<compile_context>
chip_gen: v7x
topology: tpu7x:2x2x1
jax: 0.10.0
libtpu: 0.0.40
codegen_flags: <defaults>
</compile_context>

<pallas_src>
import functools

import jax
import jax.numpy as jnp
from jax import lax
from jax.experimental import pallas as pl
from jax.experimental.pallas import tpu as pltpu


_PW = 8  # left/right halo width in W so interior stores stay sublane-aligned


# ---------------------------------------------------------------------------
# Fused kernel: one grid step = (frame f, stage s)
#   s == 0       : conv_first (3x3, Cin->C) + LeakyReLU(0.1)  -> y scratch
#   1 <= s <= nb : ResidualBlockNoBN #(s-1):  y += conv2(relu(conv1(y)))
#   s == nb      : flush y to the output block (single HBM store per frame)
# ---------------------------------------------------------------------------
def _fused_l1_kernel(x_ref, w_in_ref, b_in_ref, w1_ref, b1_ref, w2_ref, b2_ref,
                     o_ref, x_pad, y_pad, h_pad, *, H, W, Cin, C, nb):
    s = pl.program_id(1)

    def conv_narrow(src, w4, bias):
        # 3x3 conv with tiny Cin (conv_first): 9 matmuls, K = Cin.
        acc = jnp.zeros((H * W, C), jnp.float32)
        for dy in range(3):
            for dx in range(3):
                xs = src[dy:dy + H, _PW - 1 + dx:_PW - 1 + dx + W, :]
                acc = acc + jnp.dot(xs.reshape(H * W, Cin), w4[dy, dx],
                                    preferred_element_type=jnp.float32)
        return acc + bias[...]

    def conv_wide(src, w3, bias):
        # 3x3 conv with C channels: fold the dx taps into the contraction dim
        # -> 3 matmuls with K = 3*C (better MXU fill, 3x fewer pushes).
        acc = jnp.zeros((H * W, C), jnp.float32)
        for dy in range(3):
            lhs = jnp.concatenate(
                [src[dy:dy + H, _PW - 1 + dx:_PW - 1 + dx + W, :]
                 for dx in range(3)], axis=-1).reshape(H * W, 3 * C)
            acc = acc + jnp.dot(lhs, w3[dy],
                                preferred_element_type=jnp.float32)
        return acc + bias[...]

    @pl.when(s == 0)
    def _conv_first():
        # Zero the halos once per frame; interiors are always fully overwritten.
        x_pad[...] = jnp.zeros(x_pad.shape, x_pad.dtype)
        y_pad[...] = jnp.zeros(y_pad.shape, y_pad.dtype)
        h_pad[...] = jnp.zeros(h_pad.shape, h_pad.dtype)
        x_pad[1:H + 1, _PW:_PW + W, :] = x_ref[...]
        a = conv_narrow(x_pad, w_in_ref, b_in_ref)
        a = jnp.maximum(a, 0.1 * a)                       # LeakyReLU(0.1)
        y_pad[1:H + 1, _PW:_PW + W, :] = a.reshape(H, W, C)

    @pl.when(s > 0)
    def _residual_block():                                # ResidualBlockNoBN
        a = conv_wide(y_pad, w1_ref, b1_ref)
        a = jnp.maximum(a, 0.0)                           # ReLU
        h_pad[1:H + 1, _PW:_PW + W, :] = a.reshape(H, W, C)
        r = conv_wide(h_pad, w2_ref, b2_ref)
        y_pad[1:H + 1, _PW:_PW + W, :] = (
            y_pad[1:H + 1, _PW:_PW + W, :] + r.reshape(H, W, C))  # res_scale=1.0

    @pl.when(s == nb)
    def _flush():
        o_ref[...] = y_pad[1:H + 1, _PW:_PW + W, :]


def _fused_l1_extraction(x_nhwc, params):
    """x_nhwc: (F, H, W, Cin) frames -> (F, H, W, C) L1 features, f32."""
    F, H, W, Cin = x_nhwc.shape
    w_in, b_in = params["w_in"], params["b_in"]
    w1, b1, w2, b2 = params["w1"], params["b1"], params["w2"], params["b2"]
    C = w_in.shape[-1]
    nb = w1.shape[0]
    assert nb >= 1
    assert W % 8 == 0, "W must be a multiple of 8 for the sublane-aligned halo"

    # Fold the dx tap into the contraction dim of the block weights:
    # (nb, 3, 3, C, C) -> (nb, 3, 3*C, C); row index = dx*C + ci.
    w1_r = w1.reshape(nb, 3, 3 * C, C)
    w2_r = w2.reshape(nb, 3, 3 * C, C)
    b_in_r = b_in.reshape(1, C)
    b1_r = b1.reshape(nb, 1, C)
    b2_r = b2.reshape(nb, 1, C)

    def blk(s):  # stage 0 (conv_first) just re-uses block 0's weights (deduped DMA)
        return jnp.maximum(s - 1, 0)

    kernel = functools.partial(_fused_l1_kernel, H=H, W=W, Cin=Cin, C=C, nb=nb)
    return pl.pallas_call(
        kernel,
        out_shape=jax.ShapeDtypeStruct((F, H, W, C), jnp.float32),
        grid=(F, nb + 1),
        in_specs=[
            pl.BlockSpec((None, H, W, Cin), lambda f, s: (f, 0, 0, 0)),
            pl.BlockSpec((3, 3, Cin, C), lambda f, s: (0, 0, 0, 0)),
            pl.BlockSpec((1, C), lambda f, s: (0, 0)),
            pl.BlockSpec((None, 3, 3 * C, C), lambda f, s: (blk(s), 0, 0, 0)),
            pl.BlockSpec((None, 1, C), lambda f, s: (blk(s), 0, 0)),
            pl.BlockSpec((None, 3, 3 * C, C), lambda f, s: (blk(s), 0, 0, 0)),
            pl.BlockSpec((None, 1, C), lambda f, s: (blk(s), 0, 0)),
        ],
        out_specs=pl.BlockSpec((None, H, W, C), lambda f, s: (f, 0, 0, 0)),
        scratch_shapes=[
            pltpu.VMEM((H + 2, W + 2 * _PW, Cin), jnp.float32),  # haloed input frame
            pltpu.VMEM((H + 2, W + 2 * _PW, C), jnp.float32),    # resident activation y
            pltpu.VMEM((H + 2, W + 2 * _PW, C), jnp.float32),    # haloed relu(conv1(y))
        ],
        compiler_params=pltpu.CompilerParams(
            dimension_semantics=("parallel", "arbitrary"),
            vmem_limit_bytes=32 * 1024 * 1024),
    )(x_nhwc, w_in, b_in_r, w1_r, b1_r, w2_r, b2_r)


# ---------------------------------------------------------------------------
# Public forward: matches the front of EDVRFeatureExtractor.forward
#   x: (n, t, c, h, w)  ->  L1 features (n, t, mid_channels, h, w)
# ---------------------------------------------------------------------------
def edvr_feature_extractor_forward(x_ntchw, params):
    n, t, c, h, w = x_ntchw.shape
    xf = jnp.transpose(x_ntchw.reshape(n * t, c, h, w), (0, 2, 3, 1))  # NHWC frames
    feat = _fused_l1_extraction(xf, params)                            # (n*t, h, w, mid)
    feat = jnp.transpose(feat, (0, 3, 1, 2))                           # NCHW
    return feat.reshape(n, t, -1, h, w)


# ---------------------------------------------------------------------------
# Parameter init (random, deterministic)
# ---------------------------------------------------------------------------
def init_params(key, in_channels, mid_channels, num_blocks):
    ks = jax.random.split(key, 6)
    s_in = 1.0 / (3.0 * (in_channels ** 0.5))    # ~1/sqrt(fan_in)
    s_mid = 1.0 / (3.0 * (mid_channels ** 0.5))
    return {
        "w_in": s_in * jax.random.normal(
            ks[0], (3, 3, in_channels, mid_channels), jnp.float32),
        "b_in": 0.02 * jax.random.normal(ks[1], (mid_channels,), jnp.float32),
        "w1": s_mid * jax.random.normal(
            ks[2], (num_blocks, 3, 3, mid_channels, mid_channels), jnp.float32),
        "b1": 0.02 * jax.random.normal(ks[3], (num_blocks, mid_channels), jnp.float32),
        "w2": s_mid * jax.random.normal(
            ks[4], (num_blocks, 3, 3, mid_channels, mid_channels), jnp.float32),
        "b2": 0.02 * jax.random.normal(ks[5], (num_blocks, mid_channels), jnp.float32),
    }


# ---------------------------------------------------------------------------
# Pure-JAX reference (for correctness check)
# ---------------------------------------------------------------------------
def _conv3x3_ref(x_nhwc, w_hwio, b):
    y = lax.conv_general_dilated(
        x_nhwc, w_hwio, window_strides=(1, 1), padding="SAME",
        dimension_numbers=("NHWC", "HWIO", "NHWC"))
    return y + b


def reference_forward(x_ntchw, params):
    n, t, c, h, w = x_ntchw.shape
    xf = jnp.transpose(x_ntchw.reshape(n * t, c, h, w), (0, 2, 3, 1))
    y = _conv3x3_ref(xf, params["w_in"], params["b_in"])
    y = jnp.where(y >= 0.0, y, 0.1 * y)                   # LeakyReLU(0.1)
    for i in range(params["w1"].shape[0]):
        hid = jnp.maximum(_conv3x3_ref(y, params["w1"][i], params["b1"][i]), 0.0)
        y = y + _conv3x3_ref(hid, params["w2"][i], params["b2"][i])
    y = jnp.transpose(y, (0, 3, 1, 2))
    return y.reshape(n, t, -1, h, w)


if __name__ == "__main__":
    key = jax.random.PRNGKey(0)
    k_x, k_p = jax.random.split(key)

    # Small shapes consistent with the module's (n, t, 3, h, w) input.
    n, t, c, h, w = 1, 3, 3, 16, 16
    mid_channels, num_blocks = 64, 3   # module default mid=64; fewer blocks for speed

    x = jax.random.normal(k_x, (n, t, c, h, w), jnp.float32)
    params = init_params(k_p, c, mid_channels, num_blocks)

    out = jax.block_until_ready(edvr_feature_extractor_forward(x, params))
    ref = jax.block_until_ready(reference_forward(x, params))

    assert out.shape == (n, t, mid_channels, h, w)
    max_err = float(jnp.max(jnp.abs(out - ref)))
    assert jnp.allclose(out, ref, atol=5e-4, rtol=5e-4), (
        f"mismatch vs reference, max abs err {max_err}")

    print("KERNEL_OK")
</pallas_src>

<mosaic_0001>
module attributes {stable_mosaic.version = 11 : i64} {
  func.func @_fused_l1_kernel(%arg0: i32, %arg1: i32, %arg2: memref<1x16x16x3xf32, #tpu.memory_space<vmem>>, %arg3: memref<3x3x3x64xf32, #tpu.memory_space<vmem>>, %arg4: memref<1x64xf32, #tpu.memory_space<vmem>>, %arg5: memref<1x3x192x64xf32, #tpu.memory_space<vmem>>, %arg6: memref<1x1x64xf32, #tpu.memory_space<vmem>>, %arg7: memref<1x3x192x64xf32, #tpu.memory_space<vmem>>, %arg8: memref<1x1x64xf32, #tpu.memory_space<vmem>>, %arg9: memref<1x16x16x64xf32, #tpu.memory_space<vmem>>, %arg10: memref<18x32x3xf32, #tpu.memory_space<vmem>>, %arg11: memref<18x32x64xf32, #tpu.memory_space<vmem>>, %arg12: memref<18x32x64xf32, #tpu.memory_space<vmem>>) attributes {dimension_semantics = [#tpu.dimension_semantics<parallel>, #tpu.dimension_semantics<arbitrary>], iteration_bounds = array<i64: 3, 4>, scalar_prefetch = 0 : i64, scratch_operands = 3 : i64, tpu.core_type = #tpu.core_type<tc>, window_params = [{transform_indices = @transform_0, window_bounds = array<i64: 1, 16, 16, 3>}, {pipeline_mode = #tpu.pipeline_mode<synchronous>, transform_indices = @transform_1, window_bounds = array<i64: 3, 3, 3, 64>}, {pipeline_mode = #tpu.pipeline_mode<synchronous>, transform_indices = @transform_2, window_bounds = array<i64: 1, 64>}, {transform_indices = @transform_3, window_bounds = array<i64: 1, 3, 192, 64>}, {transform_indices = @transform_4, window_bounds = array<i64: 1, 1, 64>}, {transform_indices = @transform_5, window_bounds = array<i64: 1, 3, 192, 64>}, {transform_indices = @transform_6, window_bounds = array<i64: 1, 1, 64>}, {transform_indices = @transform_7, window_bounds = array<i64: 1, 16, 16, 64>}]} {
    %c0_i32 = arith.constant 0 : i32
    %0 = arith.cmpi eq, %arg1, %c0_i32 : i32
    %1 = arith.extui %0 : i1 to i32
    %c0_i32_0 = arith.constant 0 : i32
    %2 = arith.cmpi ne, %1, %c0_i32_0 : i32
    scf.if %2 {
      %cst = arith.constant 0.000000e+00 : f32
      %9 = vector.broadcast %cst : f32 to vector<18x32x3xf32>
      %c0 = arith.constant 0 : index
      %c0_4 = arith.constant 0 : index
      %c0_5 = arith.constant 0 : index
      %10 = vector.load %arg10[%c0, %c0_4, %c0_5] : memref<18x32x3xf32, #tpu.memory_space<vmem>>, vector<18x32x3xf32>
      tpu.vector_store %arg10[%c0, %c0_4, %c0_5], %9 {strides = array<i32>} : memref<18x32x3xf32, #tpu.memory_space<vmem>>, vector<18x32x3xf32>,
      %cst_6 = arith.constant 0.000000e+00 : f32
      %11 = vector.broadcast %cst_6 : f32 to vector<18x32x64xf32>
      %c0_7 = arith.constant 0 : index
      %c0_8 = arith.constant 0 : index
      %c0_9 = arith.constant 0 : index
      %12 = vector.load %arg11[%c0_7, %c0_8, %c0_9] : memref<18x32x64xf32, #tpu.memory_space<vmem>>, vector<18x32x64xf32>
      tpu.vector_store %arg11[%c0_7, %c0_8, %c0_9], %11 {strides = array<i32>} : memref<18x32x64xf32, #tpu.memory_space<vmem>>, vector<18x32x64xf32>,
      %cst_10 = arith.constant 0.000000e+00 : f32
      %13 = vector.broadcast %cst_10 : f32 to vector<18x32x64xf32>
      %c0_11 = arith.constant 0 : index
      %c0_12 = arith.constant 0 : index
      %c0_13 = arith.constant 0 : index
      %14 = vector.load %arg12[%c0_11, %c0_12, %c0_13] : memref<18x32x64xf32, #tpu.memory_space<vmem>>, vector<18x32x64xf32>
      tpu.vector_store %arg12[%c0_11, %c0_12, %c0_13], %13 {strides = array<i32>} : memref<18x32x64xf32, #tpu.memory_space<vmem>>, vector<18x32x64xf32>,
      %c0_14 = arith.constant 0 : index
      %c0_15 = arith.constant 0 : index
      %c0_16 = arith.constant 0 : index
      %c0_17 = arith.constant 0 : index
      %15 = vector.load %arg2[%c0_14, %c0_15, %c0_16, %c0_17] : memref<1x16x16x3xf32, #tpu.memory_space<vmem>>, vector<1x16x16x3xf32>
      %16 = vector.shape_cast %15 : vector<1x16x16x3xf32> to vector<16x16x3xf32>
      %c1 = arith.constant 1 : index
      %c8 = arith.constant 8 : index
      %c0_18 = arith.constant 0 : index
      %17 = vector.load %arg10[%c1, %c8, %c0_18] : memref<18x32x3xf32, #tpu.memory_space<vmem>>, vector<16x16x3xf32>
      tpu.vector_store %arg10[%c1, %c8, %c0_18], %16 {strides = array<i32>} : memref<18x32x3xf32, #tpu.memory_space<vmem>>, vector<16x16x3xf32>,
      %cst_19 = arith.constant 0.000000e+00 : f32
      %18 = vector.broadcast %cst_19 : f32 to vector<256x64xf32>
      %c0_20 = arith.constant 0 : index
      %c7 = arith.constant 7 : index
      %c0_21 = arith.constant 0 : index
      %19 = vector.load %arg10[%c0_20, %c7, %c0_21] : memref<18x32x3xf32, #tpu.memory_space<vmem>>, vector<16x16x3xf32>
      %20 = vector.shape_cast %19 : vector<16x16x3xf32> to vector<256x3xf32>
      %c0_22 = arith.constant 0 : index
      %c0_23 = arith.constant 0 : index
      %c0_24 = arith.constant 0 : index
      %c0_25 = arith.constant 0 : index
      %21 = vector.load %arg3[%c0_22, %c0_23, %c0_24, %c0_25] : memref<3x3x3x64xf32, #tpu.memory_space<vmem>>, vector<1x1x3x64xf32>
      %22 = vector.shape_cast %21 : vector<1x1x3x64xf32> to vector<3x64xf32>
      %cst_26 = arith.constant dense<0.000000e+00> : vector<256x64xf32>
      %23 = tpu.matmul %20, %22, %cst_26 {dimension_numbers = #tpu.dot_dimension_numbers<[1], [0], [0], [1], [0, 0, 1, 1], [], []>} : vector<256x3xf32>, vector<3x64xf32>, vector<256x64xf32> -> vector<256x64xf32>
      %24 = arith.addf %18, %23 : vector<256x64xf32>
      %c0_27 = arith.constant 0 : index
      %c8_28 = arith.constant 8 : index
      %c0_29 = arith.constant 0 : index
      %25 = vector.load %arg10[%c0_27, %c8_28, %c0_29] : memref<18x32x3xf32, #tpu.memory_space<vmem>>, vector<16x16x3xf32>
      %26 = vector.shape_cast %25 : vector<16x16x3xf32> to vector<256x3xf32>
      %c0_30 = arith.constant 0 : index
      %c1_31 = arith.constant 1 : index
      %c0_32 = arith.constant 0 : index
      %c0_33 = arith.constant 0 : index
      %27 = vector.load %arg3[%c0_30, %c1_31, %c0_32, %c0_33] : memref<3x3x3x64xf32, #tpu.memory_space<vmem>>, vector<1x1x3x64xf32>
      %28 = vector.shape_cast %27 : vector<1x1x3x64xf32> to vector<3x64xf32>
      %cst_34 = arith.constant dense<0.000000e+00> : vector<256x64xf32>
      %29 = tpu.matmul %26, %28, %cst_34 {dimension_numbers = #tpu.dot_dimension_numbers<[1], [0], [0], [1], [0, 0, 1, 1], [], []>} : vector<256x3xf32>, vector<3x64xf32>, vector<256x64xf32> -> vector<256x64xf32>
      %30 = arith.addf %24, %29 : vector<256x64xf32>
      %c0_35 = arith.constant 0 : index
      %c9 = arith.constant 9 : index
      %c0_36 = arith.constant 0 : index
      %31 = vector.load %arg10[%c0_35, %c9, %c0_36] : memref<18x32x3xf32, #tpu.memory_space<vmem>>, vector<16x16x3xf32>
      %32 = vector.shape_cast %31 : vector<16x16x3xf32> to vector<256x3xf32>
      %c0_37 = arith.constant 0 : index
      %c2 = arith.constant 2 : index
      %c0_38 = arith.constant 0 : index
      %c0_39 = arith.constant 0 : index
      %33 = vector.load %arg3[%c0_37, %c2, %c0_38, %c0_39] : memref<3x3x3x64xf32, #tpu.memory_space<vmem>>, vector<1x1x3x64xf32>
      %34 = vector.shape_cast %33 : vector<1x1x3x64xf32> to vector<3x64xf32>
      %cst_40 = arith.constant dense<0.000000e+00> : vector<256x64xf32>
      %35 = tpu.matmul %32, %34, %cst_40 {dimension_numbers = #tpu.dot_dimension_numbers<[1], [0], [0], [1], [0, 0, 1, 1], [], []>} : vector<256x3xf32>, vector<3x64xf32>, vector<256x64xf32> -> vector<256x64xf32>
      %36 = arith.addf %30, %35 : vector<256x64xf32>
      %c1_41 = arith.constant 1 : index
      %c7_42 = arith.constant 7 : index
      %c0_43 = arith.constant 0 : index
      %37 = vector.load %arg10[%c1_41, %c7_42, %c0_43] : memref<18x32x3xf32, #tpu.memory_space<vmem>>, vector<16x16x3xf32>
      %38 = vector.shape_cast %37 : vector<16x16x3xf32> to vector<256x3xf32>
      %c1_44 = arith.constant 1 : index
      %c0_45 = arith.constant 0 : index
      %c0_46 = arith.constant 0 : index
      %c0_47 = arith.constant 0 : index
      %39 = vector.load %arg3[%c1_44, %c0_45, %c0_46, %c0_47] : memref<3x3x3x64xf32, #tpu.memory_space<vmem>>, vector<1x1x3x64xf32>
      %40 = vector.shape_cast %39 : vector<1x1x3x64xf32> to vector<3x64xf32>
      %cst_48 = arith.constant dense<0.000000e+00> : vector<256x64xf32>
      %41 = tpu.matmul %38, %40, %cst_48 {dimension_numbers = #tpu.dot_dimension_numbers<[1], [0], [0], [1], [0, 0, 1, 1], [], []>} : vector<256x3xf32>, vector<3x64xf32>, vector<256x64xf32> -> vector<256x64xf32>
      %42 = arith.addf %36, %41 : vector<256x64xf32>
      %c1_49 = arith.constant 1 : index
      %c8_50 = arith.constant 8 : index
      %c0_51 = arith.constant 0 : index
      %43 = vector.load %arg10[%c1_49, %c8_50, %c0_51] : memref<18x32x3xf32, #tpu.memory_space<vmem>>, vector<16x16x3xf32>
      %44 = vector.shape_cast %43 : vector<16x16x3xf32> to vector<256x3xf32>
      %c1_52 = arith.constant 1 : index
      %c1_53 = arith.constant 1 : index
      %c0_54 = arith.constant 0 : index
      %c0_55 = arith.constant 0 : index
      %45 = vector.load %arg3[%c1_52, %c1_53, %c0_54, %c0_55] : memref<3x3x3x64xf32, #tpu.memory_space<vmem>>, vector<1x1x3x64xf32>
      %46 = vector.shape_cast %45 : vector<1x1x3x64xf32> to vector<3x64xf32>
      %cst_56 = arith.constant dense<0.000000e+00> : vector<256x64xf32>
      %47 = tpu.matmul %44, %46, %cst_56 {dimension_numbers = #tpu.dot_dimension_numbers<[1], [0], [0], [1], [0, 0, 1, 1], [], []>} : vector<256x3xf32>, vector<3x64xf32>, vector<256x64xf32> -> vector<256x64xf32>
      %48 = arith.addf %42, %47 : vector<256x64xf32>
      %c1_57 = arith.constant 1 : index
      %c9_58 = arith.constant 9 : index
      %c0_59 = arith.constant 0 : index
      %49 = vector.load %arg10[%c1_57, %c9_58, %c0_59] : memref<18x32x3xf32, #tpu.memory_space<vmem>>, vector<16x16x3xf32>
      %50 = vector.shape_cast %49 : vector<16x16x3xf32> to vector<256x3xf32>
      %c1_60 = arith.constant 1 : index
      %c2_61 = arith.constant 2 : index
      %c0_62 = arith.constant 0 : index
      %c0_63 = arith.constant 0 : index
      %51 = vector.load %arg3[%c1_60, %c2_61, %c0_62, %c0_63] : memref<3x3x3x64xf32, #tpu.memory_space<vmem>>, vector<1x1x3x64xf32>
      %52 = vector.shape_cast %51 : vector<1x1x3x64xf32> to vector<3x64xf32>
      %cst_64 = arith.constant dense<0.000000e+00> : vector<256x64xf32>
      %53 = tpu.matmul %50, %52, %cst_64 {dimension_numbers = #tpu.dot_dimension_numbers<[1], [0], [0], [1], [0, 0, 1, 1], [], []>} : vector<256x3xf32>, vector<3x64xf32>, vector<256x64xf32> -> vector<256x64xf32>
      %54 = arith.addf %48, %53 : vector<256x64xf32>
      %c2_65 = arith.constant 2 : index
      %c7_66 = arith.constant 7 : index
      %c0_67 = arith.constant 0 : index
      %55 = vector.load %arg10[%c2_65, %c7_66, %c0_67] : memref<18x32x3xf32, #tpu.memory_space<vmem>>, vector<16x16x3xf32>
      %56 = vector.shape_cast %55 : vector<16x16x3xf32> to vector<256x3xf32>
      %c2_68 = arith.constant 2 : index
      %c0_69 = arith.constant 0 : index
      %c0_70 = arith.constant 0 : index
      %c0_71 = arith.constant 0 : index
      %57 = vector.load %arg3[%c2_68, %c0_69, %c0_70, %c0_71] : memref<3x3x3x64xf32, #tpu.memory_space<vmem>>, vector<1x1x3x64xf32>
      %58 = vector.shape_cast %57 : vector<1x1x3x64xf32> to vector<3x64xf32>
      %cst_72 = arith.constant dense<0.000000e+00> : vector<256x64xf32>
      %59 = tpu.matmul %56, %58, %cst_72 {dimension_numbers = #tpu.dot_dimension_numbers<[1], [0], [0], [1], [0, 0, 1, 1], [], []>} : vector<256x3xf32>, vector<3x64xf32>, vector<256x64xf32> -> vector<256x64xf32>
      %60 = arith.addf %54, %59 : vector<256x64xf32>
      %c2_73 = arith.constant 2 : index
      %c8_74 = arith.constant 8 : index
      %c0_75 = arith.constant 0 : index
      %61 = vector.load %arg10[%c2_73, %c8_74, %c0_75] : memref<18x32x3xf32, #tpu.memory_space<vmem>>, vector<16x16x3xf32>
      %62 = vector.shape_cast %61 : vector<16x16x3xf32> to vector<256x3xf32>
      %c2_76 = arith.constant 2 : index
      %c1_77 = arith.constant 1 : index
      %c0_78 = arith.constant 0 : index
      %c0_79 = arith.constant 0 : index
      %63 = vector.load %arg3[%c2_76, %c1_77, %c0_78, %c0_79] : memref<3x3x3x64xf32, #tpu.memory_space<vmem>>, vector<1x1x3x64xf32>
      %64 = vector.shape_cast %63 : vector<1x1x3x64xf32> to vector<3x64xf32>
      %cst_80 = arith.constant dense<0.000000e+00> : vector<256x64xf32>
      %65 = tpu.matmul %62, %64, %cst_80 {dimension_numbers = #tpu.dot_dimension_numbers<[1], [0], [0], [1], [0, 0, 1, 1], [], []>} : vector<256x3xf32>, vector<3x64xf32>, vector<256x64xf32> -> vector<256x64xf32>
      %66 = arith.addf %60, %65 : vector<256x64xf32>
      %c2_81 = arith.constant 2 : index
      %c9_82 = arith.constant 9 : index
      %c0_83 = arith.constant 0 : index
      %67 = vector.load %arg10[%c2_81, %c9_82, %c0_83] : memref<18x32x3xf32, #tpu.memory_space<vmem>>, vector<16x16x3xf32>
      %68 = vector.shape_cast %67 : vector<16x16x3xf32> to vector<256x3xf32>
      %c2_84 = arith.constant 2 : index
      %c2_85 = arith.constant 2 : index
      %c0_86 = arith.constant 0 : index
      %c0_87 = arith.constant 0 : index
      %69 = vector.load %arg3[%c2_84, %c2_85, %c0_86, %c0_87] : memref<3x3x3x64xf32, #tpu.memory_space<vmem>>, vector<1x1x3x64xf32>
      %70 = vector.shape_cast %69 : vector<1x1x3x64xf32> to vector<3x64xf32>
      %cst_88 = arith.constant dense<0.000000e+00> : vector<256x64xf32>
      %71 = tpu.matmul %68, %70, %cst_88 {dimension_numbers = #tpu.dot_dimension_numbers<[1], [0], [0], [1], [0, 0, 1, 1], [], []>} : vector<256x3xf32>, vector<3x64xf32>, vector<256x64xf32> -> vector<256x64xf32>
      %72 = arith.addf %66, %71 : vector<256x64xf32>
      %c0_89 = arith.constant 0 : index
      %c0_90 = arith.constant 0 : index
      %73 = vector.load %arg4[%c0_89, %c0_90] : memref<1x64xf32, #tpu.memory_space<vmem>>, vector<1x64xf32>
      %74 = vector.broadcast %73 : vector<1x64xf32> to vector<256x64xf32>
      %75 = arith.addf %72, %74 : vector<256x64xf32>
      %cst_91 = arith.constant 1.000000e-01 : f32
      %76 = vector.broadcast %cst_91 : f32 to vector<256x64xf32>
      %77 = arith.mulf %76, %75 : vector<256x64xf32>
      %78 = arith.maximumf %75, %77 : vector<256x64xf32>
      %79 = vector.shape_cast %78 : vector<256x64xf32> to vector<16x16x64xf32>
      %c1_92 = arith.constant 1 : index
      %c8_93 = arith.constant 8 : index
      %c0_94 = arith.constant 0 : index
      %80 = vector.load %arg11[%c1_92, %c8_93, %c0_94] : memref<18x32x64xf32, #tpu.memory_space<vmem>>, vector<16x16x64xf32>
      tpu.vector_store %arg11[%c1_92, %c8_93, %c0_94], %79 {strides = array<i32>} : memref<18x32x64xf32, #tpu.memory_space<vmem>>, vector<16x16x64xf32>,
    } else {
    }
    %c0_i32_1 = arith.constant 0 : i32
    %3 = arith.cmpi sgt, %arg1, %c0_i32_1 : i32
    %4 = arith.extui %3 : i1 to i32
    %c0_i32_2 = arith.constant 0 : i32
    %5 = arith.cmpi ne, %4, %c0_i32_2 : i32
    scf.if %5 {
      %cst = arith.constant 0.000000e+00 : f32
      %9 = vector.broadcast %cst : f32 to vector<256x64xf32>
      %c0 = arith.constant 0 : index
      %c7 = arith.constant 7 : index
      %c0_4 = arith.constant 0 : index
      %10 = vector.load %arg11[%c0, %c7, %c0_4] : memref<18x32x64xf32, #tpu.memory_space<vmem>>, vector<16x16x64xf32>
      %c0_5 = arith.constant 0 : index
      %c8 = arith.constant 8 : index
      %c0_6 = arith.constant 0 : index
      %11 = vector.load %arg11[%c0_5, %c8, %c0_6] : memref<18x32x64xf32, #tpu.memory_space<vmem>>, vector<16x16x64xf32>
      %c0_7 = arith.constant 0 : index
      %c9 = arith.constant 9 : index
      %c0_8 = arith.constant 0 : index
      %12 = vector.load %arg11[%c0_7, %c9, %c0_8] : memref<18x32x64xf32, #tpu.memory_space<vmem>>, vector<16x16x64xf32>
      %13 = tpu.concatenate %10, %11, %12 in 2 : vector<16x16x64xf32>, vector<16x16x64xf32>, vector<16x16x64xf32> -> vector<16x16x192xf32>
      %14 = vector.shape_cast %13 : vector<16x16x192xf32> to vector<256x192xf32>
      %c0_9 = arith.constant 0 : index
      %c0_10 = arith.constant 0 : index
      %c0_11 = arith.constant 0 : index
      %c0_12 = arith.constant 0 : index
      %15 = vector.load %arg5[%c0_9, %c0_10, %c0_11, %c0_12] : memref<1x3x192x64xf32, #tpu.memory_space<vmem>>, vector<1x1x192x64xf32>
      %16 = vector.shape_cast %15 : vector<1x1x192x64xf32> to vector<192x64xf32>
      %cst_13 = arith.constant dense<0.000000e+00> : vector<256x64xf32>
      %17 = tpu.matmul %14, %16, %cst_13 {dimension_numbers = #tpu.dot_dimension_numbers<[1], [0], [0], [1], [0, 0, 1, 1], [], []>} : vector<256x192xf32>, vector<192x64xf32>, vector<256x64xf32> -> vector<256x64xf32>
      %18 = arith.addf %9, %17 : vector<256x64xf32>
      %c1 = arith.constant 1 : index
      %c7_14 = arith.constant 7 : index
      %c0_15 = arith.constant 0 : index
      %19 = vector.load %arg11[%c1, %c7_14, %c0_15] : memref<18x32x64xf32, #tpu.memory_space<vmem>>, vector<16x16x64xf32>
      %c1_16 = arith.constant 1 : index
      %c8_17 = arith.constant 8 : index
      %c0_18 = arith.constant 0 : index
      %20 = vector.load %arg11[%c1_16, %c8_17, %c0_18] : memref<18x32x64xf32, #tpu.memory_space<vmem>>, vector<16x16x64xf32>
      %c1_19 = arith.constant 1 : index
      %c9_20 = arith.constant 9 : index
      %c0_21 = arith.constant 0 : index
      %21 = vector.load %arg11[%c1_19, %c9_20, %c0_21] : memref<18x32x64xf32, #tpu.memory_space<vmem>>, vector<16x16x64xf32>
      %22 = tpu.concatenate %19, %20, %21 in 2 : vector<16x16x64xf32>, vector<16x16x64xf32>, vector<16x16x64xf32> -> vector<16x16x192xf32>
      %23 = vector.shape_cast %22 : vector<16x16x192xf32> to vector<256x192xf32>
      %c0_22 = arith.constant 0 : index
      %c1_23 = arith.constant 1 : index
      %c0_24 = arith.constant 0 : index
      %c0_25 = arith.constant 0 : index
      %24 = vector.load %arg5[%c0_22, %c1_23, %c0_24, %c0_25] : memref<1x3x192x64xf32, #tpu.memory_space<vmem>>, vector<1x1x192x64xf32>
      %25 = vector.shape_cast %24 : vector<1x1x192x64xf32> to vector<192x64xf32>
      %cst_26 = arith.constant dense<0.000000e+00> : vector<256x64xf32>
      %26 = tpu.matmul %23, %25, %cst_26 {dimension_numbers = #tpu.dot_dimension_numbers<[1], [0], [0], [1], [0, 0, 1, 1], [], []>} : vector<256x192xf32>, vector<192x64xf32>, vector<256x64xf32> -> vector<256x64xf32>
      %27 = arith.addf %18, %26 : vector<256x64xf32>
      %c2 = arith.constant 2 : index
      %c7_27 = arith.constant 7 : index
      %c0_28 = arith.constant 0 : index
      %28 = vector.load %arg11[%c2, %c7_27, %c0_28] : memref<18x32x64xf32, #tpu.memory_space<vmem>>, vector<16x16x64xf32>
      %c2_29 = arith.constant 2 : index
      %c8_30 = arith.constant 8 : index
      %c0_31 = arith.constant 0 : index
      %29 = vector.load %arg11[%c2_29, %c8_30, %c0_31] : memref<18x32x64xf32, #tpu.memory_space<vmem>>, vector<16x16x64xf32>
      %c2_32 = arith.constant 2 : index
      %c9_33 = arith.constant 9 : index
      %c0_34 = arith.constant 0 : index
      %30 = vector.load %arg11[%c2_32, %c9_33, %c0_34] : memref<18x32x64xf32, #tpu.memory_space<vmem>>, vector<16x16x64xf32>
      %31 = tpu.concatenate %28, %29, %30 in 2 : vector<16x16x64xf32>, vector<16x16x64xf32>, vector<16x16x64xf32> -> vector<16x16x192xf32>
      %32 = vector.shape_cast %31 : vector<16x16x192xf32> to vector<256x192xf32>
      %c0_35 = arith.constant 0 : index
      %c2_36 = arith.constant 2 : index
      %c0_37 = arith.constant 0 : index
      %c0_38 = arith.constant 0 : index
      %33 = vector.load %arg5[%c0_35, %c2_36, %c0_37, %c0_38] : memref<1x3x192x64xf32, #tpu.memory_space<vmem>>, vector<1x1x192x64xf32>
      %34 = vector.shape_cast %33 : vector<1x1x192x64xf32> to vector<192x64xf32>
      %cst_39 = arith.constant dense<0.000000e+00> : vector<256x64xf32>
      %35 = tpu.matmul %32, %34, %cst_39 {dimension_numbers = #tpu.dot_dimension_numbers<[1], [0], [0], [1], [0, 0, 1, 1], [], []>} : vector<256x192xf32>, vector<192x64xf32>, vector<256x64xf32> -> vector<256x64xf32>
      %36 = arith.addf %27, %35 : vector<256x64xf32>
      %c0_40 = arith.constant 0 : index
      %c0_41 = arith.constant 0 : index
      %c0_42 = arith.constant 0 : index
      %37 = vector.load %arg6[%c0_40, %c0_41, %c0_42] : memref<1x1x64xf32, #tpu.memory_space<vmem>>, vector<1x1x64xf32>
      %38 = vector.shape_cast %37 : vector<1x1x64xf32> to vector<1x64xf32>
      %39 = vector.broadcast %38 : vector<1x64xf32> to vector<256x64xf32>
      %40 = arith.addf %36, %39 : vector<256x64xf32>
      %cst_43 = arith.constant 0.000000e+00 : f32
      %41 = vector.broadcast %cst_43 : f32 to vector<256x64xf32>
      %42 = arith.maximumf %40, %41 : vector<256x64xf32>
      %43 = vector.shape_cast %42 : vector<256x64xf32> to vector<16x16x64xf32>
      %c1_44 = arith.constant 1 : index
      %c8_45 = arith.constant 8 : index
      %c0_46 = arith.constant 0 : index
      %44 = vector.load %arg12[%c1_44, %c8_45, %c0_46] : memref<18x32x64xf32, #tpu.memory_space<vmem>>, vector<16x16x64xf32>
      tpu.vector_store %arg12[%c1_44, %c8_45, %c0_46], %43 {strides = array<i32>} : memref<18x32x64xf32, #tpu.memory_space<vmem>>, vector<16x16x64xf32>,
      %cst_47 = arith.constant 0.000000e+00 : f32
      %45 = vector.broadcast %cst_47 : f32 to vector<256x64xf32>
      %c0_48 = arith.constant 0 : index
      %c7_49 = arith.constant 7 : index
      %c0_50 = arith.constant 0 : index
      %46 = vector.load %arg12[%c0_48, %c7_49, %c0_50] : memref<18x32x64xf32, #tpu.memory_space<vmem>>, vector<16x16x64xf32>
      %c0_51 = arith.constant 0 : index
      %c8_52 = arith.constant 8 : index
      %c0_53 = arith.constant 0 : index
      %47 = vector.load %arg12[%c0_51, %c8_52, %c0_53] : memref<18x32x64xf32, #tpu.memory_space<vmem>>, vector<16x16x64xf32>
      %c0_54 = arith.constant 0 : index
      %c9_55 = arith.constant 9 : index
      %c0_56 = arith.constant 0 : index
      %48 = vector.load %arg12[%c0_54, %c9_55, %c0_56] : memref<18x32x64xf32, #tpu.memory_space<vmem>>, vector<16x16x64xf32>
      %49 = tpu.concatenate %46, %47, %48 in 2 : vector<16x16x64xf32>, vector<16x16x64xf32>, vector<16x16x64xf32> -> vector<16x16x192xf32>
      %50 = vector.shape_cast %49 : vector<16x16x192xf32> to vector<256x192xf32>
      %c0_57 = arith.constant 0 : index
      %c0_58 = arith.constant 0 : index
      %c0_59 = arith.constant 0 : index
      %c0_60 = arith.constant 0 : index
      %51 = vector.load %arg7[%c0_57, %c0_58, %c0_59, %c0_60] : memref<1x3x192x64xf32, #tpu.memory_space<vmem>>, vector<1x1x192x64xf32>
      %52 = vector.shape_cast %51 : vector<1x1x192x64xf32> to vector<192x64xf32>
      %cst_61 = arith.constant dense<0.000000e+00> : vector<256x64xf32>
      %53 = tpu.matmul %50, %52, %cst_61 {dimension_numbers = #tpu.dot_dimension_numbers<[1], [0], [0], [1], [0, 0, 1, 1], [], []>} : vector<256x192xf32>, vector<192x64xf32>, vector<256x64xf32> -> vector<256x64xf32>
      %54 = arith.addf %45, %53 : vector<256x64xf32>
      %c1_62 = arith.constant 1 : index
      %c7_63 = arith.constant 7 : index
      %c0_64 = arith.constant 0 : index
      %55 = vector.load %arg12[%c1_62, %c7_63, %c0_64] : memref<18x32x64xf32, #tpu.memory_space<vmem>>, vector<16x16x64xf32>
      %c1_65 = arith.constant 1 : index
      %c8_66 = arith.constant 8 : index
      %c0_67 = arith.constant 0 : index
      %56 = vector.load %arg12[%c1_65, %c8_66, %c0_67] : memref<18x32x64xf32, #tpu.memory_space<vmem>>, vector<16x16x64xf32>
      %c1_68 = arith.constant 1 : index
      %c9_69 = arith.constant 9 : index
      %c0_70 = arith.constant 0 : index
      %57 = vector.load %arg12[%c1_68, %c9_69, %c0_70] : memref<18x32x64xf32, #tpu.memory_space<vmem>>, vector<16x16x64xf32>
      %58 = tpu.concatenate %55, %56, %57 in 2 : vector<16x16x64xf32>, vector<16x16x64xf32>, vector<16x16x64xf32> -> vector<16x16x192xf32>
      %59 = vector.shape_cast %58 : vector<16x16x192xf32> to vector<256x192xf32>
      %c0_71 = arith.constant 0 : index
      %c1_72 = arith.constant 1 : index
      %c0_73 = arith.constant 0 : index
      %c0_74 = arith.constant 0 : index
      %60 = vector.load %arg7[%c0_71, %c1_72, %c0_73, %c0_74] : memref<1x3x192x64xf32, #tpu.memory_space<vmem>>, vector<1x1x192x64xf32>
      %61 = vector.shape_cast %60 : vector<1x1x192x64xf32> to vector<192x64xf32>
      %cst_75 = arith.constant dense<0.000000e+00> : vector<256x64xf32>
      %62 = tpu.matmul %59, %61, %cst_75 {dimension_numbers = #tpu.dot_dimension_numbers<[1], [0], [0], [1], [0, 0, 1, 1], [], []>} : vector<256x192xf32>, vector<192x64xf32>, vector<256x64xf32> -> vector<256x64xf32>
      %63 = arith.addf %54, %62 : vector<256x64xf32>
      %c2_76 = arith.constant 2 : index
      %c7_77 = arith.constant 7 : index
      %c0_78 = arith.constant 0 : index
      %64 = vector.load %arg12[%c2_76, %c7_77, %c0_78] : memref<18x32x64xf32, #tpu.memory_space<vmem>>, vector<16x16x64xf32>
      %c2_79 = arith.constant 2 : index
      %c8_80 = arith.constant 8 : index
      %c0_81 = arith.constant 0 : index
      %65 = vector.load %arg12[%c2_79, %c8_80, %c0_81] : memref<18x32x64xf32, #tpu.memory_space<vmem>>, vector<16x16x64xf32>
      %c2_82 = arith.constant 2 : index
      %c9_83 = arith.constant 9 : index
      %c0_84 = arith.constant 0 : index
      %66 = vector.load %arg12[%c2_82, %c9_83, %c0_84] : memref<18x32x64xf32, #tpu.memory_space<vmem>>, vector<16x16x64xf32>
      %67 = tpu.concatenate %64, %65, %66 in 2 : vector<16x16x64xf32>, vector<16x16x64xf32>, vector<16x16x64xf32> -> vector<16x16x192xf32>
      %68 = vector.shape_cast %67 : vector<16x16x192xf32> to vector<256x192xf32>
      %c0_85 = arith.constant 0 : index
      %c2_86 = arith.constant 2 : index
      %c0_87 = arith.constant 0 : index
      %c0_88 = arith.constant 0 : index
      %69 = vector.load %arg7[%c0_85, %c2_86, %c0_87, %c0_88] : memref<1x3x192x64xf32, #tpu.memory_space<vmem>>, vector<1x1x192x64xf32>
      %70 = vector.shape_cast %69 : vector<1x1x192x64xf32> to vector<192x64xf32>
      %cst_89 = arith.constant dense<0.000000e+00> : vector<256x64xf32>
      %71 = tpu.matmul %68, %70, %cst_89 {dimension_numbers = #tpu.dot_dimension_numbers<[1], [0], [0], [1], [0, 0, 1, 1], [], []>} : vector<256x192xf32>, vector<192x64xf32>, vector<256x64xf32> -> vector<256x64xf32>
      %72 = arith.addf %63, %71 : vector<256x64xf32>
      %c0_90 = arith.constant 0 : index
      %c0_91 = arith.constant 0 : index
      %c0_92 = arith.constant 0 : index
      %73 = vector.load %arg8[%c0_90, %c0_91, %c0_92] : memref<1x1x64xf32, #tpu.memory_space<vmem>>, vector<1x1x64xf32>
      %74 = vector.shape_cast %73 : vector<1x1x64xf32> to vector<1x64xf32>
      %75 = vector.broadcast %74 : vector<1x64xf32> to vector<256x64xf32>
      %76 = arith.addf %72, %75 : vector<256x64xf32>
      %c1_93 = arith.constant 1 : index
      %c8_94 = arith.constant 8 : index
      %c0_95 = arith.constant 0 : index
      %77 = vector.load %arg11[%c1_93, %c8_94, %c0_95] : memref<18x32x64xf32, #tpu.memory_space<vmem>>, vector<16x16x64xf32>
      %78 = vector.shape_cast %76 : vector<256x64xf32> to vector<16x16x64xf32>
      %79 = arith.addf %77, %78 : vector<16x16x64xf32>
      %c1_96 = arith.constant 1 : index
      %c8_97 = arith.constant 8 : index
      %c0_98 = arith.constant 0 : index
      %80 = vector.load %arg11[%c1_96, %c8_97, %c0_98] : memref<18x32x64xf32, #tpu.memory_space<vmem>>, vector<16x16x64xf32>
      tpu.vector_store %arg11[%c1_96, %c8_97, %c0_98], %79 {strides = array<i32>} : memref<18x32x64xf32, #tpu.memory_space<vmem>>, vector<16x16x64xf32>,
    } else {
    }
    %c3_i32 = arith.constant 3 : i32
    %6 = arith.cmpi eq, %arg1, %c3_i32 : i32
    %7 = arith.extui %6 : i1 to i32
    %c0_i32_3 = arith.constant 0 : i32
    %8 = arith.cmpi ne, %7, %c0_i32_3 : i32
    scf.if %8 {
      %c1 = arith.constant 1 : index
      %c8 = arith.constant 8 : index
      %c0 = arith.constant 0 : index
      %9 = vector.load %arg11[%c1, %c8, %c0] : memref<18x32x64xf32, #tpu.memory_space<vmem>>, vector<16x16x64xf32>
      %c0_4 = arith.constant 0 : index
      %c0_5 = arith.constant 0 : index
      %c0_6 = arith.constant 0 : index
      %c0_7 = arith.constant 0 : index
      %10 = vector.load %arg9[%c0_4, %c0_5, %c0_6, %c0_7] : memref<1x16x16x64xf32, #tpu.memory_space<vmem>>, vector<1x16x16x64xf32>
      %11 = vector.shape_cast %10 : vector<1x16x16x64xf32> to vector<16x16x64xf32>
      %12 = vector.shape_cast %9 : vector<16x16x64xf32> to vector<1x16x16x64xf32>
      tpu.vector_store %arg9[%c0_4, %c0_5, %c0_6, %c0_7], %12 {strides = array<i32>} : memref<1x16x16x64xf32, #tpu.memory_space<vmem>>, vector<1x16x16x64xf32>,
    } else {
    }
    return
  }
  func.func @transform_0(%arg0: i32, %arg1: i32) -> (i32, i32, i32, i32) {
    %c0_i32 = arith.constant 0 : i32
    %c0_i32_0 = arith.constant 0 : i32
    %c0_i32_1 = arith.constant 0 : i32
    %c0_i32_2 = arith.constant 0 : i32
    return %arg0, %c0_i32, %c0_i32_0, %c0_i32_1 : i32, i32, i32, i32
  }
  func.func @transform_1(%arg0: i32, %arg1: i32) -> (i32, i32, i32, i32) {
    %c0_i32 = arith.constant 0 : i32
    %c0_i32_0 = arith.constant 0 : i32
    %c0_i32_1 = arith.constant 0 : i32
    %c0_i32_2 = arith.constant 0 : i32
    %c0_i32_3 = arith.constant 0 : i32
    return %c0_i32, %c0_i32_0, %c0_i32_1, %c0_i32_2 : i32, i32, i32, i32
  }
  func.func @transform_2(%arg0: i32, %arg1: i32) -> (i32, i32) {
    %c0_i32 = arith.constant 0 : i32
    %c0_i32_0 = arith.constant 0 : i32
    %c0_i32_1 = arith.constant 0 : i32
    return %c0_i32, %c0_i32_0 : i32, i32
  }
  func.func @transform_3(%arg0: i32, %arg1: i32) -> (i32, i32, i32, i32) {
    %c1_i32 = arith.constant 1 : i32
    %0 = arith.subi %arg1, %c1_i32 : i32
    %c0_i32 = arith.constant 0 : i32
    %1 = arith.maxsi %0, %c0_i32 : i32
    %c0_i32_0 = arith.constant 0 : i32
    %c0_i32_1 = arith.constant 0 : i32
    %c0_i32_2 = arith.constant 0 : i32
    %c0_i32_3 = arith.constant 0 : i32
    return %1, %c0_i32_0, %c0_i32_1, %c0_i32_2 : i32, i32, i32, i32
  }
  func.func @transform_4(%arg0: i32, %arg1: i32) -> (i32, i32, i32) {
    %c1_i32 = arith.constant 1 : i32
    %0 = arith.subi %arg1, %c1_i32 : i32
    %c0_i32 = arith.constant 0 : i32
    %1 = arith.maxsi %0, %c0_i32 : i32
    %c0_i32_0 = arith.constant 0 : i32
    %c0_i32_1 = arith.constant 0 : i32
    %c0_i32_2 = arith.constant 0 : i32
    return %1, %c0_i32_0, %c0_i32_1 : i32, i32, i32
  }
  func.func @transform_5(%arg0: i32, %arg1: i32) -> (i32, i32, i32, i32) {
    %c1_i32 = arith.constant 1 : i32
    %0 = arith.subi %arg1, %c1_i32 : i32
    %c0_i32 = arith.constant 0 : i32
    %1 = arith.maxsi %0, %c0_i32 : i32
    %c0_i32_0 = arith.constant 0 : i32
    %c0_i32_1 = arith.constant 0 : i32
    %c0_i32_2 = arith.constant 0 : i32
    %c0_i32_3 = arith.constant 0 : i32
    return %1, %c0_i32_0, %c0_i32_1, %c0_i32_2 : i32, i32, i32, i32
  }
  func.func @transform_6(%arg0: i32, %arg1: i32) -> (i32, i32, i32) {
    %c1_i32 = arith.constant 1 : i32
    %0 = arith.subi %arg1, %c1_i32 : i32
    %c0_i32 = arith.constant 0 : i32
    %1 = arith.maxsi %0, %c0_i32 : i32
    %c0_i32_0 = arith.constant 0 : i32
    %c0_i32_1 = arith.constant 0 : i32
    %c0_i32_2 = arith.constant 0 : i32
    return %1, %c0_i32_0, %c0_i32_1 : i32, i32, i32
  }
  func.func @transform_7(%arg0: i32, %arg1: i32) -> (i32, i32, i32, i32) {
    %c0_i32 = arith.constant 0 : i32
    %c0_i32_0 = arith.constant 0 : i32
    %c0_i32_1 = arith.constant 0 : i32
    %c0_i32_2 = arith.constant 0 : i32
    return %arg0, %c0_i32, %c0_i32_0, %c0_i32_1 : i32, i32, i32, i32
  }
}

</mosaic_0001>

<bundles_post_ra>
// kernel: tpu_custom_call.1
= control target key start
LH: loop header
LB: loop body
LE: loop exit
PB: predicated region body
PF: predicated region fallthrough
CT: control target
= control target key end

     0   :  { %s14439_s0 = inlined_call_operand.vmem [shape: f32[3,16,16,3], index: 0, kind: input, shape index: {}]   ;;  %s14440_s1 = inlined_call_operand.vmem [shape: f32[3,3,3,64], index: 1, kind: input, shape index: {}]   ;;  %s14441_s2 = inlined_call_operand.vmem [shape: f32[1,64], index: 2, kind: input, shape index: {}]   ;;  %s14442_s3 = inlined_call_operand.vmem [shape: f32[3,3,192,64], index: 3, kind: input, shape index: {}]   ;;  %s14443_s4 = inlined_call_operand.vmem [shape: f32[3,1,64], index: 4, kind: input, shape index: {}]   ;;  %s14444_s5 = inlined_call_operand.vmem [shape: f32[3,3,192,64], index: 5, kind: input, shape index: {}]   ;;  %s14445_s6 = inlined_call_operand.vmem [shape: f32[3,1,64], index: 6, kind: input, shape index: {}]   ;;  %s14446_s7 = inlined_call_operand.hbm [shape: f32[3,16,16,64], index: 7, kind: output, shape index: {}]  }
   0x1   :  { %14551 = sst [smem:[#allocation59_spill]] %s14439_s0 }
   0x2   :  { %12 = vsyncpa [#allocation6], 0 }
   0x3   :  { %14 = vsyncpa [#allocation6 + $0x1], 0  ;;  %s10527_s24 = smov 0   ;;  %s10529_s25 = smov 0  }
   0x4   :  { %s10531_s26 = smov 0   ;;  %s10533_s27 = smov 0  }
   0x5   :  { %s10535_s28 = smov 0   ;;  %s10537_s29 = smov 0  }
   0x6   :  { %s10539_s30 = smov 0   ;;  %s10541_s8 = smov 0  }
   0x7 LB: > { %14552 = sst [smem:[#allocation8_spill]] %s10459_s26  ;;  %s8431_s9 = sadd.s32 4294967295, %s10479_s8   ;;  %s10479_s8 = sphi %s10541_s8, %s20_s8   ;;  %s10475_s30 = sphi %s10539_s30, %s14687_s30   ;;  %s10471_s29 = sphi %s10537_s29, %s14686_s29   ;;  %s10467_s28 = sphi %s10535_s28, %s14685_s28   ;;  %s10463_s27 = sphi %s10533_s27, %s14684_s27   ;;  %s10459_s26 = sphi %s10531_s26, %s14683_s26   ;;  %s10455_s25 = sphi %s10529_s25, %s14689_s25   ;;  %s10451_s24 = sphi %s10527_s24, %s14688_s24  }
   0x8   : > { %14553 = sst [smem:[#allocation9_spill]] %s10471_s29  ;;  %s8432_s10 = sadd.s32 4294967294, %s10479_s8  }
   0x9   : > { %14554 = sst [smem:[#allocation10_spill]] %s10475_s30  ;;  %s29_s11 = sadd.s32 1, %s10471_s29 }
   0xa   : > { %p30_p0 = scmp.ge.s32.totalorder %s29_s11, 4  ;;  %s32_s12 = sadd.s32 1, %s10475_s30 }
   0xb   : > { %p245_p1 = scmp.ne.s32.totalorder %s10459_s26, %s10455_s25  ;;  %p246_p2 = scmp.eq.s32.totalorder %s8431_s9, 11 }
   0xc   : > { %s14691_s11 = smov (%p30_p0, %s29_s11), 0  ;;  %s14693_s12 = smov (!%p30_p0, %s32_s12), %s10475_s30 }
   0xd   : > { %14555 = sst [smem:[#allocation11_spill]] %s14691_s11  ;;  %p10576_p3 = por %p246_p2, %p245_p1 }
   0xe   : > { %p251_p4 = scmp.ne.s32.totalorder %s10455_s25, %s10451_s24  ;;  %p34_p5 = scmp.ge.s32.totalorder %s14693_s12, 3 }
   0xf   : > { %p252_p6 = scmp.eq.s32.totalorder %s8432_s10, 11  ;;  %p8443_p7 = scmp.ge.s32.totalorder %s10479_s8, 1 }
  0x10   : > { %p336_p8 = scmp.lt.s32.totalorder %s10479_s8, 13  ;;  %s14695_s12 = smov (%p34_p5, %s14693_s12), 0 }
  0x11   : > { %14557 = sst [smem:[#allocation12_spill]] %s14695_s12  ;;  %p10586_p9 = por %p252_p6, %p251_p4 }
  0x12   : > { %p337_p10 = pnand %p8443_p7, %p336_p8  ;;  %s232_s15 = ssub.s32 %s10475_s30, %s14695_s12 }
  0x13   : > { %s235_s16 = sadd.s32 1, %s10459_s26  ;;  %p233_p11 = scmp.eq.s32.totalorder %s232_s15, 0 }
  0x14   : > { %340 = sbr.rel (%p337_p10) target bundleno = 1701 (0x6a5), region = 48  ;;  %s14448_s18 = sand.u32 (!%p337_p10), 1, %s10455_s25  }
  0x15   : > { %s10594_s17 = scalar_select %p233_p11, %s10459_s26, %s235_s16  }
  0x16   : > { %p396_p12 = scmp.lt.s32.totalorder (!%p337_p10), %s10467_s28, 2  ;;  %s8444_s19 = sshll.u32 (!%p337_p10), %s14448_s18, 8 }
  0x17   : > { %14559 = sst [smem:[#allocation13_spill]] %s10594_s17  ;;  %s8447_s20 = sadd.s32 (!%p337_p10), 4294967295, %s10463_s27 }
  0x18   : > { %p402_p13 = scmp.gt.s32.totalorder (!%p337_p10), %s8447_s20, 0  ;;  %p8448_p0 = scmp.lt.s32.totalorder (!%p337_p10), %s8447_s20, 2 }
  0x19   : > { %s14560_s0 = sld [smem:[#allocation59_spill]] (!%p337_p10)  ;;  %s10628_s26 = scalar_lea.vmem (!%p337_p10), [#allocation5], %s8444_s19 }
  0x1a   : > { %p8473_p1 = scmp.ne.s32.totalorder (!%p337_p10), %s10463_s27, 0 }
  0x1b   : > { %s397_s21 = scalar_select %p396_p12, %s10467_s28, 2 }
  0x1c   : > { %s403_s22 = scalar_select %p402_p13, %s8447_s20, 0 }
  0x1d   : > { %s9077_s23 = sshll.u32 %s397_s21, 8  ;;  %444 = sbr.rel (%p8473_p1) target bundleno = 589 (0x24d), region = 52 }
  0x1e   : > { %s14697_s22 = smov (!%p8448_p0, %s403_s22), 2 }
  0x1f   : > { %s10605_s15 = scalar_lea.vmem %s14560_s0, %s9077_s23  ;;  %s10308_s16 = smul.u32 576, %s14697_s22 }
  0x20   : > { %s417_s18 = scalar_lea.vmem %s14443_s4, %s14697_s22  ;;  %s437_s21 = scalar_lea.vmem %s14445_s6, %s14697_s22 }
  0x21   : > { %s10621_s9 = scalar_lea.vmem %s14442_s3, %s10308_s16  ;;  %s10626_s0 = scalar_lea.vmem %s14444_s5, %s10308_s16 }
  0x24   : > { %v8474_v0 = vld [vmem:[%s14440_s1 + $0x4] sm:$0x7]  ;;  %vm891_vm0 = vcmask 1042432   ;;  %v10637_v1 = vld [vmem:[%s14440_s1 + $0x10] sm:$0x7]  ;;  %vm445_vm1 = vcmask 23552  }
  0x25   : > { %9384 = vmatprep.subr.msk.mxu1 %vm891_vm0, %v8474_v0  ;;  %9584 = vmatprep.subr.msk.mxu0 %vm891_vm0, %v10637_v1  ;;  %v10645_v2 = vld [vmem:[%s14440_s1] sm:$0x7]  ;;  %v10653_v4 = vld [vmem:[%s14440_s1 + $0x14] sm:$0x7]  ;;  %v14452_v5 = vmov 0.0   ;;  %v664_v6 = vld [vmem:[%s10605_s15 + $0x8] sm:$0xff] }
  0x26   : > { %v10648_v3 = vld [vmem:[%s10605_s15] sm:$0xff]  ;;  %9385 = vmatpush3.msk.msra.mxu1 %vm891_vm0, %v8474_v0  ;;  %447 = vst.msk [vmem:[#allocation2 + $0x8] sm:$0xff] %vm445_vm1, %v14452_v5  ;;  %446 = vst.msk [vmem:[#allocation2] sm:$0xff] %vm445_vm1, %v14452_v5  ;;  %9585 = vmatpush3.msk.msra.mxu0 %vm891_vm0, %v10637_v1  ;;  %v665_v7 = vld [vmem:[%s10605_s15 + $0x10] sm:$0xff]  ;;  %vm518_vm2 = vcmask 523264  }
  0x27   : > { %448 = vst.msk [vmem:[#allocation2 + $0x10] sm:$0xff] %vm445_vm1, %v14452_v5  ;;  %449 = vst.msk [vmem:[#allocation2 + $0x18] sm:$0xff] %vm445_vm1, %v14452_v5  ;;  %v666_v8 = vld [vmem:[%s10605_s15 + $0x18] sm:$0xff]  ;;  %9434 = vmatprep.subr.msk.mxu1 %vm891_vm0, %v10645_v2  ;;  %9634 = vmatprep.subr.msk.mxu0 %vm891_vm0, %v10653_v4  ;;  %v667_v9 = vld [vmem:[%s10605_s15 + $0x20] sm:$0xff] }
  0x28   : > { %450 = vst.msk [vmem:[#allocation2 + $0x20] sm:$0xff] %vm445_vm1, %v14452_v5  ;;  %451 = vst.msk [vmem:[#allocation2 + $0x28] sm:$0xff] %vm445_vm1, %v14452_v5  ;;  %v668_v10 = vld [vmem:[%s10605_s15 + $0x28] sm:$0xff]  ;;  %v669_v11 = vld [vmem:[%s10605_s15 + $0x30] sm:$0xff] }
  0x29   : > { %452 = vst.msk [vmem:[#allocation2 + $0x30] sm:$0xff] %vm445_vm1, %v14452_v5  ;;  %453 = vst.msk [vmem:[#allocation2 + $0x38] sm:$0xff] %vm445_vm1, %v14452_v5  ;;  %v670_v12 = vld [vmem:[%s10605_s15 + $0x38] sm:$0xff]  ;;  %v671_v13 = vld [vmem:[%s10605_s15 + $0x40] sm:$0xff] }
  0x2a   : > { %454 = vst.msk [vmem:[#allocation2 + $0x40] sm:$0xff] %vm445_vm1, %v14452_v5  ;;  %455 = vst.msk [vmem:[#allocation2 + $0x48] sm:$0xff] %vm445_vm1, %v14452_v5  ;;  %v672_v14 = vld [vmem:[%s10605_s15 + $0x48] sm:$0xff]  ;;  %v673_v15 = vld [vmem:[%s10605_s15 + $0x50] sm:$0xff] }
  0x2b   : > { %456 = vst.msk [vmem:[#allocation2 + $0x50] sm:$0xff] %vm445_vm1, %v14452_v5  ;;  %457 = vst.msk [vmem:[#allocation2 + $0x58] sm:$0xff] %vm445_vm1, %v14452_v5  ;;  %v674_v16 = vld [vmem:[%s10605_s15 + $0x58] sm:$0xff]  ;;  %v675_v17 = vld [vmem:[%s10605_s15 + $0x60] sm:$0xff] }
  0x2c   : > { %458 = vst.msk [vmem:[#allocation2 + $0x60] sm:$0xff] %vm445_vm1, %v14452_v5  ;;  %459 = vst.msk [vmem:[#allocation2 + $0x68] sm:$0xff] %vm445_vm1, %v14452_v5  ;;  %v676_v18 = vld [vmem:[%s10605_s15 + $0x68] sm:$0xff]  ;;  %v677_v19 = vld [vmem:[%s10605_s15 + $0x70] sm:$0xff] }
  0x2d   : > { %460 = vst.msk [vmem:[#allocation2 + $0x70] sm:$0xff] %vm445_vm1, %v14452_v5  ;;  %461 = vst.msk [vmem:[#allocation2 + $0x78] sm:$0xff] %vm445_vm1, %v14452_v5  ;;  %v678_v20 = vld [vmem:[%s10605_s15 + $0x78] sm:$0xff]  ;;  %v679_v21 = vld [vmem:[%s10605_s15 + $0x80] sm:$0xff] }
  0x2e   : > { %462 = vst.msk [vmem:[#allocation2 + $0x80] sm:$0xff] %vm445_vm1, %v14452_v5  ;;  %463 = vst.msk [vmem:[#allocation2 + $0x88] sm:$0xff] %vm445_vm1, %v14452_v5  ;;  %v680_v22 = vld [vmem:[%s10605_s15 + $0x88] sm:$0xff]  ;;  %v681_v23 = vld [vmem:[%s10605_s15 + $0x90] sm:$0xff] }
  0x2f   : > { %464 = vst.msk [vmem:[#allocation2 + $0x90] sm:$0xff] %vm445_vm1, %v14452_v5  ;;  %465 = vst.msk [vmem:[#allocation2 + $0x98] sm:$0xff] %vm445_vm1, %v14452_v5  ;;  %v682_v24 = vld [vmem:[%s10605_s15 + $0x98] sm:$0xff]  ;;  %v683_v25 = vld [vmem:[%s10605_s15 + $0xa0] sm:$0xff] }
  0x30   : > { %466 = vst.msk [vmem:[#allocation2 + $0xa0] sm:$0xff] %vm445_vm1, %v14452_v5  ;;  %467 = vst.msk [vmem:[#allocation2 + $0xa8] sm:$0xff] %vm445_vm1, %v14452_v5  ;;  %v761_v26 = vld [vmem:[#allocation2 + $0x8] sm:$0xff]  ;;  %v762_v27 = vld [vmem:[#allocation2 + $0x10] sm:$0xff] }
  0x31   : > { %468 = vst.msk [vmem:[#allocation2 + $0xb0] sm:$0xff] %vm445_vm1, %v14452_v5  ;;  %469 = vst.msk [vmem:[#allocation2 + $0xb8] sm:$0xff] %vm445_vm1, %v14452_v5  ;;  %v684_v28 = vld [vmem:[%s10605_s15 + $0xa8] sm:$0xff]  ;;  %9386 = vmatprep.mubr.msk.f32.mxu1 %vm445_vm1, %v761_v26  ;;  %v10858_v32 = vld [vmem:[%s14440_s1 + $0x18] sm:$0x7] }
  0x32   : > { %470 = vst.msk [vmem:[#allocation2 + $0xc0] sm:$0xff] %vm445_vm1, %v14452_v5  ;;  %471 = vst.msk [vmem:[#allocation2 + $0xc8] sm:$0xff] %vm445_vm1, %v14452_v5  ;;  %9387 = vmatmul.mubr.msk.f32.vlgmr.msra.gmra.mrb[0].mxu1 %vm445_vm1, %v762_v27  ;;  %v685_v37 = vld [vmem:[%s10605_s15 + $0xb0] sm:$0xff]  ;;  %v686_v38 = vld [vmem:[%s10605_s15 + $0xb8] sm:$0xff] }
  0x33   : > { %472 = vst.msk [vmem:[#allocation2 + $0xd0] sm:$0xff] %vm445_vm1, %v14452_v5  ;;  %473 = vst.msk [vmem:[#allocation2 + $0xd8] sm:$0xff] %vm445_vm1, %v14452_v5  ;;  %9435 = vmatpush3.msk.msra.mxu1 %vm891_vm0, %v10645_v2  ;;  %v687_v40 = vld [vmem:[%s10605_s15 + $0xc0] sm:$0xff]  ;;  %v688_v41 = vld [vmem:[%s10605_s15 + $0xc8] sm:$0xff] }
  0x34   : > { %474 = vst.msk [vmem:[#allocation2 + $0xe0] sm:$0xff] %vm445_vm1, %v14452_v5  ;;  %475 = vst.msk [vmem:[#allocation2 + $0xe8] sm:$0xff] %vm445_vm1, %v14452_v5  ;;  %v689_v43 = vld [vmem:[%s10605_s15 + $0xd0] sm:$0xff]  ;;  %v690_v44 = vld [vmem:[%s10605_s15 + $0xd8] sm:$0xff] }
  0x35   : > { %476 = vst.msk [vmem:[#allocation2 + $0xf0] sm:$0xff] %vm445_vm1, %v14452_v5  ;;  %477 = vst.msk [vmem:[#allocation2 + $0xf8] sm:$0xff] %vm445_vm1, %v14452_v5  ;;  %v691_v45 = vld [vmem:[%s10605_s15 + $0xe0] sm:$0xff]  ;;  %v692_v46 = vld [vmem:[%s10605_s15 + $0xe8] sm:$0xff] }
  0x36   : > { %478 = vst.msk [vmem:[#allocation2 + $0x100] sm:$0xff] %vm445_vm1, %v14452_v5  ;;  %479 = vst.msk [vmem:[#allocation2 + $0x108] sm:$0xff] %vm445_vm1, %v14452_v5  ;;  %v10928_v49 = vld [vmem:[%s14440_s1 + $0x8] sm:$0x7]  ;;  %v693_v56 = vld [vmem:[%s10605_s15 + $0xf0] sm:$0xff] }
  0x37   : > { %480 = vst.msk [vmem:[#allocation2 + $0x110] sm:$0xff] %vm445_vm1, %v14452_v5  ;;  %481 = vst.msk [vmem:[#allocation2 + $0x118] sm:$0xff] %vm445_vm1, %v14452_v5  ;;  %9484 = vmatprep.subr.msk.mxu1 %vm891_vm0, %v10928_v49  ;;  %v694_v57 = vld [vmem:[%s10605_s15 + $0xf8] sm:$0xff]  ;;  %v728_v26 = vld [vmem:[#allocation2 + $0x7] sm:$0xff] }
  0x38   : > { %482 = vst.msk [vmem:[#allocation2 + $0x120] sm:$0xff] %vm445_vm1, %v14452_v5  ;;  %483 = vst.msk [vmem:[#allocation2 + $0x128] sm:$0xff] %vm445_vm1, %v14452_v5  ;;  %v10991_v61 = vld [vmem:[%s14440_s1 + $0x1c] sm:$0x7] }
  0x39   : > { %484 = vst.msk [vmem:[#allocation2 + $0x130] sm:$0xff] %vm445_vm1, %v14452_v5  ;;  %485 = vst.msk [vmem:[#allocation2 + $0x138] sm:$0xff] %vm445_vm1, %v14452_v5 }
  0x3a   : > { %486 = vst.msk [vmem:[#allocation2 + $0x140] sm:$0xff] %vm445_vm1, %v14452_v5  ;;  %487 = vst.msk [vmem:[#allocation2 + $0x148] sm:$0xff] %vm445_vm1, %v14452_v5 }
  0x3b   : > { %488 = vst.msk [vmem:[#allocation2 + $0x150] sm:$0xff] %vm445_vm1, %v14452_v5  ;;  %489 = vst.msk [vmem:[#allocation2 + $0x158] sm:$0xff] %vm445_vm1, %v14452_v5 }
  0x3c   : > { %490 = vst.msk [vmem:[#allocation2 + $0x160] sm:$0xff] %vm445_vm1, %v14452_v5  ;;  %491 = vst.msk [vmem:[#allocation2 + $0x168] sm:$0xff] %vm445_vm1, %v14452_v5 }
  0x3d   : > { %492 = vst.msk [vmem:[#allocation2 + $0x170] sm:$0xff] %vm445_vm1, %v14452_v5  ;;  %493 = vst.msk [vmem:[#allocation2 + $0x178] sm:$0xff] %vm445_vm1, %v14452_v5 }
  0x3e   : > { %494 = vst.msk [vmem:[#allocation2 + $0x180] sm:$0xff] %vm445_vm1, %v14452_v5  ;;  %495 = vst.msk [vmem:[#allocation2 + $0x188] sm:$0xff] %vm445_vm1, %v14452_v5 }
  0x3f   : > { %496 = vst.msk [vmem:[#allocation2 + $0x190] sm:$0xff] %vm445_vm1, %v14452_v5  ;;  %497 = vst.msk [vmem:[#allocation2 + $0x198] sm:$0xff] %vm445_vm1, %v14452_v5 }
  0x40   : > { %498 = vst.msk [vmem:[#allocation2 + $0x1a0] sm:$0xff] %vm445_vm1, %v14452_v5  ;;  %499 = vst.msk [vmem:[#allocation2 + $0x1a8] sm:$0xff] %vm445_vm1, %v14452_v5 }
  0x41   : > { %500 = vst.msk [vmem:[#allocation2 + $0x1b0] sm:$0xff] %vm445_vm1, %v14452_v5  ;;  %501 = vst.msk [vmem:[#allocation2 + $0x1b8] sm:$0xff] %vm445_vm1, %v14452_v5 }
  0x42   : > { %502 = vst.msk [vmem:[#allocation2 + $0x1c0] sm:$0xff] %vm445_vm1, %v14452_v5  ;;  %503 = vst.msk [vmem:[#allocation2 + $0x1c8] sm:$0xff] %vm445_vm1, %v14452_v5 }
  0x43   : > { %504 = vst.msk [vmem:[#allocation2 + $0x1d0] sm:$0xff] %vm445_vm1, %v14452_v5  ;;  %505 = vst.msk [vmem:[#allocation2 + $0x1d8] sm:$0xff] %vm445_vm1, %v14452_v5 }
  0x44   : > { %506 = vst.msk [vmem:[#allocation2 + $0x1e0] sm:$0xff] %vm445_vm1, %v14452_v5  ;;  %507 = vst.msk [vmem:[#allocation2 + $0x1e8] sm:$0xff] %vm445_vm1, %v14452_v5 }
  0x45   : > { %508 = vst.msk [vmem:[#allocation2 + $0x1f0] sm:$0xff] %vm445_vm1, %v14452_v5  ;;  %509 = vst.msk [vmem:[#allocation2 + $0x1f8] sm:$0xff] %vm445_vm1, %v14452_v5 }
  0x46   : > { %510 = vst.msk [vmem:[#allocation2 + $0x200] sm:$0xff] %vm445_vm1, %v14452_v5  ;;  %511 = vst.msk [vmem:[#allocation2 + $0x208] sm:$0xff] %vm445_vm1, %v14452_v5 }
  0x47   : > { %512 = vst.msk [vmem:[#allocation2 + $0x210] sm:$0xff] %vm445_vm1, %v14452_v5  ;;  %513 = vst.msk [vmem:[#allocation2 + $0x218] sm:$0xff] %vm445_vm1, %v14452_v5 }
  0x48   : > { %514 = vst.msk [vmem:[#allocation2 + $0x220] sm:$0xff] %vm445_vm1, %v14452_v5  ;;  %515 = vst.msk [vmem:[#allocation2 + $0x228] sm:$0xff] %vm445_vm1, %v14452_v5 }
  0x49   : > { %516 = vst.msk [vmem:[#allocation2 + $0x230] sm:$0xff] %vm445_vm1, %v14452_v5  ;;  %517 = vst.msk [vmem:[#allocation2 + $0x238] sm:$0xff] %vm445_vm1, %v14452_v5 }
  0x4a   : > { %696 = vst.msk [vmem:[#allocation2 + $0x28] sm:$0xff] %vm445_vm1, %v10648_v3  ;;  %697 = vst.msk [vmem:[#allocation2 + $0x30] sm:$0xff] %vm445_vm1, %v664_v6 }
  0x4b   : > { %698 = vst.msk [vmem:[#allocation2 + $0x48] sm:$0xff] %vm445_vm1, %v665_v7  ;;  %699 = vst.msk [vmem:[#allocation2 + $0x50] sm:$0xff] %vm445_vm1, %v666_v8 }
  0x4c   : > { %700 = vst.msk [vmem:[#allocation2 + $0x68] sm:$0xff] %vm445_vm1, %v667_v9  ;;  %701 = vst.msk [vmem:[#allocation2 + $0x70] sm:$0xff] %vm445_vm1, %v668_v10 }
  0x4d   : > { %702 = vst.msk [vmem:[#allocation2 + $0x88] sm:$0xff] %vm445_vm1, %v669_v11  ;;  %703 = vst.msk [vmem:[#allocation2 + $0x90] sm:$0xff] %vm445_vm1, %v670_v12 }
  0x4e   : > { %704 = vst.msk [vmem:[#allocation2 + $0xa8] sm:$0xff] %vm445_vm1, %v671_v13  ;;  %705 = vst.msk [vmem:[#allocation2 + $0xb0] sm:$0xff] %vm445_vm1, %v672_v14 }
  0x4f   : > { %706 = vst.msk [vmem:[#allocation2 + $0xc8] sm:$0xff] %vm445_vm1, %v673_v15  ;;  %707 = vst.msk [vmem:[#allocation2 + $0xd0] sm:$0xff] %vm445_vm1, %v674_v16 }
  0x50   : > { %708 = vst.msk [vmem:[#allocation2 + $0xe8] sm:$0xff] %vm445_vm1, %v675_v17  ;;  %709 = vst.msk [vmem:[#allocation2 + $0xf0] sm:$0xff] %vm445_vm1, %v676_v18 }
  0x51   : > { %710 = vst.msk [vmem:[#allocation2 + $0x108] sm:$0xff] %vm445_vm1, %v677_v19  ;;  %711 = vst.msk [vmem:[#allocation2 + $0x110] sm:$0xff] %vm445_vm1, %v678_v20  ;;  %v2224_v29 = vld [vmem:[#allocation2 + $0x28] sm:$0xff]  ;;  %v2225_v30 = vld [vmem:[#allocation2 + $0x30] sm:$0xff] }
  0x52   : > { %712 = vst.msk [vmem:[#allocation2 + $0x128] sm:$0xff] %vm445_vm1, %v679_v21  ;;  %713 = vst.msk [vmem:[#allocation2 + $0x130] sm:$0xff] %vm445_vm1, %v680_v22  ;;  %9586 = vmatprep.mubr.msk.f32.mxu0 %vm445_vm1, %v2224_v29  ;;  %v10853_v31 = vld [vmem:[#allocation2 + $0x48] sm:$0xff]  ;;  %9389 = vmatprep.mubr.msk.f32.mxu1 %vm445_vm1, %v2224_v29  ;;  %v10866_v33 = vld [vmem:[#allocation2 + $0x50] sm:$0xff] }
  0x53   : > { %714 = vst.msk [vmem:[#allocation2 + $0x148] sm:$0xff] %vm445_vm1, %v681_v23  ;;  %715 = vst.msk [vmem:[#allocation2 + $0x150] sm:$0xff] %vm445_vm1, %v682_v24  ;;  %9587 = vmatmul.mubr.msk.f32.vlgmr.msra.gmra.mrb[0].mxu0 %vm445_vm1, %v2225_v30  ;;  %v10870_v34 = vld [vmem:[#allocation2 + $0x68] sm:$0xff]  ;;  %9390 = vmatmul.mubr.msk.f32.gmra.mrb[2].mxu1 %vm445_vm1, %v2225_v30  ;;  %v10881_v35 = vld [vmem:[#allocation2 + $0x70] sm:$0xff] }
  0x54   : > { %716 = vst.msk [vmem:[#allocation2 + $0x168] sm:$0xff] %vm445_vm1, %v683_v25  ;;  %717 = vst.msk [vmem:[#allocation2 + $0x170] sm:$0xff] %vm445_vm1, %v684_v28  ;;  %9635 = vmatpush3.msk.msra.mxu0 %vm891_vm0, %v10653_v4  ;;  %9589 = vmatprep.mubr.msk.f32.mxu0 %vm445_vm1, %v10853_v31  ;;  %v10883_v36 = vld [vmem:[#allocation2 + $0x88] sm:$0xff]  ;;  %v10895_v39 = vld [vmem:[#allocation2 + $0x90] sm:$0xff] }
  0x55   : > { %9684 = vmatprep.subr.msk.mxu0 %vm891_vm0, %v10858_v32  ;;  %9392 = vmatprep.mubr.msk.f32.mxu1 %vm445_vm1, %v10853_v31  ;;  %718 = vst.msk [vmem:[#allocation2 + $0x188] sm:$0xff] %vm445_vm1, %v685_v37  ;;  %719 = vst.msk [vmem:[#allocation2 + $0x190] sm:$0xff] %vm445_vm1, %v686_v38  ;;  %v10901_v42 = vld [vmem:[#allocation2 + $0xa8] sm:$0xff]  ;;  %v10919_v47 = vld [vmem:[#allocation2 + $0xb0] sm:$0xff] }
  0x56   : > { %720 = vst.msk [vmem:[#allocation2 + $0x1a8] sm:$0xff] %vm445_vm1, %v687_v40  ;;  %721 = vst.msk [vmem:[#allocation2 + $0x1b0] sm:$0xff] %vm445_vm1, %v688_v41  ;;  %v10923_v48 = vld [vmem:[#allocation2 + $0xc8] sm:$0xff]  ;;  %v10940_v50 = vld [vmem:[#allocation2 + $0xd0] sm:$0xff] }
  0x57   : > { %9590 = vmatmul.mubr.msk.f32.gmra.mrb[2].mxu0 %vm445_vm1, %v10866_v33  ;;  %9393 = vmatmul.mubr.msk.f32.gmra.mrb[4].mxu1 %vm445_vm1, %v10866_v33  ;;  %722 = vst.msk [vmem:[#allocation2 + $0x1c8] sm:$0xff] %vm445_vm1, %v689_v43  ;;  %723 = vst.msk [vmem:[#allocation2 + $0x1d0] sm:$0xff] %vm445_vm1, %v690_v44  ;;  %v10942_v51 = vld [vmem:[#allocation2 + $0xe8] sm:$0xff]  ;;  %v10952_v52 = vld [vmem:[#allocation2 + $0xf0] sm:$0xff] }
  0x58   : > { %9592 = vmatprep.mubr.msk.f32.mxu0 %vm445_vm1, %v10870_v34  ;;  %9395 = vmatprep.mubr.msk.f32.mxu1 %vm445_vm1, %v10870_v34  ;;  %724 = vst.msk [vmem:[#allocation2 + $0x1e8] sm:$0xff] %vm445_vm1, %v691_v45  ;;  %725 = vst.msk [vmem:[#allocation2 + $0x1f0] sm:$0xff] %vm445_vm1, %v692_v46  ;;  %v10954_v53 = vld [vmem:[#allocation2 + $0x108] sm:$0xff]  ;;  %v10964_v54 = vld [vmem:[#allocation2 + $0x110] sm:$0xff] }
  0x59   : > { %v10966_v55 = vld [vmem:[#allocation2 + $0x29] sm:$0xff]  ;;  %726 = vst.msk [vmem:[#allocation2 + $0x208] sm:$0xff] %vm445_vm1, %v693_v56  ;;  %727 = vst.msk [vmem:[#allocation2 + $0x210] sm:$0xff] %vm445_vm1, %v694_v57  ;;  %v10980_v58 = vld [vmem:[#allocation2 + $0x31] sm:$0xff] }
  0x5a   : > { %v10982_v59 = vld [vmem:[#allocation2 + $0x128] sm:$0xff]  ;;  %v10997_v62 = vld [vmem:[#allocation2 + $0x130] sm:$0xff] }
  0x5b   : > { %9593 = vmatmul.mubr.msk.f32.gmra.mrb[4].mxu0 %vm445_vm1, %v10881_v35  ;;  %9396 = vmatmul.mubr.msk.f32.gmra.mrb[6].mxu1 %vm445_vm1, %v10881_v35  ;;  %v10984_v60 = vld [vmem:[#allocation2 + $0x49] sm:$0xff]  ;;  %14561 = vst [vmem:[#allocation14_spill] sm:$0xff] %v10997_v62  ;;  %v11003_v63 = vld [vmem:[#allocation2 + $0x51] sm:$0xff] }
  0x5c   : > { %9595 = vmatprep.mubr.msk.f32.mxu0 %vm445_vm1, %v10883_v36  ;;  %9398 = vmatprep.mubr.msk.f32.mxu1 %vm445_vm1, %v10883_v36  ;;  %v11005_v0 = vld [vmem:[#allocation2 + $0x148] sm:$0xff]  ;;  %v11017_v3 = vld [vmem:[#allocation2 + $0x150] sm:$0xff] }
  0x5d   : > { %14562 = vst [vmem:[#allocation15_spill] sm:$0xff] %v11005_v0  ;;  %v11007_v2 = vld [vmem:[#allocation2 + $0x69] sm:$0xff]  ;;  %14563 = vst [vmem:[#allocation16_spill] sm:$0xff] %v11017_v3  ;;  %v11021_v4 = vld [vmem:[#allocation2 + $0x71] sm:$0xff] }
  0x5e   : > { %v11023_v6 = vld [vmem:[#allocation2 + $0x168] sm:$0xff]  ;;  %v11033_v8 = vld [vmem:[#allocation2 + $0x170] sm:$0xff] }
  0x5f   : > { %9596 = vmatmul.mubr.msk.f32.gmra.mrb[6].mxu0 %vm445_vm1, %v10895_v39  ;;  %9399 = vmatmul.mubr.msk.f32.gmra.mrb[8].mxu1 %vm445_vm1, %v10895_v39  ;;  %14564 = vst [vmem:[#allocation17_spill] sm:$0xff] %v11023_v6  ;;  %v11025_v7 = vld [vmem:[#allocation2 + $0x89] sm:$0xff]  ;;  %14565 = vst [vmem:[#allocation18_spill] sm:$0xff] %v11033_v8  ;;  %v11037_v9 = vld [vmem:[#allocation2 + $0x91] sm:$0xff] }
  0x60   : > { %9598 = vmatprep.mubr.msk.f32.mxu0 %vm445_vm1, %v10901_v42  ;;  %9401 = vmatprep.mubr.msk.f32.mxu1 %vm445_vm1, %v10901_v42  ;;  %v11039_v10 = vld [vmem:[#allocation2 + $0x188] sm:$0xff]  ;;  %v11049_v12 = vld [vmem:[#allocation2 + $0x190] sm:$0xff] }
  0x61   : > { %14566 = vst [vmem:[#allocation19_spill] sm:$0xff] %v11039_v10  ;;  %v11041_v11 = vld [vmem:[#allocation2 + $0xa9] sm:$0xff]  ;;  %14567 = vst [vmem:[#allocation20_spill] sm:$0xff] %v11049_v12  ;;  %v11053_v13 = vld [vmem:[#allocation2 + $0xb1] sm:$0xff] }
  0x62   : > { %v11055_v14 = vld [vmem:[#allocation2 + $0x1a8] sm:$0xff]  ;;  %v11065_v16 = vld [vmem:[#allocation2 + $0x1b0] sm:$0xff] }
  0x63   : > { %9599 = vmatmul.mubr.msk.f32.gmra.mrb[8].mxu0 %vm445_vm1, %v10919_v47  ;;  %9402 = vmatmul.mubr.msk.f32.gmra.mrb[10].mxu1 %vm445_vm1, %v10919_v47  ;;  %14568 = vst [vmem:[#allocation21_spill] sm:$0xff] %v11055_v14  ;;  %v11057_v15 = vld [vmem:[#allocation2 + $0xc9] sm:$0xff]  ;;  %14569 = vst [vmem:[#allocation22_spill] sm:$0xff] %v11065_v16  ;;  %v11069_v17 = vld [vmem:[#allocation2 + $0xd1] sm:$0xff] }
  0x64   : > { %9601 = vmatprep.mubr.msk.f32.mxu0 %vm445_vm1, %v10923_v48  ;;  %9404 = vmatprep.mubr.msk.f32.mxu1 %vm445_vm1, %v10923_v48  ;;  %v11071_v18 = vld [vmem:[#allocation2 + $0x1c8] sm:$0xff]  ;;  %v11081_v20 = vld [vmem:[#allocation2 + $0x1d0] sm:$0xff] }
  0x65   : > { %14570 = vst [vmem:[#allocation23_spill] sm:$0xff] %v11071_v18  ;;  %v11073_v19 = vld [vmem:[#allocation2 + $0xe9] sm:$0xff]  ;;  %14571 = vst [vmem:[#allocation24_spill] sm:$0xff] %v11081_v20  ;;  %v11085_v21 = vld [vmem:[#allocation2 + $0xf1] sm:$0xff] }
  0x66   : > { %v11087_v22 = vld [vmem:[#allocation2 + $0x1e8] sm:$0xff]  ;;  %v11097_v24 = vld [vmem:[#allocation2 + $0x1f0] sm:$0xff] }
  0x67   : > { %9602 = vmatmul.mubr.msk.f32.gmra.mrb[10].mxu0 %vm445_vm1, %v10940_v50  ;;  %9405 = vmatmul.mubr.msk.f32.gmra.mrb[12].mxu1 %vm445_vm1, %v10940_v50  ;;  %14572 = vst [vmem:[#allocation25_spill] sm:$0xff] %v11087_v22  ;;  %v11089_v23 = vld [vmem:[#allocation2 + $0x109] sm:$0xff]  ;;  %14573 = vst [vmem:[#allocation26_spill] sm:$0xff] %v11097_v24  ;;  %v11101_v25 = vld [vmem:[#allocation2 + $0x111] sm:$0xff] }
  0x68   : > { %9604 = vmatprep.mubr.msk.f32.mxu0 %vm445_vm1, %v10942_v51  ;;  %9407 = vmatprep.mubr.msk.f32.mxu1 %vm445_vm1, %v10942_v51  ;;  %v11103_v27 = vld [vmem:[#allocation2 + $0x129] sm:$0xff]  ;;  %v11112_v29 = vld [vmem:[#allocation2 + $0x131] sm:$0xff] }
  0x69   : > { %v729_v28 = vld [vmem:[#allocation2 + $0xf] sm:$0xff]  ;;  %v11114_v30 = vld [vmem:[#allocation2 + $0x27] sm:$0xff] }
  0x6a   : > { %14574 = vst [vmem:[#allocation27_spill] sm:$0xff] %v11114_v30  ;;  %v11122_v37 = vld [vmem:[%s14440_s1 + $0xc] sm:$0x7]  ;;  %v11128_v38 = vld [vmem:[#allocation2 + $0x2f] sm:$0xff] }
  0x6b   : > { %9605 = vmatmul.mubr.msk.f32.gmra.mrb[12].mxu0 %vm445_vm1, %v10952_v52  ;;  %9408 = vmatmul.mubr.msk.f32.gmra.mrb[14].mxu1 %vm445_vm1, %v10952_v52  ;;  %14575 = vst [vmem:[#allocation28_spill] sm:$0xff] %v11128_v38  ;;  %v11134_v40 = vld [vmem:[#allocation2 + $0x151] sm:$0xff]  ;;  %v11136_v41 = vld [vmem:[#allocation2 + $0x47] sm:$0xff] }
  0x6c   : > { %9607 = vmatprep.mubr.msk.f32.mxu0 %vm445_vm1, %v10954_v53  ;;  %9410 = vmatprep.mubr.msk.f32.mxu1 %vm445_vm1, %v10954_v53  ;;  %14576 = vst [vmem:[#allocation29_spill] sm:$0xff] %v11136_v41  ;;  %v11138_v43 = vld [vmem:[#allocation2 + $0x169] sm:$0xff]  ;;  %v11152_v45 = vld [vmem:[#allocation2 + $0x171] sm:$0xff] }
  0x6d   : > { %v11148_v44 = vld [vmem:[#allocation2 + $0x4f] sm:$0xff]  ;;  %v11154_v46 = vld [vmem:[#allocation2 + $0x67] sm:$0xff] }
  0x6e   : > { %14577 = vst [vmem:[#allocation30_spill] sm:$0xff] %v11148_v44  ;;  %14578 = vst [vmem:[#allocation31_spill] sm:$0xff] %v11154_v46  ;;  %v11164_v56 = vld [vmem:[#allocation2 + $0x6f] sm:$0xff] }
  0x6f   : > { %9608 = vmatmul.mubr.msk.f32.gmra.mrb[14].mxu0 %vm445_vm1, %v10964_v54  ;;  %9411 = vmatmul.mubr.msk.f32.gmra.mrb[16].mxu1 %vm445_vm1, %v10964_v54  ;;  %14579 = vst [vmem:[#allocation32_spill] sm:$0xff] %v11164_v56  ;;  %v11168_v57 = vld [vmem:[#allocation2 + $0x191] sm:$0xff] }
  0x70   : > { %9636 = vmatprep.mubr.msk.f32.mxu0 %vm445_vm1, %v10966_v55  ;;  %9413 = vmatprep.mubr.msk.f32.mxu1 %vm445_vm1, %v10982_v59  ;;  %v11180_v5 = vld [vmem:[#allocation2 + $0x8f] sm:$0xff] }
  0x71   : > { %14581 = vst [vmem:[#allocation34_spill] sm:$0xff] %v11180_v5 }
  0x73   : > { %9637 = vmatmul.mubr.msk.f32.vlgmr.msra.gmra.mrb[0].mxu0 %vm445_vm1, %v10980_v58  ;;  %9414 = vmatmul.mubr.msk.f32.gmra.mrb[18].mxu1 %vm445_vm1, %v10997_v62  ;;  %v11242_v62 = vld [vmem:[#allocation2 + $0x10f] sm:$0xff] }
  0x74   : > { %9685 = vmatpush3.msk.msra.mxu0 %vm891_vm0, %v10858_v32  ;;  %9639 = vmatprep.mubr.msk.f32.mxu0 %vm445_vm1, %v10984_v60  ;;  %v11116_v32 = vld [vmem:[#allocation2 + $0x149] sm:$0xff] }
  0x75   : > { %9734 = vmatprep.subr.msk.mxu0 %vm891_vm0, %v10991_v61  ;;  %9416 = vmatprep.mubr.msk.f32.mxu1 %vm445_vm1, %v11005_v0  ;;  %v11232_v0 = vld [vmem:[#allocation2 + $0x211] sm:$0xff] }
  0x76   : > { %14590 = vst [vmem:[#allocation43_spill] sm:$0xff] %v11232_v0 }
  0x77   : > { %9640 = vmatmul.mubr.msk.f32.gmra.mrb[2].mxu0 %vm445_vm1, %v11003_v63  ;;  %9417 = vmatmul.mubr.msk.f32.gmra.mrb[20].mxu1 %vm445_vm1, %v11017_v3  ;;  %v11220_v3 = vld [vmem:[#allocation2 + $0x209] sm:$0xff] }
  0x78   : > { %9642 = vmatprep.mubr.msk.f32.mxu0 %vm445_vm1, %v11007_v2  ;;  %9419 = vmatprep.mubr.msk.f32.mxu1 %vm445_vm1, %v11023_v6  ;;  %v11218_v6 = vld [vmem:[#allocation2 + $0xe7] sm:$0xff]  ;;  %14588 = vst [vmem:[#allocation41_spill] sm:$0xff] %v11220_v3 }
  0x79   : > { %14587 = vst [vmem:[#allocation40_spill] sm:$0xff] %v11218_v6 }
  0x7b   : > { %9643 = vmatmul.mubr.msk.f32.gmra.mrb[4].mxu0 %vm445_vm1, %v11021_v4  ;;  %9420 = vmatmul.mubr.msk.f32.gmra.mrb[22].mxu1 %vm445_vm1, %v11033_v8  ;;  %v11216_v8 = vld [vmem:[#allocation2 + $0x1f1] sm:$0xff] }
  0x7c   : > { %9645 = vmatprep.mubr.msk.f32.mxu0 %vm445_vm1, %v11025_v7  ;;  %9422 = vmatprep.mubr.msk.f32.mxu1 %vm445_vm1, %v11039_v10  ;;  %v11212_v10 = vld [vmem:[#allocation2 + $0xcf] sm:$0xff]  ;;  %14586 = vst [vmem:[#allocation39_spill] sm:$0xff] %v11216_v8 }
  0x7d   : > { %14585 = vst [vmem:[#allocation38_spill] sm:$0xff] %v11212_v10 }
  0x7f   : > { %9646 = vmatmul.mubr.msk.f32.gmra.mrb[6].mxu0 %vm445_vm1, %v11037_v9  ;;  %9423 = vmatmul.mubr.msk.f32.gmra.mrb[24].mxu1 %vm445_vm1, %v11049_v12  ;;  %v11204_v12 = vld [vmem:[#allocation2 + $0x1e9] sm:$0xff] }
  0x80   : > { %9648 = vmatprep.mubr.msk.f32.mxu0 %vm445_vm1, %v11041_v11  ;;  %9425 = vmatprep.mubr.msk.f32.mxu1 %vm445_vm1, %v11055_v14  ;;  %v11202_v14 = vld [vmem:[#allocation2 + $0xc7] sm:$0xff] }
  0x81   : > { %14584 = vst [vmem:[#allocation37_spill] sm:$0xff] %v11202_v14 }
  0x83   : > { %9649 = vmatmul.mubr.msk.f32.gmra.mrb[8].mxu0 %vm445_vm1, %v11053_v13  ;;  %9426 = vmatmul.mubr.msk.f32.gmra.mrb[26].mxu1 %vm445_vm1, %v11065_v16  ;;  %v11200_v16 = vld [vmem:[#allocation2 + $0x1d1] sm:$0xff] }
  0x84   : > { %9651 = vmatprep.mubr.msk.f32.mxu0 %vm445_vm1, %v11057_v15  ;;  %9428 = vmatprep.mubr.msk.f32.mxu1 %vm445_vm1, %v11071_v18  ;;  %v11196_v18 = vld [vmem:[#allocation2 + $0xaf] sm:$0xff] }
  0x85   : > { %14583 = vst [vmem:[#allocation36_spill] sm:$0xff] %v11196_v18 }
  0x87   : > { %9652 = vmatmul.mubr.msk.f32.gmra.mrb[10].mxu0 %vm445_vm1, %v11069_v17  ;;  %9429 = vmatmul.mubr.msk.f32.gmra.mrb[28].mxu1 %vm445_vm1, %v11081_v20  ;;  %v11188_v20 = vld [vmem:[#allocation2 + $0x1c9] sm:$0xff] }
  0x88   : > { %9654 = vmatprep.mubr.msk.f32.mxu0 %vm445_vm1, %v11073_v19  ;;  %9431 = vmatprep.mubr.msk.f32.mxu1 %vm445_vm1, %v11087_v22  ;;  %v11186_v22 = vld [vmem:[#allocation2 + $0xa7] sm:$0xff] }
  0x89   : > { %14582 = vst [vmem:[#allocation35_spill] sm:$0xff] %v11186_v22 }
  0x8b   : > { %9655 = vmatmul.mubr.msk.f32.gmra.mrb[12].mxu0 %vm445_vm1, %v11085_v21  ;;  %9432 = vmatmul.mubr.msk.f32.gmra.mrb[30].mxu1 %vm445_vm1, %v11097_v24  ;;  %v11184_v24 = vld [vmem:[#allocation2 + $0x1b1] sm:$0xff] }
  0x8c   : > { %9657 = vmatprep.mubr.msk.f32.mxu0 %vm445_vm1, %v11089_v23  ;;  %9436 = vmatprep.mubr.msk.f32.mxu1 %vm445_vm1, %v728_v26  ;;  %v11170_v26 = vld [vmem:[#allocation2 + $0x87] sm:$0xff] }
  0x8d   : > { %14580 = vst [vmem:[#allocation33_spill] sm:$0xff] %v11170_v26 }
  0x8f   : > { %9658 = vmatmul.mubr.msk.f32.gmra.mrb[14].mxu0 %vm445_vm1, %v11101_v25  ;;  %9437 = vmatmul.mubr.msk.f32.vlgmr.msra.gmra.mrb[0].mxu1 %vm445_vm1, %v729_v28  ;;  %v11172_v28 = vld [vmem:[#allocation2 + $0x1a9] sm:$0xff] }
  0x90   : > { %9660 = vmatprep.mubr.msk.f32.mxu0 %vm445_vm1, %v11103_v27  ;;  %9485 = vmatpush3.msk.msra.mxu1 %vm891_vm0, %v10928_v49  ;;  %v11156_v49 = vld [vmem:[#allocation2 + $0x189] sm:$0xff] }
  0x91   : > { %9439 = vmatprep.mubr.msk.f32.mxu1 %vm445_vm1, %v11114_v30  ;;  %9534 = vmatprep.subr.msk.mxu1 %vm891_vm0, %v11122_v37  ;;  %v11234_v30 = vld [vmem:[#allocation2 + $0x107] sm:$0xff] }
  0x92   : > { %14591 = vst [vmem:[#allocation44_spill] sm:$0xff] %v11234_v30 }
  0x93   : > { %9661 = vmatmul.mubr.msk.f32.gmra.mrb[16].mxu0 %vm445_vm1, %v11112_v29  ;;  %9440 = vmatmul.mubr.msk.f32.gmra.mrb[2].mxu1 %vm445_vm1, %v11128_v38  ;;  %v11228_v38 = vld [vmem:[#allocation2 + $0xef] sm:$0xff] }
  0x94   : > { %9663 = vmatprep.mubr.msk.f32.mxu0 %vm445_vm1, %v11116_v32  ;;  %9442 = vmatprep.mubr.msk.f32.mxu1 %vm445_vm1, %v11136_v41  ;;  %14589 = vst [vmem:[#allocation42_spill] sm:$0xff] %v11228_v38 }
  0x97   : > { %9664 = vmatmul.mubr.msk.f32.gmra.mrb[18].mxu0 %vm445_vm1, %v11134_v40  ;;  %9443 = vmatmul.mubr.msk.f32.gmra.mrb[4].mxu1 %vm445_vm1, %v11148_v44 }
  0x98   : > { %9666 = vmatprep.mubr.msk.f32.mxu0 %vm445_vm1, %v11138_v43  ;;  %9445 = vmatprep.mubr.msk.f32.mxu1 %vm445_vm1, %v11154_v46 }
  0x9b   : > { %9667 = vmatmul.mubr.msk.f32.gmra.mrb[20].mxu0 %vm445_vm1, %v11152_v45  ;;  %9446 = vmatmul.mubr.msk.f32.gmra.mrb[6].mxu1 %vm445_vm1, %v11164_v56 }
  0x9c   : > { %9669 = vmatprep.mubr.msk.f32.mxu0 %vm445_vm1, %v11156_v49  ;;  %9448 = vmatprep.mubr.msk.f32.mxu1 %vm445_vm1, %v11170_v26 }
  0x9f   : > { %9670 = vmatmul.mubr.msk.f32.gmra.mrb[22].mxu0 %vm445_vm1, %v11168_v57  ;;  %9449 = vmatmul.mubr.msk.f32.gmra.mrb[8].mxu1 %vm445_vm1, %v11180_v5 }
  0xa0   : > { %9672 = vmatprep.mubr.msk.f32.mxu0 %vm445_vm1, %v11172_v28  ;;  %9451 = vmatprep.mubr.msk.f32.mxu1 %vm445_vm1, %v11186_v22 }
  0xa3   : > { %9673 = vmatmul.mubr.msk.f32.gmra.mrb[24].mxu0 %vm445_vm1, %v11184_v24  ;;  %9452 = vmatmul.mubr.msk.f32.gmra.mrb[10].mxu1 %vm445_vm1, %v11196_v18 }
  0xa4   : > { %9675 = vmatprep.mubr.msk.f32.mxu0 %vm445_vm1, %v11188_v20  ;;  %9454 = vmatprep.mubr.msk.f32.mxu1 %vm445_vm1, %v11202_v14 }
  0xa7   : > { %9676 = vmatmul.mubr.msk.f32.gmra.mrb[26].mxu0 %vm445_vm1, %v11200_v16  ;;  %9455 = vmatmul.mubr.msk.f32.gmra.mrb[12].mxu1 %vm445_vm1, %v11212_v10 }
  0xa8   : > { %9678 = vmatprep.mubr.msk.f32.mxu0 %vm445_vm1, %v11204_v12  ;;  %9457 = vmatprep.mubr.msk.f32.mxu1 %vm445_vm1, %v11218_v6 }
  0xab   : > { %9679 = vmatmul.mubr.msk.f32.gmra.mrb[28].mxu0 %vm445_vm1, %v11216_v8  ;;  %9458 = vmatmul.mubr.msk.f32.gmra.mrb[14].mxu1 %vm445_vm1, %v11228_v38  ;;  %v11246_v8 = vld [vmem:[#allocation2 + $0x127] sm:$0xff] }
  0xac   : > { %9681 = vmatprep.mubr.msk.f32.mxu0 %vm445_vm1, %v11220_v3  ;;  %9460 = vmatprep.mubr.msk.f32.mxu1 %vm445_vm1, %v11234_v30  ;;  %v11253_v3 = vld [vmem:[%s14440_s1 + $0x20] sm:$0x7] }
  0xaf   : > { %9682 = vmatmul.mubr.msk.f32.gmra.mrb[30].mxu0 %vm445_vm1, %v11232_v0  ;;  %9461 = vmatmul.mubr.msk.f32.gmra.mrb[16].mxu1 %vm445_vm1, %v11242_v62  ;;  %v11259_v0 = vld [vmem:[#allocation2 + $0x12f] sm:$0xff] }
  0xb0   : > { %9686 = vmatprep.mubr.msk.f32.mxu0 %vm445_vm1, %v11136_v41  ;;  %9463 = vmatprep.mubr.msk.f32.mxu1 %vm445_vm1, %v11246_v8  ;;  %v11265_v41 = vld [vmem:[#allocation2 + $0x147] sm:$0xff] }
  0xb3   : > { %9687 = vmatmul.mubr.msk.f32.vlgmr.msra.gmra.mrb[0].mxu0 %vm445_vm1, %v11148_v44  ;;  %9464 = vmatmul.mubr.msk.f32.gmra.mrb[18].mxu1 %vm445_vm1, %v11259_v0  ;;  %v11275_v44 = vld [vmem:[#allocation2 + $0x14f] sm:$0xff] }
  0xb4   : > { %9735 = vmatpush3.msk.msra.mxu0 %vm891_vm0, %v10991_v61  ;;  %9689 = vmatprep.mubr.msk.f32.mxu0 %vm445_vm1, %v11154_v46  ;;  %v11279_v61 = vld [vmem:[#allocation2 + $0x167] sm:$0xff] }
  0xb5   : > { %9784 = vmatprep.subr.msk.mxu0 %vm891_vm0, %v11253_v3  ;;  %9466 = vmatprep.mubr.msk.f32.mxu1 %vm445_vm1, %v11265_v41  ;;  %v11291_v46 = vld [vmem:[#allocation2 + $0x187] sm:$0xff] }
  0xb7   : > { %9690 = vmatmul.mubr.msk.f32.gmra.mrb[2].mxu0 %vm445_vm1, %v11164_v56  ;;  %9467 = vmatmul.mubr.msk.f32.gmra.mrb[20].mxu1 %vm445_vm1, %v11275_v44  ;;  %v11287_v56 = vld [vmem:[#allocation2 + $0x16f] sm:$0xff] }
  0xb8   : > { %9692 = vmatprep.mubr.msk.f32.mxu0 %vm445_vm1, %v11170_v26  ;;  %9469 = vmatprep.mubr.msk.f32.mxu1 %vm445_vm1, %v11279_v61  ;;  %v11303_v26 = vld [vmem:[#allocation2 + $0x1a7] sm:$0xff] }
  0xbb   : > { %9693 = vmatmul.mubr.msk.f32.gmra.mrb[4].mxu0 %vm445_vm1, %v11180_v5  ;;  %9470 = vmatmul.mubr.msk.f32.gmra.mrb[22].mxu1 %vm445_vm1, %v11287_v56  ;;  %v11299_v5 = vld [vmem:[#allocation2 + $0x18f] sm:$0xff] }
  0xbc   : > { %9695 = vmatprep.mubr.msk.f32.mxu0 %vm445_vm1, %v11186_v22  ;;  %9472 = vmatprep.mubr.msk.f32.mxu1 %vm445_vm1, %v11291_v46  ;;  %v11315_v22 = vld [vmem:[#allocation2 + $0x1c7] sm:$0xff] }
  0xbf   : > { %9696 = vmatmul.mubr.msk.f32.gmra.mrb[6].mxu0 %vm445_vm1, %v11196_v18  ;;  %9473 = vmatmul.mubr.msk.f32.gmra.mrb[24].mxu1 %vm445_vm1, %v11299_v5  ;;  %v11311_v18 = vld [vmem:[#allocation2 + $0x1af] sm:$0xff] }
  0xc0   : > { %9698 = vmatprep.mubr.msk.f32.mxu0 %vm445_vm1, %v11202_v14  ;;  %9475 = vmatprep.mubr.msk.f32.mxu1 %vm445_vm1, %v11303_v26  ;;  %v11327_v14 = vld [vmem:[#allocation2 + $0x1e7] sm:$0xff] }
  0xc3   : > { %9699 = vmatmul.mubr.msk.f32.gmra.mrb[8].mxu0 %vm445_vm1, %v11212_v10  ;;  %9476 = vmatmul.mubr.msk.f32.gmra.mrb[26].mxu1 %vm445_vm1, %v11311_v18  ;;  %v11323_v10 = vld [vmem:[#allocation2 + $0x1cf] sm:$0xff] }
  0xc4   : > { %9701 = vmatprep.mubr.msk.f32.mxu0 %vm445_vm1, %v11218_v6  ;;  %9478 = vmatprep.mubr.msk.f32.mxu1 %vm445_vm1, %v11315_v22  ;;  %v1444_v6 = vld [vmem:[#allocation2 + $0x9] sm:$0xff] }
  0xc7   : > { %9702 = vmatmul.mubr.msk.f32.gmra.mrb[10].mxu0 %vm445_vm1, %v11228_v38  ;;  %9479 = vmatmul.mubr.msk.f32.gmra.mrb[28].mxu1 %vm445_vm1, %v11323_v10  ;;  %v11335_v38 = vld [vmem:[#allocation2 + $0x1ef] sm:$0xff] }
  0xc8   : > { %9704 = vmatprep.mubr.msk.f32.mxu0 %vm445_vm1, %v11234_v30  ;;  %9481 = vmatprep.mubr.msk.f32.mxu1 %vm445_vm1, %v11327_v14  ;;  %v1445_v30 = vld [vmem:[#allocation2 + $0x11] sm:$0xff] }
  0xcb   : > { %9705 = vmatmul.mubr.msk.f32.gmra.mrb[12].mxu0 %vm445_vm1, %v11242_v62  ;;  %9482 = vmatmul.mubr.msk.f32.gmra.mrb[30].mxu1 %vm445_vm1, %v11335_v38 }
  0xcc   : > { %9707 = vmatprep.mubr.msk.f32.mxu0 %vm445_vm1, %v11246_v8  ;;  %9486 = vmatprep.mubr.msk.f32.mxu1 %vm445_vm1, %v1444_v6  ;;  %v3035_v6 = vld [vmem:[#allocation2 + $0x227] sm:$0xff] }
  0xcf   : > { %9708 = vmatmul.mubr.msk.f32.gmra.mrb[14].mxu0 %vm445_vm1, %v11259_v0  ;;  %9487 = vmatmul.mubr.msk.f32.vlgmr.msra.gmra.mrb[0].mxu1 %vm445_vm1, %v1445_v30  ;;  %v3036_v30 = vld [vmem:[#allocation2 + $0x22f] sm:$0xff] }
  0xd0   : > { %9710 = vmatprep.mubr.msk.f32.mxu0 %vm445_vm1, %v11265_v41  ;;  %9535 = vmatpush3.msk.msra.mxu1 %vm891_vm0, %v11122_v37  ;;  %v14608_v37 = vld [vmem:[#allocation34_spill] sm:$0xff] }
  0xd1   : > { %9489 = vmatprep.mubr.msk.f32.mxu1 %vm445_vm1, %v10966_v55  ;;  %10050 = vmatprep.subr.msk.mxu1 %vm891_vm0, %v10637_v1  ;;  %v11389_v55 = vld [vmem:[#allocation2 + $0x207] sm:$0xff] }
  0xd3   : > { %9711 = vmatmul.mubr.msk.f32.gmra.mrb[16].mxu0 %vm445_vm1, %v11275_v44  ;;  %9490 = vmatmul.mubr.msk.f32.gmra.mrb[2].mxu1 %vm445_vm1, %v10980_v58  ;;  %v11399_v58 = vld [vmem:[#allocation2 + $0x20f] sm:$0xff] }
  0xd4   : > { %9713 = vmatprep.mubr.msk.f32.mxu0 %vm445_vm1, %v11279_v61  ;;  %9492 = vmatprep.mubr.msk.f32.mxu1 %vm445_vm1, %v10984_v60 }
  0xd7   : > { %9714 = vmatmul.mubr.msk.f32.gmra.mrb[18].mxu0 %vm445_vm1, %v11287_v56  ;;  %9493 = vmatmul.mubr.msk.f32.gmra.mrb[4].mxu1 %vm445_vm1, %v11003_v63 }
  0xd8   : > { %9716 = vmatprep.mubr.msk.f32.mxu0 %vm445_vm1, %v11291_v46  ;;  %9495 = vmatprep.mubr.msk.f32.mxu1 %vm445_vm1, %v11007_v2 }
  0xdb   : > { %9717 = vmatmul.mubr.msk.f32.gmra.mrb[20].mxu0 %vm445_vm1, %v11299_v5  ;;  %9496 = vmatmul.mubr.msk.f32.gmra.mrb[6].mxu1 %vm445_vm1, %v11021_v4 }
  0xdc   : > { %9719 = vmatprep.mubr.msk.f32.mxu0 %vm445_vm1, %v11303_v26  ;;  %9498 = vmatprep.mubr.msk.f32.mxu1 %vm445_vm1, %v11025_v7 }
  0xdf   : > { %9720 = vmatmul.mubr.msk.f32.gmra.mrb[22].mxu0 %vm445_vm1, %v11311_v18  ;;  %9499 = vmatmul.mubr.msk.f32.gmra.mrb[8].mxu1 %vm445_vm1, %v11037_v9 }
  0xe0   : > { %9722 = vmatprep.mubr.msk.f32.mxu0 %vm445_vm1, %v11315_v22  ;;  %9501 = vmatprep.mubr.msk.f32.mxu1 %vm445_vm1, %v11041_v11 }
  0xe3   : > { %9723 = vmatmul.mubr.msk.f32.gmra.mrb[24].mxu0 %vm445_vm1, %v11323_v10  ;;  %9502 = vmatmul.mubr.msk.f32.gmra.mrb[10].mxu1 %vm445_vm1, %v11053_v13 }
  0xe4   : > { %9725 = vmatprep.mubr.msk.f32.mxu0 %vm445_vm1, %v11327_v14  ;;  %9504 = vmatprep.mubr.msk.f32.mxu1 %vm445_vm1, %v11057_v15 }
  0xe7   : > { %9726 = vmatmul.mubr.msk.f32.gmra.mrb[26].mxu0 %vm445_vm1, %v11335_v38  ;;  %9505 = vmatmul.mubr.msk.f32.gmra.mrb[12].mxu1 %vm445_vm1, %v11069_v17 }
  0xe8   : > { %9728 = vmatprep.mubr.msk.f32.mxu0 %vm445_vm1, %v11389_v55  ;;  %9507 = vmatprep.mubr.msk.f32.mxu1 %vm445_vm1, %v11073_v19 }
  0xeb   : > { %9729 = vmatmul.mubr.msk.f32.gmra.mrb[28].mxu0 %vm445_vm1, %v11399_v58  ;;  %9508 = vmatmul.mubr.msk.f32.gmra.mrb[14].mxu1 %vm445_vm1, %v11085_v21 }
  0xec   : > { %9731 = vmatprep.mubr.msk.f32.mxu0 %vm445_vm1, %v3035_v6  ;;  %9510 = vmatprep.mubr.msk.f32.mxu1 %vm445_vm1, %v11089_v23  ;;  %v14609_v6 = vld [vmem:[#allocation22_spill] sm:$0xff] }
  0xef   : > { %9732 = vmatmul.mubr.msk.f32.gmra.mrb[30].mxu0 %vm445_vm1, %v3036_v30  ;;  %9511 = vmatmul.mubr.msk.f32.gmra.mrb[16].mxu1 %vm445_vm1, %v11101_v25  ;;  %v14610_v30 = vld [vmem:[#allocation35_spill] sm:$0xff] }
  0xf0   : > { %9736 = vmatprep.mubr.msk.f32.mxu0 %vm445_vm1, %v10853_v31  ;;  %9513 = vmatprep.mubr.msk.f32.mxu1 %vm445_vm1, %v11103_v27  ;;  %v14592_v31 = vld [vmem:[#allocation39_spill] sm:$0xff] }
  0xf3   : > { %9737 = vmatmul.mubr.msk.f32.vlgmr.msra.gmra.mrb[0].mxu0 %vm445_vm1, %v10866_v33  ;;  %9514 = vmatmul.mubr.msk.f32.gmra.mrb[18].mxu1 %vm445_vm1, %v11112_v29  ;;  %v14593_v33 = vld [vmem:[#allocation14_spill] sm:$0xff] }
  0xf4   : > { %9785 = vmatpush3.msk.msra.mxu0 %vm891_vm0, %v11253_v3  ;;  %9739 = vmatprep.mubr.msk.f32.mxu0 %vm445_vm1, %v10870_v34  ;;  %v14594_v34 = vld [vmem:[#allocation27_spill] sm:$0xff]  ;;  %v14607_v3 = vld [vmem:[#allocation21_spill] sm:$0xff] }
  0xf5   : > { %9516 = vmatprep.mubr.msk.f32.mxu1 %vm445_vm1, %v11116_v32 }
  0xf7   : > { %9740 = vmatmul.mubr.msk.f32.gmra.mrb[2].mxu0 %vm445_vm1, %v10881_v35  ;;  %9517 = vmatmul.mubr.msk.f32.gmra.mrb[20].mxu1 %vm445_vm1, %v11134_v40  ;;  %v14595_v35 = vld [vmem:[#allocation15_spill] sm:$0xff] }
  0xf8   : > { %9742 = vmatprep.mubr.msk.f32.mxu0 %vm445_vm1, %v10883_v36  ;;  %9519 = vmatprep.mubr.msk.f32.mxu1 %vm445_vm1, %v11138_v43  ;;  %v14596_v36 = vld [vmem:[#allocation28_spill] sm:$0xff] }
  0xfb   : > { %9743 = vmatmul.mubr.msk.f32.gmra.mrb[4].mxu0 %vm445_vm1, %v10895_v39  ;;  %9520 = vmatmul.mubr.msk.f32.gmra.mrb[22].mxu1 %vm445_vm1, %v11152_v45  ;;  %v14597_v39 = vld [vmem:[#allocation16_spill] sm:$0xff] }
  0xfc   : > { %9745 = vmatprep.mubr.msk.f32.mxu0 %vm445_vm1, %v10901_v42  ;;  %9522 = vmatprep.mubr.msk.f32.mxu1 %vm445_vm1, %v11156_v49  ;;  %v14598_v42 = vld [vmem:[#allocation29_spill] sm:$0xff] }
  0xff   : > { %9746 = vmatmul.mubr.msk.f32.gmra.mrb[6].mxu0 %vm445_vm1, %v10919_v47  ;;  %9523 = vmatmul.mubr.msk.f32.gmra.mrb[24].mxu1 %vm445_vm1, %v11168_v57  ;;  %v14599_v47 = vld [vmem:[#allocation17_spill] sm:$0xff] }
 0x100   : > { %9748 = vmatprep.mubr.msk.f32.mxu0 %vm445_vm1, %v10923_v48  ;;  %9525 = vmatprep.mubr.msk.f32.mxu1 %vm445_vm1, %v11172_v28  ;;  %v14600_v48 = vld [vmem:[#allocation30_spill] sm:$0xff] }
 0x103   : > { %9749 = vmatmul.mubr.msk.f32.gmra.mrb[8].mxu0 %vm445_vm1, %v10940_v50  ;;  %9526 = vmatmul.mubr.msk.f32.gmra.mrb[26].mxu1 %vm445_vm1, %v11184_v24  ;;  %v14601_v50 = vld [vmem:[#allocation18_spill] sm:$0xff] }
 0x104   : > { %9751 = vmatprep.mubr.msk.f32.mxu0 %vm445_vm1, %v10942_v51  ;;  %9528 = vmatprep.mubr.msk.f32.mxu1 %vm445_vm1, %v11188_v20  ;;  %v14602_v51 = vld [vmem:[#allocation31_spill] sm:$0xff] }
 0x107   : > { %9752 = vmatmul.mubr.msk.f32.gmra.mrb[10].mxu0 %vm445_vm1, %v10952_v52  ;;  %9529 = vmatmul.mubr.msk.f32.gmra.mrb[28].mxu1 %vm445_vm1, %v11200_v16  ;;  %v14603_v52 = vld [vmem:[#allocation19_spill] sm:$0xff] }
 0x108   : > { %9754 = vmatprep.mubr.msk.f32.mxu0 %vm445_vm1, %v10954_v53  ;;  %9531 = vmatprep.mubr.msk.f32.mxu1 %vm445_vm1, %v11204_v12  ;;  %v14605_v53 = vld [vmem:[#allocation20_spill] sm:$0xff] }
 0x10b   : > { %9755 = vmatmul.mubr.msk.f32.gmra.mrb[12].mxu0 %vm445_vm1, %v10964_v54  ;;  %9532 = vmatmul.mubr.msk.f32.gmra.mrb[30].mxu1 %vm445_vm1, %v14592_v31  ;;  %v14606_v54 = vld [vmem:[#allocation33_spill] sm:$0xff]  ;;  %v14619_v31 = vld [vmem:[#allocation42_spill] sm:$0xff] }
 0x10c   : > { %9757 = vmatprep.mubr.msk.f32.mxu0 %vm445_vm1, %v10982_v59  ;;  %9536 = vmatprep.mubr.msk.f32.mxu1 %vm445_vm1, %v14594_v34  ;;  %v14611_v34 = vld [vmem:[#allocation23_spill] sm:$0xff] }
 0x10f   : > { %9758 = vmatmul.mubr.msk.f32.gmra.mrb[14].mxu0 %vm445_vm1, %v14593_v33  ;;  %9537 = vmatmul.mubr.msk.f32.vlgmr.msra.gmra.mrb[0].mxu1 %vm445_vm1, %v14596_v36  ;;  %v14612_v36 = vld [vmem:[#allocation36_spill] sm:$0xff] }
 0x110   : > { %9760 = vmatprep.mubr.msk.f32.mxu0 %vm445_vm1, %v14595_v35  ;;  %10051 = vmatpush3.msk.msra.mxu1 %vm891_vm0, %v10637_v1  ;;  %v14604_v1 = vld [vmem:[#allocation32_spill] sm:$0xff] }
 0x111   : > { %9539 = vmatprep.mubr.msk.f32.mxu1 %vm445_vm1, %v14598_v42  ;;  %v14613_v42 = vld [vmem:[#allocation24_spill] sm:$0xff] }
 0x113   : > { %9761 = vmatmul.mubr.msk.f32.gmra.mrb[16].mxu0 %vm445_vm1, %v14597_v39  ;;  %9540 = vmatmul.mubr.msk.f32.gmra.mrb[2].mxu1 %vm445_vm1, %v14600_v48  ;;  %v14614_v48 = vld [vmem:[#allocation37_spill] sm:$0xff] }
 0x114   : > { %9763 = vmatprep.mubr.msk.f32.mxu0 %vm445_vm1, %v14599_v47  ;;  %9542 = vmatprep.mubr.msk.f32.mxu1 %vm445_vm1, %v14602_v51  ;;  %v14615_v51 = vld [vmem:[#allocation25_spill] sm:$0xff] }
 0x117   : > { %9764 = vmatmul.mubr.msk.f32.gmra.mrb[18].mxu0 %vm445_vm1, %v14601_v50  ;;  %9543 = vmatmul.mubr.msk.f32.gmra.mrb[4].mxu1 %vm445_vm1, %v14604_v1  ;;  %v11523_v1 = vld [vmem:[#allocation2 + $0x208] sm:$0xff] }
 0x118   : > { %9766 = vmatprep.mubr.msk.f32.mxu0 %vm445_vm1, %v14603_v52  ;;  %9545 = vmatprep.mubr.msk.f32.mxu1 %vm445_vm1, %v14606_v54  ;;  %v14616_v54 = vld [vmem:[#allocation38_spill] sm:$0xff] }
 0x11b   : > { %9767 = vmatmul.mubr.msk.f32.gmra.mrb[20].mxu0 %vm445_vm1, %v14605_v53  ;;  %9546 = vmatmul.mubr.msk.f32.gmra.mrb[6].mxu1 %vm445_vm1, %v14608_v37  ;;  %v14617_v37 = vld [vmem:[#allocation26_spill] sm:$0xff] }
 0x11c   : > { %9769 = vmatprep.mubr.msk.f32.mxu0 %vm445_vm1, %v14607_v3  ;;  %9548 = vmatprep.mubr.msk.f32.mxu1 %vm445_vm1, %v14610_v30  ;;  %v14618_v30 = vld [vmem:[#allocation40_spill] sm:$0xff] }
 0x11f   : > { %9770 = vmatmul.mubr.msk.f32.gmra.mrb[22].mxu0 %vm445_vm1, %v14609_v6  ;;  %9549 = vmatmul.mubr.msk.f32.gmra.mrb[8].mxu1 %vm445_vm1, %v14612_v36  ;;  %v11533_v36 = vld [vmem:[#allocation2 + $0x210] sm:$0xff] }
 0x120   : > { %9772 = vmatprep.mubr.msk.f32.mxu0 %vm445_vm1, %v14611_v34  ;;  %9551 = vmatprep.mubr.msk.f32.mxu1 %vm445_vm1, %v14614_v48  ;;  %v3425_v48 = vld [vmem:[#allocation2 + $0x228] sm:$0xff] }
 0x123   : > { %9773 = vmatmul.mubr.msk.f32.gmra.mrb[24].mxu0 %vm445_vm1, %v14613_v42  ;;  %9552 = vmatmul.mubr.msk.f32.gmra.mrb[10].mxu1 %vm445_vm1, %v14616_v54  ;;  %v3426_v54 = vld [vmem:[#allocation2 + $0x230] sm:$0xff] }
 0x124   : > { %9775 = vmatprep.mubr.msk.f32.mxu0 %vm445_vm1, %v14615_v51  ;;  %9554 = vmatprep.mubr.msk.f32.mxu1 %vm445_vm1, %v14618_v30  ;;  %v14620_v51 = vld [vmem:[#allocation44_spill] sm:$0xff] }
 0x127   : > { %9776 = vmatmul.mubr.msk.f32.gmra.mrb[26].mxu0 %vm445_vm1, %v14617_v37  ;;  %9555 = vmatmul.mubr.msk.f32.gmra.mrb[12].mxu1 %vm445_vm1, %v14619_v31 }
 0x128   : > { %9778 = vmatprep.mubr.msk.f32.mxu0 %vm445_vm1, %v11523_v1  ;;  %9557 = vmatprep.mubr.msk.f32.mxu1 %vm445_vm1, %v14620_v51 }
 0x12b   : > { %9779 = vmatmul.mubr.msk.f32.gmra.mrb[28].mxu0 %vm445_vm1, %v11533_v36  ;;  %9558 = vmatmul.mubr.msk.f32.gmra.mrb[14].mxu1 %vm445_vm1, %v11242_v62  ;;  %v3815_v62 = vld [vmem:[#allocation2 + $0x229] sm:$0xff] }
 0x12c   : > { %9781 = vmatprep.mubr.msk.f32.mxu0 %vm445_vm1, %v3425_v48  ;;  %9560 = vmatprep.mubr.msk.f32.mxu1 %vm445_vm1, %v11246_v8 }
 0x12f   : > { %9782 = vmatmul.mubr.msk.f32.gmra.mrb[30].mxu0 %vm445_vm1, %v3426_v54  ;;  %9561 = vmatmul.mubr.msk.f32.gmra.mrb[16].mxu1 %vm445_vm1, %v11259_v0  ;;  %v3816_v0 = vld [vmem:[#allocation2 + $0x231] sm:$0xff] }
 0x130   : > { %9786 = vmatprep.mubr.msk.f32.mxu0 %vm445_vm1, %v10984_v60  ;;  %9563 = vmatprep.mubr.msk.f32.mxu1 %vm445_vm1, %v11265_v41  ;;  %v14623_v60 = vld [vmem:[#allocation41_spill] sm:$0xff] }
 0x133   : > { %9787 = vmatmul.mubr.msk.f32.vlgmr.msra.gmra.mrb[0].mxu0 %vm445_vm1, %v11003_v63  ;;  %9564 = vmatmul.mubr.msk.f32.gmra.mrb[18].mxu1 %vm445_vm1, %v11275_v44  ;;  %v14624_v63 = vld [vmem:[#allocation43_spill] sm:$0xff] }
 0x134   : > { %9789 = vmatprep.mubr.msk.f32.mxu0 %vm445_vm1, %v11007_v2  ;;  %9566 = vmatprep.mubr.msk.f32.mxu1 %vm445_vm1, %v11279_v61  ;;  %v14625_v2 = vmov 0.0  }
 0x135   : > { %525 = vst.msk [vmem:[#allocation3 + $0x30] sm:$0xff] %vm518_vm2, %v14625_v2  ;;  %519 = vst.msk [vmem:[#allocation3] sm:$0xff] %vm518_vm2, %v14625_v2 }
 0x136   : > { %520 = vst.msk [vmem:[#allocation3 + $0x8] sm:$0xff] %vm518_vm2, %v14625_v2  ;;  %521 = vst.msk [vmem:[#allocation3 + $0x10] sm:$0xff] %vm518_vm2, %v14625_v2 }
 0x137   : > { %9790 = vmatmul.mubr.msk.f32.gmra.mrb[2].mxu0 %vm445_vm1, %v11021_v4  ;;  %9567 = vmatmul.mubr.msk.f32.gmra.mrb[20].mxu1 %vm445_vm1, %v11287_v56  ;;  %522 = vst.msk [vmem:[#allocation3 + $0x18] sm:$0xff] %vm518_vm2, %v14625_v2  ;;  %523 = vst.msk [vmem:[#allocation3 + $0x20] sm:$0xff] %vm518_vm2, %v14625_v2 }
 0x138   : > { %9792 = vmatprep.mubr.msk.f32.mxu0 %vm445_vm1, %v11025_v7  ;;  %9569 = vmatprep.mubr.msk.f32.mxu1 %vm445_vm1, %v11291_v46  ;;  %524 = vst.msk [vmem:[#allocation3 + $0x28] sm:$0xff] %vm518_vm2, %v14625_v2  ;;  %526 = vst.msk [vmem:[#allocation3 + $0x38] sm:$0xff] %vm518_vm2, %v14625_v2 }
 0x139   : > { %527 = vst.msk [vmem:[#allocation3 + $0x40] sm:$0xff] %vm518_vm2, %v14625_v2  ;;  %528 = vst.msk [vmem:[#allocation3 + $0x48] sm:$0xff] %vm518_vm2, %v14625_v2 }
 0x13a   : > { %529 = vst.msk [vmem:[#allocation3 + $0x50] sm:$0xff] %vm518_vm2, %v14625_v2  ;;  %530 = vst.msk [vmem:[#allocation3 + $0x58] sm:$0xff] %vm518_vm2, %v14625_v2 }
 0x13b   : > { %9793 = vmatmul.mubr.msk.f32.gmra.mrb[4].mxu0 %vm445_vm1, %v11037_v9  ;;  %9570 = vmatmul.mubr.msk.f32.gmra.mrb[22].mxu1 %vm445_vm1, %v11299_v5  ;;  %v14621_v5 = vld [vmem:[#allocation39_spill] sm:$0xff]  ;;  %531 = vst.msk [vmem:[#allocation3 + $0x60] sm:$0xff] %vm518_vm2, %v14625_v2  ;;  %532 = vst.msk [vmem:[#allocation3 + $0x68] sm:$0xff] %vm518_vm2, %v14625_v2 }
 0x13c   : > { %9795 = vmatprep.mubr.msk.f32.mxu0 %vm445_vm1, %v11041_v11  ;;  %9572 = vmatprep.mubr.msk.f32.mxu1 %vm445_vm1, %v11303_v26  ;;  %533 = vst.msk [vmem:[#allocation3 + $0x70] sm:$0xff] %vm518_vm2, %v14625_v2  ;;  %534 = vst.msk [vmem:[#allocation3 + $0x78] sm:$0xff] %vm518_vm2, %v14625_v2 }
 0x13d   : > { %535 = vst.msk [vmem:[#allocation3 + $0x80] sm:$0xff] %vm518_vm2, %v14625_v2  ;;  %536 = vst.msk [vmem:[#allocation3 + $0x88] sm:$0xff] %vm518_vm2, %v14625_v2 }
 0x13e   : > { %537 = vst.msk [vmem:[#allocation3 + $0x90] sm:$0xff] %vm518_vm2, %v14625_v2  ;;  %538 = vst.msk [vmem:[#allocation3 + $0x98] sm:$0xff] %vm518_vm2, %v14625_v2 }
 0x13f   : > { %9796 = vmatmul.mubr.msk.f32.gmra.mrb[6].mxu0 %vm445_vm1, %v11053_v13  ;;  %9573 = vmatmul.mubr.msk.f32.gmra.mrb[24].mxu1 %vm445_vm1, %v11311_v18  ;;  %539 = vst.msk [vmem:[#allocation3 + $0xa0] sm:$0xff] %vm518_vm2, %v14625_v2  ;;  %540 = vst.msk [vmem:[#allocation3 + $0xa8] sm:$0xff] %vm518_vm2, %v14625_v2 }
 0x140   : > { %9798 = vmatprep.mubr.msk.f32.mxu0 %vm445_vm1, %v11057_v15  ;;  %9575 = vmatprep.mubr.msk.f32.mxu1 %vm445_vm1, %v11315_v22  ;;  %541 = vst.msk [vmem:[#allocation3 + $0xb0] sm:$0xff] %vm518_vm2, %v14625_v2  ;;  %542 = vst.msk [vmem:[#allocation3 + $0xb8] sm:$0xff] %vm518_vm2, %v14625_v2 }
 0x141   : > { %543 = vst.msk [vmem:[#allocation3 + $0xc0] sm:$0xff] %vm518_vm2, %v14625_v2  ;;  %544 = vst.msk [vmem:[#allocation3 + $0xc8] sm:$0xff] %vm518_vm2, %v14625_v2 }
 0x142   : > { %545 = vst.msk [vmem:[#allocation3 + $0xd0] sm:$0xff] %vm518_vm2, %v14625_v2  ;;  %546 = vst.msk [vmem:[#allocation3 + $0xd8] sm:$0xff] %vm518_vm2, %v14625_v2 }
 0x143   : > { %9799 = vmatmul.mubr.msk.f32.gmra.mrb[8].mxu0 %vm445_vm1, %v11069_v17  ;;  %9576 = vmatmul.mubr.msk.f32.gmra.mrb[26].mxu1 %vm445_vm1, %v11323_v10  ;;  %547 = vst.msk [vmem:[#allocation3 + $0xe0] sm:$0xff] %vm518_vm2, %v14625_v2  ;;  %548 = vst.msk [vmem:[#allocation3 + $0xe8] sm:$0xff] %vm518_vm2, %v14625_v2 }
 0x144   : > { %9801 = vmatprep.mubr.msk.f32.mxu0 %vm445_vm1, %v11073_v19  ;;  %9578 = vmatprep.mubr.msk.f32.mxu1 %vm445_vm1, %v11327_v14  ;;  %549 = vst.msk [vmem:[#allocation3 + $0xf0] sm:$0xff] %vm518_vm2, %v14625_v2  ;;  %550 = vst.msk [vmem:[#allocation3 + $0xf8] sm:$0xff] %vm518_vm2, %v14625_v2 }
 0x145   : > { %551 = vst.msk [vmem:[#allocation3 + $0x100] sm:$0xff] %vm518_vm2, %v14625_v2  ;;  %552 = vst.msk [vmem:[#allocation3 + $0x108] sm:$0xff] %vm518_vm2, %v14625_v2 }
 0x146   : > { %553 = vst.msk [vmem:[#allocation3 + $0x110] sm:$0xff] %vm518_vm2, %v14625_v2  ;;  %554 = vst.msk [vmem:[#allocation3 + $0x118] sm:$0xff] %vm518_vm2, %v14625_v2 }
 0x147   : > { %9802 = vmatmul.mubr.msk.f32.gmra.mrb[10].mxu0 %vm445_vm1, %v11085_v21  ;;  %9579 = vmatmul.mubr.msk.f32.gmra.mrb[28].mxu1 %vm445_vm1, %v11335_v38  ;;  %555 = vst.msk [vmem:[#allocation3 + $0x120] sm:$0xff] %vm518_vm2, %v14625_v2  ;;  %556 = vst.msk [vmem:[#allocation3 + $0x128] sm:$0xff] %vm518_vm2, %v14625_v2 }
 0x148   : > { %9804 = vmatprep.mubr.msk.f32.mxu0 %vm445_vm1, %v11089_v23  ;;  %9581 = vmatprep.mubr.msk.f32.mxu1 %vm445_vm1, %v11389_v55  ;;  %557 = vst.msk [vmem:[#allocation3 + $0x130] sm:$0xff] %vm518_vm2, %v14625_v2  ;;  %558 = vst.msk [vmem:[#allocation3 + $0x138] sm:$0xff] %vm518_vm2, %v14625_v2  ;;  %v11972_v23 = vld [vmem:[%s14441_s2] ss:$0 sm:$0xff] }
 0x149   : > { %559 = vst.msk [vmem:[#allocation3 + $0x140] sm:$0xff] %vm518_vm2, %v14625_v2  ;;  %560 = vst.msk [vmem:[#allocation3 + $0x148] sm:$0xff] %vm518_vm2, %v14625_v2 }
 0x14a   : > { %561 = vst.msk [vmem:[#allocation3 + $0x150] sm:$0xff] %vm518_vm2, %v14625_v2  ;;  %562 = vst.msk [vmem:[#allocation3 + $0x158] sm:$0xff] %vm518_vm2, %v14625_v2 }
 0x14b   : > { %9805 = vmatmul.mubr.msk.f32.gmra.mrb[12].mxu0 %vm445_vm1, %v11101_v25  ;;  %9582 = vmatmul.mubr.msk.f32.gmra.mrb[30].mxu1 %vm445_vm1, %v11399_v58  ;;  %563 = vst.msk [vmem:[#allocation3 + $0x160] sm:$0xff] %vm518_vm2, %v14625_v2  ;;  %564 = vst.msk [vmem:[#allocation3 + $0x168] sm:$0xff] %vm518_vm2, %v14625_v2 }
 0x14c   : > { %9807 = vmatprep.mubr.msk.f32.mxu0 %vm445_vm1, %v11103_v27  ;;  %9610 = vmatprep.mubr.msk.f32.mxu1 %vm445_vm1, %v10982_v59  ;;  %v14622_v59 = vld [vmem:[#allocation25_spill] sm:$0xff]  ;;  %565 = vst.msk [vmem:[#allocation3 + $0x170] sm:$0xff] %vm518_vm2, %v14625_v2  ;;  %566 = vst.msk [vmem:[#allocation3 + $0x178] sm:$0xff] %vm518_vm2, %v14625_v2 }
 0x14d   : > { %567 = vst.msk [vmem:[#allocation3 + $0x180] sm:$0xff] %vm518_vm2, %v14625_v2  ;;  %568 = vst.msk [vmem:[#allocation3 + $0x188] sm:$0xff] %vm518_vm2, %v14625_v2 }
 0x14e   : > { %569 = vst.msk [vmem:[#allocation3 + $0x190] sm:$0xff] %vm518_vm2, %v14625_v2  ;;  %570 = vst.msk [vmem:[#allocation3 + $0x198] sm:$0xff] %vm518_vm2, %v14625_v2 }
 0x14f   : > { %9808 = vmatmul.mubr.msk.f32.gmra.mrb[14].mxu0 %vm445_vm1, %v11112_v29  ;;  %9611 = vmatmul.mubr.msk.f32.vlgmr.msra.gmra.mrb[16].mxu1 %vm445_vm1, %v14593_v33  ;;  %571 = vst.msk [vmem:[#allocation3 + $0x1a0] sm:$0xff] %vm518_vm2, %v14625_v2  ;;  %572 = vst.msk [vmem:[#allocation3 + $0x1a8] sm:$0xff] %vm518_vm2, %v14625_v2 }
 0x150   : > { %9810 = vmatprep.mubr.msk.f32.mxu0 %vm445_vm1, %v11116_v32  ;;  %9613 = vmatprep.mubr.msk.f32.mxu1 %vm445_vm1, %v14595_v35  ;;  %573 = vst.msk [vmem:[#allocation3 + $0x1b0] sm:$0xff] %vm518_vm2, %v14625_v2  ;;  %574 = vst.msk [vmem:[#allocation3 + $0x1b8] sm:$0xff] %vm518_vm2, %v14625_v2 }
 0x151   : > { %575 = vst.msk [vmem:[#allocation3 + $0x1c0] sm:$0xff] %vm518_vm2, %v14625_v2  ;;  %576 = vst.msk [vmem:[#allocation3 + $0x1c8] sm:$0xff] %vm518_vm2, %v14625_v2 }
 0x152   : > { %577 = vst.msk [vmem:[#allocation3 + $0x1d0] sm:$0xff] %vm518_vm2, %v14625_v2  ;;  %578 = vst.msk [vmem:[#allocation3 + $0x1d8] sm:$0xff] %vm518_vm2, %v14625_v2 }
 0x153   : > { %9811 = vmatmul.mubr.msk.f32.gmra.mrb[16].mxu0 %vm445_vm1, %v11134_v40  ;;  %9614 = vmatmul.mubr.msk.f32.gmra.mrb[18].mxu1 %vm445_vm1, %v14597_v39  ;;  %579 = vst.msk [vmem:[#allocation3 + $0x1e0] sm:$0xff] %vm518_vm2, %v14625_v2  ;;  %580 = vst.msk [vmem:[#allocation3 + $0x1e8] sm:$0xff] %vm518_vm2, %v14625_v2 }
 0x154   : > { %9813 = vmatprep.mubr.msk.f32.mxu0 %vm445_vm1, %v11138_v43  ;;  %9616 = vmatprep.mubr.msk.f32.mxu1 %vm445_vm1, %v14599_v47  ;;  %581 = vst.msk [vmem:[#allocation3 + $0x1f0] sm:$0xff] %vm518_vm2, %v14625_v2  ;;  %582 = vst.msk [vmem:[#allocation3 + $0x1f8] sm:$0xff] %vm518_vm2, %v14625_v2 }
 0x155   : > { %583 = vst.msk [vmem:[#allocation3 + $0x200] sm:$0xff] %vm518_vm2, %v14625_v2  ;;  %584 = vst.msk [vmem:[#allocation3 + $0x208] sm:$0xff] %vm518_vm2, %v14625_v2 }
 0x156   : > { %585 = vst.msk [vmem:[#allocation3 + $0x210] sm:$0xff] %vm518_vm2, %v14625_v2  ;;  %586 = vst.msk [vmem:[#allocation3 + $0x218] sm:$0xff] %vm518_vm2, %v14625_v2 }
 0x157   : > { %9814 = vmatmul.mubr.msk.f32.gmra.mrb[18].mxu0 %vm445_vm1, %v11152_v45  ;;  %9617 = vmatmul.mubr.msk.f32.gmra.mrb[20].mxu1 %vm445_vm1, %v14601_v50  ;;  %587 = vst.msk [vmem:[#allocation3 + $0x220] sm:$0xff] %vm518_vm2, %v14625_v2  ;;  %588 = vst.msk [vmem:[#allocation3 + $0x228] sm:$0xff] %vm518_vm2, %v14625_v2 }
 0x158   : > { %9816 = vmatprep.mubr.msk.f32.mxu0 %vm445_vm1, %v11156_v49  ;;  %9619 = vmatprep.mubr.msk.f32.mxu1 %vm445_vm1, %v14603_v52  ;;  %589 = vst.msk [vmem:[#allocation3 + $0x230] sm:$0xff] %vm518_vm2, %v14625_v2  ;;  %590 = vst.msk [vmem:[#allocation3 + $0x238] sm:$0xff] %vm518_vm2, %v14625_v2 }
 0x159   : > { %591 = vst.msk [vmem:[#allocation4] sm:$0xff] %vm518_vm2, %v14625_v2  ;;  %592 = vst.msk [vmem:[#allocation4 + $0x8] sm:$0xff] %vm518_vm2, %v14625_v2 }
 0x15a   : > { %593 = vst.msk [vmem:[#allocation4 + $0x10] sm:$0xff] %vm518_vm2, %v14625_v2  ;;  %594 = vst.msk [vmem:[#allocation4 + $0x18] sm:$0xff] %vm518_vm2, %v14625_v2 }
 0x15b   : > { %9817 = vmatmul.mubr.msk.f32.gmra.mrb[20].mxu0 %vm445_vm1, %v11168_v57  ;;  %9620 = vmatmul.mubr.msk.f32.gmra.mrb[22].mxu1 %vm445_vm1, %v14605_v53  ;;  %595 = vst.msk [vmem:[#allocation4 + $0x20] sm:$0xff] %vm518_vm2, %v14625_v2  ;;  %596 = vst.msk [vmem:[#allocation4 + $0x28] sm:$0xff] %vm518_vm2, %v14625_v2 }
 0x15c   : > { %9819 = vmatprep.mubr.msk.f32.mxu0 %vm445_vm1, %v11172_v28  ;;  %9622 = vmatprep.mubr.msk.f32.mxu1 %vm445_vm1, %v14607_v3  ;;  %597 = vst.msk [vmem:[#allocation4 + $0x30] sm:$0xff] %vm518_vm2, %v14625_v2  ;;  %598 = vst.msk [vmem:[#allocation4 + $0x38] sm:$0xff] %vm518_vm2, %v14625_v2 }
 0x15d   : > { %599 = vst.msk [vmem:[#allocation4 + $0x40] sm:$0xff] %vm518_vm2, %v14625_v2  ;;  %600 = vst.msk [vmem:[#allocation4 + $0x48] sm:$0xff] %vm518_vm2, %v14625_v2 }
 0x15e   : > { %601 = vst.msk [vmem:[#allocation4 + $0x50] sm:$0xff] %vm518_vm2, %v14625_v2  ;;  %602 = vst.msk [vmem:[#allocation4 + $0x58] sm:$0xff] %vm518_vm2, %v14625_v2 }
 0x15f   : > { %9820 = vmatmul.mubr.msk.f32.gmra.mrb[22].mxu0 %vm445_vm1, %v11184_v24  ;;  %9623 = vmatmul.mubr.msk.f32.gmra.mrb[24].mxu1 %vm445_vm1, %v14609_v6  ;;  %603 = vst.msk [vmem:[#allocation4 + $0x60] sm:$0xff] %vm518_vm2, %v14625_v2  ;;  %604 = vst.msk [vmem:[#allocation4 + $0x68] sm:$0xff] %vm518_vm2, %v14625_v2 }
 0x160   : > { %9822 = vmatprep.mubr.msk.f32.mxu0 %vm445_vm1, %v11188_v20  ;;  %9625 = vmatprep.mubr.msk.f32.mxu1 %vm445_vm1, %v14611_v34  ;;  %605 = vst.msk [vmem:[#allocation4 + $0x70] sm:$0xff] %vm518_vm2, %v14625_v2  ;;  %606 = vst.msk [vmem:[#allocation4 + $0x78] sm:$0xff] %vm518_vm2, %v14625_v2 }
 0x161   : > { %607 = vst.msk [vmem:[#allocation4 + $0x80] sm:$0xff] %vm518_vm2, %v14625_v2  ;;  %608 = vst.msk [vmem:[#allocation4 + $0x88] sm:$0xff] %vm518_vm2, %v14625_v2 }
 0x162   : > { %609 = vst.msk [vmem:[#allocation4 + $0x90] sm:$0xff] %vm518_vm2, %v14625_v2  ;;  %610 = vst.msk [vmem:[#allocation4 + $0x98] sm:$0xff] %vm518_vm2, %v14625_v2 }
 0x163   : > { %9823 = vmatmul.mubr.msk.f32.gmra.mrb[24].mxu0 %vm445_vm1, %v11200_v16  ;;  %9626 = vmatmul.mubr.msk.f32.gmra.mrb[26].mxu1 %vm445_vm1, %v14613_v42  ;;  %611 = vst.msk [vmem:[#allocation4 + $0xa0] sm:$0xff] %vm518_vm2, %v14625_v2  ;;  %612 = vst.msk [vmem:[#allocation4 + $0xa8] sm:$0xff] %vm518_vm2, %v14625_v2 }
 0x164   : > { %9825 = vmatprep.mubr.msk.f32.mxu0 %vm445_vm1, %v11204_v12  ;;  %9628 = vmatprep.mubr.msk.f32.mxu1 %vm445_vm1, %v14622_v59  ;;  %613 = vst.msk [vmem:[#allocation4 + $0xb0] sm:$0xff] %vm518_vm2, %v14625_v2  ;;  %614 = vst.msk [vmem:[#allocation4 + $0xb8] sm:$0xff] %vm518_vm2, %v14625_v2 }
 0x165   : > { %615 = vst.msk [vmem:[#allocation4 + $0xc0] sm:$0xff] %vm518_vm2, %v14625_v2  ;;  %616 = vst.msk [vmem:[#allocation4 + $0xc8] sm:$0xff] %vm518_vm2, %v14625_v2 }
 0x166   : > { %617 = vst.msk [vmem:[#allocation4 + $0xd0] sm:$0xff] %vm518_vm2, %v14625_v2  ;;  %618 = vst.msk [vmem:[#allocation4 + $0xd8] sm:$0xff] %vm518_vm2, %v14625_v2 }
 0x167   : > { %9826 = vmatmul.mubr.msk.f32.gmra.mrb[26].mxu0 %vm445_vm1, %v14621_v5  ;;  %9629 = vmatmul.mubr.msk.f32.gmra.mrb[28].mxu1 %vm445_vm1, %v14617_v37  ;;  %619 = vst.msk [vmem:[#allocation4 + $0xe0] sm:$0xff] %vm518_vm2, %v14625_v2  ;;  %620 = vst.msk [vmem:[#allocation4 + $0xe8] sm:$0xff] %vm518_vm2, %v14625_v2 }
 0x168   : > { %9828 = vmatprep.mubr.msk.f32.mxu0 %vm445_vm1, %v14623_v60  ;;  %9631 = vmatprep.mubr.msk.f32.mxu1 %vm445_vm1, %v11523_v1  ;;  %621 = vst.msk [vmem:[#allocation4 + $0xf0] sm:$0xff] %vm518_vm2, %v14625_v2  ;;  %622 = vst.msk [vmem:[#allocation4 + $0xf8] sm:$0xff] %vm518_vm2, %v14625_v2 }
 0x169   : > { %623 = vst.msk [vmem:[#allocation4 + $0x100] sm:$0xff] %vm518_vm2, %v14625_v2  ;;  %624 = vst.msk [vmem:[#allocation4 + $0x108] sm:$0xff] %vm518_vm2, %v14625_v2 }
 0x16a   : > { %625 = vst.msk [vmem:[#allocation4 + $0x110] sm:$0xff] %vm518_vm2, %v14625_v2  ;;  %626 = vst.msk [vmem:[#allocation4 + $0x118] sm:$0xff] %vm518_vm2, %v14625_v2 }
 0x16b   : > { %9829 = vmatmul.mubr.msk.f32.gmra.mrb[28].mxu0 %vm445_vm1, %v14624_v63  ;;  %9632 = vmatmul.mubr.msk.f32.gmra.mrb[30].mxu1 %vm445_vm1, %v11533_v36  ;;  %627 = vst.msk [vmem:[#allocation4 + $0x120] sm:$0xff] %vm518_vm2, %v14625_v2  ;;  %628 = vst.msk [vmem:[#allocation4 + $0x128] sm:$0xff] %vm518_vm2, %v14625_v2 }
 0x16c   : > { %9831 = vmatprep.mubr.msk.f32.mxu0 %vm445_vm1, %v3815_v62  ;;  %629 = vst.msk [vmem:[#allocation4 + $0x130] sm:$0xff] %vm518_vm2, %v14625_v2  ;;  %630 = vst.msk [vmem:[#allocation4 + $0x138] sm:$0xff] %vm518_vm2, %v14625_v2 }
 0x16d   : > { %631 = vst.msk [vmem:[#allocation4 + $0x140] sm:$0xff] %vm518_vm2, %v14625_v2  ;;  %632 = vst.msk [vmem:[#allocation4 + $0x148] sm:$0xff] %vm518_vm2, %v14625_v2 }
 0x16e   : > { %633 = vst.msk [vmem:[#allocation4 + $0x150] sm:$0xff] %vm518_vm2, %v14625_v2  ;;  %634 = vst.msk [vmem:[#allocation4 + $0x158] sm:$0xff] %vm518_vm2, %v14625_v2 }
 0x16f   : > { %9832 = vmatmul.mubr.msk.f32.gmra.mrb[30].mxu0 %vm445_vm1, %v3816_v0  ;;  %635 = vst.msk [vmem:[#allocation4 + $0x160] sm:$0xff] %vm518_vm2, %v14625_v2  ;;  %636 = vst.msk [vmem:[#allocation4 + $0x168] sm:$0xff] %vm518_vm2, %v14625_v2 }
 0x170   : > { %637 = vst.msk [vmem:[#allocation4 + $0x170] sm:$0xff] %vm518_vm2, %v14625_v2  ;;  %638 = vst.msk [vmem:[#allocation4 + $0x178] sm:$0xff] %vm518_vm2, %v14625_v2 }
 0x171   : > { %639 = vst.msk [vmem:[#allocation4 + $0x180] sm:$0xff] %vm518_vm2, %v14625_v2  ;;  %640 = vst.msk [vmem:[#allocation4 + $0x188] sm:$0xff] %vm518_vm2, %v14625_v2 }
 0x172   : > { %641 = vst.msk [vmem:[#allocation4 + $0x190] sm:$0xff] %vm518_vm2, %v14625_v2  ;;  %642 = vst.msk [vmem:[#allocation4 + $0x198] sm:$0xff] %vm518_vm2, %v14625_v2 }
 0x173   : > { %643 = vst.msk [vmem:[#allocation4 + $0x1a0] sm:$0xff] %vm518_vm2, %v14625_v2  ;;  %644 = vst.msk [vmem:[#allocation4 + $0x1a8] sm:$0xff] %vm518_vm2, %v14625_v2 }
 0x174   : > { %645 = vst.msk [vmem:[#allocation4 + $0x1b0] sm:$0xff] %vm518_vm2, %v14625_v2  ;;  %646 = vst.msk [vmem:[#allocation4 + $0x1b8] sm:$0xff] %vm518_vm2, %v14625_v2 }
 0x175   : > { %647 = vst.msk [vmem:[#allocation4 + $0x1c0] sm:$0xff] %vm518_vm2, %v14625_v2  ;;  %648 = vst.msk [vmem:[#allocation4 + $0x1c8] sm:$0xff] %vm518_vm2, %v14625_v2 }
 0x176   : > { %649 = vst.msk [vmem:[#allocation4 + $0x1d0] sm:$0xff] %vm518_vm2, %v14625_v2  ;;  %650 = vst.msk [vmem:[#allocation4 + $0x1d8] sm:$0xff] %vm518_vm2, %v14625_v2 }
 0x177   : > { %651 = vst.msk [vmem:[#allocation4 + $0x1e0] sm:$0xff] %vm518_vm2, %v14625_v2  ;;  %652 = vst.msk [vmem:[#allocation4 + $0x1e8] sm:$0xff] %vm518_vm2, %v14625_v2 }
 0x178   : > { %653 = vst.msk [vmem:[#allocation4 + $0x1f0] sm:$0xff] %vm518_vm2, %v14625_v2  ;;  %654 = vst.msk [vmem:[#allocation4 + $0x1f8] sm:$0xff] %vm518_vm2, %v14625_v2 }
 0x179   : > { %655 = vst.msk [vmem:[#allocation4 + $0x200] sm:$0xff] %vm518_vm2, %v14625_v2  ;;  %656 = vst.msk [vmem:[#allocation4 + $0x208] sm:$0xff] %vm518_vm2, %v14625_v2 }
 0x17a   : > { %657 = vst.msk [vmem:[#allocation4 + $0x210] sm:$0xff] %vm518_vm2, %v14625_v2  ;;  %658 = vst.msk [vmem:[#allocation4 + $0x218] sm:$0xff] %vm518_vm2, %v14625_v2 }
 0x17b   : > { %659 = vst.msk [vmem:[#allocation4 + $0x220] sm:$0xff] %vm518_vm2, %v14625_v2  ;;  %660 = vst.msk [vmem:[#allocation4 + $0x228] sm:$0xff] %vm518_vm2, %v14625_v2 }
 0x17c   : > { %661 = vst.msk [vmem:[#allocation4 + $0x230] sm:$0xff] %vm518_vm2, %v14625_v2  ;;  %662 = vst.msk [vmem:[#allocation4 + $0x238] sm:$0xff] %vm518_vm2, %v14625_v2 }
 0x1e2   : > { %v9538_v4 = vpop.f32.mrb[0].mxu1 }
 0x1e3   : > { %v2033_v7 = vpop.f32.mrb[1].mxu1 }
 0x1e6   : > { %v9541_v8 = vpop.f32.mrb[2].mxu1 }
 0x1e7   : > { %v2043_v9 = vpop.f32.mrb[3].mxu1 }
 0x1ea   : > { %v9544_v10 = vpop.f32.mrb[4].mxu1 }
 0x1eb   : > { %v2053_v11 = vpop.f32.mrb[5].mxu1 }
 0x1ee   : > { %v9547_v12 = vpop.f32.mrb[6].mxu1 }
 0x1ef   : > { %v2063_v13 = vpop.f32.mrb[7].mxu1 }
 0x1f2   : > { %v9550_v14 = vpop.f32.mrb[8].mxu1 }
 0x1f3   : > { %v2073_v15 = vpop.f32.mrb[9].mxu1 }
 0x1f6   : > { %v9553_v16 = vpop.f32.mrb[10].mxu1 }
 0x1f7   : > { %v11959_v17 = vpop.f32.mrb[11].mxu1 }
 0x1fa   : > { %v11961_v18 = vpop.f32.mrb[12].mxu1 }
 0x1fb   : > { %v11963_v19 = vpop.f32.mrb[13].mxu1 }
 0x1fe   : > { %v11965_v20 = vpop.f32.mrb[14].mxu1 }
 0x1ff   : > { %v11967_v21 = vpop.f32.mrb[15].mxu1 }
 0x206   : > { %v9788_v22 = vpop.f32.mrb[0].mxu0 }
 0x207   : > { %v10052_v24 = vadd.f32 %v9788_v22, %v9538_v4  ;;  %v3984_v25 = vpop.f32.mrb[1].mxu0 }
 0x208   : > { %v10053_v27 = vadd.f32 %v3984_v25, %v2033_v7 }
 0x209   : > { %v4183_v29 = vadd.f32 %v10052_v24, %v11972_v23 }
 0x20a   : > { %v4182_v32 = vadd.f32 %v10053_v27, %v11972_v23  ;;  %v9791_v38 = vpop.f32.mrb[2].mxu0 }
 0x20b   : > { %v4215_v40 = vmul.f32 0.1, %v4183_v29  ;;  %v10054_v41 = vadd.f32 %v9791_v38, %v9541_v8  ;;  %v3994_v43 = vpop.f32.mrb[3].mxu0 }
 0x20c   : > { %v4214_v44 = vmul.f32 0.1, %v4182_v32  ;;  %v10055_v45 = vadd.f32 %v3994_v43, %v2043_v9 }
 0x20d   : > { %v4247_v46 = vmax.f32 %v4183_v29, %v4215_v40  ;;  %v4185_v49 = vadd.f32 %v10054_v41, %v11972_v23 }
 0x20e   : > { %v4246_v56 = vmax.f32 %v4182_v32, %v4214_v44  ;;  %v4184_v57 = vadd.f32 %v10055_v45, %v11972_v23  ;;  %v9794_v26 = vpop.f32.mrb[4].mxu0 }
 0x20f   : > { %4280 = vst.msk [vmem:[#allocation3 + $0x30] sm:$0xff] %vm518_vm2, %v4247_v46  ;;  %v4217_v28 = vmul.f32 0.1, %v4185_v49  ;;  %v10056_v61 = vadd.f32 %v9794_v26, %v9544_v10  ;;  %v4004_v55 = vpop.f32.mrb[5].mxu0 }
 0x210   : > { %4279 = vst.msk [vmem:[#allocation3 + $0x28] sm:$0xff] %vm518_vm2, %v4246_v56  ;;  %v4216_v58 = vmul.f32 0.1, %v4184_v57  ;;  %v10057_v31 = vadd.f32 %v4004_v55, %v2053_v11 }
 0x211   : > { %v4249_v33 = vmax.f32 %v4185_v49, %v4217_v28  ;;  %v4187_v35 = vadd.f32 %v10056_v61, %v11972_v23 }
 0x212   : > { %v4248_v39 = vmax.f32 %v4184_v57, %v4216_v58  ;;  %v4186_v47 = vadd.f32 %v10057_v31, %v11972_v23  ;;  %v9797_v50 = vpop.f32.mrb[6].mxu0 }
 0x213   : > { %4282 = vst.msk [vmem:[#allocation3 + $0x50] sm:$0xff] %vm518_vm2, %v4249_v33  ;;  %v4219_v52 = vmul.f32 0.1, %v4187_v35  ;;  %v10058_v53 = vadd.f32 %v9797_v50, %v9547_v12  ;;  %v4014_v3 = vpop.f32.mrb[7].mxu0 }
 0x214   : > { %4281 = vst.msk [vmem:[#allocation3 + $0x48] sm:$0xff] %vm518_vm2, %v4248_v39  ;;  %v4218_v6 = vmul.f32 0.1, %v4186_v47  ;;  %v10059_v34 = vadd.f32 %v4014_v3, %v2063_v13 }
 0x215   : > { %v4251_v42 = vmax.f32 %v4187_v35, %v4219_v52  ;;  %v4189_v51 = vadd.f32 %v10058_v53, %v11972_v23 }
 0x216   : > { %v4250_v1 = vmax.f32 %v4186_v47, %v4218_v6  ;;  %v4188_v37 = vadd.f32 %v10059_v34, %v11972_v23  ;;  %v9800_v30 = vpop.f32.mrb[8].mxu0 }
 0x217   : > { %4284 = vst.msk [vmem:[#allocation3 + $0x70] sm:$0xff] %vm518_vm2, %v4251_v42  ;;  %v4221_v36 = vmul.f32 0.1, %v4189_v51  ;;  %v10060_v48 = vadd.f32 %v9800_v30, %v9550_v14  ;;  %v4024_v54 = vpop.f32.mrb[9].mxu0 }
 0x218   : > { %4283 = vst.msk [vmem:[#allocation3 + $0x68] sm:$0xff] %vm518_vm2, %v4250_v1  ;;  %v4220_v5 = vmul.f32 0.1, %v4188_v37  ;;  %v10061_v59 = vadd.f32 %v4024_v54, %v2073_v15 }
 0x219   : > { %v4253_v60 = vmax.f32 %v4189_v51, %v4221_v36  ;;  %v4191_v62 = vadd.f32 %v10060_v48, %v11972_v23 }
 0x21a   : > { %v4252_v63 = vmax.f32 %v4188_v37, %v4220_v5  ;;  %v4190_v0 = vadd.f32 %v10061_v59, %v11972_v23  ;;  %v9803_v2 = vpop.f32.mrb[10].mxu0 }
 0x21b   : > { %4286 = vst.msk [vmem:[#allocation3 + $0x90] sm:$0xff] %vm518_vm2, %v4253_v60  ;;  %v4223_v4 = vmul.f32 0.1, %v4191_v62  ;;  %v10062_v7 = vadd.f32 %v9803_v2, %v9553_v16  ;;  %v4034_v8 = vpop.f32.mrb[11].mxu0 }
 0x21c   : > { %4285 = vst.msk [vmem:[#allocation3 + $0x88] sm:$0xff] %vm518_vm2, %v4252_v63  ;;  %v4222_v9 = vmul.f32 0.1, %v4190_v0  ;;  %v10063_v10 = vadd.f32 %v4034_v8, %v11959_v17 }
 0x21d   : > { %v4255_v11 = vmax.f32 %v4191_v62, %v4223_v4  ;;  %v4193_v12 = vadd.f32 %v10062_v7, %v11972_v23 }
 0x21e   : > { %v4254_v13 = vmax.f32 %v4190_v0, %v4222_v9  ;;  %v4192_v14 = vadd.f32 %v10063_v10, %v11972_v23  ;;  %v9806_v15 = vpop.f32.mrb[12].mxu0 }
 0x21f   : > { %4288 = vst.msk [vmem:[#allocation3 + $0xb0] sm:$0xff] %vm518_vm2, %v4255_v11  ;;  %v4225_v22 = vmul.f32 0.1, %v4193_v12  ;;  %v10064_v24 = vadd.f32 %v9806_v15, %v11961_v18  ;;  %v4044_v25 = vpop.f32.mrb[13].mxu0 }
 0x220   : > { %4287 = vst.msk [vmem:[#allocation3 + $0xa8] sm:$0xff] %vm518_vm2, %v4254_v13  ;;  %v4224_v16 = vmul.f32 0.1, %v4192_v14  ;;  %v10065_v27 = vadd.f32 %v4044_v25, %v11963_v19 }
 0x221   : > { %v4257_v29 = vmax.f32 %v4193_v12, %v4225_v22  ;;  %v4195_v17 = vadd.f32 %v10064_v24, %v11972_v23 }
 0x222   : > { %v4256_v32 = vmax.f32 %v4192_v14, %v4224_v16  ;;  %v4194_v38 = vadd.f32 %v10065_v27, %v11972_v23  ;;  %v9809_v40 = vpop.f32.mrb[14].mxu0  ;;  %v9612_v49 = vpop.f32.mrb[16].mxu1 }
 0x223   : > { %4290 = vst.msk [vmem:[#allocation3 + $0xd0] sm:$0xff] %vm518_vm2, %v4257_v29  ;;  %v4227_v41 = vmul.f32 0.1, %v4195_v17  ;;  %v10066_v43 = vadd.f32 %v9809_v40, %v11965_v20  ;;  %v4054_v44 = vpop.f32.mrb[15].mxu0  ;;  %v2503_v26 = vpop.f32.mrb[17].mxu1 }
 0x224   : > { %4289 = vst.msk [vmem:[#allocation3 + $0xc8] sm:$0xff] %vm518_vm2, %v4256_v32  ;;  %v4226_v18 = vmul.f32 0.1, %v4194_v38  ;;  %v10067_v45 = vadd.f32 %v4054_v44, %v11967_v21 }
 0x225   : > { %v4259_v46 = vmax.f32 %v4195_v17, %v4227_v41  ;;  %v4197_v19 = vadd.f32 %v10066_v43, %v11972_v23 }
 0x226   : > { %v4258_v56 = vmax.f32 %v4194_v38, %v4226_v18  ;;  %v4196_v57 = vadd.f32 %v10067_v45, %v11972_v23  ;;  %v9812_v28 = vpop.f32.mrb[16].mxu0  ;;  %v9615_v35 = vpop.f32.mrb[18].mxu1 }
 0x227   : > { %4292 = vst.msk [vmem:[#allocation3 + $0xf0] sm:$0xff] %vm518_vm2, %v4259_v46  ;;  %v4229_v61 = vmul.f32 0.1, %v4197_v19  ;;  %v10068_v55 = vadd.f32 %v9812_v28, %v9612_v49  ;;  %v4064_v20 = vpop.f32.mrb[17].mxu0  ;;  %v2513_v50 = vpop.f32.mrb[19].mxu1 }
 0x228   : > { %4291 = vst.msk [vmem:[#allocation3 + $0xe8] sm:$0xff] %vm518_vm2, %v4258_v56  ;;  %v4228_v58 = vmul.f32 0.1, %v4196_v57  ;;  %v10069_v31 = vadd.f32 %v4064_v20, %v2503_v26 }
 0x229   : > { %v4261_v33 = vmax.f32 %v4197_v19, %v4229_v61  ;;  %v4199_v21 = vadd.f32 %v10068_v55, %v11972_v23 }
 0x22a   : > { %v4260_v39 = vmax.f32 %v4196_v57, %v4228_v58  ;;  %v4198_v47 = vadd.f32 %v10069_v31, %v11972_v23  ;;  %v9815_v52 = vpop.f32.mrb[18].mxu0  ;;  %v9618_v37 = vpop.f32.mrb[20].mxu1 }
 0x22b   : > { %4294 = vst.msk [vmem:[#allocation3 + $0x110] sm:$0xff] %vm518_vm2, %v4261_v33  ;;  %v4231_v53 = vmul.f32 0.1, %v4199_v21  ;;  %v10070_v3 = vadd.f32 %v9815_v52, %v9615_v35  ;;  %v4074_v6 = vpop.f32.mrb[19].mxu0  ;;  %v2523_v48 = vpop.f32.mrb[21].mxu1 }
 0x22c   : > { %4293 = vst.msk [vmem:[#allocation3 + $0x108] sm:$0xff] %vm518_vm2, %v4260_v39  ;;  %v4230_v34 = vmul.f32 0.1, %v4198_v47  ;;  %v10071_v42 = vadd.f32 %v4074_v6, %v2513_v50 }
 0x22d   : > { %v4263_v51 = vmax.f32 %v4199_v21, %v4231_v53  ;;  %v4201_v1 = vadd.f32 %v10070_v3, %v11972_v23 }
 0x22e   : > { %v4262_v30 = vmax.f32 %v4198_v47, %v4230_v34  ;;  %v4200_v36 = vadd.f32 %v10071_v42, %v11972_v23  ;;  %v9818_v54 = vpop.f32.mrb[20].mxu0  ;;  %v9621_v4 = vpop.f32.mrb[22].mxu1 }
 0x22f   : > { %4296 = vst.msk [vmem:[#allocation3 + $0x130] sm:$0xff] %vm518_vm2, %v4263_v51  ;;  %v4233_v5 = vmul.f32 0.1, %v4201_v1  ;;  %v10072_v59 = vadd.f32 %v9818_v54, %v9618_v37  ;;  %v4084_v60 = vpop.f32.mrb[21].mxu0  ;;  %v2533_v9 = vpop.f32.mrb[23].mxu1 }
 0x230   : > { %4295 = vst.msk [vmem:[#allocation3 + $0x128] sm:$0xff] %vm518_vm2, %v4262_v30  ;;  %v4232_v62 = vmul.f32 0.1, %v4200_v36  ;;  %v10073_v63 = vadd.f32 %v4084_v60, %v2523_v48 }
 0x231   : > { %v4265_v0 = vmax.f32 %v4201_v1, %v4233_v5  ;;  %v4203_v2 = vadd.f32 %v10072_v59, %v11972_v23 }
 0x232   : > { %v4264_v7 = vmax.f32 %v4200_v36, %v4232_v62  ;;  %v4202_v8 = vadd.f32 %v10073_v63, %v11972_v23  ;;  %v9821_v10 = vpop.f32.mrb[22].mxu0  ;;  %v9624_v25 = vpop.f32.mrb[24].mxu1 }
 0x233   : > { %4298 = vst.msk [vmem:[#allocation3 + $0x150] sm:$0xff] %vm518_vm2, %v4265_v0  ;;  %v4235_v11 = vmul.f32 0.1, %v4203_v2  ;;  %v10074_v12 = vadd.f32 %v9821_v10, %v9621_v4  ;;  %v4094_v13 = vpop.f32.mrb[23].mxu0  ;;  %v2543_v29 = vpop.f32.mrb[25].mxu1 }
 0x234   : > { %4297 = vst.msk [vmem:[#allocation3 + $0x148] sm:$0xff] %vm518_vm2, %v4264_v7  ;;  %v4234_v14 = vmul.f32 0.1, %v4202_v8  ;;  %v10075_v15 = vadd.f32 %v4094_v13, %v2533_v9 }
 0x235   : > { %v4267_v22 = vmax.f32 %v4203_v2, %v4235_v11  ;;  %v4205_v24 = vadd.f32 %v10074_v12, %v11972_v23 }
 0x236   : > { %v4266_v16 = vmax.f32 %v4202_v8, %v4234_v14  ;;  %v4204_v27 = vadd.f32 %v10075_v15, %v11972_v23  ;;  %v9824_v17 = vpop.f32.mrb[24].mxu0  ;;  %v9627_v45 = vpop.f32.mrb[26].mxu1 }
 0x237   : > { %4300 = vst.msk [vmem:[#allocation3 + $0x170] sm:$0xff] %vm518_vm2, %v4267_v22  ;;  %v4237_v32 = vmul.f32 0.1, %v4205_v24  ;;  %v10076_v38 = vadd.f32 %v9824_v17, %v9624_v25  ;;  %v4104_v40 = vpop.f32.mrb[25].mxu0  ;;  %v2553_v49 = vpop.f32.mrb[27].mxu1 }
 0x238   : > { %4299 = vst.msk [vmem:[#allocation3 + $0x168] sm:$0xff] %vm518_vm2, %v4266_v16  ;;  %v4236_v41 = vmul.f32 0.1, %v4204_v27  ;;  %v10077_v43 = vadd.f32 %v4104_v40, %v2543_v29 }
 0x239   : > { %v4269_v44 = vmax.f32 %v4205_v24, %v4237_v32  ;;  %v4207_v18 = vadd.f32 %v10076_v38, %v11972_v23 }
 0x23a   : > { %v4268_v46 = vmax.f32 %v4204_v27, %v4236_v41  ;;  %v4206_v19 = vadd.f32 %v10077_v43, %v11972_v23  ;;  %v9827_v56 = vpop.f32.mrb[26].mxu0  ;;  %v9630_v31 = vpop.f32.mrb[28].mxu1 }
 0x23b   : > { %4302 = vst.msk [vmem:[#allocation3 + $0x190] sm:$0xff] %vm518_vm2, %v4269_v44  ;;  %v4239_v57 = vmul.f32 0.1, %v4207_v18  ;;  %v10078_v26 = vadd.f32 %v9827_v56, %v9627_v45  ;;  %v4114_v28 = vpop.f32.mrb[27].mxu0  ;;  %v2563_v35 = vpop.f32.mrb[29].mxu1 }
 0x23c   : > { %4301 = vst.msk [vmem:[#allocation3 + $0x188] sm:$0xff] %vm518_vm2, %v4268_v46  ;;  %v4238_v61 = vmul.f32 0.1, %v4206_v19  ;;  %v10079_v55 = vadd.f32 %v4114_v28, %v2553_v49 }
 0x23d   : > { %v4271_v20 = vmax.f32 %v4207_v18, %v4239_v57  ;;  %v4209_v58 = vadd.f32 %v10078_v26, %v11972_v23 }
 0x23e   : > { %v4270_v33 = vmax.f32 %v4206_v19, %v4238_v61  ;;  %v4208_v21 = vadd.f32 %v10079_v55, %v11972_v23  ;;  %v9830_v39 = vpop.f32.mrb[28].mxu0  ;;  %v9633_v42 = vpop.f32.mrb[30].mxu1 }
 0x23f   : > { %4304 = vst.msk [vmem:[#allocation3 + $0x1b0] sm:$0xff] %vm518_vm2, %v4271_v20  ;;  %v4241_v47 = vmul.f32 0.1, %v4209_v58  ;;  %v10080_v50 = vadd.f32 %v9830_v39, %v9630_v31  ;;  %v4124_v52 = vpop.f32.mrb[29].mxu0  ;;  %v2573_v37 = vpop.f32.mrb[31].mxu1 }
 0x240   : > { %4303 = vst.msk [vmem:[#allocation3 + $0x1a8] sm:$0xff] %vm518_vm2, %v4270_v33  ;;  %v4240_v53 = vmul.f32 0.1, %v4208_v21  ;;  %v10081_v3 = vadd.f32 %v4124_v52, %v2563_v35 }
 0x241   : > { %v4273_v6 = vmax.f32 %v4209_v58, %v4241_v47  ;;  %v4211_v34 = vadd.f32 %v10080_v50, %v11972_v23 }
 0x242   : > { %v4272_v51 = vmax.f32 %v4208_v21, %v4240_v53  ;;  %v4210_v1 = vadd.f32 %v10081_v3, %v11972_v23  ;;  %v9833_v30 = vpop.f32.mrb[30].mxu0 }
 0x243   : > { %4306 = vst.msk [vmem:[#allocation3 + $0x1d0] sm:$0xff] %vm518_vm2, %v4273_v6  ;;  %v4243_v36 = vmul.f32 0.1, %v4211_v34  ;;  %v10082_v48 = vadd.f32 %v9833_v30, %v9633_v42  ;;  %v4134_v54 = vpop.f32.mrb[31].mxu0 }
 0x244   : > { %4305 = vst.msk [vmem:[#allocation3 + $0x1c8] sm:$0xff] %vm518_vm2, %v4272_v51  ;;  %v4242_v5 = vmul.f32 0.1, %v4210_v1  ;;  %v10083_v59 = vadd.f32 %v4134_v54, %v2573_v37 }
 0x245   : > { %v4275_v60 = vmax.f32 %v4211_v34, %v4243_v36  ;;  %v4213_v62 = vadd.f32 %v10082_v48, %v11972_v23 }
 0x246   : > { %v4274_v63 = vmax.f32 %v4210_v1, %v4242_v5  ;;  %v4212_v0 = vadd.f32 %v10083_v59, %v11972_v23 }
 0x247   : > { %4308 = vst.msk [vmem:[#allocation3 + $0x1f0] sm:$0xff] %vm518_vm2, %v4275_v60  ;;  %v4245_v2 = vmul.f32 0.1, %v4213_v62 }
 0x248   : > { %4307 = vst.msk [vmem:[#allocation3 + $0x1e8] sm:$0xff] %vm518_vm2, %v4274_v63  ;;  %v4244_v4 = vmul.f32 0.1, %v4212_v0 }
 0x249   : > { %v4277_v7 = vmax.f32 %v4213_v62, %v4245_v2 }
 0x24a   : > { %v4276_v8 = vmax.f32 %v4212_v0, %v4244_v4 }
 0x24b   : > { %4310 = vst.msk [vmem:[#allocation3 + $0x210] sm:$0xff] %vm518_vm2, %v4277_v7 }
 0x24c   : > { %4309 = vst.msk [vmem:[#allocation3 + $0x208] sm:$0xff] %vm518_vm2, %v4276_v8 }
 0x24d PF: > { %p8780_p2 = scmp.le.s32.totalorder %s10463_s27, 0 }
 0x24f   : > { %4314 = sbr.rel (%p8780_p2) target bundleno = 1657 (0x679), region = 56 }
 0x256   : > { %v12044_v9 = vld [vmem:[#allocation3 + $0x28] sm:$0xff]  ;;  %s10482_s10 = smov 64   ;;  %v12052_v10 = vld [vmem:[#allocation3 + $0x30] sm:$0xff]  ;;  %v14499_v12 = vmov 0.0|0.0   ;;  %v8781_v15 = vld [vmem:[%s10621_s9 + $0xc0] sm:$0xff]  ;;  %vm4539_vm3 = vcmask 523264  }
 0x257   : > { %v12046_v23 = vld [vmem:[#allocation3 + $0x48] sm:$0xff]  ;;  %4725 = vrot.lane.b32.xlu0 %v12044_v9, %s10482_s10  ;;  %v12054_v11 = vld [vmem:[#allocation3 + $0x50] sm:$0xff]  ;;  %9834 = vmatprep.subr.bf16.mxu0 %v14499_v12  ;;  %v8784_v29 = vld [vmem:[%s10621_s9 + $0xd8] sm:$0xff] }
 0x258   : > { %4729 = vrot.lane.b32.xlu1 %v12046_v23, %s10482_s10  ;;  %9870 = vmatprep.subr.bf16.mxu1 %v14499_v12  ;;  %v12062_v13 = vld [vmem:[#allocation3 + $0x68] sm:$0xff]  ;;  %v12064_v14 = vld [vmem:[#allocation3 + $0x70] sm:$0xff]  ;;  %v8785_v32 = vld [vmem:[%s10621_s9 + $0xe0] sm:$0xff] }
 0x259   : > { %v8782_v22 = vld [vmem:[%s10621_s9 + $0xc8] sm:$0xff]  ;;  %v8783_v25 = vld [vmem:[%s10621_s9 + $0xd0] sm:$0xff]  ;;  %v8788_v18 = vld [vmem:[%s10621_s9 + $0xf8] sm:$0xff] }
 0x25a   : > { %v9835_v24 = vpack.c.bf16 %v8782_v22, %v8781_v15  ;;  %v12073_v16 = vld [vmem:[#allocation3 + $0x88] sm:$0xff]  ;;  %v12075_v27 = vld [vmem:[#allocation3 + $0x90] sm:$0xff]  ;;  %v9838_v17 = vpack.c.bf16 %v8784_v29, %v8783_v25  ;;  %v8789_v56 = vld [vmem:[%s10621_s9 + $0x100] sm:$0xff] }
 0x25b   : > { %4727 = vrot.lane.b32.xlu0 %v12052_v10, %s10482_s10  ;;  %v8786_v38 = vld [vmem:[%s10621_s9 + $0xe8] sm:$0xff]  ;;  %v12087_v41 = vld [vmem:[#allocation3 + $0xb0] sm:$0xff]  ;;  %v8792_v20 = vld [vmem:[%s10621_s9 + $0x118] sm:$0xff] }
 0x25c   : > { %4731 = vrot.lane.b32.xlu1 %v12054_v11, %s10482_s10  ;;  %9836 = vmatpush1.bf16.msra.mxu0 %v9835_v24  ;;  %v12085_v40 = vld [vmem:[#allocation3 + $0xa8] sm:$0xff]  ;;  %v9841_v43 = vpack.c.bf16 %v8786_v38, %v8785_v32  ;;  %v8787_v44 = vld [vmem:[%s10621_s9 + $0xf0] sm:$0xff]  ;;  %v4572_v58 = vld [vmem:[%s10621_s9] sm:$0xff] }
 0x25d   : > { %9837 = vmatprep.subr.bf16.mxu0 %v14499_v12  ;;  %v12096_v45 = vld [vmem:[#allocation3 + $0xc8] sm:$0xff]  ;;  %v12098_v46 = vld [vmem:[#allocation3 + $0xd0] sm:$0xff]  ;;  %v9844_v49 = vpack.c.bf16 %v8788_v18, %v8787_v44  ;;  %v4575_v35 = vld [vmem:[%s10621_s9 + $0x18] sm:$0xff] }
 0x25e   : > { %v12100_v19 = vld [vmem:[#allocation3 + $0x29] sm:$0xff]  ;;  %v8793_v52 = vld [vmem:[%s10621_s9 + $0x120] sm:$0xff]  ;;  %v8796_v36 = vld [vmem:[%s10621_s9 + $0x138] sm:$0xff] }
 0x25f   : > { %4733 = vrot.lane.b32.xlu0 %v12062_v13, %s10482_s10  ;;  %8805 = vmatprep.mubr.msk.f32.mxu0 %vm4539_vm3, %v12100_v19  ;;  %v8790_v57 = vld [vmem:[%s10621_s9 + $0x108] sm:$0xff]  ;;  %v12113_v28 = vld [vmem:[#allocation3 + $0xf0] sm:$0xff]  ;;  %v4576_v6 = vld [vmem:[%s10621_s9 + $0x20] sm:$0xff] }
 0x260   : > { %4735 = vrot.lane.b32.xlu1 %v12064_v14, %s10482_s10  ;;  %9839 = vmatpush1.bf16.msra.mxu0 %v9838_v17  ;;  %v12111_v26 = vld [vmem:[#allocation3 + $0xe8] sm:$0xff]  ;;  %v9847_v61 = vpack.c.bf16 %v8790_v57, %v8789_v56  ;;  %v8791_v55 = vld [vmem:[%s10621_s9 + $0x110] sm:$0xff]  ;;  %v4579_v54 = vld [vmem:[%s10621_s9 + $0x38] sm:$0xff] }
 0x261   : > { %9840 = vmatprep.subr.bf16.mxu0 %v14499_v12  ;;  %v4573_v31 = vld [vmem:[%s10621_s9 + $0x8] sm:$0xff]  ;;  %v4574_v21 = vld [vmem:[%s10621_s9 + $0x10] sm:$0xff]  ;;  %v9850_v50 = vpack.c.bf16 %v8792_v20, %v8791_v55  ;;  %v8797_v62 = vld [vmem:[%s10621_s9 + $0x140] sm:$0xff] }
 0x262   : > { %v9871_v33 = vpack.c.bf16 %v4573_v31, %v4572_v58  ;;  %v12126_v39 = vld [vmem:[#allocation3 + $0x108] sm:$0xff]  ;;  %v12128_v47 = vld [vmem:[#allocation3 + $0x110] sm:$0xff]  ;;  %v9874_v53 = vpack.c.bf16 %v4575_v35, %v4574_v21  ;;  %v4580_v2 = vld [vmem:[%s10621_s9 + $0x40] sm:$0xff] }
 0x263   : > { %4737 = vrot.lane.b32.xlu0 %v12073_v16, %s10482_s10  ;;  %v8794_v3 = vld [vmem:[%s10621_s9 + $0x128] sm:$0xff]  ;;  %v12142_v51 = vld [vmem:[#allocation3 + $0x130] sm:$0xff]  ;;  %v8800_v25 = vld [vmem:[%s10621_s9 + $0x158] sm:$0xff] }
 0x264   : > { %4739 = vrot.lane.b32.xlu1 %v12075_v27, %s10482_s10  ;;  %9842 = vmatpush1.bf16.msra.mxu0 %v9841_v43  ;;  %v4577_v34 = vld [vmem:[%s10621_s9 + $0x28] sm:$0xff]  ;;  %v9853_v1 = vpack.c.bf16 %v8794_v3, %v8793_v52  ;;  %v8795_v37 = vld [vmem:[%s10621_s9 + $0x130] sm:$0xff]  ;;  %v4583_v17 = vld [vmem:[%s10621_s9 + $0x58] sm:$0xff] }
 0x265   : > { %9843 = vmatprep.subr.bf16.mxu0 %v14499_v12  ;;  %9872 = vmatpush1.bf16.msra.mxu1 %v9871_v33  ;;  %v12140_v42 = vld [vmem:[#allocation3 + $0x128] sm:$0xff]  ;;  %v9877_v30 = vpack.c.bf16 %v4577_v34, %v4576_v6  ;;  %v4578_v48 = vld [vmem:[%s10621_s9 + $0x30] sm:$0xff]  ;;  %v9856_v60 = vpack.c.bf16 %v8796_v36, %v8795_v37  ;;  %v8801_v44 = vld [vmem:[%s10621_s9 + $0x160] sm:$0xff] }
 0x266   : > { %9873 = vmatprep.subr.bf16.mxu1 %v14499_v12  ;;  %v12154_v5 = vld [vmem:[#allocation3 + $0x148] sm:$0xff]  ;;  %v12156_v59 = vld [vmem:[#allocation3 + $0x150] sm:$0xff]  ;;  %v9880_v63 = vpack.c.bf16 %v4579_v54, %v4578_v48  ;;  %v4584_v56 = vld [vmem:[%s10621_s9 + $0x60] sm:$0xff] }
 0x267   : > { %4741 = vrot.lane.b32.xlu0 %v12085_v40, %s10482_s10  ;;  %v8798_v0 = vld [vmem:[%s10621_s9 + $0x148] sm:$0xff]  ;;  %v12170_v8 = vld [vmem:[#allocation3 + $0x170] sm:$0xff]  ;;  %v8804_v33 = vld [vmem:[%s10621_s9 + $0x178] sm:$0xff] }
 0x268   : > { %4743 = vrot.lane.b32.xlu1 %v12087_v41, %s10482_s10  ;;  %9845 = vmatpush1.bf16.msra.mxu0 %v9844_v49  ;;  %v4581_v4 = vld [vmem:[%s10621_s9 + $0x48] sm:$0xff]  ;;  %v9859_v15 = vpack.c.bf16 %v8798_v0, %v8797_v62  ;;  %v8799_v22 = vld [vmem:[%s10621_s9 + $0x150] sm:$0xff]  ;;  %v4587_v35 = vld [vmem:[%s10621_s9 + $0x78] sm:$0xff] }
 0x269   : > { %9846 = vmatprep.subr.bf16.mxu0 %v14499_v12  ;;  %9875 = vmatpush1.bf16.msra.mxu1 %v9874_v53  ;;  %v12168_v7 = vld [vmem:[#allocation3 + $0x168] sm:$0xff]  ;;  %v9883_v24 = vpack.c.bf16 %v4581_v4, %v4580_v2  ;;  %v4582_v29 = vld [vmem:[%s10621_s9 + $0x50] sm:$0xff]  ;;  %v9862_v43 = vpack.c.bf16 %v8800_v25, %v8799_v22  ;;  %v4588_v34 = vld [vmem:[%s10621_s9 + $0x80] sm:$0xff] }
 0x26a   : > { %9876 = vmatprep.subr.bf16.mxu1 %v14499_v12  ;;  %v12182_v32 = vld [vmem:[#allocation3 + $0x188] sm:$0xff]  ;;  %v12184_v38 = vld [vmem:[#allocation3 + $0x190] sm:$0xff]  ;;  %v9886_v18 = vpack.c.bf16 %v4583_v17, %v4582_v29  ;;  %v4591_v54 = vld [vmem:[%s10621_s9 + $0x98] sm:$0xff] }
 0x26b   : > { %4745 = vrot.lane.b32.xlu0 %v12096_v45, %s10482_s10  ;;  %v8802_v49 = vld [vmem:[%s10621_s9 + $0x168] sm:$0xff]  ;;  %v12198_v55 = vld [vmem:[#allocation3 + $0x1b0] sm:$0xff]  ;;  %v4592_v0 = vld [vmem:[%s10621_s9 + $0xa0] sm:$0xff] }
 0x26c   : > { %4747 = vrot.lane.b32.xlu1 %v12098_v46, %s10482_s10  ;;  %9848 = vmatpush1.bf16.msra.mxu0 %v9847_v61  ;;  %v4585_v57 = vld [vmem:[%s10621_s9 + $0x68] sm:$0xff]  ;;  %v9865_v20 = vpack.c.bf16 %v8802_v49, %v8801_v44  ;;  %v8803_v58 = vld [vmem:[%s10621_s9 + $0x170] sm:$0xff] }
 0x26d   : > { %9849 = vmatprep.subr.bf16.mxu0 %v14499_v12  ;;  %9878 = vmatpush1.bf16.msra.mxu1 %v9877_v30  ;;  %v12196_v61 = vld [vmem:[#allocation3 + $0x1a8] sm:$0xff]  ;;  %v9889_v31 = vpack.c.bf16 %v4585_v57, %v4584_v56  ;;  %v4586_v21 = vld [vmem:[%s10621_s9 + $0x70] sm:$0xff]  ;;  %v9868_v53 = vpack.c.bf16 %v8804_v33, %v8803_v58  ;;  %v8873_v56 = vld [vmem:[%s10621_s9 + $0x1a0] sm:$0xff] }
 0x26e   : > { %9879 = vmatprep.subr.bf16.mxu1 %v14499_v12  ;;  %v12212_v52 = vld [vmem:[#allocation3 + $0x1d0] sm:$0xff]  ;;  %v9892_v3 = vpack.c.bf16 %v4587_v35, %v4586_v21  ;;  %v12222_v37 = vld [vmem:[#allocation3 + $0x1e8] sm:$0xff] }
 0x26f   : > { %4749 = vrot.lane.b32.xlu0 %v12111_v26, %s10482_s10  ;;  %v4379_v6 = vld [vmem:[#allocation3 + $0x9] sm:$0xff]  ;;  %v12331_v58 = vld [vmem:[#allocation3 + $0x51] sm:$0xff] }
 0x270   : > { %4751 = vrot.lane.b32.xlu1 %v12113_v28, %s10482_s10  ;;  %9851 = vmatpush1.bf16.msra.mxu0 %v9850_v50  ;;  %v12210_v50 = vld [vmem:[#allocation3 + $0x1c8] sm:$0xff]  ;;  %v12224_v30 = vld [vmem:[#allocation3 + $0x1f0] sm:$0xff] }
 0x271   : > { %9852 = vmatprep.subr.bf16.mxu0 %v14499_v12  ;;  %9881 = vmatpush1.bf16.msra.mxu1 %v9880_v63  ;;  %v4590_v48 = vld [vmem:[%s10621_s9 + $0x90] sm:$0xff]  ;;  %v4593_v2 = vld [vmem:[%s10621_s9 + $0xa8] sm:$0xff] }
 0x272   : > { %9882 = vmatprep.subr.bf16.mxu1 %v14499_v12  ;;  %8837 = vmatprep.mubr.msk.f32.mxu1 %vm4539_vm3, %v4379_v6  ;;  %v12235_v62 = vld [vmem:[#allocation3 + $0x210] sm:$0xff]  ;;  %v9898_v63 = vpack.c.bf16 %v4591_v54, %v4590_v48  ;;  %v4347_v4 = vld [vmem:[#allocation3 + $0x8] sm:$0xff]  ;;  %v8877_v54 = vld [vmem:[%s10621_s9 + $0x1c0] sm:$0xff] }
 0x273   : > { %4753 = vrot.lane.b32.xlu0 %v12126_v39, %s10482_s10  ;;  %v4594_v22 = vld [vmem:[%s10621_s9 + $0xb0] sm:$0xff]  ;;  %v8874_v57 = vld [vmem:[%s10621_s9 + $0x1a8] sm:$0xff] }
 0x274   : > { %4755 = vrot.lane.b32.xlu1 %v12128_v47, %s10482_s10  ;;  %9854 = vmatpush1.bf16.msra.mxu0 %v9853_v1  ;;  %v4589_v1 = vld [vmem:[%s10621_s9 + $0x88] sm:$0xff]  ;;  %v4348_v25 = vld [vmem:[#allocation3 + $0x10] sm:$0xff] }
 0x275   : > { %9855 = vmatprep.subr.bf16.mxu0 %v14499_v12  ;;  %9884 = vmatpush1.bf16.msra.mxu1 %v9883_v24  ;;  %v9895_v36 = vpack.c.bf16 %v4589_v1, %v4588_v34  ;;  %v4595_v24 = vld [vmem:[%s10621_s9 + $0xb8] sm:$0xff]  ;;  %v12314_v17 = vld [vmem:[#allocation3 + $0x49] sm:$0xff] }
 0x276   : > { %9885 = vmatprep.subr.bf16.mxu1 %v14499_v12  ;;  %v9904_v29 = vpack.c.bf16 %v4595_v24, %v4594_v22  ;;  %v12333_v21 = vld [vmem:[#allocation3 + $0x4f] sm:$0xff]  ;;  %v8880_v22 = vld [vmem:[%s10621_s9 + $0x1d8] sm:$0xff] }
 0x277   : > { %4757 = vrot.lane.b32.xlu0 %v12140_v42, %s10482_s10  ;;  %v12346_v6 = vld [vmem:[#allocation3 + $0x69] sm:$0xff] }
 0x278   : > { %4759 = vrot.lane.b32.xlu1 %v12142_v51, %s10482_s10  ;;  %9857 = vmatpush1.bf16.msra.mxu0 %v9856_v60  ;;  %v4659_v60 = vld [vmem:[#allocation3 + $0x208] sm:$0xff] }
 0x279   : > { %9858 = vmatprep.subr.bf16.mxu0 %v14499_v12  ;;  %9887 = vmatpush1.bf16.msra.mxu1 %v9886_v18  ;;  %v12316_v18 = vld [vmem:[#allocation3 + $0x47] sm:$0xff] }
 0x27a   : > { %9888 = vmatprep.subr.bf16.mxu1 %v14499_v12 }
 0x27b   : > { %4761 = vrot.lane.b32.xlu0 %v12154_v5, %s10482_s10 }
 0x27c   : > { %4763 = vrot.lane.b32.xlu1 %v12156_v59, %s10482_s10  ;;  %9860 = vmatpush1.bf16.msra.mxu0 %v9859_v15  ;;  %v9901_v15 = vpack.c.bf16 %v4593_v2, %v4592_v0 }
 0x27d   : > { %9861 = vmatprep.subr.bf16.mxu0 %v14499_v12  ;;  %9890 = vmatpush1.bf16.msra.mxu1 %v9889_v31  ;;  %v9913_v31 = vpack.c.bf16 %v8874_v57, %v8873_v56  ;;  %v12416_v57 = vld [vmem:[#allocation3 + $0xa9] sm:$0xff] }
 0x27e   : > { %9891 = vmatprep.subr.bf16.mxu1 %v14499_v12 }
 0x27f   : > { %4765 = vrot.lane.b32.xlu0 %v12168_v7, %s10482_s10 }
 0x280   : > { %4767 = vrot.lane.b32.xlu1 %v12170_v8, %s10482_s10  ;;  %9863 = vmatpush1.bf16.msra.mxu0 %v9862_v43 }
 0x281   : > { %9864 = vmatprep.subr.bf16.mxu0 %v14499_v12  ;;  %9893 = vmatpush1.bf16.msra.mxu1 %v9892_v3 }
 0x282   : > { %9894 = vmatprep.subr.bf16.mxu1 %v14499_v12 }
 0x283   : > { %4769 = vrot.lane.b32.xlu0 %v12182_v32, %s10482_s10 }
 0x284   : > { %4771 = vrot.lane.b32.xlu1 %v12184_v38, %s10482_s10  ;;  %9866 = vmatpush1.bf16.msra.mxu0 %v9865_v20 }
 0x285   : > { %9867 = vmatprep.subr.bf16.mxu0 %v14499_v12  ;;  %9896 = vmatpush1.bf16.msra.mxu1 %v9895_v36  ;;  %v12348_v36 = vld [vmem:[#allocation3 + $0x67] sm:$0xff] }
 0x286   : > { %9897 = vmatprep.subr.bf16.mxu1 %v14499_v12 }
 0x287   : > { %4773 = vrot.lane.b32.xlu0 %v12196_v61, %s10482_s10 }
 0x288   : > { %4775 = vrot.lane.b32.xlu1 %v12198_v55, %s10482_s10  ;;  %9869 = vmatpush1.bf16.msra.mxu0 %v9868_v53  ;;  %v8875_v53 = vld [vmem:[%s10621_s9 + $0x1b0] sm:$0xff] }
 0x289   : > { %9906 = vmatprep.subr.bf16.mxu0 %v14499_v12  ;;  %9899 = vmatpush1.bf16.msra.mxu1 %v9898_v63  ;;  %v12361_v63 = vld [vmem:[#allocation3 + $0x71] sm:$0xff] }
 0x28a   : > { %9900 = vmatprep.subr.bf16.mxu1 %v14499_v12 }
 0x28b   : > { %4777 = vrot.lane.b32.xlu0 %v12210_v50, %s10482_s10 }
 0x28c   : > { %4779 = vrot.lane.b32.xlu1 %v12212_v52, %s10482_s10 }
 0x28d   : > { %9902 = vmatpush1.bf16.msra.mxu1 %v9901_v15 }
 0x28e   : > { %9903 = vmatprep.subr.bf16.mxu1 %v14499_v12 }
 0x28f   : > { %4781 = vrot.lane.b32.xlu0 %v12222_v37, %s10482_s10 }
 0x290   : > { %4783 = vrot.lane.b32.xlu1 %v12224_v30, %s10482_s10 }
 0x291   : > { %9905 = vmatpush1.bf16.msra.mxu1 %v9904_v29 }
 0x292   : > { %9942 = vmatprep.subr.bf16.mxu1 %v14499_v12 }
 0x293   : > { %4785 = vrot.lane.b32.xlu0 %v4659_v60, %s10482_s10 }
 0x294   : > { %4787 = vrot.lane.b32.xlu1 %v12235_v62, %s10482_s10 }
 0x297   : > { %4443 = vrot.lane.b32.xlu0 %v4347_v4, %s10482_s10  ;;  %v12363_v4 = vld [vmem:[#allocation3 + $0x6f] sm:$0xff] }
 0x298   : > { %5649 = vrot.lane.b32.xlu1 %v12046_v23, %s10482_s10 }
 0x29b   : > { %4445 = vrot.lane.b32.xlu0 %v4348_v25, %s10482_s10  ;;  %v12378_v25 = vld [vmem:[#allocation3 + $0x89] sm:$0xff] }
 0x29c   : > { %5651 = vrot.lane.b32.xlu1 %v12054_v11, %s10482_s10 }
 0x29f   : > { %4447 = vrot.lane.b32.xlu0 %v12044_v9, %s10482_s10  ;;  %v8869_v9 = vld [vmem:[%s10621_s9 + $0x180] sm:$0xff] }
 0x2a0   : > { %5653 = vrot.lane.b32.xlu1 %v12062_v13, %s10482_s10 }
 0x2a3   : > { %4449 = vrot.lane.b32.xlu0 %v12052_v10, %s10482_s10  ;;  %v12298_v10 = vld [vmem:[#allocation3 + $0x27] sm:$0xff] }
 0x2a4   : > { %5655 = vrot.lane.b32.xlu1 %v12064_v14, %s10482_s10 }
 0x2a7   : > { %4451 = vrot.lane.b32.xlu0 %v12046_v23, %s10482_s10  ;;  %v8870_v23 = vld [vmem:[%s10621_s9 + $0x188] sm:$0xff] }
 0x2a8   : > { %5657 = vrot.lane.b32.xlu1 %v12073_v16, %s10482_s10 }
 0x2ab   : > { %4453 = vrot.lane.b32.xlu0 %v12054_v11, %s10482_s10  ;;  %v9907_v11 = vpack.c.bf16 %v8870_v23, %v8869_v9  ;;  %v12382_v23 = vld [vmem:[#allocation3 + $0x87] sm:$0xff] }
 0x2ac   : > { %5659 = vrot.lane.b32.xlu1 %v12075_v27, %s10482_s10 }
 0x2af   : > { %4455 = vrot.lane.b32.xlu0 %v12062_v13, %s10482_s10 }
 0x2b0   : > { %5661 = vrot.lane.b32.xlu1 %v12085_v40, %s10482_s10 }
 0x2b3   : > { %4457 = vrot.lane.b32.xlu0 %v12064_v14, %s10482_s10  ;;  %v12302_v14 = vld [vmem:[#allocation3 + $0x31] sm:$0xff] }
 0x2b4   : > { %5663 = vrot.lane.b32.xlu1 %v12087_v41, %s10482_s10 }
 0x2b7   : > { %4459 = vrot.lane.b32.xlu0 %v12073_v16, %s10482_s10 }
 0x2b8   : > { %5665 = vrot.lane.b32.xlu1 %v12096_v45, %s10482_s10 }
 0x2bb   : > { %4461 = vrot.lane.b32.xlu0 %v12075_v27, %s10482_s10  ;;  %v8871_v27 = vld [vmem:[%s10621_s9 + $0x190] sm:$0xff] }
 0x2bc   : > { %5667 = vrot.lane.b32.xlu1 %v12098_v46, %s10482_s10 }
 0x2bf   : > { %4463 = vrot.lane.b32.xlu0 %v12085_v40, %s10482_s10  ;;  %v8872_v40 = vld [vmem:[%s10621_s9 + $0x198] sm:$0xff] }
 0x2c0   : > { %5669 = vrot.lane.b32.xlu1 %v12111_v26, %s10482_s10  ;;  %v9910_v43 = vpack.c.bf16 %v8872_v40, %v8871_v27  ;;  %v12397_v27 = vld [vmem:[#allocation3 + $0x91] sm:$0xff] }
 0x2c3   : > { %4465 = vrot.lane.b32.xlu0 %v12087_v41, %s10482_s10 }
 0x2c4   : > { %5671 = vrot.lane.b32.xlu1 %v12113_v28, %s10482_s10 }
 0x2c7   : > { %4467 = vrot.lane.b32.xlu0 %v12096_v45, %s10482_s10  ;;  %v12310_v45 = vld [vmem:[#allocation3 + $0x2f] sm:$0xff] }
 0x2c8   : > { %5673 = vrot.lane.b32.xlu1 %v12126_v39, %s10482_s10 }
 0x2c9   : > { %v4726_v13 = vpop.permute.xlu0 %4725 }
 0x2ca   : > { %v4730_v16 = vpop.permute.xlu1 %4729  ;;  %v4821_v41 = vsel %vm4539_vm3, %v12298_v10, %v4726_v13  ;;  %v8882_v13 = vld [vmem:[%s10621_s9 + $0x1e8] sm:$0xff] }
 0x2cb   : > { %5039 = vmatmul.mubr.f32.vlgmr.msra.gmra.mrb[0].mxu0 %v4821_v41  ;;  %4469 = vrot.lane.b32.xlu0 %v12098_v46, %s10482_s10  ;;  %v4823_v20 = vsel %vm4539_vm3, %v12316_v18, %v4730_v16 }
 0x2cc   : > { %9908 = vmatpush1.bf16.msra.mxu0 %v9907_v11  ;;  %8806 = vmatprep.mubr.msk.f32.mxu0 %vm4539_vm3, %v12302_v14 }
 0x2cd   : > { %v4728_v44 = vpop.permute.xlu0 %4727  ;;  %9909 = vmatprep.subr.bf16.mxu0 %v14499_v12  ;;  %5675 = vrot.lane.b32.xlu1 %v12128_v47, %s10482_s10 }
 0x2ce   : > { %v4732_v49 = vpop.permute.xlu1 %4731  ;;  %v4822_v46 = vsel %vm4539_vm3, %v12310_v45, %v4728_v44 }
 0x2cf   : > { %5044 = vmatmul.mubr.f32.gmra.mrb[2].mxu0 %v4822_v46  ;;  %4471 = vrot.lane.b32.xlu0 %v12111_v26, %s10482_s10  ;;  %v8876_v26 = vld [vmem:[%s10621_s9 + $0x1b8] sm:$0xff]  ;;  %v4824_v3 = vsel %vm4539_vm3, %v12333_v21, %v4732_v49 }
 0x2d0   : > { %8807 = vmatprep.mubr.msk.f32.mxu0 %vm4539_vm3, %v12314_v17  ;;  %9911 = vmatpush1.bf16.msra.mxu0 %v9910_v43  ;;  %v9916_v34 = vpack.c.bf16 %v8876_v26, %v8875_v53  ;;  %v12401_v43 = vld [vmem:[#allocation3 + $0x8f] sm:$0xff]  ;;  %v8884_v49 = vld [vmem:[%s10621_s9 + $0x1f8] sm:$0xff] }
 0x2d1   : > { %v4734_v33 = vpop.permute.xlu0 %4733  ;;  %9912 = vmatprep.subr.bf16.mxu0 %v14499_v12  ;;  %5677 = vrot.lane.b32.xlu1 %v12140_v42, %s10482_s10  ;;  %v12435_v26 = vld [vmem:[#allocation3 + $0xb1] sm:$0xff] }
 0x2d2   : > { %v4736_v35 = vpop.permute.xlu1 %4735  ;;  %v4825_v60 = vsel %vm4539_vm3, %v12348_v36, %v4734_v33 }
 0x2d3   : > { %5049 = vmatmul.mubr.f32.gmra.mrb[4].mxu0 %v4823_v20  ;;  %4473 = vrot.lane.b32.xlu0 %v12113_v28, %s10482_s10  ;;  %v8878_v28 = vld [vmem:[%s10621_s9 + $0x1c8] sm:$0xff]  ;;  %v4826_v24 = vsel %vm4539_vm3, %v12363_v4, %v4736_v35 }
 0x2d4   : > { %8808 = vmatprep.mubr.msk.f32.mxu0 %vm4539_vm3, %v12331_v58  ;;  %9914 = vmatpush1.bf16.msra.mxu0 %v9913_v31  ;;  %v9919_v0 = vpack.c.bf16 %v8878_v28, %v8877_v54  ;;  %v12420_v31 = vld [vmem:[#allocation3 + $0xa7] sm:$0xff]  ;;  %v8888_v54 = vld [vmem:[%s10621_s9 + $0x218] sm:$0xff] }
 0x2d5   : > { %v4738_v1 = vpop.permute.xlu0 %4737  ;;  %9915 = vmatprep.subr.bf16.mxu0 %v14499_v12  ;;  %5679 = vrot.lane.b32.xlu1 %v12142_v51, %s10482_s10  ;;  %v8886_v35 = vld [vmem:[%s10621_s9 + $0x208] sm:$0xff] }
 0x2d6   : > { %v4740_v48 = vpop.permute.xlu1 %4739  ;;  %v4827_v16 = vsel %vm4539_vm3, %v12382_v23, %v4738_v1  ;;  %v12439_v1 = vld [vmem:[#allocation3 + $0xaf] sm:$0xff] }
 0x2d7   : > { %5054 = vmatmul.mubr.f32.gmra.mrb[6].mxu0 %v4824_v3  ;;  %4475 = vrot.lane.b32.xlu0 %v12126_v39, %s10482_s10  ;;  %v8879_v39 = vld [vmem:[%s10621_s9 + $0x1d0] sm:$0xff]  ;;  %v4828_v56 = vsel %vm4539_vm3, %v12401_v43, %v4740_v48 }
 0x2d8   : > { %8809 = vmatprep.mubr.msk.f32.mxu0 %vm4539_vm3, %v12346_v6  ;;  %9917 = vmatpush1.bf16.msra.mxu0 %v9916_v34  ;;  %v9922_v29 = vpack.c.bf16 %v8880_v22, %v8879_v39  ;;  %v12459_v39 = vld [vmem:[#allocation3 + $0xc7] sm:$0xff] }
 0x2d9   : > { %v4742_v2 = vpop.permute.xlu0 %4741  ;;  %9918 = vmatprep.subr.bf16.mxu0 %v14499_v12  ;;  %5681 = vrot.lane.b32.xlu1 %v12154_v5, %s10482_s10 }
 0x2da   : > { %v12365_v15 = vpop.permute.xlu1 %4743  ;;  %v4829_v53 = vsel %vm4539_vm3, %v12420_v31, %v4742_v2 }
 0x2db   : > { %5059 = vmatmul.mubr.f32.gmra.mrb[8].mxu0 %v4825_v60  ;;  %4477 = vrot.lane.b32.xlu0 %v12128_v47, %s10482_s10  ;;  %v8881_v47 = vld [vmem:[%s10621_s9 + $0x1e0] sm:$0xff]  ;;  %v4830_v28 = vsel %vm4539_vm3, %v12439_v1, %v12365_v15  ;;  %v12455_v60 = vld [vmem:[#allocation3 + $0xc9] sm:$0xff] }
 0x2dc   : > { %8810 = vmatprep.mubr.msk.f32.mxu0 %vm4539_vm3, %v12361_v63  ;;  %9920 = vmatpush1.bf16.msra.mxu0 %v9919_v0  ;;  %v9925_v40 = vpack.c.bf16 %v8882_v13, %v8881_v47  ;;  %v5575_v15 = vld [vmem:[#allocation3 + $0x1a8] sm:$0xff]  ;;  %v12475_v47 = vld [vmem:[#allocation3 + $0xd1] sm:$0xff] }
 0x2dd   : > { %v12380_v9 = vpop.permute.xlu0 %4745  ;;  %9921 = vmatprep.subr.bf16.mxu0 %v14499_v12  ;;  %5683 = vrot.lane.b32.xlu1 %v12156_v59, %s10482_s10 }
 0x2de   : > { %v12384_v11 = vpop.permute.xlu1 %4747 }
 0x2df   : > { %5064 = vmatmul.mubr.f32.gmra.mrb[10].mxu0 %v4826_v24  ;;  %4479 = vrot.lane.b32.xlu0 %v12140_v42, %s10482_s10  ;;  %v8883_v42 = vld [vmem:[%s10621_s9 + $0x1f0] sm:$0xff]  ;;  %v8890_v24 = vld [vmem:[%s10621_s9 + $0x228] sm:$0xff] }
 0x2e0   : > { %8811 = vmatprep.mubr.msk.f32.mxu0 %vm4539_vm3, %v12378_v25  ;;  %9923 = vmatpush1.bf16.msra.mxu0 %v9922_v29  ;;  %v9928_v46 = vpack.c.bf16 %v8884_v49, %v8883_v42  ;;  %v4831_v29 = vsel %vm4539_vm3, %v12459_v39, %v12380_v9  ;;  %v8892_v49 = vld [vmem:[%s10621_s9 + $0x238] sm:$0xff] }
 0x2e1   : > { %v12399_v41 = vpop.permute.xlu0 %4749  ;;  %9924 = vmatprep.subr.bf16.mxu0 %v14499_v12  ;;  %5685 = vrot.lane.b32.xlu1 %v12168_v7, %s10482_s10 }
 0x2e2   : > { %v12403_v44 = vpop.permute.xlu1 %4751 }
 0x2e3   : > { %5069 = vmatmul.mubr.f32.gmra.mrb[12].mxu0 %v4827_v16  ;;  %4481 = vrot.lane.b32.xlu0 %v12142_v51, %s10482_s10  ;;  %v8885_v51 = vld [vmem:[%s10621_s9 + $0x200] sm:$0xff] }
 0x2e4   : > { %8812 = vmatprep.mubr.msk.f32.mxu0 %vm4539_vm3, %v12397_v27  ;;  %9926 = vmatpush1.bf16.msra.mxu0 %v9925_v40  ;;  %v9931_v3 = vpack.c.bf16 %v8886_v35, %v8885_v51  ;;  %v12479_v40 = vld [vmem:[#allocation3 + $0xcf] sm:$0xff]  ;;  %v12498_v35 = vld [vmem:[#allocation3 + $0xe7] sm:$0xff] }
 0x2e5   : > { %v12418_v20 = vpop.permute.xlu0 %4753  ;;  %9927 = vmatprep.subr.bf16.mxu0 %v14499_v12  ;;  %5687 = vrot.lane.b32.xlu1 %v12170_v8, %s10482_s10  ;;  %v4832_v9 = vsel %vm4539_vm3, %v12479_v40, %v12384_v11  ;;  %v12496_v51 = vld [vmem:[#allocation3 + $0xe9] sm:$0xff]  ;;  %v4833_v11 = vsel %vm4539_vm3, %v12498_v35, %v12399_v41 }
 0x2e6   : > { %v12422_v33 = vpop.permute.xlu1 %4755 }
 0x2e7   : > { %5074 = vmatmul.mubr.f32.gmra.mrb[14].mxu0 %v4828_v56  ;;  %4483 = vrot.lane.b32.xlu0 %v12154_v5, %s10482_s10  ;;  %v8887_v5 = vld [vmem:[%s10621_s9 + $0x210] sm:$0xff] }
 0x2e8   : > { %8813 = vmatprep.mubr.msk.f32.mxu0 %vm4539_vm3, %v12416_v57  ;;  %9929 = vmatpush1.bf16.msra.mxu0 %v9928_v46  ;;  %v9934_v0 = vpack.c.bf16 %v8888_v54, %v8887_v5  ;;  %v12514_v5 = vld [vmem:[#allocation3 + $0xf1] sm:$0xff] }
 0x2e9   : > { %v12437_v34 = vpop.permute.xlu0 %4757  ;;  %9930 = vmatprep.subr.bf16.mxu0 %v14499_v12  ;;  %5689 = vrot.lane.b32.xlu1 %v12182_v32, %s10482_s10  ;;  %v12516_v54 = vld [vmem:[#allocation3 + $0xef] sm:$0xff] }
 0x2ea   : > { %v12441_v48 = vpop.permute.xlu1 %4759 }
 0x2eb   : > { %5079 = vmatmul.mubr.f32.gmra.mrb[16].mxu0 %v4829_v53  ;;  %4485 = vrot.lane.b32.xlu0 %v12156_v59, %s10482_s10  ;;  %v8889_v59 = vld [vmem:[%s10621_s9 + $0x220] sm:$0xff] }
 0x2ec   : > { %8814 = vmatprep.mubr.msk.f32.mxu0 %vm4539_vm3, %v12435_v26  ;;  %9932 = vmatpush1.bf16.msra.mxu0 %v9931_v3  ;;  %v9937_v13 = vpack.c.bf16 %v8890_v24, %v8889_v59  ;;  %v12533_v59 = vld [vmem:[#allocation3 + $0x107] sm:$0xff] }
 0x2ed   : > { %v12457_v2 = vpop.permute.xlu0 %4761  ;;  %9933 = vmatprep.subr.bf16.mxu0 %v14499_v12  ;;  %5691 = vrot.lane.b32.xlu1 %v12184_v38, %s10482_s10 }
 0x2ee   : > { %v12461_v22 = vpop.permute.xlu1 %4763 }
 0x2ef   : > { %5084 = vmatmul.mubr.f32.gmra.mrb[18].mxu0 %v4830_v28  ;;  %4487 = vrot.lane.b32.xlu0 %v12168_v7, %s10482_s10  ;;  %v8891_v7 = vld [vmem:[%s10621_s9 + $0x230] sm:$0xff] }
 0x2f0   : > { %8815 = vmatprep.mubr.msk.f32.mxu0 %vm4539_vm3, %v12455_v60  ;;  %9935 = vmatpush1.bf16.msra.mxu0 %v9934_v0  ;;  %v9940_v56 = vpack.c.bf16 %v8892_v49, %v8891_v7  ;;  %v12531_v0 = vld [vmem:[#allocation3 + $0x109] sm:$0xff] }
 0x2f1   : > { %v12477_v16 = vpop.permute.xlu0 %4765  ;;  %5693 = vrot.lane.b32.xlu1 %v5575_v15, %s10482_s10  ;;  %9936 = vmatprep.subr.bf16.mxu0 %v14499_v12  ;;  %v5579_v15 = vld [vmem:[#allocation3 + $0x1e8] sm:$0xff] }
 0x2f2   : > { %v12481_v42 = vpop.permute.xlu1 %4767  ;;  %v12564_v49 = vld [vmem:[#allocation3 + $0x129] sm:$0xff] }
 0x2f3   : > { %5089 = vmatmul.mubr.f32.gmra.mrb[20].mxu0 %v4831_v29  ;;  %4489 = vrot.lane.b32.xlu0 %v12170_v8, %s10482_s10  ;;  %v5577_v8 = vld [vmem:[#allocation3 + $0x1c8] sm:$0xff]  ;;  %v12548_v29 = vld [vmem:[#allocation3 + $0x111] sm:$0xff] }
 0x2f4   : > { %8816 = vmatprep.mubr.msk.f32.mxu0 %vm4539_vm3, %v12475_v47  ;;  %9938 = vmatpush1.bf16.msra.mxu0 %v9937_v13  ;;  %v12550_v13 = vld [vmem:[#allocation3 + $0x10f] sm:$0xff] }
 0x2f5   : > { %v12494_v46 = vpop.permute.xlu0 %4769  ;;  %5695 = vrot.lane.b32.xlu1 %v12198_v55, %s10482_s10  ;;  %9939 = vmatprep.subr.bf16.mxu0 %v14499_v12 }
 0x2f6   : > { %v12500_v53 = vpop.permute.xlu1 %4771 }
 0x2f7   : > { %5094 = vmatmul.mubr.f32.gmra.mrb[22].mxu0 %v4832_v9  ;;  %4491 = vrot.lane.b32.xlu0 %v12182_v32, %s10482_s10  ;;  %v4834_v32 = vsel %vm4539_vm3, %v12516_v54, %v12403_v44  ;;  %v12566_v9 = vld [vmem:[#allocation3 + $0x127] sm:$0xff] }
 0x2f8   : > { %8817 = vmatprep.mubr.msk.f32.mxu0 %vm4539_vm3, %v12496_v51  ;;  %9941 = vmatpush1.bf16.msra.mxu0 %v9940_v56  ;;  %14626 = vst [vmem:[#allocation45_spill] sm:$0xff] %v12566_v9 }
 0x2f9   : > { %v12512_v3 = vpop.permute.xlu0 %4773  ;;  %5697 = vrot.lane.b32.xlu1 %v5577_v8, %s10482_s10  ;;  %9978 = vmatprep.subr.bf16.mxu0 %v14499_v12  ;;  %v5581_v8 = vld [vmem:[#allocation3 + $0x208] sm:$0xff] }
 0x2fa   : > { %v12518_v28 = vpop.permute.xlu1 %4775  ;;  %v4316_v12 = vld [vmem:[#allocation3 + $0xf] sm:$0xff] }
 0x2fb   : > { %5099 = vmatmul.mubr.f32.gmra.mrb[24].mxu0 %v4833_v11  ;;  %4493 = vrot.lane.b32.xlu0 %v12184_v38, %s10482_s10  ;;  %v4835_v38 = vsel %vm4539_vm3, %v12533_v59, %v12418_v20 }
 0x2fc   : > { %8818 = vmatprep.mubr.msk.f32.mxu0 %vm4539_vm3, %v12514_v5 }
 0x2fd   : > { %v12529_v41 = vpop.permute.xlu0 %4777  ;;  %5699 = vrot.lane.b32.xlu1 %v12212_v52, %s10482_s10 }
 0x2fe   : > { %v12535_v24 = vpop.permute.xlu1 %4779 }
 0x2ff   : > { %5104 = vmatmul.mubr.f32.gmra.mrb[26].mxu0 %v4834_v32  ;;  %4495 = vrot.lane.b32.xlu0 %v12196_v61, %s10482_s10  ;;  %v4836_v61 = vsel %vm4539_vm3, %v12550_v13, %v12422_v33  ;;  %v4837_v33 = vsel %vm4539_vm3, %v12566_v9, %v12437_v34  ;;  %v12579_v32 = vld [vmem:[#allocation3 + $0x131] sm:$0xff] }
 0x300   : > { %8819 = vmatprep.mubr.msk.f32.mxu0 %vm4539_vm3, %v12531_v0 }
 0x301   : > { %v12546_v44 = vpop.permute.xlu0 %4781  ;;  %5701 = vrot.lane.b32.xlu1 %v5579_v15, %s10482_s10  ;;  %v12581_v15 = vld [vmem:[#allocation3 + $0x12f] sm:$0xff] }
 0x302   : > { %v12552_v7 = vpop.permute.xlu1 %4783  ;;  %v4838_v34 = vsel %vm4539_vm3, %v12581_v15, %v12441_v48 }
 0x303   : > { %5109 = vmatmul.mubr.f32.gmra.mrb[28].mxu0 %v4835_v38  ;;  %4497 = vrot.lane.b32.xlu0 %v12198_v55, %s10482_s10  ;;  %v4315_v55 = vld [vmem:[#allocation3 + $0x7] sm:$0xff] }
 0x304   : > { %8820 = vmatprep.mubr.msk.f32.mxu0 %vm4539_vm3, %v12548_v29 }
 0x305   : > { %v12562_v20 = vpop.permute.xlu0 %4785  ;;  %5703 = vrot.lane.b32.xlu1 %v12224_v30, %s10482_s10 }
 0x306   : > { %v12570_v56 = vpop.permute.xlu1 %4787 }
 0x307   : > { %5114 = vmatmul.mubr.f32.gmra.mrb[30].mxu0 %v4836_v61  ;;  %4499 = vrot.lane.b32.xlu0 %v12210_v50, %s10482_s10  ;;  %v4380_v50 = vld [vmem:[#allocation3 + $0x11] sm:$0xff] }
 0x308   : > { %8821 = vmatprep.mubr.msk.f32.mxu0 %vm4539_vm3, %v12564_v49 }
 0x309   : > { %v4444_v11 = vpop.permute.xlu0 %4443  ;;  %5705 = vrot.lane.b32.xlu1 %v5581_v8, %s10482_s10  ;;  %v12595_v8 = vld [vmem:[#allocation3 + $0x149] sm:$0xff] }
 0x30a   : > { %v12584_v38 = vpop.permute.xlu1 %5649  ;;  %v4540_v61 = vsel %vm4539_vm3, %v4315_v55, %v4444_v11  ;;  %v12597_v55 = vld [vmem:[#allocation3 + $0x147] sm:$0xff] }
 0x30b   : > { %5119 = vmatmul.mubr.f32.gmra.mrb[32].mxu0 %v4837_v33  ;;  %4501 = vrot.lane.b32.xlu0 %v12212_v52, %s10482_s10  ;;  %v5583_v11 = vld [vmem:[#allocation3 + $0x228] sm:$0xff]  ;;  %v4839_v48 = vsel %vm4539_vm3, %v12597_v55, %v12457_v2 }
 0x30c   : > { %5360 = vmatmul.mubr.f32.vlgmr.msra.gmra.mrb[0].mxu1 %v4540_v61  ;;  %8822 = vmatprep.mubr.msk.f32.mxu0 %vm4539_vm3, %v12579_v32 }
 0x30d   : > { %v4446_v9 = vpop.permute.xlu0 %4445  ;;  %8838 = vmatprep.mubr.msk.f32.mxu1 %vm4539_vm3, %v4380_v50  ;;  %5707 = vrot.lane.b32.xlu1 %v12235_v62, %s10482_s10  ;;  %v12613_v62 = vld [vmem:[#allocation3 + $0x151] sm:$0xff] }
 0x30e   : > { %v12601_v52 = vpop.permute.xlu1 %5651  ;;  %v4541_v33 = vsel %vm4539_vm3, %v4316_v12, %v4446_v9  ;;  %v12615_v12 = vld [vmem:[#allocation3 + $0x14f] sm:$0xff] }
 0x30f   : > { %5124 = vmatmul.mubr.f32.gmra.mrb[34].mxu0 %v4838_v34  ;;  %4503 = vrot.lane.b32.xlu0 %v12222_v37, %s10482_s10  ;;  %v5584_v9 = vld [vmem:[#allocation3 + $0x230] sm:$0xff]  ;;  %v12633_v34 = vld [vmem:[#allocation3 + $0x167] sm:$0xff] }
 0x310   : > { %5365 = vmatmul.mubr.f32.gmra.mrb[2].mxu1 %v4541_v33  ;;  %8823 = vmatprep.mubr.msk.f32.mxu0 %vm4539_vm3, %v12595_v8 }
 0x311   : > { %v4448_v61 = vpop.permute.xlu0 %4447  ;;  %8839 = vmatprep.mubr.msk.f32.mxu1 %vm4539_vm3, %v12100_v19  ;;  %5709 = vrot.lane.b32.xlu1 %v5583_v11, %s10482_s10  ;;  %v4840_v19 = vsel %vm4539_vm3, %v12615_v12, %v12461_v22  ;;  %v4841_v22 = vsel %vm4539_vm3, %v12633_v34, %v12477_v16  ;;  %v12647_v11 = vld [vmem:[#allocation3 + $0x16f] sm:$0xff] }
 0x312   : > { %v4542_v37 = vsel %vm4539_vm3, %v12298_v10, %v4448_v61  ;;  %v12622_v50 = vpop.permute.xlu1 %5653  ;;  %v12631_v10 = vld [vmem:[#allocation3 + $0x169] sm:$0xff]  ;;  %v4842_v16 = vsel %vm4539_vm3, %v12647_v11, %v12481_v42 }
 0x313   : > { %5129 = vmatmul.mubr.f32.gmra.mrb[36].mxu0 %v4839_v48  ;;  %4505 = vrot.lane.b32.xlu0 %v12224_v30, %s10482_s10 }
 0x314   : > { %5370 = vmatmul.mubr.f32.gmra.mrb[4].mxu1 %v4542_v37  ;;  %8824 = vmatprep.mubr.msk.f32.mxu0 %vm4539_vm3, %v12613_v62  ;;  %v12660_v37 = vld [vmem:[#allocation3 + $0x189] sm:$0xff] }
 0x315   : > { %v4450_v2 = vpop.permute.xlu0 %4449  ;;  %8840 = vmatprep.mubr.msk.f32.mxu1 %vm4539_vm3, %v12302_v14  ;;  %5711 = vrot.lane.b32.xlu1 %v5584_v9, %s10482_s10  ;;  %v12645_v14 = vld [vmem:[#allocation3 + $0x171] sm:$0xff]  ;;  %v12662_v9 = vld [vmem:[#allocation3 + $0x187] sm:$0xff] }
 0x316   : > { %v4543_v30 = vsel %vm4539_vm3, %v12310_v45, %v4450_v2  ;;  %v12649_v48 = vpop.permute.xlu1 %5655  ;;  %14627 = vst [vmem:[#allocation46_spill] sm:$0xff] %v12662_v9  ;;  %v4843_v42 = vsel %vm4539_vm3, %v12662_v9, %v12494_v46 }
 0x317   : > { %5134 = vmatmul.mubr.f32.gmra.mrb[38].mxu0 %v4840_v19 }
 0x318   : > { %5375 = vmatmul.mubr.f32.gmra.mrb[6].mxu1 %v4543_v30  ;;  %8825 = vmatprep.mubr.msk.f32.mxu0 %vm4539_vm3, %v12631_v10 }
 0x319   : > { %v4452_v33 = vpop.permute.xlu0 %4451  ;;  %8841 = vmatprep.mubr.msk.f32.mxu1 %vm4539_vm3, %v12314_v17 }
 0x31a   : > { %v4544_v45 = vsel %vm4539_vm3, %v12316_v18, %v4452_v33  ;;  %v12666_v2 = vpop.permute.xlu1 %5657  ;;  %v12677_v33 = vld [vmem:[#allocation3 + $0x18f] sm:$0xff] }
 0x31b   : > { %5139 = vmatmul.mubr.f32.gmra.mrb[40].mxu0 %v4841_v22  ;;  %v12675_v22 = vld [vmem:[#allocation3 + $0x191] sm:$0xff]  ;;  %14628 = vst [vmem:[#allocation47_spill] sm:$0xff] %v12677_v33  ;;  %v4844_v46 = vsel %vm4539_vm3, %v12677_v33, %v12500_v53 }
 0x31c   : > { %5380 = vmatmul.mubr.f32.gmra.mrb[8].mxu1 %v4544_v45  ;;  %8826 = vmatprep.mubr.msk.f32.mxu0 %vm4539_vm3, %v12645_v14  ;;  %v12705_v33 = vld [vmem:[#allocation3 + $0x1af] sm:$0xff] }
 0x31d   : > { %v4454_v61 = vpop.permute.xlu0 %4453  ;;  %8842 = vmatprep.mubr.msk.f32.mxu1 %vm4539_vm3, %v12331_v58  ;;  %14632 = vst [vmem:[#allocation51_spill] sm:$0xff] %v12705_v33 }
 0x31e   : > { %v4545_v19 = vsel %vm4539_vm3, %v12333_v21, %v4454_v61  ;;  %v12688_v61 = vld [vmem:[#allocation3 + $0x1a9] sm:$0xff]  ;;  %v12692_v9 = vpop.permute.xlu1 %5659 }
 0x31f   : > { %5144 = vmatmul.mubr.f32.gmra.mrb[42].mxu0 %v4842_v16  ;;  %14629 = vst [vmem:[#allocation48_spill] sm:$0xff] %v12688_v61 }
 0x320   : > { %5385 = vmatmul.mubr.f32.gmra.mrb[10].mxu1 %v4545_v19  ;;  %8827 = vmatprep.mubr.msk.f32.mxu0 %vm4539_vm3, %v12660_v37  ;;  %v12690_v19 = vld [vmem:[#allocation3 + $0x1a7] sm:$0xff] }
 0x321   : > { %v4456_v30 = vpop.permute.xlu0 %4455  ;;  %8843 = vmatprep.mubr.msk.f32.mxu1 %vm4539_vm3, %v12346_v6  ;;  %14630 = vst [vmem:[#allocation49_spill] sm:$0xff] %v12690_v19  ;;  %v4845_v53 = vsel %vm4539_vm3, %v12690_v19, %v12512_v3  ;;  %v4846_v3 = vsel %vm4539_vm3, %v12705_v33, %v12518_v28  ;;  %v12718_v19 = vld [vmem:[#allocation3 + $0x1c9] sm:$0xff] }
 0x322   : > { %v4546_v45 = vsel %vm4539_vm3, %v12348_v36, %v4456_v30  ;;  %v12733_v33 = vld [vmem:[#allocation3 + $0x1cf] sm:$0xff] }
 0x323   : > { %5149 = vmatmul.mubr.f32.gmra.mrb[44].mxu0 %v4843_v42  ;;  %14635 = vst [vmem:[#allocation54_spill] sm:$0xff] %v12733_v33 }
 0x324   : > { %5390 = vmatmul.mubr.f32.gmra.mrb[12].mxu1 %v4546_v45  ;;  %8828 = vmatprep.mubr.msk.f32.mxu0 %vm4539_vm3, %v12675_v22  ;;  %v12703_v45 = vld [vmem:[#allocation3 + $0x1b1] sm:$0xff] }
 0x325   : > { %v4458_v16 = vpop.permute.xlu0 %4457  ;;  %8844 = vmatprep.mubr.msk.f32.mxu1 %vm4539_vm3, %v12361_v63  ;;  %14631 = vst [vmem:[#allocation50_spill] sm:$0xff] %v12703_v45 }
 0x326   : > { %v4547_v42 = vsel %vm4539_vm3, %v12363_v4, %v4458_v16 }
 0x327   : > { %5154 = vmatmul.mubr.f32.gmra.mrb[46].mxu0 %v4844_v46  ;;  %v12709_v46 = vpop.permute.xlu1 %5661 }
 0x328   : > { %5395 = vmatmul.mubr.f32.gmra.mrb[14].mxu1 %v4547_v42  ;;  %8829 = vmatprep.mubr.msk.f32.mxu0 %vm4539_vm3, %v12688_v61  ;;  %v12720_v61 = vld [vmem:[#allocation3 + $0x1c7] sm:$0xff] }
 0x329   : > { %v4460_v30 = vpop.permute.xlu0 %4459  ;;  %8845 = vmatprep.mubr.msk.f32.mxu1 %vm4539_vm3, %v12378_v25  ;;  %14633 = vst [vmem:[#allocation52_spill] sm:$0xff] %v12720_v61  ;;  %v4847_v28 = vsel %vm4539_vm3, %v12720_v61, %v12529_v41  ;;  %v4848_v41 = vsel %vm4539_vm3, %v12733_v33, %v12535_v24  ;;  %v12748_v61 = vld [vmem:[#allocation3 + $0x1e7] sm:$0xff]  ;;  %v12761_v33 = vld [vmem:[#allocation3 + $0x1f1] sm:$0xff] }
 0x32a   : > { %v4548_v16 = vsel %vm4539_vm3, %v12382_v23, %v4460_v30  ;;  %14637 = vst [vmem:[#allocation56_spill] sm:$0xff] %v12748_v61  ;;  %v4849_v24 = vsel %vm4539_vm3, %v12748_v61, %v12546_v44  ;;  %v12776_v61 = vld [vmem:[#allocation3 + $0x207] sm:$0xff] }
 0x32b   : > { %5159 = vmatmul.mubr.f32.gmra.mrb[48].mxu0 %v4845_v53  ;;  %14639 = vst [vmem:[#allocation58_spill] sm:$0xff] %v12776_v61 }
 0x32c   : > { %5400 = vmatmul.mubr.f32.gmra.mrb[16].mxu1 %v4548_v16  ;;  %8830 = vmatprep.mubr.msk.f32.mxu0 %vm4539_vm3, %v12703_v45  ;;  %v12731_v16 = vld [vmem:[#allocation3 + $0x1d1] sm:$0xff]  ;;  %v12735_v45 = vpop.permute.xlu1 %5663 }
 0x32d   : > { %v4462_v42 = vpop.permute.xlu0 %4461  ;;  %8846 = vmatprep.mubr.msk.f32.mxu1 %vm4539_vm3, %v12397_v27  ;;  %14634 = vst [vmem:[#allocation53_spill] sm:$0xff] %v12731_v16 }
 0x32e   : > { %v4549_v53 = vsel %vm4539_vm3, %v12401_v43, %v4462_v42 }
 0x32f   : > { %5164 = vmatmul.mubr.f32.gmra.mrb[50].mxu0 %v4846_v3 }
 0x330   : > { %5405 = vmatmul.mubr.f32.gmra.mrb[18].mxu1 %v4549_v53  ;;  %8831 = vmatprep.mubr.msk.f32.mxu0 %vm4539_vm3, %v12718_v19  ;;  %v12746_v53 = vld [vmem:[#allocation3 + $0x1e9] sm:$0xff] }
 0x331   : > { %v4464_v30 = vpop.permute.xlu0 %4463  ;;  %8847 = vmatprep.mubr.msk.f32.mxu1 %vm4539_vm3, %v12416_v57  ;;  %14636 = vst [vmem:[#allocation55_spill] sm:$0xff] %v12746_v53 }
 0x332   : > { %v4550_v3 = vsel %vm4539_vm3, %v12420_v31, %v4464_v30 }
 0x333   : > { %5169 = vmatmul.mubr.f32.gmra.mrb[52].mxu0 %v4847_v28  ;;  %v12752_v28 = vpop.permute.xlu1 %5665 }
 0x334   : > { %5410 = vmatmul.mubr.f32.gmra.mrb[20].mxu1 %v4550_v3  ;;  %8832 = vmatprep.mubr.msk.f32.mxu0 %vm4539_vm3, %v12731_v16  ;;  %v12763_v16 = vld [vmem:[#allocation3 + $0x1ef] sm:$0xff] }
 0x335   : > { %v4466_v42 = vpop.permute.xlu0 %4465  ;;  %8848 = vmatprep.mubr.msk.f32.mxu1 %vm4539_vm3, %v12435_v26  ;;  %14638 = vst [vmem:[#allocation57_spill] sm:$0xff] %v12763_v16  ;;  %v4850_v44 = vsel %vm4539_vm3, %v12763_v16, %v12552_v7  ;;  %v4851_v7 = vsel %vm4539_vm3, %v12776_v61, %v12562_v20  ;;  %v12791_v16 = vld [vmem:[#allocation3 + $0x20f] sm:$0xff] }
 0x336   : > { %v4551_v30 = vsel %vm4539_vm3, %v12439_v1, %v4466_v42  ;;  %v4852_v20 = vsel %vm4539_vm3, %v12791_v16, %v12570_v56 }
 0x337   : > { %5174 = vmatmul.mubr.f32.gmra.mrb[54].mxu0 %v4848_v41 }
 0x338   : > { %5415 = vmatmul.mubr.f32.gmra.mrb[22].mxu1 %v4551_v30  ;;  %8833 = vmatprep.mubr.msk.f32.mxu0 %vm4539_vm3, %v12746_v53  ;;  %v12774_v30 = vld [vmem:[#allocation3 + $0x209] sm:$0xff]  ;;  %v12778_v53 = vpop.permute.xlu1 %5667 }
 0x339   : > { %v4468_v3 = vpop.permute.xlu0 %4467  ;;  %8849 = vmatprep.mubr.msk.f32.mxu1 %vm4539_vm3, %v12455_v60 }
 0x33a   : > { %v4552_v41 = vsel %vm4539_vm3, %v12459_v39, %v4468_v3 }
 0x33b   : > { %5179 = vmatmul.mubr.f32.gmra.mrb[56].mxu0 %v4849_v24 }
 0x33c   : > { %5420 = vmatmul.mubr.f32.gmra.mrb[24].mxu1 %v4552_v41  ;;  %8834 = vmatprep.mubr.msk.f32.mxu0 %vm4539_vm3, %v12761_v33  ;;  %v12789_v41 = vld [vmem:[#allocation3 + $0x211] sm:$0xff] }
 0x33d   : > { %v4470_v42 = vpop.permute.xlu0 %4469  ;;  %8850 = vmatprep.mubr.msk.f32.mxu1 %vm4539_vm3, %v12475_v47 }
 0x33e   : > { %v4553_v24 = vsel %vm4539_vm3, %v12479_v40, %v4470_v42 }
 0x33f   : > { %5184 = vmatmul.mubr.f32.gmra.mrb[58].mxu0 %v4850_v44  ;;  %v12795_v44 = vpop.permute.xlu1 %5669 }
 0x340   : > { %5425 = vmatmul.mubr.f32.gmra.mrb[26].mxu1 %v4553_v24  ;;  %8835 = vmatprep.mubr.msk.f32.mxu0 %vm4539_vm3, %v12774_v30 }
 0x341   : > { %v4472_v3 = vpop.permute.xlu0 %4471  ;;  %8851 = vmatprep.mubr.msk.f32.mxu1 %vm4539_vm3, %v12496_v51 }
 0x342   : > { %v4554_v42 = vsel %vm4539_vm3, %v12498_v35, %v4472_v3 }
 0x343   : > { %5189 = vmatmul.mubr.f32.gmra.mrb[60].mxu0 %v4851_v7  ;;  %v5745_v7 = vsel %vm4539_vm3, %v12316_v18, %v12584_v38  ;;  %v12813_v56 = vpop.permute.xlu1 %5671  ;;  %v5746_v18 = vsel %vm4539_vm3, %v12333_v21, %v12601_v52  ;;  %v14640_v21 = vld [vmem:[#allocation45_spill] sm:$0xff] }
 0x344   : > { %5430 = vmatmul.mubr.f32.gmra.mrb[28].mxu1 %v4554_v42  ;;  %8836 = vmatprep.mubr.msk.f32.mxu0 %vm4539_vm3, %v12789_v41 }
 0x345   : > { %v4474_v24 = vpop.permute.xlu0 %4473  ;;  %8852 = vmatprep.mubr.msk.f32.mxu1 %vm4539_vm3, %v12514_v5 }
 0x346   : > { %v4555_v61 = vsel %vm4539_vm3, %v12516_v54, %v4474_v24 }
 0x347   : > { %5194 = vmatmul.mubr.f32.gmra.mrb[62].mxu0 %v4852_v20 }
 0x348   : > { %5435 = vmatmul.mubr.f32.gmra.mrb[30].mxu1 %v4555_v61  ;;  %8893 = vmatprep.mubr.msk.f32.mxu0 %vm4539_vm3, %v12314_v17  ;;  %v12826_v61 = vpop.permute.xlu1 %5673 }
 0x349   : > { %v4476_v3 = vpop.permute.xlu0 %4475  ;;  %8853 = vmatprep.mubr.msk.f32.mxu1 %vm4539_vm3, %v12531_v0 }
 0x34a   : > { %v4556_v42 = vsel %vm4539_vm3, %v12533_v59, %v4476_v3 }
 0x34b   : > { %5963 = vmatmul.mubr.f32.vlgmr.msra.gmra.mrb[64].mxu0 %v5745_v7 }
 0x34c   : > { %5440 = vmatmul.mubr.f32.gmra.mrb[32].mxu1 %v4556_v42  ;;  %8894 = vmatprep.mubr.msk.f32.mxu0 %vm4539_vm3, %v12331_v58  ;;  %v5747_v58 = vsel %vm4539_vm3, %v12348_v36, %v12622_v50  ;;  %v12844_v36 = vpop.permute.xlu1 %5675 }
 0x34d   : > { %v4478_v38 = vpop.permute.xlu0 %4477  ;;  %8854 = vmatprep.mubr.msk.f32.mxu1 %vm4539_vm3, %v12548_v29 }
 0x34e   : > { %v4557_v17 = vsel %vm4539_vm3, %v12550_v13, %v4478_v38 }
 0x34f   : > { %5968 = vmatmul.mubr.f32.gmra.mrb[66].mxu0 %v5746_v18 }
 0x350   : > { %5445 = vmatmul.mubr.f32.gmra.mrb[34].mxu1 %v4557_v17  ;;  %8895 = vmatprep.mubr.msk.f32.mxu0 %vm4539_vm3, %v12346_v6  ;;  %v5748_v6 = vsel %vm4539_vm3, %v12363_v4, %v12649_v48  ;;  %v12857_v48 = vpop.permute.xlu1 %5677 }
 0x351   : > { %v4480_v20 = vpop.permute.xlu0 %4479  ;;  %8855 = vmatprep.mubr.msk.f32.mxu1 %vm4539_vm3, %v12564_v49 }
 0x352   : > { %v4558_v52 = vsel %vm4539_vm3, %v14640_v21, %v4480_v20  ;;  %v14643_v20 = vld [vmem:[#allocation48_spill] sm:$0xff] }
 0x353   : > { %5973 = vmatmul.mubr.f32.gmra.mrb[68].mxu0 %v5747_v58 }
 0x354   : > { %5450 = vmatmul.mubr.f32.gmra.mrb[36].mxu1 %v4558_v52  ;;  %8896 = vmatprep.mubr.msk.f32.mxu0 %vm4539_vm3, %v12361_v63  ;;  %v5749_v63 = vsel %vm4539_vm3, %v12382_v23, %v12666_v2 }
 0x355   : > { %v4482_v24 = vpop.permute.xlu0 %4481  ;;  %8856 = vmatprep.mubr.msk.f32.mxu1 %vm4539_vm3, %v12579_v32 }
 0x356   : > { %v4559_v50 = vsel %vm4539_vm3, %v12581_v15, %v4482_v24  ;;  %v14645_v24 = vld [vmem:[#allocation50_spill] sm:$0xff] }
 0x357   : > { %5978 = vmatmul.mubr.f32.gmra.mrb[70].mxu0 %v5748_v6 }
 0x358   : > { %5455 = vmatmul.mubr.f32.gmra.mrb[38].mxu1 %v4559_v50  ;;  %8897 = vmatprep.mubr.msk.f32.mxu0 %vm4539_vm3, %v12378_v25  ;;  %v5750_v25 = vsel %vm4539_vm3, %v12401_v43, %v12692_v9  ;;  %v12875_v43 = vpop.permute.xlu1 %5679 }
 0x359   : > { %v4484_v7 = vpop.permute.xlu0 %4483  ;;  %8857 = vmatprep.mubr.msk.f32.mxu1 %vm4539_vm3, %v12595_v8 }
 0x35a   : > { %v4560_v4 = vsel %vm4539_vm3, %v12597_v55, %v4484_v7 }
 0x35b   : > { %5983 = vmatmul.mubr.f32.gmra.mrb[72].mxu0 %v5749_v63 }
 0x35c   : > { %5460 = vmatmul.mubr.f32.gmra.mrb[40].mxu1 %v4560_v4  ;;  %8898 = vmatprep.mubr.msk.f32.mxu0 %vm4539_vm3, %v12397_v27  ;;  %v5751_v27 = vsel %vm4539_vm3, %v12420_v31, %v12709_v46  ;;  %v12888_v46 = vpop.permute.xlu1 %5681  ;;  %v14648_v4 = vld [vmem:[#allocation53_spill] sm:$0xff] }
 0x35d   : > { %v4486_v3 = vpop.permute.xlu0 %4485  ;;  %8858 = vmatprep.mubr.msk.f32.mxu1 %vm4539_vm3, %v12613_v62 }
 0x35e   : > { %v4561_v23 = vsel %vm4539_vm3, %v12615_v12, %v4486_v3 }
 0x35f   : > { %5988 = vmatmul.mubr.f32.gmra.mrb[74].mxu0 %v5750_v25 }
 0x360   : > { %5465 = vmatmul.mubr.f32.gmra.mrb[42].mxu1 %v4561_v23  ;;  %8899 = vmatprep.mubr.msk.f32.mxu0 %vm4539_vm3, %v12416_v57  ;;  %v5752_v57 = vsel %vm4539_vm3, %v12439_v1, %v12735_v45  ;;  %v14641_v1 = vld [vmem:[#allocation46_spill] sm:$0xff]  ;;  %v14650_v23 = vld [vmem:[#allocation55_spill] sm:$0xff] }
 0x361   : > { %v4488_v2 = vpop.permute.xlu0 %4487  ;;  %8859 = vmatprep.mubr.msk.f32.mxu1 %vm4539_vm3, %v12631_v10 }
 0x362   : > { %v4562_v9 = vsel %vm4539_vm3, %v12633_v34, %v4488_v2 }
 0x363   : > { %5993 = vmatmul.mubr.f32.gmra.mrb[76].mxu0 %v5751_v27 }
 0x364   : > { %5470 = vmatmul.mubr.f32.gmra.mrb[44].mxu1 %v4562_v9  ;;  %8900 = vmatprep.mubr.msk.f32.mxu0 %vm4539_vm3, %v12435_v26  ;;  %v5753_v26 = vsel %vm4539_vm3, %v12459_v39, %v12752_v28  ;;  %v5684_v39 = vpop.permute.xlu1 %5683  ;;  %v14642_v28 = vld [vmem:[#allocation47_spill] sm:$0xff] }
 0x365   : > { %v4490_v42 = vpop.permute.xlu0 %4489  ;;  %8860 = vmatprep.mubr.msk.f32.mxu1 %vm4539_vm3, %v12645_v14 }
 0x366   : > { %v4563_v31 = vsel %vm4539_vm3, %v12647_v11, %v4490_v42 }
 0x367   : > { %5998 = vmatmul.mubr.f32.gmra.mrb[78].mxu0 %v5752_v57 }
 0x368   : > { %5475 = vmatmul.mubr.f32.gmra.mrb[46].mxu1 %v4563_v31  ;;  %8901 = vmatprep.mubr.msk.f32.mxu0 %vm4539_vm3, %v12455_v60  ;;  %v5754_v60 = vsel %vm4539_vm3, %v12479_v40, %v12778_v53  ;;  %v14644_v40 = vld [vmem:[#allocation49_spill] sm:$0xff]  ;;  %v5686_v52 = vpop.permute.xlu1 %5685 }
 0x369   : > { %v4492_v18 = vpop.permute.xlu0 %4491  ;;  %8861 = vmatprep.mubr.msk.f32.mxu1 %vm4539_vm3, %v12660_v37 }
 0x36a   : > { %v4564_v45 = vsel %vm4539_vm3, %v14641_v1, %v4492_v18 }
 0x36b   : > { %6003 = vmatmul.mubr.f32.gmra.mrb[80].mxu0 %v5753_v26  ;;  %v8927_v26 = vld [vmem:[%s10626_s0 + $0xc8] sm:$0xff] }
 0x36c   : > { %5480 = vmatmul.mubr.f32.gmra.mrb[48].mxu1 %v4564_v45  ;;  %8902 = vmatprep.mubr.msk.f32.mxu0 %vm4539_vm3, %v12475_v47  ;;  %v5755_v47 = vsel %vm4539_vm3, %v12498_v35, %v12795_v44  ;;  %v14646_v35 = vld [vmem:[#allocation51_spill] sm:$0xff] }
 0x36d   : > { %v4494_v38 = vpop.permute.xlu0 %4493  ;;  %8862 = vmatprep.mubr.msk.f32.mxu1 %vm4539_vm3, %v12675_v22 }
 0x36e   : > { %v4565_v17 = vsel %vm4539_vm3, %v14642_v28, %v4494_v38 }
 0x36f   : > { %6008 = vmatmul.mubr.f32.gmra.mrb[82].mxu0 %v5754_v60 }
 0x370   : > { %5485 = vmatmul.mubr.f32.gmra.mrb[50].mxu1 %v4565_v17  ;;  %8903 = vmatprep.mubr.msk.f32.mxu0 %vm4539_vm3, %v12496_v51  ;;  %v5756_v51 = vsel %vm4539_vm3, %v12516_v54, %v12813_v56  ;;  %v5688_v54 = vpop.permute.xlu1 %5687  ;;  %v14647_v56 = vld [vmem:[#allocation52_spill] sm:$0xff] }
 0x371   : > { %v4496_v58 = vpop.permute.xlu0 %4495  ;;  %8863 = vmatprep.mubr.msk.f32.mxu1 %vm4539_vm3, %v14643_v20 }
 0x372   : > { %v4566_v53 = vsel %vm4539_vm3, %v14644_v40, %v4496_v58 }
 0x373   : > { %6013 = vmatmul.mubr.f32.gmra.mrb[84].mxu0 %v5755_v47 }
 0x374   : > { %5490 = vmatmul.mubr.f32.gmra.mrb[52].mxu1 %v4566_v53  ;;  %8904 = vmatprep.mubr.msk.f32.mxu0 %vm4539_vm3, %v12514_v5  ;;  %v5757_v5 = vsel %vm4539_vm3, %v12533_v59, %v12826_v61  ;;  %v14649_v59 = vld [vmem:[#allocation54_spill] sm:$0xff]  ;;  %v5690_v25 = vpop.permute.xlu1 %5689  ;;  %v8928_v53 = vld [vmem:[%s10626_s0 + $0xd0] sm:$0xff] }
 0x375   : > { %v4498_v6 = vpop.permute.xlu0 %4497  ;;  %8864 = vmatprep.mubr.msk.f32.mxu1 %vm4539_vm3, %v14645_v24 }
 0x376   : > { %v4567_v44 = vsel %vm4539_vm3, %v14646_v35, %v4498_v6 }
 0x377   : > { %6018 = vmatmul.mubr.f32.gmra.mrb[86].mxu0 %v5756_v51 }
 0x378   : > { %5495 = vmatmul.mubr.f32.gmra.mrb[54].mxu1 %v4567_v44  ;;  %8905 = vmatprep.mubr.msk.f32.mxu0 %vm4539_vm3, %v12531_v0  ;;  %v5758_v0 = vsel %vm4539_vm3, %v12550_v13, %v12844_v36  ;;  %v14651_v13 = vld [vmem:[#allocation56_spill] sm:$0xff] }
 0x379   : > { %v4500_v50 = vpop.permute.xlu0 %4499  ;;  %8865 = vmatprep.mubr.msk.f32.mxu1 %vm4539_vm3, %v12718_v19 }
 0x37a   : > { %v4568_v63 = vsel %vm4539_vm3, %v14647_v56, %v4500_v50 }
 0x37b   : > { %6023 = vmatmul.mubr.f32.gmra.mrb[88].mxu0 %v5757_v5 }
 0x37c   : > { %5500 = vmatmul.mubr.f32.gmra.mrb[56].mxu1 %v4568_v63  ;;  %8906 = vmatprep.mubr.msk.f32.mxu0 %vm4539_vm3, %v12548_v29  ;;  %v5759_v29 = vsel %vm4539_vm3, %v14640_v21, %v12857_v48  ;;  %v5692_v21 = vpop.permute.xlu1 %5691  ;;  %v14652_v48 = vld [vmem:[#allocation57_spill] sm:$0xff] }
 0x37d   : > { %v4502_v7 = vpop.permute.xlu0 %4501  ;;  %8866 = vmatprep.mubr.msk.f32.mxu1 %vm4539_vm3, %v14648_v4 }
 0x37e   : > { %v4569_v61 = vsel %vm4539_vm3, %v14649_v59, %v4502_v7 }
 0x37f   : > { %6028 = vmatmul.mubr.f32.gmra.mrb[90].mxu0 %v5758_v0 }
 0x380   : > { %5505 = vmatmul.mubr.f32.gmra.mrb[58].mxu1 %v4569_v61  ;;  %8907 = vmatprep.mubr.msk.f32.mxu0 %vm4539_vm3, %v12564_v49  ;;  %v5760_v49 = vsel %vm4539_vm3, %v12581_v15, %v12875_v43  ;;  %v5694_v9 = vpop.permute.xlu1 %5693  ;;  %v5762_v15 = vsel %vm4539_vm3, %v12615_v12, %v5684_v39  ;;  %v5763_v43 = vsel %vm4539_vm3, %v12633_v34, %v5686_v52  ;;  %v14653_v39 = vmov 0.0|0.0   ;;  %v8929_v52 = vld [vmem:[%s10626_s0 + $0xd8] sm:$0xff]  ;;  %v8930_v61 = vld [vmem:[%s10626_s0 + $0xe0] sm:$0xff] }
 0x381   : > { %v4504_v3 = vpop.permute.xlu0 %4503  ;;  %8867 = vmatprep.mubr.msk.f32.mxu1 %vm4539_vm3, %v14650_v23  ;;  %v5765_v12 = vsel %vm4539_vm3, %v14641_v1, %v5690_v25  ;;  %v9946_v6 = vpack.c.bf16 %v8929_v52, %v8928_v53  ;;  %v8931_v25 = vld [vmem:[%s10626_s0 + $0xe8] sm:$0xff] }
 0x382   : > { %v4570_v36 = vsel %vm4539_vm3, %v14651_v13, %v4504_v3 }
 0x383   : > { %6033 = vmatmul.mubr.f32.gmra.mrb[92].mxu0 %v5759_v29 }
 0x384   : > { %5510 = vmatmul.mubr.f32.gmra.mrb[60].mxu1 %v4570_v36  ;;  %8908 = vmatprep.mubr.msk.f32.mxu0 %vm4539_vm3, %v12579_v32  ;;  %v5761_v32 = vsel %vm4539_vm3, %v12597_v55, %v12888_v46  ;;  %v5764_v55 = vsel %vm4539_vm3, %v12647_v11, %v5688_v54  ;;  %v8926_v46 = vld [vmem:[%s10626_s0 + $0xc0] sm:$0xff]  ;;  %v14654_v54 = vld [vmem:[#allocation58_spill] sm:$0xff] }
 0x385   : > { %v4506_v27 = vpop.permute.xlu0 %4505  ;;  %8868 = vmatprep.mubr.msk.f32.mxu1 %vm4539_vm3, %v12761_v33  ;;  %v9943_v1 = vpack.c.bf16 %v8927_v26, %v8926_v46  ;;  %v5552_v36 = vld [vmem:[#allocation3 + $0x22f] sm:$0xff]  ;;  %v8937_v26 = vld [vmem:[%s10626_s0 + $0x118] sm:$0xff] }
 0x386   : > { %v4571_v2 = vsel %vm4539_vm3, %v14652_v48, %v4506_v27  ;;  %v8936_v46 = vld [vmem:[%s10626_s0 + $0x110] sm:$0xff] }
 0x387   : > { %6038 = vmatmul.mubr.f32.gmra.mrb[94].mxu0 %v5760_v49  ;;  %9944 = vmatpush1.bf16.msra.mxu1 %v9943_v1 }
 0x388   : > { %5515 = vmatmul.mubr.f32.gmra.mrb[62].mxu1 %v4571_v2  ;;  %8909 = vmatprep.mubr.msk.f32.mxu0 %vm4539_vm3, %v12595_v8  ;;  %v5696_v8 = vpop.permute.xlu1 %5695 }
 0x389   : > { %9945 = vmatprep.subr.bf16.mxu1 %v14653_v39 }
 0x38b   : > { %6043 = vmatmul.mubr.f32.gmra.mrb[96].mxu0 %v5761_v32  ;;  %9947 = vmatpush1.bf16.msra.mxu1 %v9946_v6  ;;  %v8938_v6 = vld [vmem:[%s10626_s0 + $0x120] sm:$0xff] }
 0x38c   : > { %8910 = vmatprep.mubr.msk.f32.mxu0 %vm4539_vm3, %v12613_v62  ;;  %v5698_v62 = vpop.permute.xlu1 %5697  ;;  %9948 = vmatprep.subr.bf16.mxu1 %v14653_v39 }
 0x38d   : > { %v5769_v60 = vsel %vm4539_vm3, %v14647_v56, %v5698_v62  ;;  %v8934_v62 = vld [vmem:[%s10626_s0 + $0x100] sm:$0xff] }
 0x38f   : > { %6048 = vmatmul.mubr.f32.gmra.mrb[98].mxu0 %v5762_v15 }
 0x390   : > { %8911 = vmatprep.mubr.msk.f32.mxu0 %vm4539_vm3, %v12631_v10  ;;  %v5766_v10 = vsel %vm4539_vm3, %v14642_v28, %v5692_v21  ;;  %v5700_v34 = vpop.permute.xlu1 %5699  ;;  %v8932_v21 = vld [vmem:[%s10626_s0 + $0xf0] sm:$0xff] }
 0x391   : > { %v5770_v47 = vsel %vm4539_vm3, %v14649_v59, %v5700_v34  ;;  %v5551_v59 = vld [vmem:[#allocation3 + $0x227] sm:$0xff] }
 0x393   : > { %6053 = vmatmul.mubr.f32.gmra.mrb[100].mxu0 %v5763_v43 }
 0x394   : > { %8912 = vmatprep.mubr.msk.f32.mxu0 %vm4539_vm3, %v12645_v14  ;;  %v5702_v31 = vpop.permute.xlu1 %5701 }
 0x397   : > { %6058 = vmatmul.mubr.f32.gmra.mrb[102].mxu0 %v5764_v55 }
 0x398   : > { %8913 = vmatprep.mubr.msk.f32.mxu0 %vm4539_vm3, %v12660_v37  ;;  %v5767_v37 = vsel %vm4539_vm3, %v14644_v40, %v5694_v9  ;;  %v5704_v38 = vpop.permute.xlu1 %5703  ;;  %v5771_v40 = vsel %vm4539_vm3, %v14651_v13, %v5702_v31  ;;  %v5616_v13 = vld [vmem:[#allocation3 + $0x231] sm:$0xff] }
 0x39b   : > { %6063 = vmatmul.mubr.f32.gmra.mrb[104].mxu0 %v5765_v12  ;;  %v8935_v12 = vld [vmem:[%s10626_s0 + $0x108] sm:$0xff] }
 0x39c   : > { %8914 = vmatprep.mubr.msk.f32.mxu0 %vm4539_vm3, %v12675_v22  ;;  %v5768_v22 = vsel %vm4539_vm3, %v14646_v35, %v5696_v8  ;;  %v5772_v35 = vsel %vm4539_vm3, %v14652_v48, %v5704_v38  ;;  %v8933_v48 = vld [vmem:[%s10626_s0 + $0xf8] sm:$0xff]  ;;  %v9955_v34 = vpack.c.bf16 %v8935_v12, %v8934_v62 }
 0x39d   : > { %v9952_v32 = vpack.c.bf16 %v8933_v48, %v8932_v21 }
 0x39e   : > { %v12987_v14 = vpop.f32.mrb[0].mxu0 }
 0x39f   : > { %v5042_v11 = vpop.f32.mrb[1].mxu0  ;;  %6068 = vmatmul.mubr.f32.gmra.mrb[106].mxu0 %v5766_v10 }
 0x3a0   : > { %8915 = vmatprep.mubr.msk.f32.mxu0 %vm4539_vm3, %v14643_v20  ;;  %v5706_v20 = vpop.permute.xlu1 %5705 }
 0x3a1   : > { %v5773_v56 = vsel %vm4539_vm3, %v14654_v54, %v5706_v20 }
 0x3a2   : > { %v12993_v57 = vpop.f32.mrb[2].mxu0 }
 0x3a3   : > { %v5047_v42 = vpop.f32.mrb[3].mxu0  ;;  %6073 = vmatmul.mubr.f32.gmra.mrb[108].mxu0 %v5767_v37 }
 0x3a4   : > { %8916 = vmatprep.mubr.msk.f32.mxu0 %vm4539_vm3, %v14645_v24  ;;  %v5708_v44 = vpop.permute.xlu1 %5707 }
 0x3a5   : > { %v5774_v7 = vsel %vm4539_vm3, %v12791_v16, %v5708_v44 }
 0x3a6   : > { %v13001_v18 = vpop.f32.mrb[4].mxu0 }
 0x3a7   : > { %v5052_v45 = vpop.f32.mrb[5].mxu0  ;;  %6078 = vmatmul.mubr.f32.gmra.mrb[110].mxu0 %v5768_v22 }
 0x3a8   : > { %8917 = vmatprep.mubr.msk.f32.mxu0 %vm4539_vm3, %v12718_v19  ;;  %v5710_v0 = vpop.permute.xlu1 %5709  ;;  %v9958_v45 = vpack.c.bf16 %v8937_v26, %v8936_v46 }
 0x3aa   : > { %v13008_v28 = vpop.f32.mrb[6].mxu0 }
 0x3ab   : > { %v5057_v17 = vpop.f32.mrb[7].mxu0  ;;  %6083 = vmatmul.mubr.f32.gmra.mrb[112].mxu0 %v5769_v60 }
 0x3ac   : > { %8918 = vmatprep.mubr.msk.f32.mxu0 %vm4539_vm3, %v14648_v4  ;;  %v5615_v4 = vld [vmem:[#allocation3 + $0x229] sm:$0xff] }
 0x3ae   : > { %v13014_v19 = vpop.f32.mrb[8].mxu0 }
 0x3af   : > { %v5062_v58 = vpop.f32.mrb[9].mxu0  ;;  %6088 = vmatmul.mubr.f32.gmra.mrb[114].mxu0 %v5770_v47 }
 0x3b0   : > { %8919 = vmatprep.mubr.msk.f32.mxu0 %vm4539_vm3, %v14650_v23  ;;  %v5775_v23 = vsel %vm4539_vm3, %v5551_v59, %v5710_v0 }
 0x3b2   : > { %v13022_v51 = vpop.f32.mrb[10].mxu0 }
 0x3b3   : > { %v5067_v24 = vpop.f32.mrb[11].mxu0  ;;  %6093 = vmatmul.mubr.f32.gmra.mrb[116].mxu0 %v5771_v40 }
 0x3b4   : > { %8920 = vmatprep.mubr.msk.f32.mxu0 %vm4539_vm3, %v12761_v33  ;;  %v8939_v24 = vld [vmem:[%s10626_s0 + $0x128] sm:$0xff] }
 0x3b5   : > { %v9961_v44 = vpack.c.bf16 %v8939_v24, %v8938_v6 }
 0x3b6   : > { %v13029_v5 = vpop.f32.mrb[12].mxu0 }
 0x3b7   : > { %v5072_v50 = vpop.f32.mrb[13].mxu0  ;;  %6098 = vmatmul.mubr.f32.gmra.mrb[118].mxu0 %v5772_v35 }
 0x3b8   : > { %8921 = vmatprep.mubr.msk.f32.mxu0 %vm4539_vm3, %v12774_v30  ;;  %v9949_v30 = vpack.c.bf16 %v8931_v25, %v8930_v61 }
 0x3ba   : > { %v13035_v33 = vpop.f32.mrb[14].mxu0  ;;  %9950 = vmatpush1.bf16.msra.mxu1 %v9949_v30 }
 0x3bb   : > { %v5077_v63 = vpop.f32.mrb[15].mxu0  ;;  %6103 = vmatmul.mubr.f32.gmra.mrb[120].mxu0 %v5773_v56  ;;  %9951 = vmatprep.subr.bf16.mxu1 %v14653_v39 }
 0x3bc   : > { %8922 = vmatprep.mubr.msk.f32.mxu0 %vm4539_vm3, %v12789_v41  ;;  %v5712_v41 = vpop.permute.xlu1 %5711 }
 0x3bd   : > { %v5776_v27 = vsel %vm4539_vm3, %v5552_v36, %v5712_v41 }
 0x3be   : > { %v13043_v29 = vpop.f32.mrb[16].mxu0  ;;  %9953 = vmatpush1.bf16.msra.mxu1 %v9952_v32 }
 0x3bf   : > { %v5082_v3 = vpop.f32.mrb[17].mxu0  ;;  %6108 = vmatmul.mubr.f32.gmra.mrb[122].mxu0 %v5774_v7  ;;  %9954 = vmatprep.subr.bf16.mxu1 %v14653_v39 }
 0x3c0   : > { %8923 = vmatprep.mubr.msk.f32.mxu0 %vm4539_vm3, %v5615_v4  ;;  %v8940_v3 = vld [vmem:[%s10626_s0 + $0x130] sm:$0xff] }
 0x3c2   : > { %v13048_v16 = vpop.f32.mrb[18].mxu0  ;;  %9956 = vmatpush1.bf16.msra.mxu1 %v9955_v34  ;;  %v8942_v34 = vld [vmem:[%s10626_s0 + $0x140] sm:$0xff] }
 0x3c3   : > { %v5087_v49 = vpop.f32.mrb[19].mxu0  ;;  %6113 = vmatmul.mubr.f32.gmra.mrb[124].mxu0 %v5775_v23  ;;  %9957 = vmatprep.subr.bf16.mxu1 %v14653_v39  ;;  %v8941_v23 = vld [vmem:[%s10626_s0 + $0x138] sm:$0xff] }
 0x3c4   : > { %8924 = vmatprep.mubr.msk.f32.mxu0 %vm4539_vm3, %v5616_v13  ;;  %v9964_v13 = vpack.c.bf16 %v8941_v23, %v8940_v3  ;;  %v8946_v23 = vld [vmem:[%s10626_s0 + $0x160] sm:$0xff] }
 0x3c6   : > { %v13054_v2 = vpop.f32.mrb[20].mxu0  ;;  %9959 = vmatpush1.bf16.msra.mxu1 %v9958_v45 }
 0x3c7   : > { %v5092_v9 = vpop.f32.mrb[21].mxu0  ;;  %6118 = vmatmul.mubr.f32.gmra.mrb[126].mxu0 %v5776_v27  ;;  %9960 = vmatprep.subr.bf16.mxu1 %v14653_v39 }
 0x3ca   : > { %v13057_v15 = vpop.f32.mrb[22].mxu0  ;;  %9962 = vmatpush1.bf16.msra.mxu1 %v9961_v44 }
 0x3cb   : > { %v5097_v43 = vpop.f32.mrb[23].mxu0  ;;  %9963 = vmatprep.subr.bf16.mxu1 %v14653_v39 }
 0x3ce   : > { %v13059_v8 = vpop.f32.mrb[24].mxu0  ;;  %9965 = vmatpush1.bf16.msra.mxu1 %v9964_v13  ;;  %v8947_v13 = vld [vmem:[%s10626_s0 + $0x168] sm:$0xff] }
 0x3cf   : > { %v5102_v55 = vpop.f32.mrb[25].mxu0  ;;  %9966 = vmatprep.subr.bf16.mxu1 %v14653_v39 }
 0x3d2   : > { %v13063_v10 = vpop.f32.mrb[26].mxu0 }
 0x3d3   : > { %v5107_v11 = vpop.f32.mrb[27].mxu0 }
 0x3d4   : > { %v8943_v11 = vld [vmem:[%s10626_s0 + $0x148] sm:$0xff] }
 0x3d6   : > { %v13066_v37 = vpop.f32.mrb[28].mxu0 }
 0x3d7   : > { %v5112_v42 = vpop.f32.mrb[29].mxu0 }
 0x3da   : > { %v13068_v31 = vpop.f32.mrb[30].mxu0 }
 0x3db   : > { %v5117_v22 = vpop.f32.mrb[31].mxu0 }
 0x3dc   : > { %v9967_v22 = vpack.c.bf16 %v8943_v11, %v8942_v34 }
 0x3de   : > { %v13072_v1 = vpop.f32.mrb[32].mxu0  ;;  %9968 = vmatpush1.bf16.msra.mxu1 %v9967_v22 }
 0x3df   : > { %v5361_v60 = vpop.f32.mrb[0].mxu1  ;;  %v5122_v38 = vpop.f32.mrb[33].mxu0  ;;  %9969 = vmatprep.subr.bf16.mxu1 %v14653_v39 }
 0x3e0   : > { %v13075_v17 = vadd.f32 %v5361_v60, %v12987_v14  ;;  %v5363_v47 = vpop.f32.mrb[1].mxu1 }
 0x3e2   : > { %v13078_v58 = vpop.f32.mrb[34].mxu0 }
 0x3e3   : > { %v5366_v20 = vpop.f32.mrb[2].mxu1  ;;  %v5127_v40 = vpop.f32.mrb[35].mxu0 }
 0x3e4   : > { %v13081_v53 = vadd.f32 %v5366_v20, %v12993_v57  ;;  %v5368_v52 = vpop.f32.mrb[3].mxu1  ;;  %v8944_v40 = vld [vmem:[%s10626_s0 + $0x150] sm:$0xff] }
 0x3e5   : > { %v8945_v52 = vld [vmem:[%s10626_s0 + $0x158] sm:$0xff] }
 0x3e6   : > { %v13085_v35 = vpop.f32.mrb[36].mxu0  ;;  %v9970_v24 = vpack.c.bf16 %v8945_v52, %v8944_v40 }
 0x3e7   : > { %v5371_v50 = vpop.f32.mrb[4].mxu1  ;;  %v5132_v14 = vpop.f32.mrb[37].mxu0 }
 0x3e8   : > { %v13088_v54 = vadd.f32 %v5371_v50, %v13001_v18  ;;  %v5373_v56 = vpop.f32.mrb[5].mxu1  ;;  %9971 = vmatpush1.bf16.msra.mxu1 %v9970_v24 }
 0x3e9   : > { %9972 = vmatprep.subr.bf16.mxu1 %v14653_v39 }
 0x3ea   : > { %v13091_v63 = vpop.f32.mrb[38].mxu0 }
 0x3eb   : > { %v5376_v57 = vpop.f32.mrb[6].mxu1  ;;  %v5137_v0 = vpop.f32.mrb[39].mxu0 }
 0x3ec   : > { %v13094_v7 = vadd.f32 %v5376_v57, %v13008_v28  ;;  %v5378_v4 = vpop.f32.mrb[7].mxu1 }
 0x3ee   : > { %v13096_v59 = vpop.f32.mrb[40].mxu0 }
 0x3ef   : > { %v5381_v61 = vpop.f32.mrb[8].mxu1  ;;  %v5142_v25 = vpop.f32.mrb[41].mxu0 }
 0x3f0   : > { %v13099_v30 = vadd.f32 %v5381_v61, %v13014_v19  ;;  %v5383_v18 = vpop.f32.mrb[9].mxu1 }
 0x3f2   : > { %v13103_v41 = vpop.f32.mrb[42].mxu0 }
 0x3f3   : > { %v5386_v36 = vpop.f32.mrb[10].mxu1  ;;  %v5147_v49 = vpop.f32.mrb[43].mxu0 }
 0x3f4   : > { %v13106_v28 = vadd.f32 %v5386_v36, %v13022_v51  ;;  %v5388_v27 = vpop.f32.mrb[11].mxu1  ;;  %v9973_v49 = vpack.c.bf16 %v8947_v13, %v8946_v23 }
 0x3f6   : > { %v13109_v21 = vpop.f32.mrb[44].mxu0  ;;  %9974 = vmatpush1.bf16.msra.mxu1 %v9973_v49 }
 0x3f7   : > { %v5391_v19 = vpop.f32.mrb[12].mxu1  ;;  %v5152_v48 = vpop.f32.mrb[45].mxu0  ;;  %9975 = vmatprep.subr.bf16.mxu1 %v14653_v39 }
 0x3f8   : > { %v13112_v32 = vadd.f32 %v5391_v19, %v13029_v5  ;;  %v5393_v9 = vpop.f32.mrb[13].mxu1 }
 0x3fa   : > { %v13114_v43 = vpop.f32.mrb[46].mxu0 }
 0x3fb   : > { %v5396_v55 = vpop.f32.mrb[14].mxu1  ;;  %v5157_v62 = vpop.f32.mrb[47].mxu0 }
 0x3fc   : > { %v13117_v12 = vadd.f32 %v5396_v55, %v13035_v33  ;;  %v5398_v51 = vpop.f32.mrb[15].mxu1 }
 0x3fe   : > { %v13121_v42 = vpop.f32.mrb[48].mxu0 }
 0x3ff   : > { %v5401_v46 = vpop.f32.mrb[16].mxu1  ;;  %v5162_v26 = vpop.f32.mrb[49].mxu0 }
 0x400   : > { %v13124_v5 = vadd.f32 %v5401_v46, %v13043_v29  ;;  %v5403_v45 = vpop.f32.mrb[17].mxu1  ;;  %v8948_v26 = vld [vmem:[%s10626_s0 + $0x170] sm:$0xff] }
 0x401   : > { %v8949_v45 = vld [vmem:[%s10626_s0 + $0x178] sm:$0xff] }
 0x402   : > { %v13127_v60 = vpop.f32.mrb[50].mxu0 }
 0x403   : > { %v5406_v33 = vpop.f32.mrb[18].mxu1  ;;  %v5167_v38 = vpop.f32.mrb[51].mxu0 }
 0x404   : > { %v13130_v47 = vadd.f32 %v5406_v33, %v13048_v16  ;;  %v5408_v20 = vpop.f32.mrb[19].mxu1  ;;  %v9976_v33 = vpack.c.bf16 %v8949_v45, %v8948_v26  ;;  %v6517_v26 = vld [vmem:[%s10626_s0 + $0x10] sm:$0xff]  ;;  %v6518_v45 = vld [vmem:[%s10626_s0 + $0x18] sm:$0xff] }
 0x406   : > { %v13134_v6 = vpop.f32.mrb[52].mxu0  ;;  %9977 = vmatpush1.bf16.msra.mxu1 %v9976_v33 }
 0x407   : > { %v5411_v44 = vpop.f32.mrb[20].mxu1  ;;  %v5172_v29 = vpop.f32.mrb[53].mxu0  ;;  %10014 = vmatprep.subr.bf16.mxu1 %v14653_v39 }
 0x408   : > { %v13137_v50 = vadd.f32 %v5411_v44, %v13054_v2  ;;  %v5413_v14 = vpop.f32.mrb[21].mxu1  ;;  %v6515_v29 = vld [vmem:[%s10626_s0] sm:$0xff] }
 0x409   : > { %v6516_v14 = vld [vmem:[%s10626_s0 + $0x8] sm:$0xff] }
 0x40a   : > { %v13140_v56 = vpop.f32.mrb[54].mxu0 }
 0x40b   : > { %v5416_v16 = vpop.f32.mrb[22].mxu1  ;;  %v5177_v57 = vpop.f32.mrb[55].mxu0 }
 0x40c   : > { %v13143_v0 = vadd.f32 %v5416_v16, %v13057_v15  ;;  %v5418_v4 = vpop.f32.mrb[23].mxu1  ;;  %v9979_v57 = vpack.c.bf16 %v6516_v14, %v6515_v29 }
 0x40e   : > { %v13145_v61 = vpop.f32.mrb[56].mxu0  ;;  %9980 = vmatpush1.bf16.msra.mxu0 %v9979_v57 }
 0x40f   : > { %v5421_v25 = vpop.f32.mrb[24].mxu1  ;;  %v5182_v18 = vpop.f32.mrb[57].mxu0  ;;  %9981 = vmatprep.subr.bf16.mxu0 %v14653_v39 }
 0x410   : > { %v13148_v3 = vadd.f32 %v5421_v25, %v13059_v8  ;;  %v5423_v2 = vpop.f32.mrb[25].mxu1 }
 0x412   : > { %v13152_v36 = vpop.f32.mrb[58].mxu0 }
 0x413   : > { %v5426_v27 = vpop.f32.mrb[26].mxu1  ;;  %v5187_v19 = vpop.f32.mrb[59].mxu0 }
 0x414   : > { %v13155_v15 = vadd.f32 %v5426_v27, %v13063_v10  ;;  %v5428_v48 = vpop.f32.mrb[27].mxu1 }
 0x416   : > { %v13158_v8 = vpop.f32.mrb[60].mxu0 }
 0x417   : > { %v5431_v9 = vpop.f32.mrb[28].mxu1  ;;  %v5192_v55 = vpop.f32.mrb[61].mxu0 }
 0x418   : > { %v13161_v62 = vadd.f32 %v5431_v9, %v13066_v37  ;;  %v5433_v51 = vpop.f32.mrb[29].mxu1  ;;  %v13175_v37 = vld [vmem:[%s417_s18] ss:$0 sm:$0xff] }
 0x41a   : > { %v13163_v34 = vpop.f32.mrb[62].mxu0 }
 0x41b   : > { %v5436_v11 = vpop.f32.mrb[30].mxu1  ;;  %v5197_v22 = vpop.f32.mrb[63].mxu0 }
 0x41c   : > { %v13166_v10 = vadd.f32 %v5436_v11, %v13068_v31  ;;  %v5438_v46 = vpop.f32.mrb[31].mxu1 }
 0x41e   : > { %v5964_v38 = vpop.f32.mrb[64].mxu0 }
 0x41f   : > { %v5441_v20 = vpop.f32.mrb[32].mxu1  ;;  %v6123_v40 = vadd.f32 %v5964_v38, %v13075_v17  ;;  %v5966_v52 = vpop.f32.mrb[65].mxu0 }
 0x420   : > { %v13179_v31 = vadd.f32 %v5441_v20, %v13072_v1  ;;  %v5443_v24 = vpop.f32.mrb[33].mxu1 }
 0x421   : > { %v6162_v44 = vadd.f32 %v13175_v37, %v6123_v40 }
 0x422   : > { %v5969_v16 = vpop.f32.mrb[66].mxu0 }
 0x423   : > { %v6194_v4 = vmax.f32 %v6162_v44, 0.0  ;;  %v5446_v25 = vpop.f32.mrb[34].mxu1  ;;  %v6124_v18 = vadd.f32 %v5969_v16, %v13081_v53  ;;  %v5971_v2 = vpop.f32.mrb[67].mxu0 }
 0x424   : > { %v13187_v17 = vadd.f32 %v5446_v25, %v13078_v58  ;;  %v5448_v23 = vpop.f32.mrb[35].mxu1  ;;  %v6519_v2 = vld [vmem:[%s10626_s0 + $0x20] sm:$0xff] }
 0x425   : > { %6227 = vst.msk [vmem:[#allocation4 + $0x28] sm:$0xff] %vm4539_vm3, %v6194_v4  ;;  %v6163_v1 = vadd.f32 %v13175_v37, %v6124_v18  ;;  %v6520_v23 = vld [vmem:[%s10626_s0 + $0x28] sm:$0xff] }
 0x426   : > { %v5974_v13 = vpop.f32.mrb[68].mxu0 }
 0x427   : > { %v6195_v49 = vmax.f32 %v6163_v1, 0.0  ;;  %v5451_v27 = vpop.f32.mrb[36].mxu1  ;;  %v6125_v19 = vadd.f32 %v5974_v13, %v13088_v54  ;;  %v5976_v53 = vpop.f32.mrb[69].mxu0 }
 0x428   : > { %v13194_v48 = vadd.f32 %v5451_v27, %v13085_v35  ;;  %v5453_v58 = vpop.f32.mrb[37].mxu1  ;;  %v9982_v35 = vpack.c.bf16 %v6518_v45, %v6517_v26  ;;  %v9985_v27 = vpack.c.bf16 %v6520_v23, %v6519_v2 }
 0x429   : > { %6228 = vst.msk [vmem:[#allocation4 + $0x30] sm:$0xff] %vm4539_vm3, %v6195_v49  ;;  %v6164_v9 = vadd.f32 %v13175_v37, %v6125_v19 }
 0x42a   : > { %v5979_v55 = vpop.f32.mrb[70].mxu0  ;;  %9983 = vmatpush1.bf16.msra.mxu0 %v9982_v35 }
 0x42b   : > { %v6196_v51 = vmax.f32 %v6164_v9, 0.0  ;;  %v5456_v11 = vpop.f32.mrb[38].mxu1  ;;  %v6126_v22 = vadd.f32 %v5979_v55, %v13094_v7  ;;  %v5981_v46 = vpop.f32.mrb[71].mxu0  ;;  %9984 = vmatprep.subr.bf16.mxu0 %v14653_v39 }
 0x42c   : > { %v13202_v33 = vadd.f32 %v5456_v11, %v13091_v63  ;;  %v5458_v54 = vpop.f32.mrb[39].mxu1  ;;  %v13204_v38 = vld [vmem:[#allocation4 + $0x28] sm:$0xff] }
 0x42d   : > { %6229 = vst.msk [vmem:[#allocation4 + $0x48] sm:$0xff] %vm4539_vm3, %v6196_v51  ;;  %v6165_v20 = vadd.f32 %v13175_v37, %v6126_v22  ;;  %6667 = vrot.lane.b32.xlu0 %v13204_v38, %s10482_s10 }
 0x42e   : > { %v5984_v40 = vpop.f32.mrb[72].mxu0  ;;  %9986 = vmatpush1.bf16.msra.mxu0 %v9985_v27 }
 0x42f   : > { %v6197_v7 = vmax.f32 %v6165_v20, 0.0  ;;  %v5461_v52 = vpop.f32.mrb[40].mxu1  ;;  %v6127_v24 = vadd.f32 %v5984_v40, %v13099_v30  ;;  %v5986_v63 = vpop.f32.mrb[73].mxu0  ;;  %9987 = vmatprep.subr.bf16.mxu0 %v14653_v39 }
 0x430   : > { %v13213_v44 = vadd.f32 %v5461_v52, %v13096_v59  ;;  %v5463_v29 = vpop.f32.mrb[41].mxu1  ;;  %v13215_v14 = vld [vmem:[#allocation4 + $0x30] sm:$0xff] }
 0x431   : > { %v6603_v16 = vld [vmem:[#allocation4 + $0x29] sm:$0xff]  ;;  %6230 = vst.msk [vmem:[#allocation4 + $0x50] sm:$0xff] %vm4539_vm3, %v6197_v7  ;;  %v6166_v57 = vadd.f32 %v13175_v37, %v6127_v24  ;;  %6669 = vrot.lane.b32.xlu1 %v13215_v14, %s10482_s10 }
 0x432   : > { %8950 = vmatprep.mubr.msk.f32.mxu1 %vm4539_vm3, %v6603_v16  ;;  %v5989_v30 = vpop.f32.mrb[74].mxu0  ;;  %v6521_v29 = vld [vmem:[%s10626_s0 + $0x30] sm:$0xff]  ;;  %v6522_v16 = vld [vmem:[%s10626_s0 + $0x38] sm:$0xff] }
 0x433   : > { %v6198_v4 = vmax.f32 %v6166_v57, 0.0  ;;  %v5466_v25 = vpop.f32.mrb[42].mxu1  ;;  %v6128_v18 = vadd.f32 %v5989_v30, %v13106_v28  ;;  %v5991_v59 = vpop.f32.mrb[75].mxu0 }
 0x434   : > { %v13226_v1 = vadd.f32 %v5466_v25, %v13103_v41  ;;  %v5468_v13 = vpop.f32.mrb[43].mxu1  ;;  %v13228_v49 = vld [vmem:[#allocation4 + $0x48] sm:$0xff] }
 0x435   : > { %6231 = vst.msk [vmem:[#allocation4 + $0x68] sm:$0xff] %vm4539_vm3, %v6198_v4  ;;  %v6167_v19 = vadd.f32 %v13175_v37, %v6128_v18  ;;  %6671 = vrot.lane.b32.xlu0 %v13228_v49, %s10482_s10  ;;  %v9988_v4 = vpack.c.bf16 %v6522_v16, %v6521_v29 }
 0x436   : > { %v5994_v53 = vpop.f32.mrb[76].mxu0 }
 0x437   : > { %v6199_v28 = vmax.f32 %v6167_v19, 0.0  ;;  %v5471_v58 = vpop.f32.mrb[44].mxu1  ;;  %v6129_v9 = vadd.f32 %v5994_v53, %v13112_v32  ;;  %v5996_v55 = vpop.f32.mrb[77].mxu0  ;;  %9989 = vmatpush1.bf16.msra.mxu0 %v9988_v4 }
 0x438   : > { %v13237_v41 = vadd.f32 %v5471_v58, %v13109_v21  ;;  %v5473_v51 = vpop.f32.mrb[45].mxu1  ;;  %v13239_v11 = vld [vmem:[#allocation4 + $0x50] sm:$0xff]  ;;  %9990 = vmatprep.subr.bf16.mxu0 %v14653_v39 }
 0x439   : > { %6232 = vst.msk [vmem:[#allocation4 + $0x70] sm:$0xff] %vm4539_vm3, %v6199_v28  ;;  %v6168_v22 = vadd.f32 %v13175_v37, %v6129_v9  ;;  %6673 = vrot.lane.b32.xlu1 %v13239_v11, %s10482_s10 }
 0x43a   : > { %v5999_v46 = vpop.f32.mrb[78].mxu0 }
 0x43b   : > { %v6200_v26 = vmax.f32 %v6168_v22, 0.0  ;;  %v5476_v32 = vpop.f32.mrb[46].mxu1  ;;  %v6130_v45 = vadd.f32 %v5999_v46, %v13117_v12  ;;  %v6001_v54 = vpop.f32.mrb[79].mxu0 }
 0x43c   : > { %v13247_v21 = vadd.f32 %v5476_v32, %v13114_v43  ;;  %v5478_v35 = vpop.f32.mrb[47].mxu1  ;;  %v13249_v20 = vld [vmem:[#allocation4 + $0x68] sm:$0xff]  ;;  %v6523_v54 = vld [vmem:[%s10626_s0 + $0x40] sm:$0xff] }
 0x43d   : > { %6233 = vst.msk [vmem:[#allocation4 + $0x88] sm:$0xff] %vm4539_vm3, %v6200_v26  ;;  %v6169_v40 = vadd.f32 %v13175_v37, %v6130_v45  ;;  %6675 = vrot.lane.b32.xlu0 %v13249_v20, %s10482_s10  ;;  %v6524_v35 = vld [vmem:[%s10626_s0 + $0x48] sm:$0xff] }
 0x43e   : > { %v6004_v7 = vpop.f32.mrb[80].mxu0 }
 0x43f   : > { %v6201_v52 = vmax.f32 %v6169_v40, 0.0  ;;  %v5481_v24 = vpop.f32.mrb[48].mxu1  ;;  %v6131_v63 = vadd.f32 %v6004_v7, %v13124_v5  ;;  %v6006_v12 = vpop.f32.mrb[81].mxu0 }
 0x440   : > { %v13259_v43 = vadd.f32 %v5481_v24, %v13121_v42  ;;  %v5483_v57 = vpop.f32.mrb[49].mxu1  ;;  %v13261_v30 = vld [vmem:[#allocation4 + $0x70] sm:$0xff] }
 0x441   : > { %6234 = vst.msk [vmem:[#allocation4 + $0x90] sm:$0xff] %vm4539_vm3, %v6201_v52  ;;  %v6170_v25 = vadd.f32 %v13175_v37, %v6131_v63  ;;  %6677 = vrot.lane.b32.xlu1 %v13261_v30, %s10482_s10  ;;  %v9991_v52 = vpack.c.bf16 %v6524_v35, %v6523_v54 }
 0x442   : > { %v6009_v18 = vpop.f32.mrb[82].mxu0 }
 0x443   : > { %v6202_v5 = vmax.f32 %v6170_v25, 0.0  ;;  %v5486_v59 = vpop.f32.mrb[50].mxu1  ;;  %v6132_v2 = vadd.f32 %v6009_v18, %v13130_v47  ;;  %v6011_v23 = vpop.f32.mrb[83].mxu0  ;;  %9992 = vmatpush1.bf16.msra.mxu0 %v9991_v52 }
 0x444   : > { %v13270_v42 = vadd.f32 %v5486_v59, %v13127_v60  ;;  %v5488_v13 = vpop.f32.mrb[51].mxu1  ;;  %v13272_v27 = vld [vmem:[#allocation4 + $0x88] sm:$0xff]  ;;  %9993 = vmatprep.subr.bf16.mxu0 %v14653_v39  ;;  %v6525_v23 = vld [vmem:[%s10626_s0 + $0x50] sm:$0xff] }
 0x445   : > { %6235 = vst.msk [vmem:[#allocation4 + $0xa8] sm:$0xff] %vm4539_vm3, %v6202_v5  ;;  %v6171_v19 = vadd.f32 %v13175_v37, %v6132_v2  ;;  %6679 = vrot.lane.b32.xlu0 %v13272_v27, %s10482_s10  ;;  %v6526_v13 = vld [vmem:[%s10626_s0 + $0x58] sm:$0xff] }
 0x446   : > { %v6014_v53 = vpop.f32.mrb[84].mxu0 }
 0x447   : > { %v6203_v28 = vmax.f32 %v6171_v19, 0.0  ;;  %v5491_v47 = vpop.f32.mrb[52].mxu1  ;;  %v6133_v58 = vadd.f32 %v6014_v53, %v13137_v50  ;;  %v6016_v9 = vpop.f32.mrb[85].mxu0 }
 0x448   : > { %v13280_v60 = vadd.f32 %v5491_v47, %v13134_v6  ;;  %v5493_v55 = vpop.f32.mrb[53].mxu1  ;;  %v13282_v51 = vld [vmem:[#allocation4 + $0x90] sm:$0xff] }
 0x449   : > { %6236 = vst.msk [vmem:[#allocation4 + $0xb0] sm:$0xff] %vm4539_vm3, %v6203_v28  ;;  %v6172_v22 = vadd.f32 %v13175_v37, %v6133_v58  ;;  %6681 = vrot.lane.b32.xlu1 %v13282_v51, %s10482_s10  ;;  %v9994_v28 = vpack.c.bf16 %v6526_v13, %v6525_v23 }
 0x44a   : > { %v6019_v46 = vpop.f32.mrb[86].mxu0 }
 0x44b   : > { %v6204_v26 = vmax.f32 %v6172_v22, 0.0  ;;  %v5496_v32 = vpop.f32.mrb[54].mxu1  ;;  %v6134_v45 = vadd.f32 %v6019_v46, %v13143_v0  ;;  %v6021_v50 = vpop.f32.mrb[87].mxu0  ;;  %9995 = vmatpush1.bf16.msra.mxu0 %v9994_v28 }
 0x44c   : > { %v13292_v6 = vadd.f32 %v5496_v32, %v13140_v56  ;;  %v5498_v40 = vpop.f32.mrb[55].mxu1  ;;  %v13294_v7 = vld [vmem:[#allocation4 + $0xa8] sm:$0xff]  ;;  %9996 = vmatprep.subr.bf16.mxu0 %v14653_v39 }
 0x44d   : > { %6237 = vst.msk [vmem:[#allocation4 + $0xc8] sm:$0xff] %vm4539_vm3, %v6204_v26  ;;  %v6173_v24 = vadd.f32 %v13175_v37, %v6134_v45  ;;  %6683 = vrot.lane.b32.xlu0 %v13294_v7, %s10482_s10 }
 0x44e   : > { %v6024_v63 = vpop.f32.mrb[88].mxu0 }
 0x44f   : > { %v6205_v0 = vmax.f32 %v6173_v24, 0.0  ;;  %v5501_v12 = vpop.f32.mrb[56].mxu1  ;;  %v6135_v56 = vadd.f32 %v6024_v63, %v13148_v3  ;;  %v6026_v29 = vpop.f32.mrb[89].mxu0 }
 0x450   : > { %v13303_v16 = vadd.f32 %v5501_v12, %v13145_v61  ;;  %v5503_v57 = vpop.f32.mrb[57].mxu1  ;;  %v13305_v4 = vld [vmem:[#allocation4 + $0xb0] sm:$0xff]  ;;  %v6528_v29 = vld [vmem:[%s10626_s0 + $0x68] sm:$0xff] }
 0x451   : > { %6238 = vst.msk [vmem:[#allocation4 + $0xd0] sm:$0xff] %vm4539_vm3, %v6205_v0  ;;  %v6174_v25 = vadd.f32 %v13175_v37, %v6135_v56  ;;  %6685 = vrot.lane.b32.xlu1 %v13305_v4, %s10482_s10 }
 0x452   : > { %v6029_v18 = vpop.f32.mrb[90].mxu0 }
 0x453   : > { %v6206_v5 = vmax.f32 %v6174_v25, 0.0  ;;  %v5506_v59 = vpop.f32.mrb[58].mxu1  ;;  %v6136_v3 = vadd.f32 %v6029_v18, %v13155_v15  ;;  %v6031_v2 = vpop.f32.mrb[91].mxu0 }
 0x454   : > { %v13315_v61 = vadd.f32 %v5506_v59, %v13152_v36  ;;  %v5508_v19 = vpop.f32.mrb[59].mxu1  ;;  %v13317_v53 = vld [vmem:[#allocation4 + $0xc8] sm:$0xff] }
 0x455   : > { %6239 = vst.msk [vmem:[#allocation4 + $0xe8] sm:$0xff] %vm4539_vm3, %v6206_v5  ;;  %v6175_v47 = vadd.f32 %v13175_v37, %v6136_v3  ;;  %6687 = vrot.lane.b32.xlu0 %v13317_v53, %s10482_s10 }
 0x456   : > { %v6034_v58 = vpop.f32.mrb[92].mxu0 }
 0x457   : > { %v6207_v15 = vmax.f32 %v6175_v47, 0.0  ;;  %v5511_v9 = vpop.f32.mrb[60].mxu1  ;;  %v6137_v55 = vadd.f32 %v6034_v58, %v13161_v62  ;;  %v6036_v22 = vpop.f32.mrb[93].mxu0 }
 0x458   : > { %v13326_v36 = vadd.f32 %v5511_v9, %v13158_v8  ;;  %v5513_v46 = vpop.f32.mrb[61].mxu1  ;;  %v13328_v26 = vld [vmem:[#allocation4 + $0xd0] sm:$0xff] }
 0x459   : > { %6240 = vst.msk [vmem:[#allocation4 + $0xf0] sm:$0xff] %vm4539_vm3, %v6207_v15  ;;  %v6176_v32 = vadd.f32 %v13175_v37, %v6137_v55  ;;  %6689 = vrot.lane.b32.xlu1 %v13328_v26, %s10482_s10  ;;  %v6529_v22 = vld [vmem:[%s10626_s0 + $0x70] sm:$0xff]  ;;  %v6530_v46 = vld [vmem:[%s10626_s0 + $0x78] sm:$0xff] }
 0x45a   : > { %v6039_v45 = vpop.f32.mrb[94].mxu0 }
 0x45b   : > { %v6208_v62 = vmax.f32 %v6176_v32, 0.0  ;;  %v5516_v50 = vpop.f32.mrb[62].mxu1  ;;  %v6138_v54 = vadd.f32 %v6039_v45, %v13166_v10  ;;  %v6041_v35 = vpop.f32.mrb[95].mxu0  ;;  %v6527_v10 = vld [vmem:[%s10626_s0 + $0x60] sm:$0xff] }
 0x45c   : > { %v13336_v8 = vadd.f32 %v5516_v50, %v13163_v34  ;;  %v13338_v40 = vld [vmem:[#allocation4 + $0xe8] sm:$0xff]  ;;  %v5518_v52 = vpop.f32.mrb[63].mxu1  ;;  %v9997_v34 = vpack.c.bf16 %v6528_v29, %v6527_v10 }
 0x45d   : > { %6241 = vst.msk [vmem:[#allocation4 + $0x108] sm:$0xff] %vm4539_vm3, %v6208_v62  ;;  %v6177_v24 = vadd.f32 %v13175_v37, %v6138_v54  ;;  %6691 = vrot.lane.b32.xlu0 %v13338_v40, %s10482_s10  ;;  %v6532_v10 = vld [vmem:[%s10626_s0 + $0x88] sm:$0xff] }
 0x45e   : > { %v6044_v63 = vpop.f32.mrb[96].mxu0  ;;  %9998 = vmatpush1.bf16.msra.mxu0 %v9997_v34 }
 0x45f   : > { %v6209_v0 = vmax.f32 %v6177_v24, 0.0  ;;  %v6139_v12 = vadd.f32 %v6044_v63, %v13179_v31  ;;  %v6046_v56 = vpop.f32.mrb[97].mxu0  ;;  %9999 = vmatprep.subr.bf16.mxu0 %v14653_v39 }
 0x460   : > { %v13347_v57 = vld [vmem:[#allocation4 + $0xf0] sm:$0xff]  ;;  %v6531_v56 = vld [vmem:[%s10626_s0 + $0x80] sm:$0xff] }
 0x461   : > { %6242 = vst.msk [vmem:[#allocation4 + $0x110] sm:$0xff] %vm4539_vm3, %v6209_v0  ;;  %v6178_v25 = vadd.f32 %v13175_v37, %v6139_v12  ;;  %6693 = vrot.lane.b32.xlu1 %v13347_v57, %s10482_s10  ;;  %v10003_v29 = vpack.c.bf16 %v6532_v10, %v6531_v56 }
 0x462   : > { %v6049_v18 = vpop.f32.mrb[98].mxu0 }
 0x463   : > { %v6210_v5 = vmax.f32 %v6178_v25, 0.0  ;;  %v6140_v59 = vadd.f32 %v6049_v18, %v13187_v17  ;;  %v6051_v3 = vpop.f32.mrb[99].mxu0 }
 0x464   : > { %v13355_v31 = vld [vmem:[#allocation4 + $0x108] sm:$0xff] }
 0x465   : > { %6243 = vst.msk [vmem:[#allocation4 + $0x128] sm:$0xff] %vm4539_vm3, %v6210_v5  ;;  %v6179_v2 = vadd.f32 %v13175_v37, %v6140_v59  ;;  %6695 = vrot.lane.b32.xlu0 %v13355_v31, %s10482_s10 }
 0x466   : > { %v6054_v23 = vpop.f32.mrb[100].mxu0 }
 0x467   : > { %v6211_v13 = vmax.f32 %v6179_v2, 0.0  ;;  %v6141_v19 = vadd.f32 %v6054_v23, %v13194_v48  ;;  %v6056_v28 = vpop.f32.mrb[101].mxu0  ;;  %v10000_v48 = vpack.c.bf16 %v6530_v46, %v6529_v22  ;;  %v6534_v22 = vld [vmem:[%s10626_s0 + $0x98] sm:$0xff] }
 0x468   : > { %v13362_v17 = vld [vmem:[#allocation4 + $0x110] sm:$0xff] }
 0x469   : > { %6244 = vst.msk [vmem:[#allocation4 + $0x130] sm:$0xff] %vm4539_vm3, %v6211_v13  ;;  %v6180_v47 = vadd.f32 %v13175_v37, %v6141_v19  ;;  %6697 = vrot.lane.b32.xlu1 %v13362_v17, %s10482_s10  ;;  %10001 = vmatpush1.bf16.msra.mxu0 %v10000_v48 }
 0x46a   : > { %v6059_v58 = vpop.f32.mrb[102].mxu0  ;;  %10002 = vmatprep.subr.bf16.mxu0 %v14653_v39 }
 0x46b   : > { %v6212_v15 = vmax.f32 %v6180_v47, 0.0  ;;  %v6142_v9 = vadd.f32 %v6059_v58, %v13202_v33  ;;  %v6061_v55 = vpop.f32.mrb[103].mxu0 }
 0x46c   : > { %v13371_v32 = vld [vmem:[#allocation4 + $0x128] sm:$0xff]  ;;  %v6533_v55 = vld [vmem:[%s10626_s0 + $0x90] sm:$0xff] }
 0x46d   : > { %6245 = vst.msk [vmem:[#allocation4 + $0x148] sm:$0xff] %vm4539_vm3, %v6212_v15  ;;  %v6181_v45 = vadd.f32 %v13175_v37, %v6142_v9  ;;  %6699 = vrot.lane.b32.xlu0 %v13371_v32, %s10482_s10  ;;  %10004 = vmatpush1.bf16.msra.mxu0 %v10003_v29 }
 0x46e   : > { %v6064_v62 = vpop.f32.mrb[104].mxu0  ;;  %10005 = vmatprep.subr.bf16.mxu0 %v14653_v39 }
 0x46f   : > { %v6213_v50 = vmax.f32 %v6181_v45, 0.0  ;;  %v6143_v33 = vadd.f32 %v6064_v62, %v13213_v44  ;;  %v6066_v54 = vpop.f32.mrb[105].mxu0 }
 0x470   : > { %v13379_v35 = vld [vmem:[#allocation4 + $0x130] sm:$0xff] }
 0x471   : > { %6246 = vst.msk [vmem:[#allocation4 + $0x150] sm:$0xff] %vm4539_vm3, %v6213_v50  ;;  %v6182_v52 = vadd.f32 %v13175_v37, %v6143_v33  ;;  %6701 = vrot.lane.b32.xlu1 %v13379_v35, %s10482_s10 }
 0x472   : > { %v6069_v24 = vpop.f32.mrb[106].mxu0 }
 0x473   : > { %v6214_v63 = vmax.f32 %v6182_v52, 0.0  ;;  %v6144_v0 = vadd.f32 %v6069_v24, %v13226_v1  ;;  %v6071_v12 = vpop.f32.mrb[107].mxu0 }
 0x474   : > { %v13388_v44 = vld [vmem:[#allocation4 + $0x148] sm:$0xff] }
 0x475   : > { %6247 = vst.msk [vmem:[#allocation4 + $0x168] sm:$0xff] %vm4539_vm3, %v6214_v63  ;;  %v6183_v34 = vadd.f32 %v13175_v37, %v6144_v0  ;;  %6703 = vrot.lane.b32.xlu0 %v13388_v44, %s10482_s10 }
 0x476   : > { %v6074_v25 = vpop.f32.mrb[108].mxu0 }
 0x477   : > { %v6215_v18 = vmax.f32 %v6183_v34, 0.0  ;;  %v6145_v5 = vadd.f32 %v6074_v25, %v13237_v41  ;;  %v6076_v59 = vpop.f32.mrb[109].mxu0  ;;  %v6535_v25 = vld [vmem:[%s10626_s0 + $0xa0] sm:$0xff] }
 0x478   : > { %v13396_v1 = vld [vmem:[#allocation4 + $0x150] sm:$0xff] }
 0x479   : > { %6248 = vst.msk [vmem:[#allocation4 + $0x170] sm:$0xff] %vm4539_vm3, %v6215_v18  ;;  %v6184_v3 = vadd.f32 %v13175_v37, %v6145_v5  ;;  %6705 = vrot.lane.b32.xlu1 %v13396_v1, %s10482_s10  ;;  %v6536_v18 = vld [vmem:[%s10626_s0 + $0xa8] sm:$0xff] }
 0x47a   : > { %v6079_v2 = vpop.f32.mrb[110].mxu0 }
 0x47b   : > { %v6216_v23 = vmax.f32 %v6184_v3, 0.0  ;;  %v6146_v13 = vadd.f32 %v6079_v2, %v13247_v21  ;;  %v6081_v19 = vpop.f32.mrb[111].mxu0  ;;  %v10006_v21 = vpack.c.bf16 %v6534_v22, %v6533_v55  ;;  %v6538_v55 = vld [vmem:[%s10626_s0 + $0xb8] sm:$0xff] }
 0x47c   : > { %v13403_v41 = vld [vmem:[#allocation4 + $0x168] sm:$0xff] }
 0x47d   : > { %6249 = vst.msk [vmem:[#allocation4 + $0x188] sm:$0xff] %vm4539_vm3, %v6216_v23  ;;  %v6185_v28 = vadd.f32 %v13175_v37, %v6146_v13  ;;  %6707 = vrot.lane.b32.xlu0 %v13403_v41, %s10482_s10  ;;  %10007 = vmatpush1.bf16.msra.mxu0 %v10006_v21 }
 0x47e   : > { %v6084_v47 = vpop.f32.mrb[112].mxu0  ;;  %10008 = vmatprep.subr.bf16.mxu0 %v14653_v39 }
 0x47f   : > { %v6217_v58 = vmax.f32 %v6185_v28, 0.0  ;;  %v6147_v15 = vadd.f32 %v6084_v47, %v13259_v43  ;;  %v6086_v9 = vpop.f32.mrb[113].mxu0 }
 0x480   : > { %v13412_v46 = vld [vmem:[#allocation4 + $0x170] sm:$0xff] }
 0x481   : > { %6250 = vst.msk [vmem:[#allocation4 + $0x190] sm:$0xff] %vm4539_vm3, %v6217_v58  ;;  %v6186_v48 = vadd.f32 %v13175_v37, %v6147_v15  ;;  %6709 = vrot.lane.b32.xlu1 %v13412_v46, %s10482_s10  ;;  %v6537_v9 = vld [vmem:[%s10626_s0 + $0xb0] sm:$0xff] }
 0x482   : > { %v6089_v45 = vpop.f32.mrb[114].mxu0  ;;  %v10012_v22 = vpack.c.bf16 %v6538_v55, %v6537_v9  ;;  %v6291_v9 = vld [vmem:[#allocation4 + $0x8] sm:$0xff] }
 0x483   : > { %v6218_v62 = vmax.f32 %v6186_v48, 0.0  ;;  %v6148_v50 = vadd.f32 %v6089_v45, %v13270_v42  ;;  %v6091_v33 = vpop.f32.mrb[115].mxu0 }
 0x484   : > { %v13420_v43 = vld [vmem:[#allocation4 + $0x188] sm:$0xff] }
 0x485   : > { %6251 = vst.msk [vmem:[#allocation4 + $0x1a8] sm:$0xff] %vm4539_vm3, %v6218_v62  ;;  %v6187_v54 = vadd.f32 %v13175_v37, %v6148_v50  ;;  %6711 = vrot.lane.b32.xlu0 %v13420_v43, %s10482_s10 }
 0x486   : > { %v6094_v52 = vpop.f32.mrb[116].mxu0 }
 0x487   : > { %v6219_v24 = vmax.f32 %v6187_v54, 0.0  ;;  %v6149_v63 = vadd.f32 %v6094_v52, %v13280_v60  ;;  %v6096_v0 = vpop.f32.mrb[117].mxu0  ;;  %v10009_v60 = vpack.c.bf16 %v6536_v18, %v6535_v25  ;;  %v13476_v18 = vld [vmem:[#allocation4 + $0x27] sm:$0xff] }
 0x488   : > { %v13427_v42 = vld [vmem:[#allocation4 + $0x190] sm:$0xff]  ;;  %v9014_v0 = vld [vmem:[%s10626_s0 + $0x180] sm:$0xff] }
 0x489   : > { %6252 = vst.msk [vmem:[#allocation4 + $0x1b0] sm:$0xff] %vm4539_vm3, %v6219_v24  ;;  %v6188_v12 = vadd.f32 %v13175_v37, %v6149_v63  ;;  %6713 = vrot.lane.b32.xlu1 %v13427_v42, %s10482_s10  ;;  %10010 = vmatpush1.bf16.msra.mxu0 %v10009_v60  ;;  %v9017_v60 = vld [vmem:[%s10626_s0 + $0x198] sm:$0xff] }
 0x48a   : > { %v6099_v56 = vpop.f32.mrb[118].mxu0  ;;  %10011 = vmatprep.subr.bf16.mxu0 %v14653_v39 }
 0x48b   : > { %v6220_v10 = vmax.f32 %v6188_v12, 0.0  ;;  %v6150_v29 = vadd.f32 %v6099_v56, %v13292_v6  ;;  %v6101_v34 = vpop.f32.mrb[119].mxu0  ;;  %v9015_v12 = vld [vmem:[%s10626_s0 + $0x188] sm:$0xff] }
 0x48c   : > { %v13436_v5 = vld [vmem:[#allocation4 + $0x1a8] sm:$0xff] }
 0x48d   : > { %6253 = vst.msk [vmem:[#allocation4 + $0x1c8] sm:$0xff] %vm4539_vm3, %v6220_v10  ;;  %v6189_v59 = vadd.f32 %v13175_v37, %v6150_v29  ;;  %6715 = vrot.lane.b32.xlu0 %v13436_v5, %s10482_s10  ;;  %10013 = vmatpush1.bf16.msra.mxu0 %v10012_v22  ;;  %v6323_v56 = vld [vmem:[#allocation4 + $0x9] sm:$0xff]  ;;  %v10015_v29 = vpack.c.bf16 %v9015_v12, %v9014_v0  ;;  %v9022_v12 = vld [vmem:[%s10626_s0 + $0x1c0] sm:$0xff] }
 0x48e   : > { %v6104_v3 = vpop.f32.mrb[120].mxu0  ;;  %8982 = vmatprep.mubr.msk.f32.mxu0 %vm4539_vm3, %v6323_v56  ;;  %v13506_v22 = vld [vmem:[#allocation4 + $0x47] sm:$0xff] }
 0x48f   : > { %v6221_v2 = vmax.f32 %v6189_v59, 0.0  ;;  %v6151_v6 = vadd.f32 %v6104_v3, %v13303_v16  ;;  %v6106_v23 = vpop.f32.mrb[121].mxu0  ;;  %v9023_v56 = vld [vmem:[%s10626_s0 + $0x1c8] sm:$0xff] }
 0x490   : > { %v13444_v13 = vld [vmem:[#allocation4 + $0x1b0] sm:$0xff] }
 0x491   : > { %6254 = vst.msk [vmem:[#allocation4 + $0x1d0] sm:$0xff] %vm4539_vm3, %v6221_v2  ;;  %v6190_v19 = vadd.f32 %v13175_v37, %v6151_v6  ;;  %6717 = vrot.lane.b32.xlu1 %v13444_v13, %s10482_s10  ;;  %v13491_v23 = vld [vmem:[#allocation4 + $0x2f] sm:$0xff] }
 0x492   : > { %v6109_v28 = vpop.f32.mrb[122].mxu0 }
 0x493   : > { %v6222_v47 = vmax.f32 %v6190_v19, 0.0  ;;  %v6152_v58 = vadd.f32 %v6109_v28, %v13315_v61  ;;  %v6111_v15 = vpop.f32.mrb[123].mxu0 }
 0x494   : > { %v13453_v16 = vld [vmem:[#allocation4 + $0x1c8] sm:$0xff] }
 0x495   : > { %6255 = vst.msk [vmem:[#allocation4 + $0x1e8] sm:$0xff] %vm4539_vm3, %v6222_v47  ;;  %v6191_v21 = vadd.f32 %v13175_v37, %v6152_v58  ;;  %6719 = vrot.lane.b32.xlu0 %v13453_v16, %s10482_s10  ;;  %v9018_v47 = vld [vmem:[%s10626_s0 + $0x1a0] sm:$0xff]  ;;  %v9019_v58 = vld [vmem:[%s10626_s0 + $0x1a8] sm:$0xff] }
 0x496   : > { %v6114_v48 = vpop.f32.mrb[124].mxu0  ;;  %v13502_v15 = vld [vmem:[#allocation4 + $0x49] sm:$0xff] }
 0x497   : > { %v6223_v45 = vmax.f32 %v6191_v21, 0.0  ;;  %v6153_v61 = vadd.f32 %v6114_v48, %v13326_v36  ;;  %v6116_v62 = vpop.f32.mrb[125].mxu0  ;;  %v10021_v21 = vpack.c.bf16 %v9019_v58, %v9018_v47 }
 0x498   : > { %v13460_v50 = vld [vmem:[#allocation4 + $0x1d0] sm:$0xff]  ;;  %v9021_v62 = vld [vmem:[%s10626_s0 + $0x1b8] sm:$0xff] }
 0x499   : > { %6256 = vst.msk [vmem:[#allocation4 + $0x1f0] sm:$0xff] %vm4539_vm3, %v6223_v45  ;;  %v6192_v33 = vadd.f32 %v13175_v37, %v6153_v61  ;;  %6721 = vrot.lane.b32.xlu1 %v13460_v50, %s10482_s10  ;;  %v9020_v61 = vld [vmem:[%s10626_s0 + $0x1b0] sm:$0xff] }
 0x49a   : > { %v6119_v54 = vpop.f32.mrb[126].mxu0 }
 0x49b   : > { %v6224_v52 = vmax.f32 %v6192_v33, 0.0  ;;  %v6154_v24 = vadd.f32 %v6119_v54, %v13336_v8  ;;  %v6121_v63 = vpop.f32.mrb[127].mxu0  ;;  %v9016_v8 = vld [vmem:[%s10626_s0 + $0x190] sm:$0xff] }
 0x49c   : > { %v13469_v36 = vld [vmem:[#allocation4 + $0x1e8] sm:$0xff]  ;;  %v10018_v2 = vpack.c.bf16 %v9017_v60, %v9016_v8  ;;  %v13518_v33 = vld [vmem:[#allocation4 + $0x51] sm:$0xff]  ;;  %v10024_v63 = vpack.c.bf16 %v9021_v62, %v9020_v61 }
 0x49d   : > { %6257 = vst.msk [vmem:[#allocation4 + $0x208] sm:$0xff] %vm4539_vm3, %v6224_v52  ;;  %v6193_v10 = vadd.f32 %v13175_v37, %v6154_v24  ;;  %6723 = vrot.lane.b32.xlu0 %v13469_v36, %s10482_s10  ;;  %v13487_v37 = vld [vmem:[#allocation4 + $0x31] sm:$0xff] }
 0x49e   : > { %v6292_v54 = vld [vmem:[#allocation4 + $0x10] sm:$0xff] }
 0x49f   : > { %v6225_v34 = vmax.f32 %v6193_v10, 0.0  ;;  %v6668_v25 = vpop.permute.xlu0 %6667  ;;  %v13522_v24 = vld [vmem:[#allocation4 + $0x4f] sm:$0xff] }
 0x4a0   : > { %v6763_v59 = vsel %vm4539_vm3, %v13476_v18, %v6668_v25  ;;  %v13482_v3 = vld [vmem:[#allocation4 + $0x1f0] sm:$0xff]  ;;  %v10027_v25 = vpack.c.bf16 %v9023_v56, %v9022_v12 }
 0x4a1   : > { %6258 = vst.msk [vmem:[#allocation4 + $0x210] sm:$0xff] %vm4539_vm3, %v6225_v34  ;;  %6725 = vrot.lane.b32.xlu1 %v13482_v3, %s10482_s10  ;;  %6981 = vmatmul.mubr.f32.vlgmr.msra.gmra.mrb[64].mxu1 %v6763_v59  ;;  %v13532_v10 = vld [vmem:[#allocation4 + $0x69] sm:$0xff]  ;;  %v9025_v59 = vld [vmem:[%s10626_s0 + $0x1d8] sm:$0xff] }
 0x4a2   : > { %10016 = vmatpush1.bf16.msra.mxu1 %v10015_v29  ;;  %8951 = vmatprep.mubr.msk.f32.mxu1 %vm4539_vm3, %v13487_v37  ;;  %v13536_v34 = vld [vmem:[#allocation4 + $0x67] sm:$0xff]  ;;  %v9024_v60 = vld [vmem:[%s10626_s0 + $0x1d0] sm:$0xff] }
 0x4a3   : > { %v6670_v6 = vpop.permute.xlu1 %6669  ;;  %10017 = vmatprep.subr.bf16.mxu1 %v14653_v39  ;;  %v10030_v47 = vpack.c.bf16 %v9025_v59, %v9024_v60  ;;  %v13596_v60 = vld [vmem:[#allocation4 + $0xa7] sm:$0xff] }
 0x4a4   : > { %v13494_v19 = vld [vmem:[#allocation4 + $0x208] sm:$0xff]  ;;  %v6764_v28 = vsel %vm4539_vm3, %v13491_v23, %v6670_v6 }
 0x4a5   : > { %6727 = vrot.lane.b32.xlu0 %v13494_v19, %s10482_s10  ;;  %6986 = vmatmul.mubr.f32.gmra.mrb[66].mxu1 %v6764_v28  ;;  %v13551_v28 = vld [vmem:[#allocation4 + $0x6f] sm:$0xff] }
 0x4a6   : > { %8952 = vmatprep.mubr.msk.f32.mxu1 %vm4539_vm3, %v13502_v15  ;;  %10019 = vmatpush1.bf16.msra.mxu1 %v10018_v2  ;;  %v13547_v2 = vld [vmem:[#allocation4 + $0x71] sm:$0xff] }
 0x4a7   : > { %v6672_v55 = vpop.permute.xlu0 %6671  ;;  %10020 = vmatprep.subr.bf16.mxu1 %v14653_v39 }
 0x4a8   : > { %v13509_v48 = vld [vmem:[#allocation4 + $0x210] sm:$0xff]  ;;  %v6765_v45 = vsel %vm4539_vm3, %v13506_v22, %v6672_v55 }
 0x4a9   : > { %6729 = vrot.lane.b32.xlu1 %v13509_v48, %s10482_s10  ;;  %6387 = vrot.lane.b32.xlu0 %v6291_v9, %s10482_s10  ;;  %v9026_v9 = vld [vmem:[%s10626_s0 + $0x1e0] sm:$0xff]  ;;  %v13562_v55 = vld [vmem:[#allocation4 + $0x89] sm:$0xff] }
 0x4aa   : > { %6991 = vmatmul.mubr.f32.gmra.mrb[68].mxu1 %v6765_v45  ;;  %v13566_v45 = vld [vmem:[#allocation4 + $0x87] sm:$0xff] }
 0x4ab   : > { %8953 = vmatprep.mubr.msk.f32.mxu1 %vm4539_vm3, %v13518_v33  ;;  %v6674_v52 = vpop.permute.xlu1 %6673  ;;  %10022 = vmatpush1.bf16.msra.mxu1 %v10021_v21 }
 0x4ac   : > { %v6766_v0 = vsel %vm4539_vm3, %v13522_v24, %v6674_v52  ;;  %10023 = vmatprep.subr.bf16.mxu1 %v14653_v39  ;;  %v13577_v52 = vld [vmem:[#allocation4 + $0x91] sm:$0xff] }
 0x4ad   : > { %7591 = vrot.lane.b32.xlu1 %v13228_v49, %s10482_s10  ;;  %6389 = vrot.lane.b32.xlu0 %v6292_v54, %s10482_s10  ;;  %v9028_v54 = vld [vmem:[%s10626_s0 + $0x1f0] sm:$0xff] }
 0x4ae   : > { %6996 = vmatmul.mubr.f32.gmra.mrb[70].mxu1 %v6766_v0  ;;  %v13581_v0 = vld [vmem:[#allocation4 + $0x8f] sm:$0xff] }
 0x4af   : > { %8954 = vmatprep.mubr.msk.f32.mxu1 %vm4539_vm3, %v13532_v10  ;;  %v6676_v29 = vpop.permute.xlu0 %6675  ;;  %10025 = vmatpush1.bf16.msra.mxu1 %v10024_v63 }
 0x4b0   : > { %v6767_v8 = vsel %vm4539_vm3, %v13536_v34, %v6676_v29  ;;  %10026 = vmatprep.subr.bf16.mxu1 %v14653_v39  ;;  %v9030_v29 = vld [vmem:[%s10626_s0 + $0x200] sm:$0xff] }
 0x4b1   : > { %7593 = vrot.lane.b32.xlu1 %v13239_v11, %s10482_s10  ;;  %6391 = vrot.lane.b32.xlu0 %v13204_v38, %s10482_s10  ;;  %v9027_v38 = vld [vmem:[%s10626_s0 + $0x1e8] sm:$0xff] }
 0x4b2   : > { %7001 = vmatmul.mubr.f32.gmra.mrb[72].mxu1 %v6767_v8  ;;  %v10033_v61 = vpack.c.bf16 %v9027_v38, %v9026_v9  ;;  %v13611_v38 = vld [vmem:[#allocation4 + $0xaf] sm:$0xff] }
 0x4b3   : > { %8955 = vmatprep.mubr.msk.f32.mxu1 %vm4539_vm3, %v13547_v2  ;;  %v6678_v6 = vpop.permute.xlu1 %6677  ;;  %10028 = vmatpush1.bf16.msra.mxu1 %v10027_v25  ;;  %v13592_v25 = vld [vmem:[#allocation4 + $0xa9] sm:$0xff] }
 0x4b4   : > { %v6768_v58 = vsel %vm4539_vm3, %v13551_v28, %v6678_v6  ;;  %10029 = vmatprep.subr.bf16.mxu1 %v14653_v39 }
 0x4b5   : > { %7595 = vrot.lane.b32.xlu1 %v13249_v20, %s10482_s10  ;;  %6393 = vrot.lane.b32.xlu0 %v13215_v14, %s10482_s10  ;;  %v9029_v14 = vld [vmem:[%s10626_s0 + $0x1f8] sm:$0xff] }
 0x4b6   : > { %7006 = vmatmul.mubr.f32.gmra.mrb[74].mxu1 %v6768_v58  ;;  %v10036_v12 = vpack.c.bf16 %v9029_v14, %v9028_v54  ;;  %v13607_v58 = vld [vmem:[#allocation4 + $0xb1] sm:$0xff]  ;;  %v13622_v54 = vld [vmem:[#allocation4 + $0xc9] sm:$0xff] }
 0x4b7   : > { %8956 = vmatprep.mubr.msk.f32.mxu1 %vm4539_vm3, %v13562_v55  ;;  %v6680_v21 = vpop.permute.xlu0 %6679  ;;  %10031 = vmatpush1.bf16.msra.mxu1 %v10030_v47  ;;  %v9032_v47 = vld [vmem:[%s10626_s0 + $0x210] sm:$0xff] }
 0x4b8   : > { %v6769_v62 = vsel %vm4539_vm3, %v13566_v45, %v6680_v21  ;;  %10032 = vmatprep.subr.bf16.mxu1 %v14653_v39 }
 0x4b9   : > { %7597 = vrot.lane.b32.xlu1 %v13261_v30, %s10482_s10  ;;  %6395 = vrot.lane.b32.xlu0 %v13228_v49, %s10482_s10  ;;  %v9031_v49 = vld [vmem:[%s10626_s0 + $0x208] sm:$0xff] }
 0x4ba   : > { %7011 = vmatmul.mubr.f32.gmra.mrb[76].mxu1 %v6769_v62  ;;  %v10039_v59 = vpack.c.bf16 %v9031_v49, %v9030_v29  ;;  %v9034_v62 = vld [vmem:[%s10626_s0 + $0x220] sm:$0xff]  ;;  %v9036_v29 = vld [vmem:[%s10626_s0 + $0x230] sm:$0xff]  ;;  %v9037_v49 = vld [vmem:[%s10626_s0 + $0x238] sm:$0xff] }
 0x4bb   : > { %8957 = vmatprep.mubr.msk.f32.mxu1 %vm4539_vm3, %v13577_v52  ;;  %v6682_v63 = vpop.permute.xlu1 %6681  ;;  %10034 = vmatpush1.bf16.msra.mxu1 %v10033_v61 }
 0x4bc   : > { %v6770_v56 = vsel %vm4539_vm3, %v13581_v0, %v6682_v63  ;;  %10035 = vmatprep.subr.bf16.mxu1 %v14653_v39  ;;  %v13626_v63 = vld [vmem:[#allocation4 + $0xc7] sm:$0xff] }
 0x4bd   : > { %7599 = vrot.lane.b32.xlu1 %v13272_v27, %s10482_s10  ;;  %6397 = vrot.lane.b32.xlu0 %v13239_v11, %s10482_s10  ;;  %v9033_v11 = vld [vmem:[%s10626_s0 + $0x218] sm:$0xff] }
 0x4be   : > { %7016 = vmatmul.mubr.f32.gmra.mrb[78].mxu1 %v6770_v56  ;;  %v10042_v21 = vpack.c.bf16 %v9033_v11, %v9032_v47 }
 0x4bf   : > { %8958 = vmatprep.mubr.msk.f32.mxu1 %vm4539_vm3, %v13592_v25  ;;  %v6684_v8 = vpop.permute.xlu0 %6683  ;;  %10037 = vmatpush1.bf16.msra.mxu1 %v10036_v12 }
 0x4c0   : > { %v6771_v6 = vsel %vm4539_vm3, %v13596_v60, %v6684_v8  ;;  %10038 = vmatprep.subr.bf16.mxu1 %v14653_v39 }
 0x4c1   : > { %7601 = vrot.lane.b32.xlu1 %v13282_v51, %s10482_s10  ;;  %6399 = vrot.lane.b32.xlu0 %v13249_v20, %s10482_s10  ;;  %v9035_v20 = vld [vmem:[%s10626_s0 + $0x228] sm:$0xff] }
 0x4c2   : > { %7021 = vmatmul.mubr.f32.gmra.mrb[80].mxu1 %v6771_v6  ;;  %v10045_v12 = vpack.c.bf16 %v9035_v20, %v9034_v62  ;;  %v10048_v6 = vpack.c.bf16 %v9037_v49, %v9036_v29  ;;  %v13690_v29 = vld [vmem:[#allocation4 + $0x10f] sm:$0xff] }
 0x4c3   : > { %8959 = vmatprep.mubr.msk.f32.mxu1 %vm4539_vm3, %v13607_v58  ;;  %v6686_v9 = vpop.permute.xlu1 %6685  ;;  %10040 = vmatpush1.bf16.msra.mxu1 %v10039_v59  ;;  %v13641_v59 = vld [vmem:[#allocation4 + $0xcf] sm:$0xff] }
 0x4c4   : > { %v6772_v61 = vsel %vm4539_vm3, %v13611_v38, %v6686_v9  ;;  %10041 = vmatprep.subr.bf16.mxu1 %v14653_v39  ;;  %v13654_v9 = vld [vmem:[#allocation4 + $0xe7] sm:$0xff] }
 0x4c5   : > { %7603 = vrot.lane.b32.xlu1 %v13294_v7, %s10482_s10  ;;  %6401 = vrot.lane.b32.xlu0 %v13261_v30, %s10482_s10  ;;  %v13637_v30 = vld [vmem:[#allocation4 + $0xd1] sm:$0xff] }
 0x4c6   : > { %7026 = vmatmul.mubr.f32.gmra.mrb[82].mxu1 %v6772_v61  ;;  %v13666_v61 = vld [vmem:[#allocation4 + $0xef] sm:$0xff] }
 0x4c7   : > { %8960 = vmatprep.mubr.msk.f32.mxu1 %vm4539_vm3, %v13622_v54  ;;  %v6688_v14 = vpop.permute.xlu0 %6687  ;;  %10043 = vmatpush1.bf16.msra.mxu1 %v10042_v21 }
 0x4c8   : > { %v6773_v56 = vsel %vm4539_vm3, %v13626_v63, %v6688_v14  ;;  %10044 = vmatprep.subr.bf16.mxu1 %v14653_v39  ;;  %v13678_v14 = vld [vmem:[#allocation4 + $0x107] sm:$0xff] }
 0x4c9   : > { %7605 = vrot.lane.b32.xlu1 %v13305_v4, %s10482_s10  ;;  %6403 = vrot.lane.b32.xlu0 %v13272_v27, %s10482_s10  ;;  %v13650_v27 = vld [vmem:[#allocation4 + $0xe9] sm:$0xff] }
 0x4ca   : > { %7031 = vmatmul.mubr.f32.gmra.mrb[84].mxu1 %v6773_v56 }
 0x4cb   : > { %8961 = vmatprep.mubr.msk.f32.mxu1 %vm4539_vm3, %v13637_v30  ;;  %v6690_v8 = vpop.permute.xlu1 %6689  ;;  %10046 = vmatpush1.bf16.msra.mxu1 %v10045_v12 }
 0x4cc   : > { %v6774_v47 = vsel %vm4539_vm3, %v13641_v59, %v6690_v8  ;;  %10047 = vmatprep.subr.bf16.mxu1 %v14653_v39  ;;  %v13662_v39 = vld [vmem:[#allocation4 + $0xf1] sm:$0xff] }
 0x4cd   : > { %7607 = vrot.lane.b32.xlu1 %v13317_v53, %s10482_s10  ;;  %6405 = vrot.lane.b32.xlu0 %v13282_v51, %s10482_s10 }
 0x4ce   : > { %7036 = vmatmul.mubr.f32.gmra.mrb[86].mxu1 %v6774_v47 }
 0x4cf   : > { %8962 = vmatprep.mubr.msk.f32.mxu1 %vm4539_vm3, %v13650_v27  ;;  %v6692_v11 = vpop.permute.xlu0 %6691  ;;  %10049 = vmatpush1.bf16.msra.mxu1 %v10048_v6  ;;  %v13702_v6 = vld [vmem:[#allocation4 + $0x127] sm:$0xff] }
 0x4d0   : > { %v6775_v21 = vsel %vm4539_vm3, %v13654_v9, %v6692_v11 }
 0x4d1   : > { %7609 = vrot.lane.b32.xlu1 %v13328_v26, %s10482_s10  ;;  %6407 = vrot.lane.b32.xlu0 %v13294_v7, %s10482_s10  ;;  %v13674_v7 = vld [vmem:[#allocation4 + $0x109] sm:$0xff] }
 0x4d2   : > { %7041 = vmatmul.mubr.f32.gmra.mrb[88].mxu1 %v6775_v21  ;;  %v13714_v21 = vld [vmem:[#allocation4 + $0x12f] sm:$0xff] }
 0x4d3   : > { %8963 = vmatprep.mubr.msk.f32.mxu1 %vm4539_vm3, %v13662_v39  ;;  %v6694_v51 = vpop.permute.xlu1 %6693 }
 0x4d4   : > { %v6776_v62 = vsel %vm4539_vm3, %v13666_v61, %v6694_v51 }
 0x4d5   : > { %7611 = vrot.lane.b32.xlu1 %v13338_v40, %s10482_s10  ;;  %6409 = vrot.lane.b32.xlu0 %v13305_v4, %s10482_s10  ;;  %v13686_v4 = vld [vmem:[#allocation4 + $0x111] sm:$0xff] }
 0x4d6   : > { %7046 = vmatmul.mubr.f32.gmra.mrb[90].mxu1 %v6776_v62 }
 0x4d7   : > { %8964 = vmatprep.mubr.msk.f32.mxu1 %vm4539_vm3, %v13674_v7  ;;  %v6696_v20 = vpop.permute.xlu0 %6695 }
 0x4d8   : > { %v6777_v12 = vsel %vm4539_vm3, %v13678_v14, %v6696_v20  ;;  %v13726_v20 = vld [vmem:[#allocation4 + $0x147] sm:$0xff] }
 0x4d9   : > { %7613 = vrot.lane.b32.xlu1 %v13347_v57, %s10482_s10  ;;  %6411 = vrot.lane.b32.xlu0 %v13317_v53, %s10482_s10  ;;  %v13698_v53 = vld [vmem:[#allocation4 + $0x129] sm:$0xff] }
 0x4da   : > { %7051 = vmatmul.mubr.f32.gmra.mrb[92].mxu1 %v6777_v12 }
 0x4db   : > { %8965 = vmatprep.mubr.msk.f32.mxu1 %vm4539_vm3, %v13686_v4  ;;  %v6698_v56 = vpop.permute.xlu1 %6697 }
 0x4dc   : > { %v6778_v49 = vsel %vm4539_vm3, %v13690_v29, %v6698_v56 }
 0x4dd   : > { %7615 = vrot.lane.b32.xlu1 %v13355_v31, %s10482_s10  ;;  %6413 = vrot.lane.b32.xlu0 %v13328_v26, %s10482_s10  ;;  %v13710_v26 = vld [vmem:[#allocation4 + $0x131] sm:$0xff] }
 0x4de   : > { %7056 = vmatmul.mubr.f32.gmra.mrb[94].mxu1 %v6778_v49  ;;  %v13738_v49 = vld [vmem:[#allocation4 + $0x14f] sm:$0xff] }
 0x4df   : > { %8966 = vmatprep.mubr.msk.f32.mxu1 %vm4539_vm3, %v13698_v53  ;;  %v6700_v8 = vpop.permute.xlu0 %6699 }
 0x4e0   : > { %v6779_v47 = vsel %vm4539_vm3, %v13702_v6, %v6700_v8 }
 0x4e1   : > { %7617 = vrot.lane.b32.xlu1 %v13362_v17, %s10482_s10  ;;  %6415 = vrot.lane.b32.xlu0 %v13338_v40, %s10482_s10  ;;  %v13722_v40 = vld [vmem:[#allocation4 + $0x149] sm:$0xff] }
 0x4e2   : > { %7061 = vmatmul.mubr.f32.gmra.mrb[96].mxu1 %v6779_v47 }
 0x4e3   : > { %8967 = vmatprep.mubr.msk.f32.mxu1 %vm4539_vm3, %v13710_v26  ;;  %v6702_v11 = vpop.permute.xlu1 %6701 }
 0x4e4   : > { %v6780_v51 = vsel %vm4539_vm3, %v13714_v21, %v6702_v11  ;;  %v13750_v11 = vld [vmem:[#allocation4 + $0x167] sm:$0xff] }
 0x4e5   : > { %7619 = vrot.lane.b32.xlu1 %v13371_v32, %s10482_s10  ;;  %6417 = vrot.lane.b32.xlu0 %v13347_v57, %s10482_s10  ;;  %v13734_v57 = vld [vmem:[#allocation4 + $0x151] sm:$0xff] }
 0x4e6   : > { %7066 = vmatmul.mubr.f32.gmra.mrb[98].mxu1 %v6780_v51 }
 0x4e7   : > { %8968 = vmatprep.mubr.msk.f32.mxu1 %vm4539_vm3, %v13722_v40  ;;  %v6704_v62 = vpop.permute.xlu0 %6703 }
 0x4e8   : > { %v6781_v12 = vsel %vm4539_vm3, %v13726_v20, %v6704_v62 }
 0x4e9   : > { %7621 = vrot.lane.b32.xlu1 %v13379_v35, %s10482_s10  ;;  %6419 = vrot.lane.b32.xlu0 %v13355_v31, %s10482_s10  ;;  %v13746_v31 = vld [vmem:[#allocation4 + $0x169] sm:$0xff] }
 0x4ea   : > { %7071 = vmatmul.mubr.f32.gmra.mrb[100].mxu1 %v6781_v12  ;;  %v13762_v12 = vld [vmem:[#allocation4 + $0x16f] sm:$0xff] }
 0x4eb   : > { %8969 = vmatprep.mubr.msk.f32.mxu1 %vm4539_vm3, %v13734_v57  ;;  %v6706_v56 = vpop.permute.xlu1 %6705 }
 0x4ec   : > { %v6782_v8 = vsel %vm4539_vm3, %v13738_v49, %v6706_v56 }
 0x4ed   : > { %7623 = vrot.lane.b32.xlu1 %v13388_v44, %s10482_s10  ;;  %6421 = vrot.lane.b32.xlu0 %v13362_v17, %s10482_s10  ;;  %v13758_v17 = vld [vmem:[#allocation4 + $0x171] sm:$0xff] }
 0x4ee   : > { %7076 = vmatmul.mubr.f32.gmra.mrb[102].mxu1 %v6782_v8 }
 0x4ef   : > { %8970 = vmatprep.mubr.msk.f32.mxu1 %vm4539_vm3, %v13746_v31  ;;  %v6708_v47 = vpop.permute.xlu0 %6707 }
 0x4f0   : > { %v6783_v51 = vsel %vm4539_vm3, %v13750_v11, %v6708_v47  ;;  %v13774_v47 = vld [vmem:[#allocation4 + $0x187] sm:$0xff] }
 0x4f1   : > { %7625 = vrot.lane.b32.xlu1 %v13396_v1, %s10482_s10  ;;  %6423 = vrot.lane.b32.xlu0 %v13371_v32, %s10482_s10  ;;  %v13770_v32 = vld [vmem:[#allocation4 + $0x189] sm:$0xff] }
 0x4f2   : > { %7081 = vmatmul.mubr.f32.gmra.mrb[104].mxu1 %v6783_v51  ;;  %14655 = vst [vmem:[#allocation45_spill] sm:$0xff] %v13770_v32 }
 0x4f3   : > { %8971 = vmatprep.mubr.msk.f32.mxu1 %vm4539_vm3, %v13758_v17  ;;  %v6710_v62 = vpop.permute.xlu1 %6709 }
 0x4f4   : > { %v6784_v56 = vsel %vm4539_vm3, %v13762_v12, %v6710_v62 }
 0x4f5   : > { %7627 = vrot.lane.b32.xlu1 %v13403_v41, %s10482_s10  ;;  %6425 = vrot.lane.b32.xlu0 %v13379_v35, %s10482_s10  ;;  %v13782_v35 = vld [vmem:[#allocation4 + $0x191] sm:$0xff] }
 0x4f6   : > { %7086 = vmatmul.mubr.f32.gmra.mrb[106].mxu1 %v6784_v56  ;;  %14656 = vst [vmem:[#allocation46_spill] sm:$0xff] %v13782_v35  ;;  %v13786_v56 = vld [vmem:[#allocation4 + $0x18f] sm:$0xff] }
 0x4f7   : > { %8972 = vmatprep.mubr.msk.f32.mxu1 %vm4539_vm3, %v13770_v32  ;;  %v6712_v8 = vpop.permute.xlu0 %6711 }
 0x4f8   : > { %v6785_v51 = vsel %vm4539_vm3, %v13774_v47, %v6712_v8 }
 0x4f9   : > { %7629 = vrot.lane.b32.xlu1 %v13412_v46, %s10482_s10  ;;  %6427 = vrot.lane.b32.xlu0 %v13388_v44, %s10482_s10  ;;  %v13794_v44 = vld [vmem:[#allocation4 + $0x1a9] sm:$0xff] }
 0x4fa   : > { %7091 = vmatmul.mubr.f32.gmra.mrb[108].mxu1 %v6785_v51  ;;  %14657 = vst [vmem:[#allocation47_spill] sm:$0xff] %v13794_v44  ;;  %v13798_v51 = vld [vmem:[#allocation4 + $0x1a7] sm:$0xff] }
 0x4fb   : > { %8973 = vmatprep.mubr.msk.f32.mxu1 %vm4539_vm3, %v13782_v35  ;;  %v6714_v62 = vpop.permute.xlu1 %6713 }
 0x4fc   : > { %v6786_v32 = vsel %vm4539_vm3, %v13786_v56, %v6714_v62  ;;  %v13810_v62 = vld [vmem:[#allocation4 + $0x1af] sm:$0xff] }
 0x4fd   : > { %7631 = vrot.lane.b32.xlu1 %v13420_v43, %s10482_s10  ;;  %6429 = vrot.lane.b32.xlu0 %v13396_v1, %s10482_s10  ;;  %v13806_v1 = vld [vmem:[#allocation4 + $0x1b1] sm:$0xff] }
 0x4fe   : > { %7096 = vmatmul.mubr.f32.gmra.mrb[110].mxu1 %v6786_v32  ;;  %14658 = vst [vmem:[#allocation48_spill] sm:$0xff] %v13806_v1 }
 0x4ff   : > { %8974 = vmatprep.mubr.msk.f32.mxu1 %vm4539_vm3, %v13794_v44  ;;  %v6716_v8 = vpop.permute.xlu0 %6715 }
 0x500   : > { %v6787_v35 = vsel %vm4539_vm3, %v13798_v51, %v6716_v8  ;;  %v13822_v8 = vld [vmem:[#allocation4 + $0x1c7] sm:$0xff] }
 0x501   : > { %7633 = vrot.lane.b32.xlu1 %v13427_v42, %s10482_s10  ;;  %6431 = vrot.lane.b32.xlu0 %v13403_v41, %s10482_s10  ;;  %v13818_v41 = vld [vmem:[#allocation4 + $0x1c9] sm:$0xff] }
 0x502   : > { %7101 = vmatmul.mubr.f32.gmra.mrb[112].mxu1 %v6787_v35  ;;  %14659 = vst [vmem:[#allocation49_spill] sm:$0xff] %v13818_v41 }
 0x503   : > { %8975 = vmatprep.mubr.msk.f32.mxu1 %vm4539_vm3, %v13806_v1  ;;  %v6718_v32 = vpop.permute.xlu1 %6717 }
 0x504   : > { %v6788_v44 = vsel %vm4539_vm3, %v13810_v62, %v6718_v32  ;;  %v13834_v32 = vld [vmem:[#allocation4 + $0x1cf] sm:$0xff] }
 0x505   : > { %7635 = vrot.lane.b32.xlu1 %v13436_v5, %s10482_s10  ;;  %6433 = vrot.lane.b32.xlu0 %v13412_v46, %s10482_s10  ;;  %v13830_v46 = vld [vmem:[#allocation4 + $0x1d1] sm:$0xff] }
 0x506   : > { %7106 = vmatmul.mubr.f32.gmra.mrb[114].mxu1 %v6788_v44  ;;  %14660 = vst [vmem:[#allocation50_spill] sm:$0xff] %v13830_v46 }
 0x507   : > { %8976 = vmatprep.mubr.msk.f32.mxu1 %vm4539_vm3, %v13818_v41  ;;  %v6720_v35 = vpop.permute.xlu0 %6719 }
 0x508   : > { %v6789_v1 = vsel %vm4539_vm3, %v13822_v8, %v6720_v35  ;;  %v13846_v35 = vld [vmem:[#allocation4 + $0x1e7] sm:$0xff] }
 0x509   : > { %7637 = vrot.lane.b32.xlu1 %v13444_v13, %s10482_s10  ;;  %6435 = vrot.lane.b32.xlu0 %v13420_v43, %s10482_s10  ;;  %v13842_v43 = vld [vmem:[#allocation4 + $0x1e9] sm:$0xff]  ;;  %14662 = vst [vmem:[#allocation52_spill] sm:$0xff] %v13846_v35 }
 0x50a   : > { %7111 = vmatmul.mubr.f32.gmra.mrb[116].mxu1 %v6789_v1  ;;  %14661 = vst [vmem:[#allocation51_spill] sm:$0xff] %v13842_v43 }
 0x50b   : > { %8977 = vmatprep.mubr.msk.f32.mxu1 %vm4539_vm3, %v13830_v46  ;;  %v6722_v44 = vpop.permute.xlu1 %6721 }
 0x50c   : > { %v6790_v41 = vsel %vm4539_vm3, %v13834_v32, %v6722_v44  ;;  %v13858_v44 = vld [vmem:[#allocation4 + $0x1ef] sm:$0xff] }
 0x50d   : > { %7639 = vrot.lane.b32.xlu1 %v13453_v16, %s10482_s10  ;;  %6437 = vrot.lane.b32.xlu0 %v13427_v42, %s10482_s10  ;;  %v13854_v42 = vld [vmem:[#allocation4 + $0x1f1] sm:$0xff]  ;;  %14664 = vst [vmem:[#allocation54_spill] sm:$0xff] %v13858_v44 }
 0x50e   : > { %7116 = vmatmul.mubr.f32.gmra.mrb[118].mxu1 %v6790_v41  ;;  %14663 = vst [vmem:[#allocation53_spill] sm:$0xff] %v13854_v42 }
 0x50f   : > { %8978 = vmatprep.mubr.msk.f32.mxu1 %vm4539_vm3, %v13842_v43  ;;  %v6724_v1 = vpop.permute.xlu0 %6723 }
 0x510   : > { %v6791_v46 = vsel %vm4539_vm3, %v13846_v35, %v6724_v1  ;;  %v13870_v1 = vld [vmem:[#allocation4 + $0x207] sm:$0xff] }
 0x511   : > { %7641 = vrot.lane.b32.xlu1 %v13460_v50, %s10482_s10  ;;  %6439 = vrot.lane.b32.xlu0 %v13436_v5, %s10482_s10  ;;  %v13866_v5 = vld [vmem:[#allocation4 + $0x209] sm:$0xff]  ;;  %14666 = vst [vmem:[#allocation56_spill] sm:$0xff] %v13870_v1 }
 0x512   : > { %7121 = vmatmul.mubr.f32.gmra.mrb[120].mxu1 %v6791_v46  ;;  %14665 = vst [vmem:[#allocation55_spill] sm:$0xff] %v13866_v5 }
 0x513   : > { %8979 = vmatprep.mubr.msk.f32.mxu1 %vm4539_vm3, %v13854_v42  ;;  %v6726_v41 = vpop.permute.xlu1 %6725 }
 0x514   : > { %v6792_v43 = vsel %vm4539_vm3, %v13858_v44, %v6726_v41  ;;  %v6259_v41 = vld [vmem:[#allocation4 + $0x7] sm:$0xff]  ;;  %v13882_v44 = vld [vmem:[#allocation4 + $0x20f] sm:$0xff] }
 0x515   : > { %7643 = vrot.lane.b32.xlu1 %v13469_v36, %s10482_s10  ;;  %6441 = vrot.lane.b32.xlu0 %v13444_v13, %s10482_s10  ;;  %v13878_v13 = vld [vmem:[#allocation4 + $0x211] sm:$0xff] }
 0x516   : > { %7126 = vmatmul.mubr.f32.gmra.mrb[122].mxu1 %v6792_v43  ;;  %14667 = vst [vmem:[#allocation57_spill] sm:$0xff] %v13878_v13 }
 0x517   : > { %8980 = vmatprep.mubr.msk.f32.mxu1 %vm4539_vm3, %v13866_v5  ;;  %v6728_v46 = vpop.permute.xlu0 %6727 }
 0x518   : > { %v6793_v42 = vsel %vm4539_vm3, %v13870_v1, %v6728_v46  ;;  %v6324_v1 = vld [vmem:[#allocation4 + $0x11] sm:$0xff] }
 0x519   : > { %7645 = vrot.lane.b32.xlu1 %v13482_v3, %s10482_s10  ;;  %6443 = vrot.lane.b32.xlu0 %v13453_v16, %s10482_s10  ;;  %v6260_v16 = vld [vmem:[#allocation4 + $0xf] sm:$0xff] }
 0x51a   : > { %7131 = vmatmul.mubr.f32.gmra.mrb[124].mxu1 %v6793_v42 }
 0x51b   : > { %8981 = vmatprep.mubr.msk.f32.mxu1 %vm4539_vm3, %v13878_v13  ;;  %v6730_v43 = vpop.permute.xlu1 %6729  ;;  %v6388_v5 = vpop.permute.xlu0 %6387 }
 0x51c   : > { %v6483_v35 = vsel %vm4539_vm3, %v6259_v41, %v6388_v5  ;;  %v6794_v46 = vsel %vm4539_vm3, %v13882_v44, %v6730_v43 }
 0x51d   : > { %7647 = vrot.lane.b32.xlu1 %v13494_v19, %s10482_s10  ;;  %7302 = vmatmul.mubr.f32.vlgmr.msra.gmra.mrb[128].mxu0 %v6483_v35  ;;  %v7525_v19 = vld [vmem:[#allocation4 + $0x228] sm:$0xff] }
 0x51e   : > { %7136 = vmatmul.mubr.f32.gmra.mrb[126].mxu1 %v6794_v46  ;;  %6445 = vrot.lane.b32.xlu0 %v13460_v50, %s10482_s10  ;;  %v6325_v50 = vld [vmem:[#allocation4 + $0x29] sm:$0xff] }
 0x51f   : > { %9038 = vmatprep.mubr.msk.f32.mxu1 %vm4539_vm3, %v13502_v15  ;;  %v7592_v42 = vpop.permute.xlu1 %7591  ;;  %v6390_v13 = vpop.permute.xlu0 %6389  ;;  %8983 = vmatprep.mubr.msk.f32.mxu0 %vm4539_vm3, %v6324_v1 }
 0x520   : > { %v7687_v5 = vsel %vm4539_vm3, %v13506_v22, %v7592_v42  ;;  %v6484_v41 = vsel %vm4539_vm3, %v6260_v16, %v6390_v13 }
 0x521   : > { %7649 = vrot.lane.b32.xlu1 %v13509_v48, %s10482_s10  ;;  %7307 = vmatmul.mubr.f32.gmra.mrb[130].mxu0 %v6484_v41 }
 0x522   : > { %7905 = vmatmul.mubr.f32.vlgmr.msra.gmra.mrb[128].mxu1 %v7687_v5  ;;  %6447 = vrot.lane.b32.xlu0 %v13469_v36, %s10482_s10  ;;  %v7526_v36 = vld [vmem:[#allocation4 + $0x230] sm:$0xff] }
 0x523   : > { %8984 = vmatprep.mubr.msk.f32.mxu0 %vm4539_vm3, %v6325_v50  ;;  %9039 = vmatprep.mubr.msk.f32.mxu1 %vm4539_vm3, %v13518_v33  ;;  %v7594_v35 = vpop.permute.xlu1 %7593  ;;  %v6392_v1 = vpop.permute.xlu0 %6391 }
 0x524   : > { %v7688_v13 = vsel %vm4539_vm3, %v13522_v24, %v7594_v35  ;;  %v6485_v48 = vsel %vm4539_vm3, %v13476_v18, %v6392_v1 }
 0x525   : > { %7651 = vrot.lane.b32.xlu1 %v7525_v19, %s10482_s10  ;;  %7312 = vmatmul.mubr.f32.gmra.mrb[132].mxu0 %v6485_v48 }
 0x526   : > { %7910 = vmatmul.mubr.f32.gmra.mrb[130].mxu1 %v7688_v13  ;;  %6449 = vrot.lane.b32.xlu0 %v13482_v3, %s10482_s10 }
 0x527   : > { %8985 = vmatprep.mubr.msk.f32.mxu0 %vm4539_vm3, %v13487_v37  ;;  %9040 = vmatprep.mubr.msk.f32.mxu1 %vm4539_vm3, %v13532_v10  ;;  %v7596_v43 = vpop.permute.xlu1 %7595  ;;  %v6394_v46 = vpop.permute.xlu0 %6393 }
 0x528   : > { %v6486_v16 = vsel %vm4539_vm3, %v13491_v23, %v6394_v46  ;;  %v7689_v18 = vsel %vm4539_vm3, %v13536_v34, %v7596_v43 }
 0x529   : > { %7653 = vrot.lane.b32.xlu1 %v7526_v36, %s10482_s10  ;;  %7317 = vmatmul.mubr.f32.gmra.mrb[134].mxu0 %v6486_v16 }
 0x52a   : > { %7915 = vmatmul.mubr.f32.gmra.mrb[132].mxu1 %v7689_v18  ;;  %8986 = vmatprep.mubr.msk.f32.mxu0 %vm4539_vm3, %v13502_v15 }
 0x52b   : > { %9041 = vmatprep.mubr.msk.f32.mxu1 %vm4539_vm3, %v13547_v2  ;;  %v7598_v3 = vpop.permute.xlu1 %7597  ;;  %v6396_v37 = vpop.permute.xlu0 %6395 }
 0x52c   : > { %v6487_v42 = vsel %vm4539_vm3, %v13506_v22, %v6396_v37  ;;  %v7690_v23 = vsel %vm4539_vm3, %v13551_v28, %v7598_v3 }
 0x52d   : > { %7322 = vmatmul.mubr.f32.gmra.mrb[136].mxu0 %v6487_v42 }
 0x52e   : > { %7920 = vmatmul.mubr.f32.gmra.mrb[134].mxu1 %v7690_v23  ;;  %8987 = vmatprep.mubr.msk.f32.mxu0 %vm4539_vm3, %v13518_v33 }
 0x52f   : > { %9042 = vmatprep.mubr.msk.f32.mxu1 %vm4539_vm3, %v13562_v55  ;;  %v7600_v15 = vpop.permute.xlu1 %7599  ;;  %v6398_v5 = vpop.permute.xlu0 %6397 }
 0x530   : > { %v6488_v41 = vsel %vm4539_vm3, %v13522_v24, %v6398_v5  ;;  %v7691_v50 = vsel %vm4539_vm3, %v13566_v45, %v7600_v15 }
 0x531   : > { %7327 = vmatmul.mubr.f32.gmra.mrb[138].mxu0 %v6488_v41 }
 0x532   : > { %7925 = vmatmul.mubr.f32.gmra.mrb[136].mxu1 %v7691_v50  ;;  %8988 = vmatprep.mubr.msk.f32.mxu0 %vm4539_vm3, %v13532_v10 }
 0x533   : > { %9043 = vmatprep.mubr.msk.f32.mxu1 %vm4539_vm3, %v13577_v52  ;;  %v7602_v22 = vpop.permute.xlu1 %7601  ;;  %v6400_v33 = vpop.permute.xlu0 %6399 }
 0x534   : > { %v6489_v19 = vsel %vm4539_vm3, %v13536_v34, %v6400_v33  ;;  %v7692_v35 = vsel %vm4539_vm3, %v13581_v0, %v7602_v22 }
 0x535   : > { %7332 = vmatmul.mubr.f32.gmra.mrb[140].mxu0 %v6489_v19 }
 0x536   : > { %7930 = vmatmul.mubr.f32.gmra.mrb[138].mxu1 %v7692_v35  ;;  %8989 = vmatprep.mubr.msk.f32.mxu0 %vm4539_vm3, %v13547_v2 }
 0x537   : > { %9044 = vmatprep.mubr.msk.f32.mxu1 %vm4539_vm3, %v13592_v25  ;;  %v7604_v24 = vpop.permute.xlu1 %7603  ;;  %v6402_v10 = vpop.permute.xlu0 %6401 }
 0x538   : > { %v6490_v1 = vsel %vm4539_vm3, %v13551_v28, %v6402_v10  ;;  %v7693_v13 = vsel %vm4539_vm3, %v13596_v60, %v7604_v24 }
 0x539   : > { %7337 = vmatmul.mubr.f32.gmra.mrb[142].mxu0 %v6490_v1 }
 0x53a   : > { %7935 = vmatmul.mubr.f32.gmra.mrb[140].mxu1 %v7693_v13  ;;  %8990 = vmatprep.mubr.msk.f32.mxu0 %vm4539_vm3, %v13562_v55 }
 0x53b   : > { %9045 = vmatprep.mubr.msk.f32.mxu1 %vm4539_vm3, %v13607_v58  ;;  %v7606_v34 = vpop.permute.xlu1 %7605  ;;  %v6404_v2 = vpop.permute.xlu0 %6403 }
 0x53c   : > { %v6491_v48 = vsel %vm4539_vm3, %v13566_v45, %v6404_v2  ;;  %v7694_v36 = vsel %vm4539_vm3, %v13611_v38, %v7606_v34 }
 0x53d   : > { %7342 = vmatmul.mubr.f32.gmra.mrb[144].mxu0 %v6491_v48 }
 0x53e   : > { %7940 = vmatmul.mubr.f32.gmra.mrb[142].mxu1 %v7694_v36  ;;  %8991 = vmatprep.mubr.msk.f32.mxu0 %vm4539_vm3, %v13577_v52 }
 0x53f   : > { %9046 = vmatprep.mubr.msk.f32.mxu1 %vm4539_vm3, %v13622_v54  ;;  %v7608_v28 = vpop.permute.xlu1 %7607  ;;  %v6406_v55 = vpop.permute.xlu0 %6405 }
 0x540   : > { %v6492_v43 = vsel %vm4539_vm3, %v13581_v0, %v6406_v55  ;;  %v7695_v46 = vsel %vm4539_vm3, %v13626_v63, %v7608_v28 }
 0x541   : > { %7347 = vmatmul.mubr.f32.gmra.mrb[146].mxu0 %v6492_v43 }
 0x542   : > { %7945 = vmatmul.mubr.f32.gmra.mrb[144].mxu1 %v7695_v46  ;;  %8992 = vmatprep.mubr.msk.f32.mxu0 %vm4539_vm3, %v13592_v25 }
 0x543   : > { %9047 = vmatprep.mubr.msk.f32.mxu1 %vm4539_vm3, %v13637_v30  ;;  %v7610_v45 = vpop.permute.xlu1 %7609  ;;  %v6408_v52 = vpop.permute.xlu0 %6407 }
 0x544   : > { %v6493_v16 = vsel %vm4539_vm3, %v13596_v60, %v6408_v52  ;;  %v7696_v18 = vsel %vm4539_vm3, %v13641_v59, %v7610_v45 }
 0x545   : > { %7352 = vmatmul.mubr.f32.gmra.mrb[148].mxu0 %v6493_v16 }
 0x546   : > { %7950 = vmatmul.mubr.f32.gmra.mrb[146].mxu1 %v7696_v18  ;;  %8993 = vmatprep.mubr.msk.f32.mxu0 %vm4539_vm3, %v13607_v58 }
 0x547   : > { %9048 = vmatprep.mubr.msk.f32.mxu1 %vm4539_vm3, %v13650_v27  ;;  %v7612_v0 = vpop.permute.xlu1 %7611  ;;  %v6410_v25 = vpop.permute.xlu0 %6409 }
 0x548   : > { %v6494_v3 = vsel %vm4539_vm3, %v13611_v38, %v6410_v25  ;;  %v7697_v37 = vsel %vm4539_vm3, %v13654_v9, %v7612_v0 }
 0x549   : > { %7357 = vmatmul.mubr.f32.gmra.mrb[150].mxu0 %v6494_v3 }
 0x54a   : > { %7955 = vmatmul.mubr.f32.gmra.mrb[148].mxu1 %v7697_v37  ;;  %8994 = vmatprep.mubr.msk.f32.mxu0 %vm4539_vm3, %v13622_v54 }
 0x54b   : > { %9049 = vmatprep.mubr.msk.f32.mxu1 %vm4539_vm3, %v13662_v39  ;;  %v7614_v60 = vpop.permute.xlu1 %7613  ;;  %v6412_v58 = vpop.permute.xlu0 %6411 }
 0x54c   : > { %v6495_v42 = vsel %vm4539_vm3, %v13626_v63, %v6412_v58  ;;  %v7698_v23 = vsel %vm4539_vm3, %v13666_v61, %v7614_v60 }
 0x54d   : > { %7362 = vmatmul.mubr.f32.gmra.mrb[152].mxu0 %v6495_v42 }
 0x54e   : > { %7960 = vmatmul.mubr.f32.gmra.mrb[150].mxu1 %v7698_v23  ;;  %8995 = vmatprep.mubr.msk.f32.mxu0 %vm4539_vm3, %v13637_v30 }
 0x54f   : > { %9050 = vmatprep.mubr.msk.f32.mxu1 %vm4539_vm3, %v13674_v7  ;;  %v7616_v38 = vpop.permute.xlu1 %7615  ;;  %v6414_v54 = vpop.permute.xlu0 %6413 }
 0x550   : > { %v6496_v15 = vsel %vm4539_vm3, %v13641_v59, %v6414_v54  ;;  %v7699_v5 = vsel %vm4539_vm3, %v13678_v14, %v7616_v38  ;;  %v14672_v54 = vld [vmem:[#allocation49_spill] sm:$0xff] }
 0x551   : > { %7367 = vmatmul.mubr.f32.gmra.mrb[154].mxu0 %v6496_v15 }
 0x552   : > { %7965 = vmatmul.mubr.f32.gmra.mrb[152].mxu1 %v7699_v5  ;;  %8996 = vmatprep.mubr.msk.f32.mxu0 %vm4539_vm3, %v13650_v27 }
 0x553   : > { %9051 = vmatprep.mubr.msk.f32.mxu1 %vm4539_vm3, %v13686_v4  ;;  %v7618_v63 = vpop.permute.xlu1 %7617  ;;  %v6416_v30 = vpop.permute.xlu0 %6415 }
 0x554   : > { %v6497_v41 = vsel %vm4539_vm3, %v13654_v9, %v6416_v30  ;;  %v7700_v50 = vsel %vm4539_vm3, %v13690_v29, %v7618_v63 }
 0x555   : > { %7372 = vmatmul.mubr.f32.gmra.mrb[156].mxu0 %v6497_v41 }
 0x556   : > { %7970 = vmatmul.mubr.f32.gmra.mrb[154].mxu1 %v7700_v50  ;;  %8997 = vmatprep.mubr.msk.f32.mxu0 %vm4539_vm3, %v13662_v39  ;;  %v14673_v50 = vld [vmem:[#allocation50_spill] sm:$0xff] }
 0x557   : > { %9052 = vmatprep.mubr.msk.f32.mxu1 %vm4539_vm3, %v13698_v53  ;;  %v7620_v59 = vpop.permute.xlu1 %7619  ;;  %v6418_v27 = vpop.permute.xlu0 %6417 }
 0x558   : > { %v6498_v22 = vsel %vm4539_vm3, %v13666_v61, %v6418_v27  ;;  %v7701_v33 = vsel %vm4539_vm3, %v13702_v6, %v7620_v59 }
 0x559   : > { %7377 = vmatmul.mubr.f32.gmra.mrb[158].mxu0 %v6498_v22 }
 0x55a   : > { %7975 = vmatmul.mubr.f32.gmra.mrb[156].mxu1 %v7701_v33  ;;  %8998 = vmatprep.mubr.msk.f32.mxu0 %vm4539_vm3, %v13674_v7 }
 0x55b   : > { %9053 = vmatprep.mubr.msk.f32.mxu1 %vm4539_vm3, %v13710_v26  ;;  %v7622_v9 = vpop.permute.xlu1 %7621  ;;  %v6420_v39 = vpop.permute.xlu0 %6419 }
 0x55c   : > { %v6499_v19 = vsel %vm4539_vm3, %v13678_v14, %v6420_v39  ;;  %v7702_v35 = vsel %vm4539_vm3, %v13714_v21, %v7622_v9  ;;  %v14674_v39 = vld [vmem:[#allocation51_spill] sm:$0xff] }
 0x55d   : > { %7382 = vmatmul.mubr.f32.gmra.mrb[160].mxu0 %v6499_v19 }
 0x55e   : > { %7980 = vmatmul.mubr.f32.gmra.mrb[158].mxu1 %v7702_v35  ;;  %8999 = vmatprep.mubr.msk.f32.mxu0 %vm4539_vm3, %v13686_v4 }
 0x55f   : > { %9054 = vmatprep.mubr.msk.f32.mxu1 %vm4539_vm3, %v13722_v40  ;;  %v7624_v61 = vpop.permute.xlu1 %7623  ;;  %v6422_v7 = vpop.permute.xlu0 %6421 }
 0x560   : > { %v6500_v24 = vsel %vm4539_vm3, %v13690_v29, %v6422_v7  ;;  %v7703_v10 = vsel %vm4539_vm3, %v13726_v20, %v7624_v61 }
 0x561   : > { %7387 = vmatmul.mubr.f32.gmra.mrb[162].mxu0 %v6500_v24 }
 0x562   : > { %7985 = vmatmul.mubr.f32.gmra.mrb[160].mxu1 %v7703_v10  ;;  %9000 = vmatprep.mubr.msk.f32.mxu0 %vm4539_vm3, %v13698_v53 }
 0x563   : > { %9055 = vmatprep.mubr.msk.f32.mxu1 %vm4539_vm3, %v13734_v57  ;;  %v7626_v14 = vpop.permute.xlu1 %7625  ;;  %v6424_v4 = vpop.permute.xlu0 %6423 }
 0x564   : > { %v6501_v1 = vsel %vm4539_vm3, %v13702_v6, %v6424_v4  ;;  %v7704_v13 = vsel %vm4539_vm3, %v13738_v49, %v7626_v14  ;;  %v14676_v14 = vld [vmem:[#allocation53_spill] sm:$0xff] }
 0x565   : > { %7392 = vmatmul.mubr.f32.gmra.mrb[164].mxu0 %v6501_v1 }
 0x566   : > { %7990 = vmatmul.mubr.f32.gmra.mrb[162].mxu1 %v7704_v13  ;;  %9001 = vmatprep.mubr.msk.f32.mxu0 %vm4539_vm3, %v13710_v26 }
 0x567   : > { %9056 = vmatprep.mubr.msk.f32.mxu1 %vm4539_vm3, %v13746_v31  ;;  %v7628_v29 = vpop.permute.xlu1 %7627  ;;  %v6426_v53 = vpop.permute.xlu0 %6425 }
 0x568   : > { %v6502_v34 = vsel %vm4539_vm3, %v13714_v21, %v6426_v53  ;;  %v7705_v2 = vsel %vm4539_vm3, %v13750_v11, %v7628_v29  ;;  %v14668_v21 = vld [vmem:[#allocation45_spill] sm:$0xff] }
 0x569   : > { %7397 = vmatmul.mubr.f32.gmra.mrb[166].mxu0 %v6502_v34 }
 0x56a   : > { %7995 = vmatmul.mubr.f32.gmra.mrb[164].mxu1 %v7705_v2  ;;  %9002 = vmatprep.mubr.msk.f32.mxu0 %vm4539_vm3, %v13722_v40  ;;  %v14678_v2 = vld [vmem:[#allocation55_spill] sm:$0xff] }
 0x56b   : > { %9057 = vmatprep.mubr.msk.f32.mxu1 %vm4539_vm3, %v13758_v17  ;;  %v7630_v6 = vpop.permute.xlu1 %7629  ;;  %v6428_v26 = vpop.permute.xlu0 %6427 }
 0x56c   : > { %v6503_v48 = vsel %vm4539_vm3, %v13726_v20, %v6428_v26  ;;  %v7706_v36 = vsel %vm4539_vm3, %v13762_v12, %v7630_v6  ;;  %v14669_v20 = vld [vmem:[#allocation46_spill] sm:$0xff] }
 0x56d   : > { %7402 = vmatmul.mubr.f32.gmra.mrb[168].mxu0 %v6503_v48  ;;  %v14679_v48 = vld [vmem:[#allocation56_spill] sm:$0xff] }
 0x56e   : > { %8000 = vmatmul.mubr.f32.gmra.mrb[166].mxu1 %v7706_v36  ;;  %9003 = vmatprep.mubr.msk.f32.mxu0 %vm4539_vm3, %v13734_v57 }
 0x56f   : > { %9058 = vmatprep.mubr.msk.f32.mxu1 %vm4539_vm3, %v14668_v21  ;;  %v7632_v40 = vpop.permute.xlu1 %7631  ;;  %v6430_v28 = vpop.permute.xlu0 %6429 }
 0x570   : > { %v6504_v55 = vsel %vm4539_vm3, %v13738_v49, %v6430_v28  ;;  %v7707_v43 = vsel %vm4539_vm3, %v13774_v47, %v7632_v40  ;;  %v14680_v28 = vld [vmem:[#allocation57_spill] sm:$0xff] }
 0x571   : > { %7407 = vmatmul.mubr.f32.gmra.mrb[170].mxu0 %v6504_v55 }
 0x572   : > { %8005 = vmatmul.mubr.f32.gmra.mrb[168].mxu1 %v7707_v43  ;;  %9004 = vmatprep.mubr.msk.f32.mxu0 %vm4539_vm3, %v13746_v31  ;;  %v14670_v31 = vld [vmem:[#allocation47_spill] sm:$0xff] }
 0x573   : > { %9059 = vmatprep.mubr.msk.f32.mxu1 %vm4539_vm3, %v14669_v20  ;;  %v7634_v57 = vpop.permute.xlu1 %7633  ;;  %v6432_v46 = vpop.permute.xlu0 %6431 }
 0x574   : > { %v14068_v45 = vpop.f32.mrb[64].mxu1  ;;  %v6505_v52 = vsel %vm4539_vm3, %v13750_v11, %v6432_v46  ;;  %v7708_v49 = vsel %vm4539_vm3, %v13786_v56, %v7634_v57  ;;  %v7557_v57 = vld [vmem:[#allocation4 + $0x229] sm:$0xff] }
 0x575   : > { %v6984_v16 = vpop.f32.mrb[65].mxu1  ;;  %7412 = vmatmul.mubr.f32.gmra.mrb[172].mxu0 %v6505_v52  ;;  %v7493_v52 = vld [vmem:[#allocation4 + $0x227] sm:$0xff] }
 0x576   : > { %8010 = vmatmul.mubr.f32.gmra.mrb[170].mxu1 %v7708_v49  ;;  %9005 = vmatprep.mubr.msk.f32.mxu0 %vm4539_vm3, %v13758_v17  ;;  %v14671_v17 = vld [vmem:[#allocation48_spill] sm:$0xff] }
 0x577   : > { %9060 = vmatprep.mubr.msk.f32.mxu1 %vm4539_vm3, %v14670_v31  ;;  %v7636_v18 = vpop.permute.xlu1 %7635  ;;  %v6434_v0 = vpop.permute.xlu0 %6433 }
 0x578   : > { %v14078_v25 = vpop.f32.mrb[66].mxu1  ;;  %v6506_v3 = vsel %vm4539_vm3, %v13762_v12, %v6434_v0  ;;  %v7709_v11 = vsel %vm4539_vm3, %v13798_v51, %v7636_v18 }
 0x579   : > { %v6989_v37 = vpop.f32.mrb[67].mxu1  ;;  %7417 = vmatmul.mubr.f32.gmra.mrb[174].mxu0 %v6506_v3 }
 0x57a   : > { %8015 = vmatmul.mubr.f32.gmra.mrb[172].mxu1 %v7709_v11  ;;  %9006 = vmatprep.mubr.msk.f32.mxu0 %vm4539_vm3, %v14668_v21  ;;  %v7494_v11 = vld [vmem:[#allocation4 + $0x22f] sm:$0xff] }
 0x57b   : > { %9061 = vmatprep.mubr.msk.f32.mxu1 %vm4539_vm3, %v14671_v17  ;;  %v7638_v60 = vpop.permute.xlu1 %7637  ;;  %v6436_v58 = vpop.permute.xlu0 %6435 }
 0x57c   : > { %v6507_v42 = vsel %vm4539_vm3, %v13774_v47, %v6436_v58  ;;  %v7710_v12 = vsel %vm4539_vm3, %v13810_v62, %v7638_v60 }
 0x57d   : > { %v14092_v23 = vpop.f32.mrb[68].mxu1  ;;  %7422 = vmatmul.mubr.f32.gmra.mrb[176].mxu0 %v6507_v42 }
 0x57e   : > { %v6994_v38 = vpop.f32.mrb[69].mxu1  ;;  %8020 = vmatmul.mubr.f32.gmra.mrb[174].mxu1 %v7710_v12  ;;  %9007 = vmatprep.mubr.msk.f32.mxu0 %vm4539_vm3, %v14669_v20 }
 0x57f   : > { %9062 = vmatprep.mubr.msk.f32.mxu1 %vm4539_vm3, %v14672_v54  ;;  %v7640_v15 = vpop.permute.xlu1 %7639  ;;  %v6438_v5 = vpop.permute.xlu0 %6437 }
 0x580   : > { %v6508_v63 = vsel %vm4539_vm3, %v13786_v56, %v6438_v5  ;;  %v7711_v47 = vsel %vm4539_vm3, %v13822_v8, %v7640_v15 }
 0x581   : > { %v14102_v30 = vpop.f32.mrb[70].mxu1  ;;  %7427 = vmatmul.mubr.f32.gmra.mrb[178].mxu0 %v6508_v63 }
 0x582   : > { %v6999_v41 = vpop.f32.mrb[71].mxu1  ;;  %8025 = vmatmul.mubr.f32.gmra.mrb[176].mxu1 %v7711_v47  ;;  %9008 = vmatprep.mubr.msk.f32.mxu0 %vm4539_vm3, %v14670_v31 }
 0x583   : > { %9063 = vmatprep.mubr.msk.f32.mxu1 %vm4539_vm3, %v14673_v50  ;;  %v7642_v59 = vpop.permute.xlu1 %7641  ;;  %v6440_v27 = vpop.permute.xlu0 %6439 }
 0x584   : > { %v6509_v22 = vsel %vm4539_vm3, %v13798_v51, %v6440_v27  ;;  %v7712_v56 = vsel %vm4539_vm3, %v13834_v32, %v7642_v59  ;;  %v14675_v51 = vld [vmem:[#allocation52_spill] sm:$0xff] }
 0x585   : > { %v14112_v33 = vpop.f32.mrb[72].mxu1  ;;  %7432 = vmatmul.mubr.f32.gmra.mrb[180].mxu0 %v6509_v22 }
 0x586   : > { %v7004_v9 = vpop.f32.mrb[73].mxu1  ;;  %8030 = vmatmul.mubr.f32.gmra.mrb[178].mxu1 %v7712_v56  ;;  %9009 = vmatprep.mubr.msk.f32.mxu0 %vm4539_vm3, %v14671_v17 }
 0x587   : > { %9064 = vmatprep.mubr.msk.f32.mxu1 %vm4539_vm3, %v14674_v39  ;;  %v7644_v19 = vpop.permute.xlu1 %7643  ;;  %v6442_v35 = vpop.permute.xlu0 %6441 }
 0x588   : > { %v6510_v61 = vsel %vm4539_vm3, %v13810_v62, %v6442_v35  ;;  %v7713_v7 = vsel %vm4539_vm3, %v14675_v51, %v7644_v19  ;;  %v14677_v62 = vld [vmem:[#allocation54_spill] sm:$0xff] }
 0x589   : > { %v14122_v24 = vpop.f32.mrb[74].mxu1  ;;  %7437 = vmatmul.mubr.f32.gmra.mrb[182].mxu0 %v6510_v61 }
 0x58a   : > { %v7009_v10 = vpop.f32.mrb[75].mxu1  ;;  %8035 = vmatmul.mubr.f32.gmra.mrb[180].mxu1 %v7713_v7  ;;  %9010 = vmatprep.mubr.msk.f32.mxu0 %vm4539_vm3, %v14672_v54 }
 0x58b   : > { %9065 = vmatprep.mubr.msk.f32.mxu1 %vm4539_vm3, %v14676_v14  ;;  %v7646_v4 = vpop.permute.xlu1 %7645  ;;  %v6444_v1 = vpop.permute.xlu0 %6443 }
 0x58c   : > { %v6511_v13 = vsel %vm4539_vm3, %v13822_v8, %v6444_v1  ;;  %v7714_v29 = vsel %vm4539_vm3, %v14677_v62, %v7646_v4 }
 0x58d   : > { %v14132_v53 = vpop.f32.mrb[76].mxu1  ;;  %7442 = vmatmul.mubr.f32.gmra.mrb[184].mxu0 %v6511_v13 }
 0x58e   : > { %v7014_v34 = vpop.f32.mrb[77].mxu1  ;;  %8040 = vmatmul.mubr.f32.gmra.mrb[182].mxu1 %v7714_v29  ;;  %9011 = vmatprep.mubr.msk.f32.mxu0 %vm4539_vm3, %v14673_v50 }
 0x58f   : > { %9066 = vmatprep.mubr.msk.f32.mxu1 %vm4539_vm3, %v14678_v2  ;;  %v7648_v6 = vpop.permute.xlu1 %7647 }
 0x590   : > { %v6446_v26 = vpop.permute.xlu0 %6445  ;;  %v7715_v36 = vsel %vm4539_vm3, %v14679_v48, %v7648_v6 }
 0x591   : > { %v14140_v8 = vpop.f32.mrb[78].mxu1  ;;  %v6512_v21 = vsel %vm4539_vm3, %v13834_v32, %v6446_v26 }
 0x592   : > { %v7019_v40 = vpop.f32.mrb[79].mxu1  ;;  %7447 = vmatmul.mubr.f32.gmra.mrb[186].mxu0 %v6512_v21  ;;  %8045 = vmatmul.mubr.f32.gmra.mrb[184].mxu1 %v7715_v36 }
 0x593   : > { %9012 = vmatprep.mubr.msk.f32.mxu0 %vm4539_vm3, %v14674_v39  ;;  %9067 = vmatprep.mubr.msk.f32.mxu1 %vm4539_vm3, %v14680_v28  ;;  %v7650_v55 = vpop.permute.xlu1 %7649 }
 0x594   : > { %v6448_v43 = vpop.permute.xlu0 %6447  ;;  %v7716_v20 = vsel %vm4539_vm3, %v13882_v44, %v7650_v55  ;;  %v7558_v44 = vld [vmem:[#allocation4 + $0x231] sm:$0xff] }
 0x595   : > { %v14150_v46 = vpop.f32.mrb[80].mxu1  ;;  %v6513_v32 = vsel %vm4539_vm3, %v14675_v51, %v6448_v43 }
 0x596   : > { %v7024_v49 = vpop.f32.mrb[81].mxu1  ;;  %7452 = vmatmul.mubr.f32.gmra.mrb[188].mxu0 %v6513_v32  ;;  %8050 = vmatmul.mubr.f32.gmra.mrb[186].mxu1 %v7716_v20 }
 0x597   : > { %9013 = vmatprep.mubr.msk.f32.mxu0 %vm4539_vm3, %v14676_v14  ;;  %v7652_v16 = vpop.permute.xlu1 %7651  ;;  %9068 = vmatprep.mubr.msk.f32.mxu1 %vm4539_vm3, %v7557_v57 }
 0x598   : > { %v6450_v31 = vpop.permute.xlu0 %6449  ;;  %v7717_v18 = vsel %vm4539_vm3, %v7493_v52, %v7652_v16 }
 0x599   : > { %v14158_v0 = vpop.f32.mrb[82].mxu1  ;;  %v6514_v3 = vsel %vm4539_vm3, %v14677_v62, %v6450_v31 }
 0x59a   : > { %v7029_v37 = vpop.f32.mrb[83].mxu1  ;;  %7457 = vmatmul.mubr.f32.gmra.mrb[190].mxu0 %v6514_v3  ;;  %8055 = vmatmul.mubr.f32.gmra.mrb[188].mxu1 %v7717_v18 }
 0x59b   : > { %v7654_v17 = vpop.permute.xlu1 %7653  ;;  %9069 = vmatprep.mubr.msk.f32.mxu1 %vm4539_vm3, %v7558_v44 }
 0x59c   : > { %v7718_v60 = vsel %vm4539_vm3, %v7494_v11, %v7654_v17  ;;  %v14215_v11 = vld [vmem:[%s437_s21] ss:$0 sm:$0xff] }
 0x59d   : > { %v14164_v58 = vpop.f32.mrb[84].mxu1 }
 0x59e   : > { %v7034_v42 = vpop.f32.mrb[85].mxu1  ;;  %8060 = vmatmul.mubr.f32.gmra.mrb[190].mxu1 %v7718_v60 }
 0x59f   : > { %v8136_v42 = vld [vmem:[#allocation3 + $0x28] sm:$0xff] }
 0x5a1   : > { %v14166_v12 = vpop.f32.mrb[86].mxu1 }
 0x5a2   : > { %v7039_v38 = vpop.f32.mrb[87].mxu1 }
 0x5a5   : > { %v14168_v54 = vpop.f32.mrb[88].mxu1 }
 0x5a6   : > { %v7044_v15 = vpop.f32.mrb[89].mxu1 }
 0x5a9   : > { %v14170_v5 = vpop.f32.mrb[90].mxu1 }
 0x5aa   : > { %v7049_v63 = vpop.f32.mrb[91].mxu1 }
 0x5ad   : > { %v14172_v47 = vpop.f32.mrb[92].mxu1 }
 0x5ae   : > { %v7054_v41 = vpop.f32.mrb[93].mxu1 }
 0x5b1   : > { %v14174_v50 = vpop.f32.mrb[94].mxu1 }
 0x5b2   : > { %v7059_v59 = vpop.f32.mrb[95].mxu1 }
 0x5b5   : > { %v14176_v27 = vpop.f32.mrb[96].mxu1 }
 0x5b6   : > { %v7064_v22 = vpop.f32.mrb[97].mxu1 }
 0x5b9   : > { %v14178_v56 = vpop.f32.mrb[98].mxu1 }
 0x5ba   : > { %v7069_v9 = vpop.f32.mrb[99].mxu1 }
 0x5bb   : > { %v8137_v9 = vld [vmem:[#allocation3 + $0x30] sm:$0xff] }
 0x5bd   : > { %v14180_v39 = vpop.f32.mrb[100].mxu1 }
 0x5be   : > { %v7074_v19 = vpop.f32.mrb[101].mxu1 }
 0x5c1   : > { %v14182_v35 = vpop.f32.mrb[102].mxu1 }
 0x5c2   : > { %v7079_v61 = vpop.f32.mrb[103].mxu1 }
 0x5c5   : > { %v14184_v51 = vpop.f32.mrb[104].mxu1 }
 0x5c6   : > { %v7084_v7 = vpop.f32.mrb[105].mxu1 }
 0x5c9   : > { %v14186_v10 = vpop.f32.mrb[106].mxu1 }
 0x5ca   : > { %v7089_v14 = vpop.f32.mrb[107].mxu1 }
 0x5cd   : > { %v14188_v4 = vpop.f32.mrb[108].mxu1 }
 0x5ce   : > { %v7094_v1 = vpop.f32.mrb[109].mxu1 }
 0x5d1   : > { %v14190_v13 = vpop.f32.mrb[110].mxu1 }
 0x5d2   : > { %v7099_v62 = vpop.f32.mrb[111].mxu1 }
 0x5d5   : > { %v14192_v29 = vpop.f32.mrb[112].mxu1 }
 0x5d6   : > { %v7104_v34 = vpop.f32.mrb[113].mxu1 }
 0x5d9   : > { %v14194_v2 = vpop.f32.mrb[114].mxu1 }
 0x5da   : > { %v7109_v6 = vpop.f32.mrb[115].mxu1 }
 0x5dd   : > { %v14196_v26 = vpop.f32.mrb[116].mxu1 }
 0x5de   : > { %v7114_v48 = vpop.f32.mrb[117].mxu1 }
 0x5df   : > { %v8138_v48 = vld [vmem:[#allocation3 + $0x48] sm:$0xff] }
 0x5e1   : > { %v14198_v36 = vpop.f32.mrb[118].mxu1 }
 0x5e2   : > { %v7119_v21 = vpop.f32.mrb[119].mxu1 }
 0x5e5   : > { %v14200_v40 = vpop.f32.mrb[120].mxu1 }
 0x5e6   : > { %v7124_v28 = vpop.f32.mrb[121].mxu1 }
 0x5e9   : > { %v14202_v55 = vpop.f32.mrb[122].mxu1 }
 0x5ea   : > { %v7129_v43 = vpop.f32.mrb[123].mxu1 }
 0x5ed   : > { %v14204_v20 = vpop.f32.mrb[124].mxu1 }
 0x5ee   : > { %v7134_v57 = vpop.f32.mrb[125].mxu1 }
 0x5f0   : > { %v7303_v32 = vpop.f32.mrb[128].mxu0 }
 0x5f1   : > { %v14206_v52 = vpop.f32.mrb[126].mxu1  ;;  %v7304_v49 = vadd.f32 %v7303_v32, %v14068_v45  ;;  %v7305_v16 = vpop.f32.mrb[129].mxu0 }
 0x5f2   : > { %v7139_v31 = vpop.f32.mrb[127].mxu1 }
 0x5f3   : > { %v8139_v31 = vld [vmem:[#allocation3 + $0x50] sm:$0xff] }
 0x5f4   : > { %v7308_v18 = vpop.f32.mrb[130].mxu0 }
 0x5f5   : > { %v7309_v44 = vadd.f32 %v7308_v18, %v14078_v25  ;;  %v7906_v3 = vpop.f32.mrb[128].mxu1  ;;  %v7310_v37 = vpop.f32.mrb[131].mxu0 }
 0x5f6   : > { %v8065_v17 = vadd.f32 %v7906_v3, %v7304_v49  ;;  %v7908_v60 = vpop.f32.mrb[129].mxu1 }
 0x5f8   : > { %v8104_v38 = vadd.f32 %v14215_v11, %v8065_v17  ;;  %v7313_v15 = vpop.f32.mrb[132].mxu0 }
 0x5f9   : > { %v7314_v45 = vadd.f32 %v7313_v15, %v14092_v23  ;;  %v7911_v63 = vpop.f32.mrb[130].mxu1  ;;  %v7315_v41 = vpop.f32.mrb[133].mxu0 }
 0x5fa   : > { %v8168_v59 = vadd.f32 %v8136_v42, %v8104_v38  ;;  %v8066_v25 = vadd.f32 %v7911_v63, %v7309_v44  ;;  %v7913_v22 = vpop.f32.mrb[131].mxu1  ;;  %v8140_v38 = vld [vmem:[#allocation3 + $0x68] sm:$0xff] }
 0x5fc   : > { %8200 = vst.msk [vmem:[#allocation3 + $0x28] sm:$0xff] %vm4539_vm3, %v8168_v59  ;;  %v8105_v19 = vadd.f32 %v14215_v11, %v8066_v25  ;;  %v7318_v61 = vpop.f32.mrb[134].mxu0 }
 0x5fd   : > { %v7319_v7 = vadd.f32 %v7318_v61, %v14102_v30  ;;  %v7916_v14 = vpop.f32.mrb[132].mxu1  ;;  %v7320_v1 = vpop.f32.mrb[135].mxu0 }
 0x5fe   : > { %v8169_v62 = vadd.f32 %v8137_v9, %v8105_v19  ;;  %v8067_v34 = vadd.f32 %v7916_v14, %v7314_v45  ;;  %v7918_v6 = vpop.f32.mrb[133].mxu1  ;;  %v8141_v9 = vld [vmem:[#allocation3 + $0x70] sm:$0xff] }
 0x5ff   : > { %v8142_v6 = vld [vmem:[#allocation3 + $0x88] sm:$0xff] }
 0x600   : > { %8201 = vst.msk [vmem:[#allocation3 + $0x30] sm:$0xff] %vm4539_vm3, %v8169_v62  ;;  %v8106_v23 = vadd.f32 %v14215_v11, %v8067_v34  ;;  %v7323_v21 = vpop.f32.mrb[136].mxu0 }
 0x601   : > { %v7324_v28 = vadd.f32 %v7323_v21, %v14112_v33  ;;  %v7921_v43 = vpop.f32.mrb[134].mxu1  ;;  %v7325_v57 = vpop.f32.mrb[137].mxu0 }
 0x602   : > { %v8170_v32 = vadd.f32 %v8138_v48, %v8106_v23  ;;  %v8068_v49 = vadd.f32 %v7921_v43, %v7319_v7  ;;  %v7923_v16 = vpop.f32.mrb[135].mxu1 }
 0x604   : > { %8202 = vst.msk [vmem:[#allocation3 + $0x48] sm:$0xff] %vm4539_vm3, %v8170_v32  ;;  %v8107_v30 = vadd.f32 %v14215_v11, %v8068_v49  ;;  %v7328_v18 = vpop.f32.mrb[138].mxu0  ;;  %v8143_v49 = vld [vmem:[#allocation3 + $0x90] sm:$0xff] }
 0x605   : > { %v7329_v44 = vadd.f32 %v7328_v18, %v14122_v24  ;;  %v7926_v3 = vpop.f32.mrb[136].mxu1  ;;  %v7330_v37 = vpop.f32.mrb[139].mxu0 }
 0x606   : > { %v8171_v17 = vadd.f32 %v8139_v31, %v8107_v30  ;;  %v8069_v60 = vadd.f32 %v7926_v3, %v7324_v28  ;;  %v7928_v42 = vpop.f32.mrb[137].mxu1 }
 0x608   : > { %8203 = vst.msk [vmem:[#allocation3 + $0x50] sm:$0xff] %vm4539_vm3, %v8171_v17  ;;  %v8108_v33 = vadd.f32 %v14215_v11, %v8069_v60  ;;  %v7333_v15 = vpop.f32.mrb[140].mxu0  ;;  %v8144_v17 = vld [vmem:[#allocation3 + $0xa8] sm:$0xff] }
 0x609   : > { %v7334_v45 = vadd.f32 %v7333_v15, %v14132_v53  ;;  %v7931_v63 = vpop.f32.mrb[138].mxu1  ;;  %v7335_v41 = vpop.f32.mrb[141].mxu0 }
 0x60a   : > { %v8172_v59 = vadd.f32 %v8140_v38, %v8108_v33  ;;  %v8070_v25 = vadd.f32 %v7931_v63, %v7329_v44  ;;  %v7933_v22 = vpop.f32.mrb[139].mxu1  ;;  %v8145_v41 = vld [vmem:[#allocation3 + $0xb0] sm:$0xff] }
 0x60c   : > { %8204 = vst.msk [vmem:[#allocation3 + $0x68] sm:$0xff] %vm4539_vm3, %v8172_v59  ;;  %v8109_v24 = vadd.f32 %v14215_v11, %v8070_v25  ;;  %v7338_v19 = vpop.f32.mrb[142].mxu0 }
 0x60d   : > { %v7339_v61 = vadd.f32 %v7338_v19, %v14140_v8  ;;  %v7936_v7 = vpop.f32.mrb[140].mxu1  ;;  %v7340_v14 = vpop.f32.mrb[143].mxu0 }
 0x60e   : > { %v8173_v1 = vadd.f32 %v8141_v9, %v8109_v24  ;;  %v8071_v62 = vadd.f32 %v7936_v7, %v7334_v45  ;;  %v7938_v34 = vpop.f32.mrb[141].mxu1  ;;  %v8146_v7 = vld [vmem:[#allocation3 + $0xc8] sm:$0xff] }
 0x610   : > { %8205 = vst.msk [vmem:[#allocation3 + $0x70] sm:$0xff] %vm4539_vm3, %v8173_v1  ;;  %v8110_v53 = vadd.f32 %v14215_v11, %v8071_v62  ;;  %v7343_v48 = vpop.f32.mrb[144].mxu0 }
 0x611   : > { %v7344_v23 = vadd.f32 %v7343_v48, %v14150_v46  ;;  %v7941_v21 = vpop.f32.mrb[142].mxu1  ;;  %v7345_v28 = vpop.f32.mrb[145].mxu0 }
 0x612   : > { %v8174_v43 = vadd.f32 %v8142_v6, %v8110_v53  ;;  %v8072_v57 = vadd.f32 %v7941_v21, %v7339_v61  ;;  %v7943_v32 = vpop.f32.mrb[143].mxu1 }
 0x614   : > { %8206 = vst.msk [vmem:[#allocation3 + $0x88] sm:$0xff] %vm4539_vm3, %v8174_v43  ;;  %v8111_v8 = vadd.f32 %v14215_v11, %v8072_v57  ;;  %v7348_v16 = vpop.f32.mrb[146].mxu0 }
 0x615   : > { %v7349_v31 = vadd.f32 %v7348_v16, %v14158_v0  ;;  %v7946_v30 = vpop.f32.mrb[144].mxu1  ;;  %v7350_v18 = vpop.f32.mrb[147].mxu0  ;;  %v8148_v16 = vld [vmem:[#allocation3 + $0xe8] sm:$0xff] }
 0x616   : > { %v8175_v44 = vadd.f32 %v8143_v49, %v8111_v8  ;;  %v8073_v3 = vadd.f32 %v7946_v30, %v7344_v23  ;;  %v7948_v37 = vpop.f32.mrb[145].mxu1  ;;  %v8147_v23 = vld [vmem:[#allocation3 + $0xd0] sm:$0xff] }
 0x618   : > { %8207 = vst.msk [vmem:[#allocation3 + $0x90] sm:$0xff] %vm4539_vm3, %v8175_v44  ;;  %v8112_v46 = vadd.f32 %v14215_v11, %v8073_v3  ;;  %v7353_v60 = vpop.f32.mrb[148].mxu0 }
 0x619   : > { %v7354_v42 = vadd.f32 %v7353_v60, %v14164_v58  ;;  %v7951_v38 = vpop.f32.mrb[146].mxu1  ;;  %v7355_v33 = vpop.f32.mrb[149].mxu0 }
 0x61a   : > { %v8176_v15 = vadd.f32 %v8144_v17, %v8112_v46  ;;  %v8074_v45 = vadd.f32 %v7951_v38, %v7349_v31  ;;  %v7953_v63 = vpop.f32.mrb[147].mxu1  ;;  %v8149_v46 = vld [vmem:[#allocation3 + $0xf0] sm:$0xff] }
 0x61c   : > { %8208 = vst.msk [vmem:[#allocation3 + $0xa8] sm:$0xff] %vm4539_vm3, %v8176_v15  ;;  %v8113_v0 = vadd.f32 %v14215_v11, %v8074_v45  ;;  %v7358_v59 = vpop.f32.mrb[150].mxu0 }
 0x61d   : > { %v7359_v25 = vadd.f32 %v7358_v59, %v14166_v12  ;;  %v7956_v22 = vpop.f32.mrb[148].mxu1  ;;  %v7360_v9 = vpop.f32.mrb[151].mxu0 }
 0x61e   : > { %v8177_v24 = vadd.f32 %v8145_v41, %v8113_v0  ;;  %v8075_v19 = vadd.f32 %v7956_v22, %v7354_v42  ;;  %v7958_v61 = vpop.f32.mrb[149].mxu1  ;;  %v8150_v41 = vld [vmem:[#allocation3 + $0x108] sm:$0xff] }
 0x61f   : > { %v8151_v61 = vld [vmem:[#allocation3 + $0x110] sm:$0xff] }
 0x620   : > { %8209 = vst.msk [vmem:[#allocation3 + $0xb0] sm:$0xff] %vm4539_vm3, %v8177_v24  ;;  %v8114_v58 = vadd.f32 %v14215_v11, %v8075_v19  ;;  %v7363_v14 = vpop.f32.mrb[152].mxu0 }
 0x621   : > { %v7364_v1 = vadd.f32 %v7363_v14, %v14168_v54  ;;  %v7961_v62 = vpop.f32.mrb[150].mxu1  ;;  %v7365_v34 = vpop.f32.mrb[153].mxu0 }
 0x622   : > { %v8178_v6 = vadd.f32 %v8146_v7, %v8114_v58  ;;  %v8076_v53 = vadd.f32 %v7961_v62, %v7359_v25  ;;  %v7963_v48 = vpop.f32.mrb[151].mxu1 }
 0x624   : > { %8210 = vst.msk [vmem:[#allocation3 + $0xc8] sm:$0xff] %vm4539_vm3, %v8178_v6  ;;  %v8115_v12 = vadd.f32 %v14215_v11, %v8076_v53  ;;  %v7368_v21 = vpop.f32.mrb[154].mxu0  ;;  %v8152_v53 = vld [vmem:[#allocation3 + $0x128] sm:$0xff] }
 0x625   : > { %v7369_v28 = vadd.f32 %v7368_v21, %v14170_v5  ;;  %v7966_v43 = vpop.f32.mrb[152].mxu1  ;;  %v7370_v57 = vpop.f32.mrb[155].mxu0 }
 0x626   : > { %v8179_v32 = vadd.f32 %v8147_v23, %v8115_v12  ;;  %v8077_v49 = vadd.f32 %v7966_v43, %v7364_v1  ;;  %v7968_v8 = vpop.f32.mrb[153].mxu1 }
 0x628   : > { %8211 = vst.msk [vmem:[#allocation3 + $0xd0] sm:$0xff] %vm4539_vm3, %v8179_v32  ;;  %v8116_v54 = vadd.f32 %v14215_v11, %v8077_v49  ;;  %v7373_v31 = vpop.f32.mrb[156].mxu0  ;;  %v8153_v32 = vld [vmem:[#allocation3 + $0x130] sm:$0xff] }
 0x629   : > { %v7374_v30 = vadd.f32 %v7373_v31, %v14172_v47  ;;  %v7971_v18 = vpop.f32.mrb[154].mxu1  ;;  %v7375_v44 = vpop.f32.mrb[157].mxu0 }
 0x62a   : > { %v8180_v3 = vadd.f32 %v8148_v16, %v8116_v54  ;;  %v8078_v37 = vadd.f32 %v7971_v18, %v7369_v28  ;;  %v7973_v17 = vpop.f32.mrb[155].mxu1  ;;  %v8154_v44 = vld [vmem:[#allocation3 + $0x148] sm:$0xff] }
 0x62c   : > { %8212 = vst.msk [vmem:[#allocation3 + $0xe8] sm:$0xff] %vm4539_vm3, %v8180_v3  ;;  %v8117_v5 = vadd.f32 %v14215_v11, %v8078_v37  ;;  %v7378_v60 = vpop.f32.mrb[158].mxu0 }
 0x62d   : > { %v7379_v42 = vadd.f32 %v7378_v60, %v14174_v50  ;;  %v7976_v38 = vpop.f32.mrb[156].mxu1  ;;  %v7380_v33 = vpop.f32.mrb[159].mxu0 }
 0x62e   : > { %v8181_v15 = vadd.f32 %v8149_v46, %v8117_v5  ;;  %v8079_v45 = vadd.f32 %v7976_v38, %v7374_v30  ;;  %v7978_v63 = vpop.f32.mrb[157].mxu1  ;;  %v8155_v38 = vld [vmem:[#allocation3 + $0x150] sm:$0xff] }
 0x630   : > { %8213 = vst.msk [vmem:[#allocation3 + $0xf0] sm:$0xff] %vm4539_vm3, %v8181_v15  ;;  %v8118_v47 = vadd.f32 %v14215_v11, %v8079_v45  ;;  %v7383_v0 = vpop.f32.mrb[160].mxu0 }
 0x631   : > { %v7384_v59 = vadd.f32 %v7383_v0, %v14176_v27  ;;  %v7981_v25 = vpop.f32.mrb[158].mxu1  ;;  %v7385_v22 = vpop.f32.mrb[161].mxu0 }
 0x632   : > { %v8182_v9 = vadd.f32 %v8150_v41, %v8118_v47  ;;  %v8080_v24 = vadd.f32 %v7981_v25, %v7379_v42  ;;  %v7983_v19 = vpop.f32.mrb[159].mxu1 }
 0x634   : > { %8214 = vst.msk [vmem:[#allocation3 + $0x108] sm:$0xff] %vm4539_vm3, %v8182_v9  ;;  %v8119_v50 = vadd.f32 %v14215_v11, %v8080_v24  ;;  %v7388_v7 = vpop.f32.mrb[162].mxu0 }
 0x635   : > { %v7389_v58 = vadd.f32 %v7388_v7, %v14178_v56  ;;  %v7986_v14 = vpop.f32.mrb[160].mxu1  ;;  %v7390_v1 = vpop.f32.mrb[163].mxu0  ;;  %v8157_v7 = vld [vmem:[#allocation3 + $0x170] sm:$0xff] }
 0x636   : > { %v8183_v62 = vadd.f32 %v8151_v61, %v8119_v50  ;;  %v8081_v34 = vadd.f32 %v7986_v14, %v7384_v59  ;;  %v7988_v6 = vpop.f32.mrb[161].mxu1  ;;  %v8156_v59 = vld [vmem:[#allocation3 + $0x168] sm:$0xff] }
 0x638   : > { %8215 = vst.msk [vmem:[#allocation3 + $0x110] sm:$0xff] %vm4539_vm3, %v8183_v62  ;;  %v8120_v27 = vadd.f32 %v14215_v11, %v8081_v34  ;;  %v7393_v48 = vpop.f32.mrb[164].mxu0 }
 0x639   : > { %v7394_v23 = vadd.f32 %v7393_v48, %v14180_v39  ;;  %v7991_v12 = vpop.f32.mrb[162].mxu1  ;;  %v7395_v21 = vpop.f32.mrb[165].mxu0 }
 0x63a   : > { %v8184_v28 = vadd.f32 %v8152_v53, %v8120_v27  ;;  %v8082_v43 = vadd.f32 %v7991_v12, %v7389_v58  ;;  %v7993_v57 = vpop.f32.mrb[163].mxu1  ;;  %v8158_v27 = vld [vmem:[#allocation3 + $0x188] sm:$0xff] }
 0x63c   : > { %8216 = vst.msk [vmem:[#allocation3 + $0x128] sm:$0xff] %vm4539_vm3, %v8184_v28  ;;  %v8121_v56 = vadd.f32 %v14215_v11, %v8082_v43  ;;  %v7398_v49 = vpop.f32.mrb[166].mxu0 }
 0x63d   : > { %v7399_v8 = vadd.f32 %v7398_v49, %v14182_v35  ;;  %v7996_v16 = vpop.f32.mrb[164].mxu1  ;;  %v7400_v54 = vpop.f32.mrb[167].mxu0 }
 0x63e   : > { %v8185_v31 = vadd.f32 %v8153_v32, %v8121_v56  ;;  %v8083_v30 = vadd.f32 %v7996_v16, %v7394_v23  ;;  %v7998_v18 = vpop.f32.mrb[165].mxu1  ;;  %v8159_v32 = vld [vmem:[#allocation3 + $0x190] sm:$0xff] }
 0x63f   : > { %v8160_v18 = vld [vmem:[#allocation3 + $0x1a8] sm:$0xff] }
 0x640   : > { %8217 = vst.msk [vmem:[#allocation3 + $0x130] sm:$0xff] %vm4539_vm3, %v8185_v31  ;;  %v8122_v39 = vadd.f32 %v14215_v11, %v8083_v30  ;;  %v7403_v3 = vpop.f32.mrb[168].mxu0 }
 0x641   : > { %v7404_v37 = vadd.f32 %v7403_v3, %v14184_v51  ;;  %v8001_v17 = vpop.f32.mrb[166].mxu1  ;;  %v7405_v46 = vpop.f32.mrb[169].mxu0 }
 0x642   : > { %v8186_v5 = vadd.f32 %v8154_v44, %v8122_v39  ;;  %v8084_v60 = vadd.f32 %v8001_v17, %v7399_v8  ;;  %v8003_v42 = vpop.f32.mrb[167].mxu1 }
 0x644   : > { %8218 = vst.msk [vmem:[#allocation3 + $0x148] sm:$0xff] %vm4539_vm3, %v8186_v5  ;;  %v8123_v35 = vadd.f32 %v14215_v11, %v8084_v60  ;;  %v7408_v33 = vpop.f32.mrb[170].mxu0  ;;  %v8161_v60 = vld [vmem:[#allocation3 + $0x1b0] sm:$0xff] }
 0x645   : > { %v7409_v15 = vadd.f32 %v7408_v33, %v14186_v10  ;;  %v8006_v45 = vpop.f32.mrb[168].mxu1  ;;  %v7410_v63 = vpop.f32.mrb[171].mxu0 }
 0x646   : > { %v8187_v41 = vadd.f32 %v8155_v38, %v8123_v35  ;;  %v8085_v47 = vadd.f32 %v8006_v45, %v7404_v37  ;;  %v8008_v0 = vpop.f32.mrb[169].mxu1 }
 0x648   : > { %8219 = vst.msk [vmem:[#allocation3 + $0x150] sm:$0xff] %vm4539_vm3, %v8187_v41  ;;  %v8124_v51 = vadd.f32 %v14215_v11, %v8085_v47  ;;  %v7413_v25 = vpop.f32.mrb[172].mxu0  ;;  %v8162_v41 = vld [vmem:[#allocation3 + $0x1c8] sm:$0xff] }
 0x649   : > { %v7414_v22 = vadd.f32 %v7413_v25, %v14188_v4  ;;  %v8011_v9 = vpop.f32.mrb[170].mxu1  ;;  %v7415_v24 = vpop.f32.mrb[173].mxu0 }
 0x64a   : > { %v8188_v19 = vadd.f32 %v8156_v59, %v8124_v51  ;;  %v8086_v61 = vadd.f32 %v8011_v9, %v7409_v15  ;;  %v8013_v50 = vpop.f32.mrb[171].mxu1  ;;  %v8163_v24 = vld [vmem:[#allocation3 + $0x1d0] sm:$0xff] }
 0x64c   : > { %8220 = vst.msk [vmem:[#allocation3 + $0x168] sm:$0xff] %vm4539_vm3, %v8188_v19  ;;  %v8125_v10 = vadd.f32 %v14215_v11, %v8086_v61  ;;  %v7418_v58 = vpop.f32.mrb[174].mxu0 }
 0x64d   : > { %v7419_v14 = vadd.f32 %v7418_v58, %v14190_v13  ;;  %v8016_v1 = vpop.f32.mrb[172].mxu1  ;;  %v7420_v62 = vpop.f32.mrb[175].mxu0 }
 0x64e   : > { %v8189_v34 = vadd.f32 %v8157_v7, %v8125_v10  ;;  %v8087_v6 = vadd.f32 %v8016_v1, %v7414_v22  ;;  %v8018_v53 = vpop.f32.mrb[173].mxu1  ;;  %v8164_v1 = vld [vmem:[#allocation3 + $0x1e8] sm:$0xff] }
 0x650   : > { %8221 = vst.msk [vmem:[#allocation3 + $0x170] sm:$0xff] %vm4539_vm3, %v8189_v34  ;;  %v8126_v4 = vadd.f32 %v14215_v11, %v8087_v6  ;;  %v7423_v48 = vpop.f32.mrb[176].mxu0 }
 0x651   : > { %v7424_v23 = vadd.f32 %v7423_v48, %v14192_v29  ;;  %v8021_v12 = vpop.f32.mrb[174].mxu1  ;;  %v7425_v21 = vpop.f32.mrb[177].mxu0 }
 0x652   : > { %v8190_v28 = vadd.f32 %v8158_v27, %v8126_v4  ;;  %v8088_v43 = vadd.f32 %v8021_v12, %v7419_v14  ;;  %v8023_v57 = vpop.f32.mrb[175].mxu1 }
 0x654   : > { %8222 = vst.msk [vmem:[#allocation3 + $0x188] sm:$0xff] %vm4539_vm3, %v8190_v28  ;;  %v8127_v13 = vadd.f32 %v14215_v11, %v8088_v43  ;;  %v7428_v56 = vpop.f32.mrb[178].mxu0 }
 0x655   : > { %v7429_v49 = vadd.f32 %v7428_v56, %v14194_v2  ;;  %v8026_v8 = vpop.f32.mrb[176].mxu1  ;;  %v7430_v16 = vpop.f32.mrb[179].mxu0  ;;  %v8166_v56 = vld [vmem:[#allocation3 + $0x208] sm:$0xff] }
 0x656   : > { %v8191_v54 = vadd.f32 %v8159_v32, %v8127_v13  ;;  %v8089_v31 = vadd.f32 %v8026_v8, %v7424_v23  ;;  %v8028_v30 = vpop.f32.mrb[177].mxu1  ;;  %v8165_v23 = vld [vmem:[#allocation3 + $0x1f0] sm:$0xff] }
 0x658   : > { %8223 = vst.msk [vmem:[#allocation3 + $0x190] sm:$0xff] %vm4539_vm3, %v8191_v54  ;;  %v8128_v29 = vadd.f32 %v14215_v11, %v8089_v31  ;;  %v7433_v44 = vpop.f32.mrb[180].mxu0  ;;  %v8167_v31 = vld [vmem:[#allocation3 + $0x210] sm:$0xff] }
 0x659   : > { %v7434_v39 = vadd.f32 %v7433_v44, %v14196_v26  ;;  %v8031_v3 = vpop.f32.mrb[178].mxu1  ;;  %v7435_v37 = vpop.f32.mrb[181].mxu0 }
 0x65a   : > { %v8192_v17 = vadd.f32 %v8160_v18, %v8128_v29  ;;  %v8090_v46 = vadd.f32 %v8031_v3, %v7429_v49  ;;  %v8033_v5 = vpop.f32.mrb[179].mxu1 }
 0x65c   : > { %8224 = vst.msk [vmem:[#allocation3 + $0x1a8] sm:$0xff] %vm4539_vm3, %v8192_v17  ;;  %v8129_v2 = vadd.f32 %v14215_v11, %v8090_v46  ;;  %v7438_v42 = vpop.f32.mrb[182].mxu0 }
 0x65d   : > { %v7439_v38 = vadd.f32 %v7438_v42, %v14198_v36  ;;  %v8036_v35 = vpop.f32.mrb[180].mxu1  ;;  %v7440_v33 = vpop.f32.mrb[183].mxu0 }
 0x65e   : > { %v8193_v15 = vadd.f32 %v8161_v60, %v8129_v2  ;;  %v8091_v45 = vadd.f32 %v8036_v35, %v7434_v39  ;;  %v8038_v63 = vpop.f32.mrb[181].mxu1 }
 0x660   : > { %8225 = vst.msk [vmem:[#allocation3 + $0x1b0] sm:$0xff] %vm4539_vm3, %v8193_v15  ;;  %v8130_v26 = vadd.f32 %v14215_v11, %v8091_v45  ;;  %v7443_v47 = vpop.f32.mrb[184].mxu0 }
 0x661   : > { %v7444_v0 = vadd.f32 %v7443_v47, %v14200_v40  ;;  %v8041_v59 = vpop.f32.mrb[182].mxu1  ;;  %v7445_v51 = vpop.f32.mrb[185].mxu0 }
 0x662   : > { %v8194_v25 = vadd.f32 %v8162_v41, %v8130_v26  ;;  %v8092_v22 = vadd.f32 %v8041_v59, %v7439_v38  ;;  %v8043_v9 = vpop.f32.mrb[183].mxu1 }
 0x664   : > { %8226 = vst.msk [vmem:[#allocation3 + $0x1c8] sm:$0xff] %vm4539_vm3, %v8194_v25  ;;  %v8131_v36 = vadd.f32 %v14215_v11, %v8092_v22 }
 0x665   : > { %v7448_v19 = vpop.f32.mrb[186].mxu0  ;;  %v8046_v61 = vpop.f32.mrb[184].mxu1 }
 0x666   : > { %v8195_v50 = vadd.f32 %v8163_v24, %v8131_v36  ;;  %v7449_v7 = vadd.f32 %v7448_v19, %v14202_v55  ;;  %v8093_v10 = vadd.f32 %v8046_v61, %v7444_v0  ;;  %v7450_v58 = vpop.f32.mrb[187].mxu0  ;;  %v8048_v14 = vpop.f32.mrb[185].mxu1 }
 0x668   : > { %8227 = vst.msk [vmem:[#allocation3 + $0x1d0] sm:$0xff] %vm4539_vm3, %v8195_v50  ;;  %v8132_v40 = vadd.f32 %v14215_v11, %v8093_v10 }
 0x669   : > { %v7453_v62 = vpop.f32.mrb[188].mxu0  ;;  %v8051_v34 = vpop.f32.mrb[186].mxu1 }
 0x66a   : > { %v8196_v6 = vadd.f32 %v8164_v1, %v8132_v40  ;;  %v7454_v53 = vadd.f32 %v7453_v62, %v14204_v20  ;;  %v8094_v27 = vadd.f32 %v8051_v34, %v7449_v7  ;;  %v7455_v4 = vpop.f32.mrb[189].mxu0  ;;  %v8053_v48 = vpop.f32.mrb[187].mxu1 }
 0x66c   : > { %8228 = vst.msk [vmem:[#allocation3 + $0x1e8] sm:$0xff] %vm4539_vm3, %v8196_v6  ;;  %v8133_v55 = vadd.f32 %v14215_v11, %v8094_v27 }
 0x66d   : > { %v7458_v12 = vpop.f32.mrb[190].mxu0  ;;  %v8056_v21 = vpop.f32.mrb[188].mxu1 }
 0x66e   : > { %v8197_v28 = vadd.f32 %v8165_v23, %v8133_v55  ;;  %v7459_v43 = vadd.f32 %v7458_v12, %v14206_v52  ;;  %v8095_v57 = vadd.f32 %v8056_v21, %v7454_v53  ;;  %v7460_v32 = vpop.f32.mrb[191].mxu0  ;;  %v8058_v13 = vpop.f32.mrb[189].mxu1 }
 0x670   : > { %8229 = vst.msk [vmem:[#allocation3 + $0x1f0] sm:$0xff] %vm4539_vm3, %v8197_v28  ;;  %v8134_v20 = vadd.f32 %v14215_v11, %v8095_v57 }
 0x671   : > { %v8061_v49 = vpop.f32.mrb[190].mxu1 }
 0x672   : > { %v8198_v8 = vadd.f32 %v8166_v56, %v8134_v20  ;;  %v8096_v16 = vadd.f32 %v8061_v49, %v7459_v43  ;;  %v8063_v54 = vpop.f32.mrb[191].mxu1 }
 0x674   : > { %8230 = vst.msk [vmem:[#allocation3 + $0x208] sm:$0xff] %vm4539_vm3, %v8198_v8  ;;  %v8135_v30 = vadd.f32 %v14215_v11, %v8096_v16 }
 0x676   : > { %v8199_v18 = vadd.f32 %v8167_v31, %v8135_v30 }
 0x678   : > { %8231 = vst.msk [vmem:[#allocation3 + $0x210] sm:$0xff] %vm4539_vm3, %v8199_v18 }
 0x679 PF: > { %p9071_p4 = scmp.ne.s32.totalorder %s10463_s27, 3 }
 0x67a   : > { %v8237_v52 = vld [vmem:[#allocation3 + $0x28] sm:$0xff] (!%p9071_p4)  ;;  %vm8269_vm4 = vcmask (!%p9071_p4), 523264   ;;  %v8238_v29 = vld [vmem:[#allocation3 + $0x30] sm:$0xff] (!%p9071_p4) }
 0x67b   : > { %8235 = sbr.rel (%p9071_p4) target bundleno = 1675 (0x68b), region = 60  ;;  %v8239_v11 = vld [vmem:[#allocation3 + $0x48] sm:$0xff] (!%p9071_p4)  ;;  %8270 = vst.msk [vmem:[%s10628_s26] sm:$0xff] (!%p9071_p4), %vm8269_vm4, %v8237_v52  ;;  %8271 = vst.msk [vmem:[%s10628_s26 + $0x8] sm:$0xff] (!%p9071_p4), %vm8269_vm4, %v8238_v29  ;;  %v8240_v44 = vld [vmem:[#allocation3 + $0x50] sm:$0xff] (!%p9071_p4) }
 0x67c   : > { %8272 = vst.msk [vmem:[%s10628_s26 + $0x10] sm:$0xff] (!%p9071_p4), %vm8269_vm4, %v8239_v11  ;;  %v8241_v39 = vld [vmem:[#allocation3 + $0x68] sm:$0xff] (!%p9071_p4)  ;;  %v8242_v3 = vld [vmem:[#allocation3 + $0x70] sm:$0xff] (!%p9071_p4)  ;;  %8273 = vst.msk [vmem:[%s10628_s26 + $0x18] sm:$0xff] (!%p9071_p4), %vm8269_vm4, %v8240_v44 }
 0x67d   : > { %8274 = vst.msk [vmem:[%s10628_s26 + $0x20] sm:$0xff] (!%p9071_p4), %vm8269_vm4, %v8241_v39  ;;  %8275 = vst.msk [vmem:[%s10628_s26 + $0x28] sm:$0xff] (!%p9071_p4), %vm8269_vm4, %v8242_v3  ;;  %v8243_v37 = vld [vmem:[#allocation3 + $0x88] sm:$0xff] (!%p9071_p4)  ;;  %v8244_v17 = vld [vmem:[#allocation3 + $0x90] sm:$0xff] (!%p9071_p4) }
 0x67e   : > { %v8245_v46 = vld [vmem:[#allocation3 + $0xa8] sm:$0xff] (!%p9071_p4)  ;;  %8276 = vst.msk [vmem:[%s10628_s26 + $0x30] sm:$0xff] (!%p9071_p4), %vm8269_vm4, %v8243_v37  ;;  %8277 = vst.msk [vmem:[%s10628_s26 + $0x38] sm:$0xff] (!%p9071_p4), %vm8269_vm4, %v8244_v17  ;;  %v8246_v5 = vld [vmem:[#allocation3 + $0xb0] sm:$0xff] (!%p9071_p4) }
 0x67f   : > { %8278 = vst.msk [vmem:[%s10628_s26 + $0x40] sm:$0xff] (!%p9071_p4), %vm8269_vm4, %v8245_v46  ;;  %v8247_v60 = vld [vmem:[#allocation3 + $0xc8] sm:$0xff] (!%p9071_p4)  ;;  %v8248_v2 = vld [vmem:[#allocation3 + $0xd0] sm:$0xff] (!%p9071_p4)  ;;  %8279 = vst.msk [vmem:[%s10628_s26 + $0x48] sm:$0xff] (!%p9071_p4), %vm8269_vm4, %v8246_v5 }
 0x680   : > { %8280 = vst.msk [vmem:[%s10628_s26 + $0x50] sm:$0xff] (!%p9071_p4), %vm8269_vm4, %v8247_v60  ;;  %8281 = vst.msk [vmem:[%s10628_s26 + $0x58] sm:$0xff] (!%p9071_p4), %vm8269_vm4, %v8248_v2  ;;  %v8249_v42 = vld [vmem:[#allocation3 + $0xe8] sm:$0xff] (!%p9071_p4)  ;;  %v8250_v38 = vld [vmem:[#allocation3 + $0xf0] sm:$0xff] (!%p9071_p4) }
 0x681   : > { %v8251_v35 = vld [vmem:[#allocation3 + $0x108] sm:$0xff] (!%p9071_p4)  ;;  %8282 = vst.msk [vmem:[%s10628_s26 + $0x60] sm:$0xff] (!%p9071_p4), %vm8269_vm4, %v8249_v42  ;;  %8283 = vst.msk [vmem:[%s10628_s26 + $0x68] sm:$0xff] (!%p9071_p4), %vm8269_vm4, %v8250_v38  ;;  %v8252_v33 = vld [vmem:[#allocation3 + $0x110] sm:$0xff] (!%p9071_p4) }
 0x682   : > { %8284 = vst.msk [vmem:[%s10628_s26 + $0x70] sm:$0xff] %vm8269_vm4, %v8251_v35  ;;  %v8253_v15 = vld [vmem:[#allocation3 + $0x128] sm:$0xff]  ;;  %v8254_v45 = vld [vmem:[#allocation3 + $0x130] sm:$0xff]  ;;  %8285 = vst.msk [vmem:[%s10628_s26 + $0x78] sm:$0xff] %vm8269_vm4, %v8252_v33 }
 0x683   : > { %8286 = vst.msk [vmem:[%s10628_s26 + $0x80] sm:$0xff] %vm8269_vm4, %v8253_v15  ;;  %8287 = vst.msk [vmem:[%s10628_s26 + $0x88] sm:$0xff] %vm8269_vm4, %v8254_v45  ;;  %v8255_v63 = vld [vmem:[#allocation3 + $0x148] sm:$0xff]  ;;  %v8256_v41 = vld [vmem:[#allocation3 + $0x150] sm:$0xff] }
 0x684   : > { %v8257_v26 = vld [vmem:[#allocation3 + $0x168] sm:$0xff]  ;;  %8288 = vst.msk [vmem:[%s10628_s26 + $0x90] sm:$0xff] %vm8269_vm4, %v8255_v63  ;;  %8289 = vst.msk [vmem:[%s10628_s26 + $0x98] sm:$0xff] %vm8269_vm4, %v8256_v41  ;;  %v8258_v47 = vld [vmem:[#allocation3 + $0x170] sm:$0xff] }
 0x685   : > { %8290 = vst.msk [vmem:[%s10628_s26 + $0xa0] sm:$0xff] %vm8269_vm4, %v8257_v26  ;;  %v8259_v0 = vld [vmem:[#allocation3 + $0x188] sm:$0xff]  ;;  %v8260_v59 = vld [vmem:[#allocation3 + $0x190] sm:$0xff]  ;;  %8291 = vst.msk [vmem:[%s10628_s26 + $0xa8] sm:$0xff] %vm8269_vm4, %v8258_v47 }
 0x686   : > { %8292 = vst.msk [vmem:[%s10628_s26 + $0xb0] sm:$0xff] %vm8269_vm4, %v8259_v0  ;;  %8293 = vst.msk [vmem:[%s10628_s26 + $0xb8] sm:$0xff] %vm8269_vm4, %v8260_v59  ;;  %v8261_v51 = vld [vmem:[#allocation3 + $0x1a8] sm:$0xff]  ;;  %v8262_v25 = vld [vmem:[#allocation3 + $0x1b0] sm:$0xff] }
 0x687   : > { %v8263_v22 = vld [vmem:[#allocation3 + $0x1c8] sm:$0xff]  ;;  %8294 = vst.msk [vmem:[%s10628_s26 + $0xc0] sm:$0xff] %vm8269_vm4, %v8261_v51  ;;  %8295 = vst.msk [vmem:[%s10628_s26 + $0xc8] sm:$0xff] %vm8269_vm4, %v8262_v25  ;;  %v8264_v9 = vld [vmem:[#allocation3 + $0x1d0] sm:$0xff] }
 0x688   : > { %8296 = vst.msk [vmem:[%s10628_s26 + $0xd0] sm:$0xff] %vm8269_vm4, %v8263_v22  ;;  %v8265_v24 = vld [vmem:[#allocation3 + $0x1e8] sm:$0xff]  ;;  %v8266_v36 = vld [vmem:[#allocation3 + $0x1f0] sm:$0xff]  ;;  %8297 = vst.msk [vmem:[%s10628_s26 + $0xd8] sm:$0xff] %vm8269_vm4, %v8264_v9 }
 0x689   : > { %8298 = vst.msk [vmem:[%s10628_s26 + $0xe0] sm:$0xff] %vm8269_vm4, %v8265_v24  ;;  %8299 = vst.msk [vmem:[%s10628_s26 + $0xe8] sm:$0xff] %vm8269_vm4, %v8266_v36  ;;  %v8267_v19 = vld [vmem:[#allocation3 + $0x208] sm:$0xff]  ;;  %v8268_v61 = vld [vmem:[#allocation3 + $0x210] sm:$0xff] }
 0x68a   : > { %8300 = vst.msk [vmem:[%s10628_s26 + $0xf0] sm:$0xff] %vm8269_vm4, %v8267_v19  ;;  %8301 = vst.msk [vmem:[%s10628_s26 + $0xf8] sm:$0xff] %vm8269_vm4, %v8268_v61 }
 0x68b PF: > { %s9086_s27 = sshll.u32 %s10467_s28, 12  ;;  %s8316_s15 = sshll.u32 %s10628_s26, 4  ;;  %s14383_s15 = int_to_ptr.vmem [resolvable:$true] %s8316_s15 }
 0x68c   : > { %s14380_s12 = scalar_lea.hbm %s14446_s7, %s9086_s27  ;;  %s14681_s29 = sand.u32 1, %s10455_s25  }
 0x68d   : > { %s14387_s30 = scalar_lea.sflag [#allocation6], %s14681_s29  ;;  %s10385_s17 = scalar_lea.vmem %s14383_s15, 4096 }
 0x68e   : > { %p10386_p5 = scmp.ne.s32.totalorder %s14383_s15, %s10385_s17  ;;  %s10484_s28 = smov [#allocation5]  }
 0x68f   : > { %s10389_s19 = sshll.u32 %s10484_s28, 4  ;;  %s10390_s19 = int_to_ptr.vmem [resolvable:$false] %s10389_s19 }
 0x690   : > { %p10387_p6 = pnand %p10386_p5, %p10576_p3  ;;  %s10391_s16 = scalar_lea.vmem %s10390_s19, 8192 }
 0x691   : > { %p10392_p8 = scmp.lt.s32.totalorder %s14383_s15, %s10390_s19  ;;  %p10393_p10 = scmp.lt.s32.totalorder %s10391_s16, %s10385_s17 }
 0x692   : > { %p10388_p7 = pneg %p10387_p6 }
 0x693   : > { %p10394_p11 = por %p10393_p10, %p10392_p8 }
 0x695   : > { %p10395_p12 = pnand %p10394_p11, %p10388_p7 }
 0x697   : > { %10398 = shalt.err (!%p10395_p12)
}
 0x698   : > { %s10399_s26 = scalar_lea.hbm %s14380_s12, 4096  ;;  %s10403_s10 = scalar_lea.hbm %s14446_s7, 12288 }
 0x699   : > { %p10400_p13 = scmp.ne.s32.totalorder %s14380_s12, %s10399_s26  ;;  %p10404_p2 = scmp.lt.u32.totalorder %s14380_s12, %s14446_s7 }
 0x69a   : > { %p10405_p4 = scmp.lt.u32.totalorder %s10403_s10, %s10399_s26  ;;  %p10407_p6 = scmp.lt.u32.totalorder %s10399_s26, %s14380_s12 }
 0x69b   : > { %p10401_p0 = pnand %p10400_p13, %p10576_p3 }
 0x69c   : > { %p10406_p5 = por %p10405_p4, %p10404_p2 }
 0x69d   : > { %p10402_p1 = pneg %p10401_p0 }
 0x69e   : > { %p10408_p7 = por %p10407_p6, %p10406_p5 }
 0x6a0   : > { %p10409_p8 = pnand %p10408_p7, %p10402_p1 }
 0x6a2   : > { %10412 = shalt.err (!%p10409_p8)
}
 0x6a3   : > { %s10485_s0 = smov 128   ;;  %s10486_s18 = smov 8  }
 0x6a4   : > { %10309 = dma.vmem_to_hbm [thread:$0]  (%p10576_p3), %s14383_s15, 4096, %s14380_s12, %s14387_s30, %s10485_s0, %s10485_s0, %s10486_s18  }
 0x6a5 PF: > { %p10315_p10 = scmp.ge.s32.totalorder %s10479_s8, 2  ;;  %s8331_s27 = sand.u32 1, %s10451_s24  }
 0x6a6   : > { %s8332_s22 = scalar_lea.sflag [#allocation6], %s8331_s27 }
 0x6a7   : > { %p10312_p11 = pnand %p10315_p10, %p10586_p9 }
 0x6a9   : > { %10446 = dma.done.wait (!%p10312_p11), %s8332_s22, 4096  }
 0x6aa   : > { %10448 = vsyncadd (!%p10312_p11), %s8332_s22, 4294963200  ;;  %s20_s8 = sadd.s32 1, %s10479_s8   ;;  %s14682_s21 = sld [smem:[#allocation8_spill]] }
 0x6ab   : > { %p17_p12 = scmp.ge.s32.totalorder %s20_s8, 14   ;;  %s14683_s26 = sld [smem:[#allocation13_spill]] }
 0x6ac   : > { %s14684_s27 = sld [smem:[#allocation9_spill]]  ;;  %s14685_s28 = sld [smem:[#allocation10_spill]] }
 0x6ad   : > { %s14686_s29 = sld [smem:[#allocation11_spill]]  ;;  %s14687_s30 = sld [smem:[#allocation12_spill]] }
 0x6ae   : > { %s14688_s24 = smov %s10455_s25  ;;  %19 = sbr.rel (!%p17_p12) target bundleno = 7 (0x7), region = 127 }
 0x6b0   : > { %s14689_s25 = smov %s14682_s21 }
 0x6b5   :  { %8337 = vsyncpa [#allocation6], 1 }
 0x6b6   :  { %8339 = vsyncpa [#allocation6 + $0x1], 1 }

</bundles_post_ra>
